<compile_context>
chip_gen: v5e
topology: v5e:2x2
jax: 0.10.0
libtpu: 0.0.40
codegen_flags: <defaults>
</compile_context>

<pallas_src>
import jax
import jax.numpy as jnp
from jax import lax
from jax.experimental import pallas as pl
from jax.experimental.pallas import tpu as pltpu


# --------------------------------------------------------------------------
# Fused kernel: 4x GATConv -> global_mean_pool -> fc1 -> relu -> fc2
# --------------------------------------------------------------------------
def fused_gat_kernel(x_ref, mask_ref, w_ref, asrc_ref, bias_ref, pool_ref,
                     fc1w_ref, fc1b_ref, fc2w_ref, fc2b_ref, out_ref):
    A = x_ref.shape[1]              # lane-padded augmented width (a_dst at lane A-1)

    h = x_ref[...]                  # f32 [N, A]
    for l in range(4):
        # one MXU pass yields both the projected features and a_dst:
        #   h_aug = [ x @ W  |  0-pad  |  x @ (W @ att_dst^T) ]   (last lane)
        h_aug = jnp.dot(h.astype(jnp.bfloat16), w_ref[l],
                        preferred_element_type=jnp.float32)          # [N, A]
        a_dst = h_aug[:, A - 1:A]                                    # static lane slice [N,1]
        # a_src needs a sublane->lane move: one small transposed matmul.
        # att_src is zero beyond H, so the folded a_dst lane does not contribute.
        a_src = lax.dot_general(asrc_ref[l:l + 1, :], h_aug,
                                (((1,), (1,)), ((), ())),
                                preferred_element_type=jnp.float32)  # [1, N]

        # scores[i, j] = a_dst[i] + a_src[j]  (dst i attends to src j)
        s = a_dst + a_src                                            # [N, N] f32
        s = jnp.maximum(s, 0.2 * s) + mask_ref[...]                  # leaky_relu + additive bf16 mask
        m = jnp.max(s, axis=-1, keepdims=True)
        p = jnp.exp(s - m)                                           # unnormalised probs (<=1)
        denom = jnp.sum(p, axis=-1, keepdims=True)

        # deferred softmax normalisation: scale AFTER the matmul (O(N*A) not O(N^2))
        out = jnp.dot(p.astype(jnp.bfloat16), h_aug.astype(jnp.bfloat16),
                      preferred_element_type=jnp.float32)            # [N, A]
        out = out * pl.reciprocal(denom, approx=True)
        out = out + bias_ref[l:l + 1, :]
        h = jnp.maximum(out, 0.0)                                    # fused relu
        # (the junk a_dst lane of h is killed by the zero rows of the next
        #  layer's padded weight / of the padded fc1 weight)

    # readout: global_mean_pool as a matmul with the row-normalised pool
    # matrix, then fc1 -> relu -> (eval-mode dropout = identity) -> fc2.
    pooled = jnp.dot(pool_ref[...], h.astype(jnp.bfloat16),
                     preferred_element_type=jnp.float32)             # [G, A]
    z = jnp.dot(pooled.astype(jnp.bfloat16), fc1w_ref[...],
                preferred_element_type=jnp.float32) + fc1b_ref[...]
    z = jnp.maximum(z, 0.0)
    out_ref[...] = jnp.dot(z.astype(jnp.bfloat16), fc2w_ref[...],
                           preferred_element_type=jnp.float32) + fc2b_ref[...]


# --------------------------------------------------------------------------
# Wrapper: one fused pallas_call (everything fits in VMEM at these sizes)
# --------------------------------------------------------------------------
def gat_forward(params, x, edge_index, batch, num_graphs):
    N, f_in = x.shape
    H = params["conv1"]["w"].shape[1]                 # hidden_channels
    # augmented width: hidden + 1 folded a_dst column, padded to a lane multiple
    A = ((max(f_in, H) + 1 + 127) // 128) * 128       # = 128 here
    G = int(num_graphs)
    O = params["fc2"]["w"].shape[1]

    # dense adjacency (incl. self loops) encoded as an additive bf16 bias.
    src, dst = edge_index[0], edge_index[1]
    adj = jnp.zeros((N, N), jnp.float32).at[dst, src].set(1.0)
    adj = jnp.maximum(adj, jnp.eye(N, dtype=jnp.float32))
    mask_add = jnp.where(adj > 0, 0.0, -1e30).astype(jnp.bfloat16)
    # TODO(synk): for large N, replace this O(N^2) materialisation with a
    #             block-sparse/CSR layout via PrefetchScalarGridSpec.

    # per-layer augmented weights, padded to a uniform (A, A) and stacked:
    #   w_aug = [ W | 0 | W @ att_dst^T ]   (a_dst pinned to lane A-1,
    #                                        zero rows beyond fan-in)
    def aug_w(p, fin):
        w_full = jnp.zeros((A, A), jnp.float32).at[:fin, :H].set(p["w"])
        a_dst_col = w_full[:, :H] @ p["att_dst"].T                   # (A, 1)
        return w_full.at[:, A - 1].set(a_dst_col[:, 0])

    convs = [params[k] for k in ("conv1", "conv2", "conv3", "conv4")]
    fins = [f_in, H, H, H]
    w_all = jnp.stack([aug_w(p, f) for p, f in zip(convs, fins)]
                      ).astype(jnp.bfloat16)                         # (4, A, A)
    asrc_all = jnp.stack(
        [jnp.zeros((A,), jnp.float32).at[:H].set(p["att_src"][0]) for p in convs])
    bias_all = jnp.stack(
        [jnp.zeros((A,), jnp.float32).at[:H].set(p["bias"][0]) for p in convs])

    x_pad = jnp.zeros((N, A), jnp.float32).at[:, :f_in].set(x)

    # global_mean_pool as a row-normalised one-hot pool matrix [G, N]
    # (this is what lets multiple graphs share one call / one block-diag adj)
    onehot = (batch[None, :] == jnp.arange(G)[:, None]).astype(jnp.float32)
    counts = jnp.maximum(onehot.sum(axis=1, keepdims=True), 1.0)
    pool = (onehot / counts).astype(jnp.bfloat16)

    fc1w = jnp.zeros((A, H), jnp.float32).at[:H, :].set(params["fc1"]["w"])
    fc1w = fc1w.astype(jnp.bfloat16)
    fc1b = params["fc1"]["b"]
    fc2w = params["fc2"]["w"].astype(jnp.bfloat16)
    fc2b = params["fc2"]["b"]

    def full(shape):
        return pl.BlockSpec(shape, lambda i, _n=len(shape): (0,) * _n)

    return pl.pallas_call(
        fused_gat_kernel,
        out_shape=jax.ShapeDtypeStruct((G, O), jnp.float32),
        grid=(1,),
        in_specs=[
            full((N, A)),        # x_pad
            full((N, N)),        # mask_add (bf16 additive bias)
            full((4, A, A)),     # stacked augmented conv weights (bf16)
            full((4, A)),        # stacked att_src (padded)
            full((4, A)),        # stacked conv biases (padded)
            full((G, N)),        # pool matrix (bf16)
            full((A, H)),        # fc1 weight (padded, bf16)
            full((1, H)),        # fc1 bias
            full((H, O)),        # fc2 weight (bf16)
            full((1, O)),        # fc2 bias
        ],
        out_specs=full((G, O)),
        compiler_params=pltpu.CompilerParams(
            dimension_semantics=("arbitrary",),
            vmem_limit_bytes=32 * 1024 * 1024),
    )(x_pad, mask_add, w_all, asrc_all, bias_all, pool,
      fc1w, fc1b, fc2w, fc2b)


# --------------------------------------------------------------------------
# Pure-JAX reference (f32, no folding) for a correctness check
# --------------------------------------------------------------------------
def gat_reference(params, x, edge_index, batch, num_graphs):
    N = x.shape[0]
    src, dst = edge_index[0], edge_index[1]
    adj = jnp.zeros((N, N), jnp.float32).at[dst, src].set(1.0)
    adj = jnp.maximum(adj, jnp.eye(N, dtype=jnp.float32))
    h = x
    for name in ("conv1", "conv2", "conv3", "conv4"):
        p = params[name]
        hw = h @ p["w"]
        a_dst = hw @ p["att_dst"].T
        a_src = hw @ p["att_src"].T
        s = a_dst + a_src.T
        s = jnp.where(s > 0, s, 0.2 * s)
        s = jnp.where(adj > 0, s, -1e30)
        attn = jax.nn.softmax(s, axis=-1)
        h = jnp.maximum(attn @ hw + p["bias"], 0.0)
    onehot = (batch[None, :] == jnp.arange(num_graphs)[:, None]).astype(jnp.float32)
    pool = onehot / jnp.maximum(onehot.sum(axis=1, keepdims=True), 1.0)
    z = jnp.maximum(pool @ h @ params["fc1"]["w"] + params["fc1"]["b"], 0.0)
    return z @ params["fc2"]["w"] + params["fc2"]["b"]


# --------------------------------------------------------------------------
# Parameter init (deterministic, Glorot-style)
# --------------------------------------------------------------------------
def glorot(key, shape):
    fan_in, fan_out = shape[0], shape[1]
    lim = jnp.sqrt(6.0 / (fan_in + fan_out))
    return jax.random.uniform(key, shape, jnp.float32, -lim, lim)


def init_gatconv(key, fin, fout):
    k1, k2, k3 = jax.random.split(key, 3)
    return dict(
        w=glorot(k1, (fin, fout)),                 # lin.weight^T
        att_src=glorot(k2, (1, fout)),
        att_dst=glorot(k3, (1, fout)),
        bias=jnp.zeros((1, fout), jnp.float32),
    )


def init_linear(key, fin, fout):
    k1, k2 = jax.random.split(key)
    lim = 1.0 / jnp.sqrt(fin)
    return dict(
        w=jax.random.uniform(k1, (fin, fout), jnp.float32, -lim, lim),
        b=jax.random.uniform(k2, (1, fout), jnp.float32, -lim, lim),
    )


# --------------------------------------------------------------------------
if __name__ == "__main__":
    in_channels, hidden_channels, out_channels = 8, 32, 4

    # Batch G graphs into one call (block-diagonal adjacency) so the node
    # dimension per matmul is >=128 and the MXU is actually occupied.
    G, nodes_per, edges_per = 8, 32, 64
    N = G * nodes_per                                  # 256 nodes total

    key = jax.random.PRNGKey(0)
    keys = jax.random.split(key, 10)

    params = {
        "conv1": init_gatconv(keys[0], in_channels, hidden_channels),
        "conv2": init_gatconv(keys[1], hidden_channels, hidden_channels),
        "conv3": init_gatconv(keys[2], hidden_channels, hidden_channels),
        "conv4": init_gatconv(keys[3], hidden_channels, hidden_channels),
        "fc1": init_linear(keys[4], hidden_channels, hidden_channels),
        "fc2": init_linear(keys[5], hidden_channels, out_channels),
    }

    x = jax.random.normal(keys[6], (N, in_channels), jnp.float32)

    # per-graph random edges, offset into the global node index space
    src_list, dst_list = [], []
    for g in range(G):
        kg = jax.random.fold_in(keys[7], g)
        kg1, kg2 = jax.random.split(kg)
        src_list.append(jax.random.randint(kg1, (edges_per,), 0, nodes_per)
                        + g * nodes_per)
        dst_list.append(jax.random.randint(kg2, (edges_per,), 0, nodes_per)
                        + g * nodes_per)
    edge_index = jnp.stack(
        [jnp.concatenate(src_list), jnp.concatenate(dst_list)], axis=0
    ).astype(jnp.int32)
    batch = jnp.repeat(jnp.arange(G, dtype=jnp.int32), nodes_per)

    out = gat_forward(params, x, edge_index, batch, G)
    out = jax.block_until_ready(out)

    ref = gat_reference(params, x, edge_index, batch, G)
    assert out.shape == (G, out_channels)
    assert bool(jnp.all(jnp.isfinite(out)))
    # bf16 MXU operands + approx reciprocal -> loose tolerance vs f32 reference
    assert bool(jnp.allclose(out, ref, atol=0.2, rtol=0.1))
    print("KERNEL_OK")
</pallas_src>

<mosaic_0001>
module attributes {stable_mosaic.version = 11 : i64} {
  func.func @fused_gat_kernel(%arg0: i32, %arg1: memref<256x128xf32, #tpu.memory_space<vmem>>, %arg2: memref<256x256xbf16, #tpu.memory_space<vmem>>, %arg3: memref<4x128x128xbf16, #tpu.memory_space<vmem>>, %arg4: memref<4x128xf32, #tpu.memory_space<vmem>>, %arg5: memref<4x128xf32, #tpu.memory_space<vmem>>, %arg6: memref<8x256xbf16, #tpu.memory_space<vmem>>, %arg7: memref<128x32xbf16, #tpu.memory_space<vmem>>, %arg8: memref<1x32xf32, #tpu.memory_space<vmem>>, %arg9: memref<32x4xbf16, #tpu.memory_space<vmem>>, %arg10: memref<1x4xf32, #tpu.memory_space<vmem>>, %arg11: memref<8x4xf32, #tpu.memory_space<vmem>>) attributes {dimension_semantics = [#tpu.dimension_semantics<arbitrary>], iteration_bounds = array<i64: 1>, scalar_prefetch = 0 : i64, scratch_operands = 0 : i64, tpu.core_type = #tpu.core_type<tc>, window_params = [{pipeline_mode = #tpu.pipeline_mode<synchronous>, transform_indices = @transform_0, window_bounds = array<i64: 256, 128>}, {pipeline_mode = #tpu.pipeline_mode<synchronous>, transform_indices = @transform_1, window_bounds = array<i64: 256, 256>}, {pipeline_mode = #tpu.pipeline_mode<synchronous>, transform_indices = @transform_2, window_bounds = array<i64: 4, 128, 128>}, {pipeline_mode = #tpu.pipeline_mode<synchronous>, transform_indices = @transform_3, window_bounds = array<i64: 4, 128>}, {pipeline_mode = #tpu.pipeline_mode<synchronous>, transform_indices = @transform_4, window_bounds = array<i64: 4, 128>}, {pipeline_mode = #tpu.pipeline_mode<synchronous>, transform_indices = @transform_5, window_bounds = array<i64: 8, 256>}, {pipeline_mode = #tpu.pipeline_mode<synchronous>, transform_indices = @transform_6, window_bounds = array<i64: 128, 32>}, {pipeline_mode = #tpu.pipeline_mode<synchronous>, transform_indices = @transform_7, window_bounds = array<i64: 1, 32>}, {pipeline_mode = #tpu.pipeline_mode<synchronous>, transform_indices = @transform_8, window_bounds = array<i64: 32, 4>}, {pipeline_mode = #tpu.pipeline_mode<synchronous>, transform_indices = @transform_9, window_bounds = array<i64: 1, 4>}, {pipeline_mode = #tpu.pipeline_mode<synchronous>, transform_indices = @transform_10, window_bounds = array<i64: 8, 4>}]} {
    %c0 = arith.constant 0 : index
    %c0_0 = arith.constant 0 : index
    %0 = vector.load %arg1[%c0, %c0_0] : memref<256x128xf32, #tpu.memory_space<vmem>>, vector<256x128xf32>
    %1 = arith.truncf %0 : vector<256x128xf32> to vector<256x128xbf16>
    %c0_1 = arith.constant 0 : index
    %c0_2 = arith.constant 0 : index
    %c0_3 = arith.constant 0 : index
    %2 = vector.load %arg3[%c0_1, %c0_2, %c0_3] : memref<4x128x128xbf16, #tpu.memory_space<vmem>>, vector<1x128x128xbf16>
    %3 = vector.shape_cast %2 : vector<1x128x128xbf16> to vector<128x128xbf16>
    %cst = arith.constant dense<0.000000e+00> : vector<256x128xf32>
    %4 = tpu.matmul %1, %3, %cst {dimension_numbers = #tpu.dot_dimension_numbers<[1], [0], [0], [1], [0, 0, 1, 1], [], []>} : vector<256x128xbf16>, vector<128x128xbf16>, vector<256x128xf32> -> vector<256x128xf32>
    %5 = vector.extract_strided_slice %4 {offsets = [0, 127], sizes = [256, 1], strides = [1, 1]} : vector<256x128xf32> to vector<256x1xf32>
    %c0_4 = arith.constant 0 : index
    %c0_5 = arith.constant 0 : index
    %6 = vector.load %arg4[%c0_4, %c0_5] : memref<4x128xf32, #tpu.memory_space<vmem>>, vector<1x128xf32>
    %cst_6 = arith.constant dense<0.000000e+00> : vector<1x256xf32>
    %7 = tpu.matmul %6, %4, %cst_6 {dimension_numbers = #tpu.dot_dimension_numbers<[1], [1], [0], [0], [0, 0, 1, 0], [], []>} : vector<1x128xf32>, vector<256x128xf32>, vector<1x256xf32> -> vector<1x256xf32>
    %8 = vector.broadcast %5 : vector<256x1xf32> to vector<256x256xf32>
    %9 = vector.broadcast %7 : vector<1x256xf32> to vector<256x256xf32>
    %10 = arith.addf %8, %9 : vector<256x256xf32>
    %cst_7 = arith.constant 2.000000e-01 : f32
    %11 = vector.broadcast %cst_7 : f32 to vector<256x256xf32>
    %12 = arith.mulf %11, %10 : vector<256x256xf32>
    %13 = arith.maximumf %10, %12 : vector<256x256xf32>
    %c0_8 = arith.constant 0 : index
    %c0_9 = arith.constant 0 : index
    %14 = vector.load %arg2[%c0_8, %c0_9] : memref<256x256xbf16, #tpu.memory_space<vmem>>, vector<256x256xbf16>
    %15 = arith.extf %14 : vector<256x256xbf16> to vector<256x256xf32>
    %16 = arith.addf %13, %15 : vector<256x256xf32>
    %cst_10 = arith.constant dense<0xFF800000> : vector<256xf32>
    %17 = vector.multi_reduction <maximumf>, %16, %cst_10 [1] : vector<256x256xf32> to vector<256xf32>
    %18 = vector.shape_cast %17 : vector<256xf32> to vector<256x1xf32>
    %19 = vector.broadcast %18 : vector<256x1xf32> to vector<256x256xf32>
    %20 = arith.subf %16, %19 : vector<256x256xf32>
    %21 = math.exp %20 : vector<256x256xf32>
    %cst_11 = arith.constant dense<0.000000e+00> : vector<256xf32>
    %22 = vector.multi_reduction <add>, %21, %cst_11 [1] : vector<256x256xf32> to vector<256xf32>
    %23 = vector.shape_cast %22 : vector<256xf32> to vector<256x1xf32>
    %24 = arith.truncf %21 : vector<256x256xf32> to vector<256x256xbf16>
    %25 = arith.truncf %4 : vector<256x128xf32> to vector<256x128xbf16>
    %cst_12 = arith.constant dense<0.000000e+00> : vector<256x128xf32>
    %26 = tpu.matmul %24, %25, %cst_12 {dimension_numbers = #tpu.dot_dimension_numbers<[1], [0], [0], [1], [0, 0, 1, 1], [], []>} : vector<256x256xbf16>, vector<256x128xbf16>, vector<256x128xf32> -> vector<256x128xf32>
    %27 = tpu.reciprocal %23 {approx = true} : vector<256x1xf32> -> vector<256x1xf32>
    %28 = vector.broadcast %27 : vector<256x1xf32> to vector<256x128xf32>
    %29 = arith.mulf %26, %28 : vector<256x128xf32>
    %c0_13 = arith.constant 0 : index
    %c0_14 = arith.constant 0 : index
    %30 = vector.load %arg5[%c0_13, %c0_14] : memref<4x128xf32, #tpu.memory_space<vmem>>, vector<1x128xf32>
    %31 = vector.broadcast %30 : vector<1x128xf32> to vector<256x128xf32>
    %32 = arith.addf %29, %31 : vector<256x128xf32>
    %cst_15 = arith.constant 0.000000e+00 : f32
    %33 = vector.broadcast %cst_15 : f32 to vector<256x128xf32>
    %34 = arith.maximumf %32, %33 : vector<256x128xf32>
    %35 = arith.truncf %34 : vector<256x128xf32> to vector<256x128xbf16>
    %c1 = arith.constant 1 : index
    %c0_16 = arith.constant 0 : index
    %c0_17 = arith.constant 0 : index
    %36 = vector.load %arg3[%c1, %c0_16, %c0_17] : memref<4x128x128xbf16, #tpu.memory_space<vmem>>, vector<1x128x128xbf16>
    %37 = vector.shape_cast %36 : vector<1x128x128xbf16> to vector<128x128xbf16>
    %cst_18 = arith.constant dense<0.000000e+00> : vector<256x128xf32>
    %38 = tpu.matmul %35, %37, %cst_18 {dimension_numbers = #tpu.dot_dimension_numbers<[1], [0], [0], [1], [0, 0, 1, 1], [], []>} : vector<256x128xbf16>, vector<128x128xbf16>, vector<256x128xf32> -> vector<256x128xf32>
    %39 = vector.extract_strided_slice %38 {offsets = [0, 127], sizes = [256, 1], strides = [1, 1]} : vector<256x128xf32> to vector<256x1xf32>
    %c1_19 = arith.constant 1 : index
    %c0_20 = arith.constant 0 : index
    %40 = vector.load %arg4[%c1_19, %c0_20] : memref<4x128xf32, #tpu.memory_space<vmem>>, vector<1x128xf32>
    %cst_21 = arith.constant dense<0.000000e+00> : vector<1x256xf32>
    %41 = tpu.matmul %40, %38, %cst_21 {dimension_numbers = #tpu.dot_dimension_numbers<[1], [1], [0], [0], [0, 0, 1, 0], [], []>} : vector<1x128xf32>, vector<256x128xf32>, vector<1x256xf32> -> vector<1x256xf32>
    %42 = vector.broadcast %39 : vector<256x1xf32> to vector<256x256xf32>
    %43 = vector.broadcast %41 : vector<1x256xf32> to vector<256x256xf32>
    %44 = arith.addf %42, %43 : vector<256x256xf32>
    %cst_22 = arith.constant 2.000000e-01 : f32
    %45 = vector.broadcast %cst_22 : f32 to vector<256x256xf32>
    %46 = arith.mulf %45, %44 : vector<256x256xf32>
    %47 = arith.maximumf %44, %46 : vector<256x256xf32>
    %c0_23 = arith.constant 0 : index
    %c0_24 = arith.constant 0 : index
    %48 = vector.load %arg2[%c0_23, %c0_24] : memref<256x256xbf16, #tpu.memory_space<vmem>>, vector<256x256xbf16>
    %49 = arith.extf %48 : vector<256x256xbf16> to vector<256x256xf32>
    %50 = arith.addf %47, %49 : vector<256x256xf32>
    %cst_25 = arith.constant dense<0xFF800000> : vector<256xf32>
    %51 = vector.multi_reduction <maximumf>, %50, %cst_25 [1] : vector<256x256xf32> to vector<256xf32>
    %52 = vector.shape_cast %51 : vector<256xf32> to vector<256x1xf32>
    %53 = vector.broadcast %52 : vector<256x1xf32> to vector<256x256xf32>
    %54 = arith.subf %50, %53 : vector<256x256xf32>
    %55 = math.exp %54 : vector<256x256xf32>
    %cst_26 = arith.constant dense<0.000000e+00> : vector<256xf32>
    %56 = vector.multi_reduction <add>, %55, %cst_26 [1] : vector<256x256xf32> to vector<256xf32>
    %57 = vector.shape_cast %56 : vector<256xf32> to vector<256x1xf32>
    %58 = arith.truncf %55 : vector<256x256xf32> to vector<256x256xbf16>
    %59 = arith.truncf %38 : vector<256x128xf32> to vector<256x128xbf16>
    %cst_27 = arith.constant dense<0.000000e+00> : vector<256x128xf32>
    %60 = tpu.matmul %58, %59, %cst_27 {dimension_numbers = #tpu.dot_dimension_numbers<[1], [0], [0], [1], [0, 0, 1, 1], [], []>} : vector<256x256xbf16>, vector<256x128xbf16>, vector<256x128xf32> -> vector<256x128xf32>
    %61 = tpu.reciprocal %57 {approx = true} : vector<256x1xf32> -> vector<256x1xf32>
    %62 = vector.broadcast %61 : vector<256x1xf32> to vector<256x128xf32>
    %63 = arith.mulf %60, %62 : vector<256x128xf32>
    %c1_28 = arith.constant 1 : index
    %c0_29 = arith.constant 0 : index
    %64 = vector.load %arg5[%c1_28, %c0_29] : memref<4x128xf32, #tpu.memory_space<vmem>>, vector<1x128xf32>
    %65 = vector.broadcast %64 : vector<1x128xf32> to vector<256x128xf32>
    %66 = arith.addf %63, %65 : vector<256x128xf32>
    %cst_30 = arith.constant 0.000000e+00 : f32
    %67 = vector.broadcast %cst_30 : f32 to vector<256x128xf32>
    %68 = arith.maximumf %66, %67 : vector<256x128xf32>
    %69 = arith.truncf %68 : vector<256x128xf32> to vector<256x128xbf16>
    %c2 = arith.constant 2 : index
    %c0_31 = arith.constant 0 : index
    %c0_32 = arith.constant 0 : index
    %70 = vector.load %arg3[%c2, %c0_31, %c0_32] : memref<4x128x128xbf16, #tpu.memory_space<vmem>>, vector<1x128x128xbf16>
    %71 = vector.shape_cast %70 : vector<1x128x128xbf16> to vector<128x128xbf16>
    %cst_33 = arith.constant dense<0.000000e+00> : vector<256x128xf32>
    %72 = tpu.matmul %69, %71, %cst_33 {dimension_numbers = #tpu.dot_dimension_numbers<[1], [0], [0], [1], [0, 0, 1, 1], [], []>} : vector<256x128xbf16>, vector<128x128xbf16>, vector<256x128xf32> -> vector<256x128xf32>
    %73 = vector.extract_strided_slice %72 {offsets = [0, 127], sizes = [256, 1], strides = [1, 1]} : vector<256x128xf32> to vector<256x1xf32>
    %c2_34 = arith.constant 2 : index
    %c0_35 = arith.constant 0 : index
    %74 = vector.load %arg4[%c2_34, %c0_35] : memref<4x128xf32, #tpu.memory_space<vmem>>, vector<1x128xf32>
    %cst_36 = arith.constant dense<0.000000e+00> : vector<1x256xf32>
    %75 = tpu.matmul %74, %72, %cst_36 {dimension_numbers = #tpu.dot_dimension_numbers<[1], [1], [0], [0], [0, 0, 1, 0], [], []>} : vector<1x128xf32>, vector<256x128xf32>, vector<1x256xf32> -> vector<1x256xf32>
    %76 = vector.broadcast %73 : vector<256x1xf32> to vector<256x256xf32>
    %77 = vector.broadcast %75 : vector<1x256xf32> to vector<256x256xf32>
    %78 = arith.addf %76, %77 : vector<256x256xf32>
    %cst_37 = arith.constant 2.000000e-01 : f32
    %79 = vector.broadcast %cst_37 : f32 to vector<256x256xf32>
    %80 = arith.mulf %79, %78 : vector<256x256xf32>
    %81 = arith.maximumf %78, %80 : vector<256x256xf32>
    %c0_38 = arith.constant 0 : index
    %c0_39 = arith.constant 0 : index
    %82 = vector.load %arg2[%c0_38, %c0_39] : memref<256x256xbf16, #tpu.memory_space<vmem>>, vector<256x256xbf16>
    %83 = arith.extf %82 : vector<256x256xbf16> to vector<256x256xf32>
    %84 = arith.addf %81, %83 : vector<256x256xf32>
    %cst_40 = arith.constant dense<0xFF800000> : vector<256xf32>
    %85 = vector.multi_reduction <maximumf>, %84, %cst_40 [1] : vector<256x256xf32> to vector<256xf32>
    %86 = vector.shape_cast %85 : vector<256xf32> to vector<256x1xf32>
    %87 = vector.broadcast %86 : vector<256x1xf32> to vector<256x256xf32>
    %88 = arith.subf %84, %87 : vector<256x256xf32>
    %89 = math.exp %88 : vector<256x256xf32>
    %cst_41 = arith.constant dense<0.000000e+00> : vector<256xf32>
    %90 = vector.multi_reduction <add>, %89, %cst_41 [1] : vector<256x256xf32> to vector<256xf32>
    %91 = vector.shape_cast %90 : vector<256xf32> to vector<256x1xf32>
    %92 = arith.truncf %89 : vector<256x256xf32> to vector<256x256xbf16>
    %93 = arith.truncf %72 : vector<256x128xf32> to vector<256x128xbf16>
    %cst_42 = arith.constant dense<0.000000e+00> : vector<256x128xf32>
    %94 = tpu.matmul %92, %93, %cst_42 {dimension_numbers = #tpu.dot_dimension_numbers<[1], [0], [0], [1], [0, 0, 1, 1], [], []>} : vector<256x256xbf16>, vector<256x128xbf16>, vector<256x128xf32> -> vector<256x128xf32>
    %95 = tpu.reciprocal %91 {approx = true} : vector<256x1xf32> -> vector<256x1xf32>
    %96 = vector.broadcast %95 : vector<256x1xf32> to vector<256x128xf32>
    %97 = arith.mulf %94, %96 : vector<256x128xf32>
    %c2_43 = arith.constant 2 : index
    %c0_44 = arith.constant 0 : index
    %98 = vector.load %arg5[%c2_43, %c0_44] : memref<4x128xf32, #tpu.memory_space<vmem>>, vector<1x128xf32>
    %99 = vector.broadcast %98 : vector<1x128xf32> to vector<256x128xf32>
    %100 = arith.addf %97, %99 : vector<256x128xf32>
    %cst_45 = arith.constant 0.000000e+00 : f32
    %101 = vector.broadcast %cst_45 : f32 to vector<256x128xf32>
    %102 = arith.maximumf %100, %101 : vector<256x128xf32>
    %103 = arith.truncf %102 : vector<256x128xf32> to vector<256x128xbf16>
    %c3 = arith.constant 3 : index
    %c0_46 = arith.constant 0 : index
    %c0_47 = arith.constant 0 : index
    %104 = vector.load %arg3[%c3, %c0_46, %c0_47] : memref<4x128x128xbf16, #tpu.memory_space<vmem>>, vector<1x128x128xbf16>
    %105 = vector.shape_cast %104 : vector<1x128x128xbf16> to vector<128x128xbf16>
    %cst_48 = arith.constant dense<0.000000e+00> : vector<256x128xf32>
    %106 = tpu.matmul %103, %105, %cst_48 {dimension_numbers = #tpu.dot_dimension_numbers<[1], [0], [0], [1], [0, 0, 1, 1], [], []>} : vector<256x128xbf16>, vector<128x128xbf16>, vector<256x128xf32> -> vector<256x128xf32>
    %107 = vector.extract_strided_slice %106 {offsets = [0, 127], sizes = [256, 1], strides = [1, 1]} : vector<256x128xf32> to vector<256x1xf32>
    %c3_49 = arith.constant 3 : index
    %c0_50 = arith.constant 0 : index
    %108 = vector.load %arg4[%c3_49, %c0_50] : memref<4x128xf32, #tpu.memory_space<vmem>>, vector<1x128xf32>
    %cst_51 = arith.constant dense<0.000000e+00> : vector<1x256xf32>
    %109 = tpu.matmul %108, %106, %cst_51 {dimension_numbers = #tpu.dot_dimension_numbers<[1], [1], [0], [0], [0, 0, 1, 0], [], []>} : vector<1x128xf32>, vector<256x128xf32>, vector<1x256xf32> -> vector<1x256xf32>
    %110 = vector.broadcast %107 : vector<256x1xf32> to vector<256x256xf32>
    %111 = vector.broadcast %109 : vector<1x256xf32> to vector<256x256xf32>
    %112 = arith.addf %110, %111 : vector<256x256xf32>
    %cst_52 = arith.constant 2.000000e-01 : f32
    %113 = vector.broadcast %cst_52 : f32 to vector<256x256xf32>
    %114 = arith.mulf %113, %112 : vector<256x256xf32>
    %115 = arith.maximumf %112, %114 : vector<256x256xf32>
    %c0_53 = arith.constant 0 : index
    %c0_54 = arith.constant 0 : index
    %116 = vector.load %arg2[%c0_53, %c0_54] : memref<256x256xbf16, #tpu.memory_space<vmem>>, vector<256x256xbf16>
    %117 = arith.extf %116 : vector<256x256xbf16> to vector<256x256xf32>
    %118 = arith.addf %115, %117 : vector<256x256xf32>
    %cst_55 = arith.constant dense<0xFF800000> : vector<256xf32>
    %119 = vector.multi_reduction <maximumf>, %118, %cst_55 [1] : vector<256x256xf32> to vector<256xf32>
    %120 = vector.shape_cast %119 : vector<256xf32> to vector<256x1xf32>
    %121 = vector.broadcast %120 : vector<256x1xf32> to vector<256x256xf32>
    %122 = arith.subf %118, %121 : vector<256x256xf32>
    %123 = math.exp %122 : vector<256x256xf32>
    %cst_56 = arith.constant dense<0.000000e+00> : vector<256xf32>
    %124 = vector.multi_reduction <add>, %123, %cst_56 [1] : vector<256x256xf32> to vector<256xf32>
    %125 = vector.shape_cast %124 : vector<256xf32> to vector<256x1xf32>
    %126 = arith.truncf %123 : vector<256x256xf32> to vector<256x256xbf16>
    %127 = arith.truncf %106 : vector<256x128xf32> to vector<256x128xbf16>
    %cst_57 = arith.constant dense<0.000000e+00> : vector<256x128xf32>
    %128 = tpu.matmul %126, %127, %cst_57 {dimension_numbers = #tpu.dot_dimension_numbers<[1], [0], [0], [1], [0, 0, 1, 1], [], []>} : vector<256x256xbf16>, vector<256x128xbf16>, vector<256x128xf32> -> vector<256x128xf32>
    %129 = tpu.reciprocal %125 {approx = true} : vector<256x1xf32> -> vector<256x1xf32>
    %130 = vector.broadcast %129 : vector<256x1xf32> to vector<256x128xf32>
    %131 = arith.mulf %128, %130 : vector<256x128xf32>
    %c3_58 = arith.constant 3 : index
    %c0_59 = arith.constant 0 : index
    %132 = vector.load %arg5[%c3_58, %c0_59] : memref<4x128xf32, #tpu.memory_space<vmem>>, vector<1x128xf32>
    %133 = vector.broadcast %132 : vector<1x128xf32> to vector<256x128xf32>
    %134 = arith.addf %131, %133 : vector<256x128xf32>
    %cst_60 = arith.constant 0.000000e+00 : f32
    %135 = vector.broadcast %cst_60 : f32 to vector<256x128xf32>
    %136 = arith.maximumf %134, %135 : vector<256x128xf32>
    %c0_61 = arith.constant 0 : index
    %c0_62 = arith.constant 0 : index
    %137 = vector.load %arg6[%c0_61, %c0_62] : memref<8x256xbf16, #tpu.memory_space<vmem>>, vector<8x256xbf16>
    %138 = arith.truncf %136 : vector<256x128xf32> to vector<256x128xbf16>
    %cst_63 = arith.constant dense<0.000000e+00> : vector<8x128xf32>
    %139 = tpu.matmul %137, %138, %cst_63 {dimension_numbers = #tpu.dot_dimension_numbers<[1], [0], [0], [1], [0, 0, 1, 1], [], []>} : vector<8x256xbf16>, vector<256x128xbf16>, vector<8x128xf32> -> vector<8x128xf32>
    %140 = arith.truncf %139 : vector<8x128xf32> to vector<8x128xbf16>
    %c0_64 = arith.constant 0 : index
    %c0_65 = arith.constant 0 : index
    %141 = vector.load %arg7[%c0_64, %c0_65] : memref<128x32xbf16, #tpu.memory_space<vmem>>, vector<128x32xbf16>
    %cst_66 = arith.constant dense<0.000000e+00> : vector<8x32xf32>
    %142 = tpu.matmul %140, %141, %cst_66 {dimension_numbers = #tpu.dot_dimension_numbers<[1], [0], [0], [1], [0, 0, 1, 1], [], []>} : vector<8x128xbf16>, vector<128x32xbf16>, vector<8x32xf32> -> vector<8x32xf32>
    %c0_67 = arith.constant 0 : index
    %c0_68 = arith.constant 0 : index
    %143 = vector.load %arg8[%c0_67, %c0_68] : memref<1x32xf32, #tpu.memory_space<vmem>>, vector<1x32xf32>
    %144 = vector.broadcast %143 : vector<1x32xf32> to vector<8x32xf32>
    %145 = arith.addf %142, %144 : vector<8x32xf32>
    %cst_69 = arith.constant 0.000000e+00 : f32
    %146 = vector.broadcast %cst_69 : f32 to vector<8x32xf32>
    %147 = arith.maximumf %145, %146 : vector<8x32xf32>
    %148 = arith.truncf %147 : vector<8x32xf32> to vector<8x32xbf16>
    %c0_70 = arith.constant 0 : index
    %c0_71 = arith.constant 0 : index
    %149 = vector.load %arg9[%c0_70, %c0_71] : memref<32x4xbf16, #tpu.memory_space<vmem>>, vector<32x4xbf16>
    %cst_72 = arith.constant dense<0.000000e+00> : vector<8x4xf32>
    %150 = tpu.matmul %148, %149, %cst_72 {dimension_numbers = #tpu.dot_dimension_numbers<[1], [0], [0], [1], [0, 0, 1, 1], [], []>} : vector<8x32xbf16>, vector<32x4xbf16>, vector<8x4xf32> -> vector<8x4xf32>
    %c0_73 = arith.constant 0 : index
    %c0_74 = arith.constant 0 : index
    %151 = vector.load %arg10[%c0_73, %c0_74] : memref<1x4xf32, #tpu.memory_space<vmem>>, vector<1x4xf32>
    %152 = vector.broadcast %151 : vector<1x4xf32> to vector<8x4xf32>
    %153 = arith.addf %150, %152 : vector<8x4xf32>
    %c0_75 = arith.constant 0 : index
    %c0_76 = arith.constant 0 : index
    %154 = vector.load %arg11[%c0_75, %c0_76] : memref<8x4xf32, #tpu.memory_space<vmem>>, vector<8x4xf32>
    tpu.vector_store %arg11[%c0_75, %c0_76], %153 {strides = array<i32>} : memref<8x4xf32, #tpu.memory_space<vmem>>, vector<8x4xf32>,
    return
  }
  func.func @transform_0(%arg0: i32) -> (i32, i32) {
    %c0_i32 = arith.constant 0 : i32
    %c0_i32_0 = arith.constant 0 : i32
    %c0_i32_1 = arith.constant 0 : i32
    return %c0_i32, %c0_i32_0 : i32, i32
  }
  func.func @transform_1(%arg0: i32) -> (i32, i32) {
    %c0_i32 = arith.constant 0 : i32
    %c0_i32_0 = arith.constant 0 : i32
    %c0_i32_1 = arith.constant 0 : i32
    return %c0_i32, %c0_i32_0 : i32, i32
  }
  func.func @transform_2(%arg0: i32) -> (i32, i32, i32) {
    %c0_i32 = arith.constant 0 : i32
    %c0_i32_0 = arith.constant 0 : i32
    %c0_i32_1 = arith.constant 0 : i32
    %c0_i32_2 = arith.constant 0 : i32
    return %c0_i32, %c0_i32_0, %c0_i32_1 : i32, i32, i32
  }
  func.func @transform_3(%arg0: i32) -> (i32, i32) {
    %c0_i32 = arith.constant 0 : i32
    %c0_i32_0 = arith.constant 0 : i32
    %c0_i32_1 = arith.constant 0 : i32
    return %c0_i32, %c0_i32_0 : i32, i32
  }
  func.func @transform_4(%arg0: i32) -> (i32, i32) {
    %c0_i32 = arith.constant 0 : i32
    %c0_i32_0 = arith.constant 0 : i32
    %c0_i32_1 = arith.constant 0 : i32
    return %c0_i32, %c0_i32_0 : i32, i32
  }
  func.func @transform_5(%arg0: i32) -> (i32, i32) {
    %c0_i32 = arith.constant 0 : i32
    %c0_i32_0 = arith.constant 0 : i32
    %c0_i32_1 = arith.constant 0 : i32
    return %c0_i32, %c0_i32_0 : i32, i32
  }
  func.func @transform_6(%arg0: i32) -> (i32, i32) {
    %c0_i32 = arith.constant 0 : i32
    %c0_i32_0 = arith.constant 0 : i32
    %c0_i32_1 = arith.constant 0 : i32
    return %c0_i32, %c0_i32_0 : i32, i32
  }
  func.func @transform_7(%arg0: i32) -> (i32, i32) {
    %c0_i32 = arith.constant 0 : i32
    %c0_i32_0 = arith.constant 0 : i32
    %c0_i32_1 = arith.constant 0 : i32
    return %c0_i32, %c0_i32_0 : i32, i32
  }
  func.func @transform_8(%arg0: i32) -> (i32, i32) {
    %c0_i32 = arith.constant 0 : i32
    %c0_i32_0 = arith.constant 0 : i32
    %c0_i32_1 = arith.constant 0 : i32
    return %c0_i32, %c0_i32_0 : i32, i32
  }
  func.func @transform_9(%arg0: i32) -> (i32, i32) {
    %c0_i32 = arith.constant 0 : i32
    %c0_i32_0 = arith.constant 0 : i32
    %c0_i32_1 = arith.constant 0 : i32
    return %c0_i32, %c0_i32_0 : i32, i32
  }
  func.func @transform_10(%arg0: i32) -> (i32, i32) {
    %c0_i32 = arith.constant 0 : i32
    %c0_i32_0 = arith.constant 0 : i32
    %c0_i32_1 = arith.constant 0 : i32
    return %c0_i32, %c0_i32_0 : i32, i32
  }
}

</mosaic_0001>

<bundles_post_ra>
// kernel: tpu_custom_call.1
= control target key start
LH: loop header
LB: loop body
LE: loop exit
PB: predicated region body
PF: predicated region fallthrough
CT: control target
= control target key end

     0   :  { %15 = vsyncpa [#allocation3], 0  ;;  %s10202_s0 = inlined_call_operand.hbm [shape: f32[256,128], index: 0, kind: input, shape index: {}]   ;;  %s10203_s1 = inlined_call_operand.hbm [shape: bf16[256,256], index: 1, kind: input, shape index: {}]   ;;  %s10204_s2 = inlined_call_operand.hbm [shape: bf16[4,128,128], index: 2, kind: input, shape index: {}]   ;;  %s10205_s3 = inlined_call_operand.vmem [shape: f32[4,128], index: 3, kind: input, shape index: {}]   ;;  %s10206_s4 = inlined_call_operand.vmem [shape: f32[4,128], index: 4, kind: input, shape index: {}]   ;;  %s10207_s5 = inlined_call_operand.vmem [shape: bf16[8,256], index: 5, kind: input, shape index: {}]   ;;  %s10208_s6 = inlined_call_operand.vmem [shape: bf16[128,32], index: 6, kind: input, shape index: {}]   ;;  %s10209_s7 = inlined_call_operand.vmem [shape: f32[1,32], index: 7, kind: input, shape index: {}]   ;;  %s10210_s8 = inlined_call_operand.vmem [shape: bf16[32,4], index: 8, kind: input, shape index: {}]   ;;  %s10211_s9 = inlined_call_operand.vmem [shape: f32[1,4], index: 9, kind: input, shape index: {}]   ;;  %s10212_s10 = inlined_call_operand.vmem [shape: f32[8,4], index: 10, kind: output, shape index: {}]  }
   0x1   :  { %16 = vsyncpa [#allocation5], 0  ;;  %s34_s15 = sshll.u32 %s10203_s1, 4  ;;  %s6940_s16 = smov [#allocation4]   ;;  %s35_s15 = int_to_ptr.hbm [resolvable:$true] %s34_s15 }
   0x2   :  { %s36_s17 = sshll.u32 %s6940_s16, 4  ;;  %s21_s20 = sshll.u32 %s10202_s0, 4  ;;  %s37_s17 = int_to_ptr.vmem [resolvable:$true] %s36_s17  ;;  %s22_s20 = int_to_ptr.hbm [resolvable:$true] %s21_s20 }
   0x3   :  { %s6941_s21 = smov 128   ;;  %s6942_s22 = smov 8  }
   0x4   :  { %42 = dma.hbm_to_vmem [thread:$0]  %s35_s15, 4096, %s37_s17, [#allocation5], %s6941_s21, %s6941_s21, %s6942_s22  }
   0x5   :  { %s6943_s23 = smov [#allocation2]   ;;  %s47_s27 = sshll.u32 %s10204_s2, 4  ;;  %s48_s27 = int_to_ptr.hbm [resolvable:$true] %s47_s27 }
   0x6   :  { %s23_s24 = sshll.u32 %s6943_s23, 4  ;;  %s6944_s1 = smov [#allocation6]   ;;  %s24_s24 = int_to_ptr.vmem [resolvable:$true] %s23_s24 }
   0x7   :  { %29 = dma.hbm_to_vmem [thread:$0]  %s22_s20, 4096, %s24_s24, [#allocation3], %s6941_s21, %s6941_s21, %s6942_s22  }
   0x8   :  { %s49_s28 = sshll.u32 %s6944_s1, 4  ;;  %s6945_s29 = smov 64   ;;  %s50_s28 = int_to_ptr.vmem [resolvable:$true] %s49_s28 }
   0x9   :  { %s6946_s30 = smov 4  }
   0xa   :  { %55 = dma.hbm_to_vmem [thread:$0]  %s48_s27, 4096, %s50_s28, [#allocation5], %s6945_s29, %s6945_s29, %s6946_s30  }
   0xb   :  { %6936 = dma.done.wait [#allocation3], 4096  }
   0xc   :  { %6937 = vsyncadd [#allocation3], 4294963200 }
   0xd   :  { %6938 = dma.done.wait [#allocation5], 8192  }
   0xe   :  { %6939 = vsyncadd [#allocation5], 4294959104  ;;  %v6041_v0 = vld [vmem:[#allocation6 + $0x38] sm:$0xff]  ;;  %v6040_v1 = vld [vmem:[#allocation6 + $0x30] sm:$0xff]  ;;  %v6947_v26 = vmov 127   ;;  %vm5840_vm0 = vcmask 261120  }
   0xf   :  { %195 = vmatpush.bf16.msra.mxu0 %v6041_v0  ;;  %v6039_v2 = vld [vmem:[#allocation6 + $0x28] sm:$0xff]  ;;  %v6038_v3 = vld [vmem:[#allocation6 + $0x20] sm:$0xff]  ;;  %v6037_v4 = vld [vmem:[#allocation6 + $0x18] sm:$0xff]  ;;  %6084 = vset.pattern.permute.xlu0 %v6947_v26  ;;  %vm5857_vm1 = vcmask 31744  }
  0x10   :  { %v6036_v5 = vld [vmem:[#allocation6 + $0x10] sm:$0xff]  ;;  %v6035_v6 = vld [vmem:[#allocation6 + $0x8] sm:$0xff]  ;;  %v6034_v7 = vld [vmem:[#allocation6] sm:$0xff]  ;;  %6085 = vset.pattern.permute.xlu1 %v6947_v26  ;;  %6086 = vset.pattern.permute.xlu2 %v6947_v26 }
  0x11   :  { %v83_v8 = vld [vmem:[#allocation2] sm:$0xff]  ;;  %v84_v9 = vld [vmem:[#allocation2 + $0x8] sm:$0xff]  ;;  %v85_v11 = vld [vmem:[#allocation2 + $0x10] sm:$0xff] }
  0x12   :  { %v115_v10 = vpack.c.bf16 %v84_v9, %v83_v8  ;;  %v86_v12 = vld [vmem:[#allocation2 + $0x18] sm:$0xff]  ;;  %v87_v14 = vld [vmem:[#allocation2 + $0x20] sm:$0xff]  ;;  %v88_v15 = vld [vmem:[#allocation2 + $0x28] sm:$0xff] }
  0x13   :  { %196 = vmatpush.bf16.msra.mxu0 %v6040_v1  ;;  %v116_v13 = vpack.c.bf16 %v86_v12, %v85_v11  ;;  %v117_v16 = vpack.c.bf16 %v88_v15, %v87_v14  ;;  %v89_v17 = vld [vmem:[#allocation2 + $0x30] sm:$0xff]  ;;  %v90_v18 = vld [vmem:[#allocation2 + $0x38] sm:$0xff]  ;;  %v91_v20 = vld [vmem:[#allocation2 + $0x40] sm:$0xff] }
  0x14   :  { %v118_v19 = vpack.c.bf16 %v90_v18, %v89_v17  ;;  %v92_v21 = vld [vmem:[#allocation2 + $0x48] sm:$0xff]  ;;  %v93_v23 = vld [vmem:[#allocation2 + $0x50] sm:$0xff]  ;;  %v94_v24 = vld [vmem:[#allocation2 + $0x58] sm:$0xff] }
  0x15   :  { %v119_v22 = vpack.c.bf16 %v92_v21, %v91_v20  ;;  %v120_v25 = vpack.c.bf16 %v94_v24, %v93_v23  ;;  %v95_v27 = vld [vmem:[#allocation2 + $0x60] sm:$0xff]  ;;  %v96_v28 = vld [vmem:[#allocation2 + $0x68] sm:$0xff]  ;;  %v97_v30 = vld [vmem:[#allocation2 + $0x70] sm:$0xff] }
  0x16   :  { %v121_v29 = vpack.c.bf16 %v96_v28, %v95_v27  ;;  %v98_v31 = vld [vmem:[#allocation2 + $0x78] sm:$0xff]  ;;  %v99_v33 = vld [vmem:[#allocation2 + $0x80] sm:$0xff]  ;;  %v100_v34 = vld [vmem:[#allocation2 + $0x88] sm:$0xff] }
  0x17   :  { %197 = vmatpush.bf16.msra.mxu0 %v6039_v2  ;;  %v122_v32 = vpack.c.bf16 %v98_v31, %v97_v30  ;;  %v123_v35 = vpack.c.bf16 %v100_v34, %v99_v33  ;;  %v101_v38 = vld [vmem:[#allocation2 + $0x90] sm:$0xff]  ;;  %v102_v39 = vld [vmem:[#allocation2 + $0x98] sm:$0xff]  ;;  %v103_v43 = vld [vmem:[#allocation2 + $0xa0] sm:$0xff] }
  0x18   :  { %v124_v40 = vpack.c.bf16 %v102_v39, %v101_v38  ;;  %v104_v44 = vld [vmem:[#allocation2 + $0xa8] sm:$0xff]  ;;  %v105_v48 = vld [vmem:[#allocation2 + $0xb0] sm:$0xff]  ;;  %v106_v49 = vld [vmem:[#allocation2 + $0xb8] sm:$0xff] }
  0x19   :  { %v125_v45 = vpack.c.bf16 %v104_v44, %v103_v43  ;;  %v126_v50 = vpack.c.bf16 %v106_v49, %v105_v48  ;;  %v107_v53 = vld [vmem:[#allocation2 + $0xc0] sm:$0xff]  ;;  %v108_v54 = vld [vmem:[#allocation2 + $0xc8] sm:$0xff]  ;;  %v109_v58 = vld [vmem:[#allocation2 + $0xd0] sm:$0xff] }
  0x1a   :  { %v127_v55 = vpack.c.bf16 %v108_v54, %v107_v53  ;;  %v110_v59 = vld [vmem:[#allocation2 + $0xd8] sm:$0xff]  ;;  %v111_v63 = vld [vmem:[#allocation2 + $0xe0] sm:$0xff]  ;;  %v112_v0 = vld [vmem:[#allocation2 + $0xe8] sm:$0xff] }
  0x1b   :  { %198 = vmatpush.bf16.msra.mxu0 %v6038_v3  ;;  %v128_v60 = vpack.c.bf16 %v110_v59, %v109_v58  ;;  %v129_v1 = vpack.c.bf16 %v112_v0, %v111_v63  ;;  %v284_v24 = vld [vmem:[%s10205_s3] sm:$0x1] }
  0x1f   :  { %199 = vmatpush.bf16.msra.mxu0 %v6037_v4  ;;  %v113_v4 = vld [vmem:[#allocation2 + $0xf0] sm:$0xff] }
  0x23   :  { %200 = vmatpush.bf16.msra.mxu0 %v6036_v5  ;;  %v114_v5 = vld [vmem:[#allocation2 + $0xf8] sm:$0xff] }
  0x27   :  { %201 = vmatpush.bf16.msra.mxu0 %v6035_v6  ;;  %v130_v6 = vpack.c.bf16 %v114_v5, %v113_v4  ;;  %v679_v5 = vld [vmem:[#allocation4] sm:$0xff] }
  0x2b   :  { %202 = vmatpush.bf16.msra.mxu0 %v6034_v7 }
  0x2e   :  { %203 = vmatmul.bf16.vlgmr.msra.gmra.mxu0 %v115_v10 }
  0x3e   :  { %208 = vmatmul.bf16.gmra.mxu0 %v116_v13 }
  0x4e   :  { %213 = vmatmul.bf16.gmra.mxu0 %v117_v16 }
  0x5e   :  { %218 = vmatmul.bf16.gmra.mxu0 %v118_v19 }
  0x6e   :  { %223 = vmatmul.bf16.gmra.mxu0 %v119_v22 }
  0x7e   :  { %228 = vmatmul.bf16.gmra.mxu0 %v120_v25 }
  0x8e   :  { %233 = vmatmul.bf16.gmra.mxu0 %v121_v29 }
  0x9e   :  { %238 = vmatmul.bf16.gmra.mxu0 %v122_v32 }
  0xab   :  { %v7012_v36 = vpop.f32.mrf.mxu0 }
  0xac   :  { %327 = vperm.xlu0 %6084, %v7012_v36  }
  0xae   :  { %243 = vmatmul.bf16.gmra.mxu0 %v123_v35 }
  0xb3   :  { %v7015_v37 = vpop.f32.mrf.mxu0 }
  0xb4   :  { %332 = vperm.xlu0 %6084, %v7015_v37   ;;  %v1255_v19 = vpack.c.bf16 %v7015_v37, %v7012_v36 }
  0xbb   :  { %v7018_v41 = vpop.f32.mrf.mxu0 }
  0xbc   :  { %337 = vperm.xlu1 %6085, %v7018_v41  }
  0xbe   :  { %248 = vmatmul.bf16.gmra.mxu0 %v124_v40 }
  0xc3   :  { %v7021_v42 = vpop.f32.mrf.mxu0 }
  0xc4   :  { %342 = vperm.xlu1 %6085, %v7021_v42   ;;  %v1256_v18 = vpack.c.bf16 %v7021_v42, %v7018_v41 }
  0xcb   :  { %v7024_v46 = vpop.f32.mrf.mxu0 }
  0xcc   :  { %347 = vperm.xlu2 %6086, %v7024_v46  }
  0xce   :  { %253 = vmatmul.bf16.gmra.mxu0 %v125_v45 }
  0xd3   :  { %v7027_v47 = vpop.f32.mrf.mxu0 }
  0xd4   :  { %352 = vperm.xlu2 %6086, %v7027_v47   ;;  %v1257_v16 = vpack.c.bf16 %v7027_v47, %v7024_v46 }
  0xdb   :  { %v7030_v51 = vpop.f32.mrf.mxu0 }
  0xdc   :  { %357 = vperm.xlu0 %6084, %v7030_v51  }
  0xde   :  { %258 = vmatmul.bf16.gmra.mxu0 %v126_v50 }
  0xe3   :  { %v7033_v52 = vpop.f32.mrf.mxu0 }
  0xe4   :  { %362 = vperm.xlu1 %6085, %v7033_v52   ;;  %v1258_v15 = vpack.c.bf16 %v7033_v52, %v7030_v51 }
  0xeb   :  { %v224_v56 = vpop.f32.mrf.mxu0 }
  0xec   :  { %367 = vperm.xlu1 %6085, %v224_v56  }
  0xee   :  { %263 = vmatmul.bf16.gmra.mxu0 %v127_v55 }
  0xf3   :  { %v226_v57 = vpop.f32.mrf.mxu0 }
  0xf4   :  { %372 = vperm.xlu1 %6085, %v226_v57   ;;  %v1259_v13 = vpack.c.bf16 %v226_v57, %v224_v56 }
  0xfb   :  { %v229_v61 = vpop.f32.mrf.mxu0 }
  0xfc   :  { %377 = vperm.xlu2 %6086, %v229_v61  }
  0xfe   :  { %268 = vmatmul.bf16.gmra.mxu0 %v128_v60  ;;  %v680_v60 = vld [vmem:[#allocation4 + $0x8] sm:$0xff] }
 0x103   :  { %v231_v62 = vpop.f32.mrf.mxu0 }
 0x104   :  { %382 = vperm.xlu0 %6084, %v231_v62   ;;  %v1260_v12 = vpack.c.bf16 %v231_v62, %v229_v61 }
 0x10b   :  { %v234_v2 = vpop.f32.mrf.mxu0 }
 0x10c   :  { %387 = vperm.xlu2 %6086, %v234_v2  }
 0x10e   :  { %273 = vmatmul.bf16.gmra.mxu0 %v129_v1 }
 0x113   :  { %v236_v3 = vpop.f32.mrf.mxu0 }
 0x114   :  { %392 = vperm.xlu1 %6085, %v236_v3   ;;  %v1261_v10 = vpack.c.bf16 %v236_v3, %v234_v2 }
 0x11b   :  { %v239_v7 = vpop.f32.mrf.mxu0 }
 0x11c   :  { %397 = vperm.xlu0 %6084, %v239_v7  }
 0x11e   :  { %278 = vmatmul.bf16.gmra.mxu0 %v130_v6  ;;  %v328_v43 = vpop.permute.xlu0 %327 }
 0x123   :  { %v241_v8 = vpop.f32.mrf.mxu0 }
 0x124   :  { %402 = vperm.xlu2 %6086, %v241_v8   ;;  %285 = vmatpush.xpose.msra.mxu1 %v241_v8  ;;  %v1262_v9 = vpack.c.bf16 %v241_v8, %v239_v7  ;;  %v7114_v8 = vunpack.c.l.bf16 %v680_v60 }
 0x126   :  { %1271 = vmatpush.bf16.msra.mxu3 %v1262_v9  ;;  %v333_v49 = vpop.permute.xlu0 %332  ;;  %v348_v59 = vpop.permute.xlu2 %347  ;;  %10369 = vst [vmem:[#allocation11_spill] sm:$0xff] %v7114_v8  ;;  %v7116_v9 = vunpack.c.h.bf16 %v680_v60 }
 0x128   :  { %286 = vmatpush.xpose.msra.mxu1 %v239_v7  ;;  %10370 = vst [vmem:[#allocation12_spill] sm:$0xff] %v7116_v9 }
 0x12a   :  { %1272 = vmatpush.bf16.msra.mxu3 %v1261_v10 }
 0x12b   :  { %v7036_v11 = vpop.f32.mrf.mxu0 }
 0x12c   :  { %287 = vmatpush.xpose.msra.mxu1 %v236_v3  ;;  %407 = vperm.xlu2 %6086, %v7036_v11  }
 0x12e   :  { %1273 = vmatpush.bf16.msra.mxu3 %v1260_v12 }
 0x130   :  { %288 = vmatpush.xpose.msra.mxu1 %v234_v2 }
 0x132   :  { %1274 = vmatpush.bf16.msra.mxu3 %v1259_v13 }
 0x133   :  { %v7039_v14 = vpop.f32.mrf.mxu0 }
 0x134   :  { %289 = vmatpush.xpose.msra.mxu1 %v231_v62  ;;  %412 = vperm.xlu1 %6085, %v7039_v14  }
 0x136   :  { %1275 = vmatpush.bf16.msra.mxu3 %v1258_v15  ;;  %v7123_v15 = vunpack.c.l.bf16 %v679_v5 }
 0x138   :  { %290 = vmatpush.xpose.msra.mxu1 %v229_v61  ;;  %10371 = vst [vmem:[#allocation13_spill] sm:$0xff] %v7123_v15 }
 0x13a   :  { %1276 = vmatpush.bf16.msra.mxu3 %v1257_v16 }
 0x13b   :  { %v7046_v17 = vpop.f32.mrf.mxu0 }
 0x13c   :  { %291 = vmatpush.xpose.msra.mxu1 %v226_v57  ;;  %417 = vperm.xlu1 %6085, %v7046_v17  }
 0x13e   :  { %1277 = vmatpush.bf16.msra.mxu3 %v1256_v18 }
 0x140   :  { %292 = vmatpush.xpose.msra.mxu1 %v224_v56  ;;  %v681_v56 = vld [vmem:[#allocation4 + $0x10] sm:$0xff] }
 0x141   :  { %v7108_v63 = vunpack.c.l.bf16 %v681_v56  ;;  %v7110_v0 = vunpack.c.h.bf16 %v681_v56 }
 0x142   :  { %1278 = vmatpush.bf16.msra.mxu3 %v1255_v19 }
 0x143   :  { %v251_v20 = vpop.f32.mrf.mxu0  ;;  %10367 = vst [vmem:[#allocation9_spill] sm:$0xff] %v7108_v63 }
 0x144   :  { %293 = vmatpush.xpose.msra.mxu1 %v7033_v52  ;;  %422 = vperm.xlu0 %6084, %v251_v20   ;;  %v1264_v40 = vpack.c.bf16 %v251_v20, %v7046_v17  ;;  %10368 = vst [vmem:[#allocation10_spill] sm:$0xff] %v7110_v0 }
 0x148   :  { %294 = vmatpush.xpose.msra.mxu1 %v7030_v51 }
 0x14b   :  { %v254_v21 = vpop.f32.mrf.mxu0 }
 0x14c   :  { %295 = vmatpush.xpose.msra.mxu1 %v7027_v47  ;;  %427 = vperm.xlu0 %6084, %v254_v21  }
 0x150   :  { %296 = vmatpush.xpose.msra.mxu1 %v7024_v46 }
 0x153   :  { %v256_v22 = vpop.f32.mrf.mxu0 }
 0x154   :  { %297 = vmatpush.xpose.msra.mxu1 %v7021_v42  ;;  %432 = vperm.xlu2 %6086, %v256_v22   ;;  %v1265_v39 = vpack.c.bf16 %v256_v22, %v254_v21  ;;  %v338_v42 = vpop.permute.xlu1 %337 }
 0x158   :  { %298 = vmatpush.xpose.msra.mxu1 %v7018_v41  ;;  %v1263_v41 = vpack.c.bf16 %v7039_v14, %v7036_v11 }
 0x15b   :  { %v259_v23 = vpop.f32.mrf.mxu0 }
 0x15c   :  { %299 = vmatpush.xpose.msra.mxu1 %v7015_v37  ;;  %437 = vperm.xlu2 %6086, %v259_v23   ;;  %v343_v45 = vpop.permute.xlu1 %342 }
 0x160   :  { %300 = vmatpush.xpose.msra.mxu1 %v7012_v36 }
 0x163   :  { %v261_v25 = vpop.f32.mrf.mxu0  ;;  %301 = vmatmul.f32.vlgmr.msra.gmra.mxu1 %v284_v24 }
 0x164   :  { %442 = vperm.xlu1 %6085, %v261_v25   ;;  %v1266_v38 = vpack.c.bf16 %v261_v25, %v259_v23  ;;  %v363_v51 = vpop.permute.xlu1 %362 }
 0x16b   :  { %v264_v26 = vpop.f32.mrf.mxu0 }
 0x16c   :  { %447 = vperm.xlu1 %6085, %v264_v26  }
 0x173   :  { %v7064_v27 = vpop.f32.mrf.mxu0 }
 0x174   :  { %v1267_v37 = vpack.c.bf16 %v7064_v27, %v264_v26 }
 0x17b   :  { %v7066_v28 = vpop.f32.mrf.mxu0 }
 0x183   :  { %v7068_v29 = vpop.f32.mrf.mxu0 }
 0x184   :  { %v1268_v36 = vpack.c.bf16 %v7068_v29, %v7066_v28 }
 0x18b   :  { %v7070_v30 = vpop.f32.mrf.mxu0 }
 0x193   :  { %v7072_v31 = vpop.f32.mrf.mxu0 }
 0x194   :  { %v1269_v35 = vpack.c.bf16 %v7072_v31, %v7070_v30 }
 0x19b   :  { %v7074_v32 = vpop.f32.mrf.mxu0 }
 0x1a3   :  { %v7076_v33 = vpop.f32.mrf.mxu0 }
 0x1a4   :  { %305 = vmatpush.xpose.msra.mxu2 %v7076_v33  ;;  %v1270_v34 = vpack.c.bf16 %v7076_v33, %v7074_v32 }
 0x1a6   :  { %1360 = vmatpush.bf16.msrb.mxu1 %v1270_v34  ;;  %v7139_v34 = vunpack.c.h.bf16 %v679_v5 }
 0x1a8   :  { %306 = vmatpush.xpose.msra.mxu2 %v7074_v32  ;;  %10372 = vst [vmem:[#allocation14_spill] sm:$0xff] %v7139_v34 }
 0x1aa   :  { %1361 = vmatpush.bf16.msrb.mxu1 %v1269_v35 }
 0x1ac   :  { %307 = vmatpush.xpose.msra.mxu2 %v7072_v31 }
 0x1ae   :  { %1362 = vmatpush.bf16.msrb.mxu1 %v1268_v36 }
 0x1b0   :  { %308 = vmatpush.xpose.msra.mxu2 %v7070_v30 }
 0x1b2   :  { %1363 = vmatpush.bf16.msrb.mxu1 %v1267_v37 }
 0x1b4   :  { %309 = vmatpush.xpose.msra.mxu2 %v7068_v29 }
 0x1b6   :  { %1364 = vmatpush.bf16.msrb.mxu1 %v1266_v38 }
 0x1b8   :  { %310 = vmatpush.xpose.msra.mxu2 %v7066_v28 }
 0x1ba   :  { %1365 = vmatpush.bf16.msrb.mxu1 %v1265_v39 }
 0x1bc   :  { %311 = vmatpush.xpose.msra.mxu2 %v7064_v27 }
 0x1be   :  { %1366 = vmatpush.bf16.msrb.mxu1 %v1264_v40 }
 0x1c0   :  { %312 = vmatpush.xpose.msra.mxu2 %v264_v26 }
 0x1c2   :  { %1367 = vmatpush.bf16.msrb.mxu1 %v1263_v41 }
 0x1c4   :  { %313 = vmatpush.xpose.msra.mxu2 %v261_v25 }
 0x1c8   :  { %314 = vmatpush.xpose.msra.mxu2 %v259_v23 }
 0x1cc   :  { %315 = vmatpush.xpose.msra.mxu2 %v256_v22 }
 0x1d0   :  { %316 = vmatpush.xpose.msra.mxu2 %v254_v21 }
 0x1d4   :  { %317 = vmatpush.xpose.msra.mxu2 %v251_v20  ;;  %v683_v20 = vld [vmem:[#allocation4 + $0x20] sm:$0xff] }
 0x1d5   :  { %v7141_v35 = vunpack.c.h.bf16 %v683_v20  ;;  %v7146_v39 = vunpack.c.l.bf16 %v683_v20  ;;  %v685_v20 = vld [vmem:[#allocation4 + $0x30] sm:$0xff] }
 0x1d7   :  { %10373 = vst [vmem:[#allocation15_spill] sm:$0xff] %v7141_v35 }
 0x1d8   :  { %318 = vmatpush.xpose.msra.mxu2 %v7046_v17  ;;  %10374 = vst [vmem:[#allocation16_spill] sm:$0xff] %v7146_v39 }
 0x1dc   :  { %319 = vmatpush.xpose.msra.mxu2 %v7039_v14 }
 0x1e0   :  { %320 = vmatpush.xpose.msra.mxu2 %v7036_v11  ;;  %v302_v44 = vpop.f32.mrf.mxu1  ;;  %v7118_v11 = vpop.permute.xlu1 %367 }
 0x1e1   :  { %v7098_v46 = vperm.slane %v302_v44, 0 }
 0x1e3   :  { %321 = vmatmul.f32.vlgmr.msra.gmra.mxu2 %v284_v24  ;;  %v491_v47 = vadd.f32 %v7098_v46, %v338_v42  ;;  %v489_v52 = vadd.f32 %v7098_v46, %v333_v49  ;;  %v487_v57 = vadd.f32 %v7098_v46, %v328_v43  ;;  %v495_v61 = vadd.f32 %v7098_v46, %v348_v59 }
 0x1e4   :  { %v493_v21 = vadd.f32 %v7098_v46, %v343_v45  ;;  %v501_v36 = vadd.f32 %v7098_v46, %v363_v51 }
 0x1e5   :  { %v555_v53 = vmul.f32 0.2, %v491_v47  ;;  %v553_v58 = vmul.f32 0.2, %v489_v52  ;;  %v551_v6 = vmul.f32 0.2, %v487_v57 }
 0x1e6   :  { %v559_v12 = vmul.f32 0.2, %v495_v61 }
 0x1e7   :  { %v619_v62 = vmax.f32 %v491_v47, %v555_v53  ;;  %v617_v7 = vmax.f32 %v489_v52, %v553_v58  ;;  %v615_v24 = vmax.f32 %v487_v57, %v551_v6  ;;  %v565_v52 = vmul.f32 0.2, %v501_v36 }
 0x1e8   :  { %v623_v38 = vmax.f32 %v495_v61, %v559_v12  ;;  %v373_v58 = vpop.permute.xlu1 %372 }
 0x1e9   :  { %v7121_v13 = vadd.f32 %v7108_v63, %v619_v62  ;;  %v7131_v22 = vadd.f32 %v7114_v8, %v617_v7  ;;  %v686_v62 = vld [vmem:[#allocation4 + $0x38] sm:$0xff]  ;;  %v505_v5 = vadd.f32 %v7098_v46, %v373_v58 }
 0x1ea   :  { %v7158_v53 = vadd.f32 %v7146_v39, %v623_v38  ;;  %v7177_v12 = vunpack.c.l.bf16 %v686_v62  ;;  %v688_v38 = vld [vmem:[#allocation4 + $0x48] sm:$0xff] }
 0x1ec   :  { %10378 = vst [vmem:[#allocation20_spill] sm:$0xff] %v7177_v12 }
 0x266   :  { %v322_v48 = vpop.f32.mrf.mxu2 }
 0x267   :  { %v7101_v50 = vperm.slane %v322_v48, 0 }
 0x269   :  { %v490_v54 = vadd.f32 %v7101_v50, %v333_v49  ;;  %v492_v55 = vadd.f32 %v7101_v50, %v338_v42  ;;  %v488_v1 = vadd.f32 %v7101_v50, %v328_v43  ;;  %v496_v2 = vadd.f32 %v7101_v50, %v348_v59  ;;  %v682_v49 = vld [vmem:[#allocation4 + $0x18] sm:$0xff] }
 0x26a   :  { %v494_v16 = vadd.f32 %v7101_v50, %v343_v45  ;;  %v502_v25 = vadd.f32 %v7101_v50, %v363_v51  ;;  %v557_v43 = vmul.f32 0.2, %v493_v21  ;;  %v7149_v45 = vadd.f32 %v7123_v15, %v615_v24  ;;  %v358_v51 = vpop.permute.xlu0 %357 }
 0x26b   :  { %v556_v3 = vmul.f32 0.2, %v492_v55  ;;  %v554_v4 = vmul.f32 0.2, %v490_v54  ;;  %v552_v18 = vmul.f32 0.2, %v488_v1  ;;  %v7163_v57 = vunpack.c.h.bf16 %v682_v49 }
 0x26c   :  { %v560_v19 = vmul.f32 0.2, %v496_v2  ;;  %v558_v40 = vmul.f32 0.2, %v494_v16  ;;  %v566_v44 = vmul.f32 0.2, %v502_v25  ;;  %v499_v59 = vadd.f32 %v7098_v46, %v358_v51 }
 0x26d   :  { %v620_v10 = vmax.f32 %v492_v55, %v556_v3  ;;  %v618_v14 = vmax.f32 %v490_v54, %v554_v4  ;;  %v616_v41 = vmax.f32 %v488_v1, %v552_v18  ;;  %v500_v54 = vadd.f32 %v7101_v50, %v358_v51  ;;  %10375 = vst [vmem:[#allocation17_spill] sm:$0xff] %v7163_v57 }
 0x26e   :  { %v624_v42 = vmax.f32 %v496_v2, %v560_v19  ;;  %v622_v56 = vmax.f32 %v494_v16, %v558_v40  ;;  %v621_v60 = vmax.f32 %v493_v21, %v557_v43  ;;  %v7166_v61 = vunpack.c.l.bf16 %v682_v49 }
 0x26f   :  { %v7127_v17 = vadd.f32 %v7110_v0, %v620_v10  ;;  %v7134_v23 = vadd.f32 %v7116_v9, %v618_v14  ;;  %v7152_v47 = vadd.f32 %v7139_v34, %v616_v41  ;;  %v506_v1 = vadd.f32 %v7101_v50, %v373_v58 }
 0x270   :  { %v7155_v48 = vadd.f32 %v7141_v35, %v624_v42  ;;  %10376 = vst [vmem:[#allocation18_spill] sm:$0xff] %v7166_v61  ;;  %v630_v3 = vmax.f32 %v502_v25, %v566_v44  ;;  %v7171_v4 = vunpack.c.h.bf16 %v686_v62  ;;  %v564_v6 = vmul.f32 0.2, %v500_v54 }
 0x271   :  { %v845_v26 = vmax.f32 %v7121_v13, %v7127_v17  ;;  %v842_v37 = vmax.f32 %v7131_v22, %v7134_v23  ;;  %v839_v55 = vmax.f32 %v7149_v45, %v7152_v47  ;;  %v7175_v7 = vadd.f32 %v7163_v57, %v622_v56 }
 0x272   :  { %v851_v2 = vmax.f32 %v7158_v53, %v7155_v48  ;;  %10377 = vst [vmem:[#allocation19_spill] sm:$0xff] %v7171_v4  ;;  %v629_v10 = vmax.f32 %v501_v36, %v565_v52  ;;  %v563_v14 = vmul.f32 0.2, %v499_v59  ;;  %v570_v16 = vmul.f32 0.2, %v506_v1 }
 0x273   :  { %846 = vmax.xlane.f32.xlu1 %v845_v26  ;;  %843 = vmax.xlane.f32.xlu0 %v842_v37  ;;  %v7180_v18 = vadd.f32 %v7166_v61, %v621_v60  ;;  %v7183_v19 = vadd.f32 %v7171_v4, %v630_v3  ;;  %v569_v21 = vmul.f32 0.2, %v505_v5  ;;  %v628_v26 = vmax.f32 %v500_v54, %v564_v6  ;;  %v684_v3 = vld [vmem:[#allocation4 + $0x28] sm:$0xff] }
 0x274   :  { %840 = vmax.xlane.f32.xlu2 %v839_v55  ;;  %v7188_v25 = vadd.f32 %v7177_v12, %v629_v10  ;;  %v7190_v36 = vunpack.c.h.bf16 %v685_v20  ;;  %v7192_v37 = vunpack.c.l.bf16 %v685_v20  ;;  %v627_v41 = vmax.f32 %v499_v59, %v563_v14  ;;  %v353_v59 = vpop.permute.xlu2 %352 }
 0x275   :  { %v848_v24 = vmax.f32 %v7180_v18, %v7175_v7  ;;  %v634_v42 = vmax.f32 %v506_v1, %v570_v16  ;;  %v7196_v43 = vunpack.c.h.bf16 %v688_v38  ;;  %v633_v49 = vmax.f32 %v505_v5, %v569_v21 }
 0x276   :  { %10379 = vst [vmem:[#allocation21_spill] sm:$0xff] %v7190_v36  ;;  %v860_v40 = vmax.f32 %v7188_v25, %v7183_v19  ;;  %v7199_v44 = vadd.f32 %v7190_v36, %v628_v26  ;;  %v7201_v51 = vunpack.c.l.bf16 %v688_v38  ;;  %v7204_v52 = vadd.f32 %v7192_v37, %v627_v41  ;;  %v383_v26 = vpop.permute.xlu0 %382  ;;  %v687_v38 = vld [vmem:[#allocation4 + $0x40] sm:$0xff] }
 0x277   :  { %10380 = vst [vmem:[#allocation22_spill] sm:$0xff] %v7192_v37  ;;  %v7207_v54 = vadd.f32 %v7196_v43, %v634_v42  ;;  %v498_v60 = vadd.f32 %v7101_v50, %v353_v59  ;;  %v497_v62 = vadd.f32 %v7098_v46, %v353_v59  ;;  %v7223_v6 = vunpack.c.h.bf16 %v684_v3 }
 0x278   :  { %10381 = vst [vmem:[#allocation23_spill] sm:$0xff] %v7196_v43  ;;  %v857_v55 = vmax.f32 %v7204_v52, %v7199_v44  ;;  %v7212_v56 = vadd.f32 %v7201_v51, %v633_v49  ;;  %v503_v10 = vadd.f32 %v7098_v46, %v7118_v11  ;;  %v7227_v16 = vunpack.c.l.bf16 %v684_v3  ;;  %v690_v3 = vld [vmem:[#allocation4 + $0x58] sm:$0xff] }
 0x279   :  { %10382 = vst [vmem:[#allocation24_spill] sm:$0xff] %v7201_v51  ;;  %v562_v1 = vmul.f32 0.2, %v498_v60  ;;  %v7238_v42 = vunpack.c.h.bf16 %v687_v38  ;;  %v509_v49 = vadd.f32 %v7098_v46, %v383_v26 }
 0x27a   :  { %v866_v58 = vmax.f32 %v7212_v56, %v7207_v54  ;;  %10383 = vst [vmem:[#allocation25_spill] sm:$0xff] %v7223_v6 }
 0x27b   :  { %852 = vmax.xlane.f32.xlu1 %v851_v2  ;;  %v561_v2 = vmul.f32 0.2, %v497_v62  ;;  %v626_v5 = vmax.f32 %v498_v60, %v562_v1  ;;  %10384 = vst [vmem:[#allocation26_spill] sm:$0xff] %v7227_v16  ;;  %v573_v1 = vmul.f32 0.2, %v509_v49 }
 0x27c   :  { %849 = vmax.xlane.f32.xlu2 %v848_v24  ;;  %10385 = vst [vmem:[#allocation27_spill] sm:$0xff] %v7238_v42 }
 0x27d   :  { %v625_v14 = vmax.f32 %v497_v62, %v561_v2  ;;  %v7230_v21 = vadd.f32 %v7223_v6, %v626_v5  ;;  %v393_v5 = vpop.permute.xlu1 %392 }
 0x27e   :  { %v7277_v37 = vpop.permute.xlu0 %397 }
 0x27f   :  { %v7233_v24 = vadd.f32 %v7227_v16, %v625_v14 }
 0x281   :  { %v854_v41 = vmax.f32 %v7233_v24, %v7230_v21 }
 0x283   :  { %861 = vmax.xlane.f32.xlu1 %v860_v40  ;;  %v510_v40 = vadd.f32 %v7101_v50, %v383_v26  ;;  %v637_v26 = vmax.f32 %v509_v49, %v573_v1  ;;  %v514_v49 = vadd.f32 %v7101_v50, %v393_v5 }
 0x284   :  { %858 = vmax.xlane.f32.xlu2 %v857_v55 }
 0x285   :  { %v574_v60 = vmul.f32 0.2, %v510_v40  ;;  %v578_v36 = vmul.f32 0.2, %v514_v49 }
 0x287   :  { %452 = vperm.xlu0 %6084, %v7064_v27   ;;  %v504_v27 = vadd.f32 %v7101_v50, %v7118_v11 }
 0x289   :  { %v568_v20 = vmul.f32 0.2, %v504_v27 }
 0x28b   :  { %867 = vmax.xlane.f32.xlu1 %v866_v58  ;;  %v632_v11 = vmax.f32 %v504_v27, %v568_v20  ;;  %v7241_v58 = vunpack.c.l.bf16 %v687_v38  ;;  %v638_v20 = vmax.f32 %v510_v40, %v574_v60  ;;  %v7255_v38 = vunpack.c.l.bf16 %v690_v3  ;;  %v689_v60 = vld [vmem:[#allocation4 + $0x50] sm:$0xff] }
 0x28c   :  { %v7265_v4 = vunpack.c.h.bf16 %v689_v60 }
 0x28d   :  { %10386 = vst [vmem:[#allocation28_spill] sm:$0xff] %v7241_v58  ;;  %v7244_v62 = vadd.f32 %v7238_v42, %v632_v11  ;;  %v7263_v40 = vadd.f32 %v7255_v38, %v637_v26  ;;  %v691_v26 = vld [vmem:[#allocation4 + $0x60] sm:$0xff] }
 0x28e   :  { %10388 = vst [vmem:[#allocation30_spill] sm:$0xff] %v7255_v38  ;;  %v7275_v38 = vunpack.c.h.bf16 %v691_v26 }
 0x28f   :  { %10389 = vst [vmem:[#allocation31_spill] sm:$0xff] %v7265_v4 }
 0x290   :  { %10391 = vst [vmem:[#allocation33_spill] sm:$0xff] %v7275_v38 }
 0x29c   :  { %457 = vperm.xlu2 %6086, %v7066_v28   ;;  %v378_v28 = vpop.permute.xlu2 %377 }
 0x29d   :  { %v508_v27 = vadd.f32 %v7101_v50, %v378_v28 }
 0x2a4   :  { %462 = vperm.xlu1 %6085, %v7068_v29   ;;  %v567_v29 = vmul.f32 0.2, %v503_v10  ;;  %v388_v59 = vpop.permute.xlu2 %387 }
 0x2a5   :  { %v512_v11 = vadd.f32 %v7101_v50, %v388_v59  ;;  %v511_v43 = vadd.f32 %v7098_v46, %v388_v59 }
 0x2a6   :  { %v631_v55 = vmax.f32 %v503_v10, %v567_v29  ;;  %v7252_v10 = vunpack.c.h.bf16 %v690_v3  ;;  %v507_v29 = vadd.f32 %v7098_v46, %v378_v28  ;;  %v7267_v28 = vpop.permute.xlu1 %412 }
 0x2a7   :  { %v576_v1 = vmul.f32 0.2, %v512_v11 }
 0x2a8   :  { %v7247_v2 = vadd.f32 %v7241_v58, %v631_v55  ;;  %10387 = vst [vmem:[#allocation29_spill] sm:$0xff] %v7252_v10  ;;  %v572_v55 = vmul.f32 0.2, %v508_v27  ;;  %v7259_v51 = vadd.f32 %v7252_v10, %v638_v20  ;;  %v571_v12 = vmul.f32 0.2, %v507_v29 }
 0x2a9   :  { %v513_v20 = vadd.f32 %v7098_v46, %v393_v5  ;;  %v575_v10 = vmul.f32 0.2, %v511_v43  ;;  %v7273_v58 = vunpack.c.l.bf16 %v689_v60  ;;  %v640_v35 = vmax.f32 %v512_v11, %v576_v1  ;;  %v692_v60 = vld [vmem:[#allocation4 + $0x68] sm:$0xff] }
 0x2aa   :  { %v863_v14 = vmax.f32 %v7247_v2, %v7244_v62  ;;  %v872_v3 = vmax.f32 %v7263_v40, %v7259_v51  ;;  %v635_v59 = vmax.f32 %v507_v29, %v571_v12  ;;  %v7290_v16 = vunpack.c.h.bf16 %v692_v60 }
 0x2ab   :  { %10390 = vst [vmem:[#allocation32_spill] sm:$0xff] %v7273_v58  ;;  %v577_v12 = vmul.f32 0.2, %v513_v20  ;;  %v642_v11 = vmax.f32 %v514_v49, %v578_v36  ;;  %v7295_v1 = vadd.f32 %v7275_v38, %v640_v35  ;;  %v423_v36 = vpop.permute.xlu0 %422 }
 0x2ac   :  { %v7287_v29 = vadd.f32 %v7273_v58, %v635_v59  ;;  %10393 = vst [vmem:[#allocation35_spill] sm:$0xff] %v7290_v16  ;;  %v526_v63 = vadd.f32 %v7101_v50, %v423_v36 }
 0x2ad   :  { %v7307_v35 = vadd.f32 %v7290_v16, %v642_v11 }
 0x2b1   :  { %855 = vmax.xlane.f32.xlu0 %v854_v41  ;;  %v403_v41 = vpop.permute.xlu2 %402 }
 0x2b2   :  { %v518_v42 = vadd.f32 %v7101_v50, %v403_v41 }
 0x2b4   :  { %v582_v61 = vmul.f32 0.2, %v518_v42 }
 0x2b9   :  { %864 = vmax.xlane.f32.xlu0 %v863_v14  ;;  %v636_v14 = vmax.f32 %v508_v27, %v572_v55  ;;  %v7283_v27 = vunpack.c.l.bf16 %v691_v26  ;;  %v408_v5 = vpop.permute.xlu2 %407  ;;  %v517_v55 = vadd.f32 %v7098_v46, %v403_v41  ;;  %v7297_v26 = vunpack.c.l.bf16 %v692_v60  ;;  %v418_v41 = vpop.permute.xlu1 %417 }
 0x2ba   :  { %v520_v6 = vadd.f32 %v7101_v50, %v408_v5  ;;  %v519_v59 = vadd.f32 %v7098_v46, %v408_v5  ;;  %v524_v57 = vadd.f32 %v7101_v50, %v418_v41  ;;  %v646_v5 = vmax.f32 %v518_v42, %v582_v61 }
 0x2bb   :  { %v7281_v39 = vadd.f32 %v7265_v4, %v636_v14  ;;  %10392 = vst [vmem:[#allocation34_spill] sm:$0xff] %v7283_v27  ;;  %v581_v58 = vmul.f32 0.2, %v517_v55  ;;  %v694_v4 = vld [vmem:[#allocation4 + $0x78] sm:$0xff] }
 0x2bc   :  { %10394 = vst [vmem:[#allocation36_spill] sm:$0xff] %v7297_v26  ;;  %v7304_v0 = vunpack.c.h.bf16 %v694_v4  ;;  %v584_v49 = vmul.f32 0.2, %v520_v6  ;;  %v7311_v38 = vunpack.c.l.bf16 %v694_v4  ;;  %v588_v11 = vmul.f32 0.2, %v524_v57 }
 0x2bd   :  { %v869_v14 = vmax.f32 %v7287_v29, %v7281_v39 }
 0x2be   :  { %10395 = vst [vmem:[#allocation37_spill] sm:$0xff] %v7304_v0  ;;  %v648_v61 = vmax.f32 %v520_v6, %v584_v49  ;;  %v7323_v4 = vadd.f32 %v7304_v0, %v646_v5  ;;  %v590_v6 = vmul.f32 0.2, %v526_v63 }
 0x2bf   :  { %10396 = vst [vmem:[#allocation38_spill] sm:$0xff] %v7311_v38 }
 0x2c0   :  { %10398 = vst [vmem:[#allocation40_spill] sm:$0xff] %v7323_v4 }
 0x2c1   :  { %873 = vmax.xlane.f32.xlu0 %v872_v3  ;;  %v639_v3 = vmax.f32 %v511_v43, %v575_v10  ;;  %v641_v43 = vmax.f32 %v513_v20, %v577_v12  ;;  %v523_v20 = vadd.f32 %v7098_v46, %v418_v41  ;;  %v583_v12 = vmul.f32 0.2, %v519_v59  ;;  %v443_v41 = vpop.permute.xlu1 %442 }
 0x2c2   :  { %v534_v15 = vadd.f32 %v7101_v50, %v443_v41 }
 0x2c3   :  { %v7301_v10 = vadd.f32 %v7283_v27, %v639_v3  ;;  %v7315_v3 = vadd.f32 %v7297_v26, %v641_v43  ;;  %v645_v27 = vmax.f32 %v517_v55, %v581_v58  ;;  %v525_v43 = vadd.f32 %v7098_v46, %v423_v36  ;;  %v697_v26 = vld [vmem:[#allocation4 + $0x90] sm:$0xff] }
 0x2c4   :  { %v647_v58 = vmax.f32 %v519_v59, %v583_v12  ;;  %v7332_v9 = vunpack.c.h.bf16 %v697_v26  ;;  %v7339_v36 = vunpack.c.l.bf16 %v697_v26  ;;  %v533_v59 = vadd.f32 %v7098_v46, %v443_v41 }
 0x2c5   :  { %870 = vmax.xlane.f32.xlu2 %v869_v14  ;;  %v875_v60 = vmax.f32 %v7301_v10, %v7295_v1  ;;  %v695_v14 = vld [vmem:[#allocation4 + $0x80] sm:$0xff]  ;;  %v878_v16 = vmax.f32 %v7315_v3, %v7307_v35  ;;  %v7329_v55 = vadd.f32 %v7311_v38, %v645_v27  ;;  %v589_v27 = vmul.f32 0.2, %v525_v43  ;;  %v698_v38 = vld [vmem:[#allocation4 + $0x98] sm:$0xff] }
 0x2c6   :  { %v7318_v34 = vunpack.c.h.bf16 %v695_v14  ;;  %v7325_v42 = vunpack.c.l.bf16 %v695_v14  ;;  %10401 = vst [vmem:[#allocation43_spill] sm:$0xff] %v7332_v9  ;;  %v652_v14 = vmax.f32 %v524_v57, %v588_v11  ;;  %v598_v8 = vmul.f32 0.2, %v534_v15 }
 0x2c7   :  { %10400 = vst [vmem:[#allocation42_spill] sm:$0xff] %v7329_v55  ;;  %v884_v5 = vmax.f32 %v7329_v55, %v7323_v4  ;;  %v654_v26 = vmax.f32 %v526_v63, %v590_v6  ;;  %v7354_v41 = vunpack.c.l.bf16 %v698_v38 }
 0x2c8   :  { %10397 = vst [vmem:[#allocation39_spill] sm:$0xff] %v7318_v34  ;;  %v7335_v49 = vadd.f32 %v7318_v34, %v648_v61  ;;  %v7343_v12 = vadd.f32 %v7325_v42, %v647_v58  ;;  %v7347_v34 = vunpack.c.h.bf16 %v698_v38  ;;  %v7352_v11 = vadd.f32 %v7332_v9, %v652_v14  ;;  %v7356_v58 = vpop.permute.xlu2 %432 }
 0x2c9   :  { %10399 = vst [vmem:[#allocation41_spill] sm:$0xff] %v7325_v42  ;;  %v702_v42 = vld [vmem:[#allocation4 + $0xb8] sm:$0xff]  ;;  %v662_v6 = vmax.f32 %v534_v15, %v598_v8 }
 0x2ca   :  { %10402 = vst [vmem:[#allocation44_spill] sm:$0xff] %v7339_v36  ;;  %v887_v57 = vmax.f32 %v7343_v12, %v7335_v49  ;;  %v7362_v4 = vunpack.c.h.bf16 %v702_v42  ;;  %v7365_v63 = vadd.f32 %v7347_v34, %v654_v26 }
 0x2cb   :  { %10403 = vst [vmem:[#allocation45_spill] sm:$0xff] %v7347_v34 }
 0x2cc   :  { %10404 = vst [vmem:[#allocation46_spill] sm:$0xff] %v7354_v41  ;;  %v7379_v26 = vadd.f32 %v7362_v4, %v662_v6 }
 0x2cd   :  { %879 = vmax.xlane.f32.xlu2 %v878_v16  ;;  %v428_v16 = vpop.permute.xlu0 %427  ;;  %10405 = vst [vmem:[#allocation47_spill] sm:$0xff] %v7362_v4 }
 0x2ce   :  { %876 = vmax.xlane.f32.xlu1 %v875_v60  ;;  %v587_v60 = vmul.f32 0.2, %v523_v20  ;;  %v528_v61 = vadd.f32 %v7101_v50, %v428_v16  ;;  %10408 = vst [vmem:[#allocation50_spill] sm:$0xff] %v7379_v26 }
 0x2d0   :  { %v651_v0 = vmax.f32 %v523_v20, %v587_v60  ;;  %v653_v20 = vmax.f32 %v525_v43, %v589_v27  ;;  %v592_v55 = vmul.f32 0.2, %v528_v61  ;;  %v7372_v27 = vunpack.c.l.bf16 %v702_v42 }
 0x2d2   :  { %v7360_v60 = vadd.f32 %v7339_v36, %v651_v0  ;;  %10406 = vst [vmem:[#allocation48_spill] sm:$0xff] %v7372_v27  ;;  %v699_v0 = vld [vmem:[#allocation4 + $0xa0] sm:$0xff]  ;;  %v656_v36 = vmax.f32 %v528_v61, %v592_v55 }
 0x2d3   :  { %v7376_v9 = vunpack.c.h.bf16 %v699_v0  ;;  %v7381_v15 = vunpack.c.l.bf16 %v699_v0 }
 0x2d4   :  { %v893_v38 = vmax.f32 %v7360_v60, %v7352_v11 }
 0x2d5   :  { %467 = vperm.xlu0 %6084, %v7070_v30   ;;  %v527_v30 = vadd.f32 %v7098_v46, %v428_v16  ;;  %888 = vmax.xlane.f32.xlu2 %v887_v57  ;;  %v7370_v16 = vadd.f32 %v7354_v41, %v653_v20  ;;  %10407 = vst [vmem:[#allocation49_spill] sm:$0xff] %v7376_v9 }
 0x2d6   :  { %885 = vmax.xlane.f32.xlu1 %v884_v5  ;;  %v597_v5 = vmul.f32 0.2, %v533_v59  ;;  %10409 = vst [vmem:[#allocation51_spill] sm:$0xff] %v7381_v15  ;;  %v7389_v42 = vadd.f32 %v7376_v9, %v656_v36 }
 0x2d7   :  { %v591_v14 = vmul.f32 0.2, %v527_v30  ;;  %v896_v57 = vmax.f32 %v7370_v16, %v7365_v63 }
 0x2d8   :  { %v661_v43 = vmax.f32 %v533_v59, %v597_v5  ;;  %v7386_v59 = vpop.permute.xlu2 %437 }
 0x2d9   :  { %v655_v8 = vmax.f32 %v527_v30, %v591_v14 }
 0x2da   :  { %v7384_v20 = vadd.f32 %v7372_v27, %v661_v43 }
 0x2db   :  { %v7394_v61 = vadd.f32 %v7381_v15, %v655_v8  ;;  %v7402_v8 = vpop.permute.xlu1 %447 }
 0x2dc   :  { %v908_v55 = vmax.f32 %v7384_v20, %v7379_v26 }
 0x2dd   :  { %897 = vmax.xlane.f32.xlu2 %v896_v57  ;;  %v899_v30 = vmax.f32 %v7394_v61, %v7389_v42 }
 0x2de   :  { %894 = vmax.xlane.f32.xlu1 %v893_v38 }
 0x2e5   :  { %900 = vmax.xlane.f32.xlu2 %v899_v30 }
 0x2e6   :  { %909 = vmax.xlane.f32.xlu1 %v908_v55  ;;  %v844_v5 = vpop.xlane.xlu0 %843  ;;  %v516_v55 = vadd.f32 %v7101_v50, %v7277_v37 }
 0x2e7   :  { %v937_v38 = vsub.f32 %v7131_v22, %v844_v5  ;;  %v938_v6 = vsub.f32 %v7134_v23, %v844_v5  ;;  %v841_v36 = vpop.xlane.xlu2 %840  ;;  %v515_v22 = vadd.f32 %v7098_v46, %v7277_v37 }
 0x2e8   :  { %v935_v0 = vsub.f32 %v7149_v45, %v841_v36  ;;  %v936_v57 = vsub.f32 %v7152_v47, %v841_v36  ;;  %v580_v23 = vmul.f32 0.2, %v516_v55  ;;  %v693_v36 = vld [vmem:[#allocation4 + $0x70] sm:$0xff] }
 0x2e9   :  { %v1003_v14 = vmul.f32 1.442695, %v937_v38  ;;  %v1005_v43 = vmul.f32 1.442695, %v938_v6  ;;  %v579_v38 = vmul.f32 0.2, %v515_v22  ;;  %v7412_v15 = vunpack.c.h.bf16 %v693_v36 }
 0x2ea   :  { %v999_v27 = vmul.f32 1.442695, %v935_v0  ;;  %v1001_v4 = vmul.f32 1.442695, %v936_v57  ;;  %v847_v0 = vpop.xlane.xlu1 %846  ;;  %v644_v57 = vmax.f32 %v516_v55, %v580_v23  ;;  %v7419_v41 = vunpack.c.l.bf16 %v693_v36 }
 0x2eb   :  { %6093 = vpow2.f32 %v1003_v14  ;;  %10410 = vst [vmem:[#allocation52_spill] sm:$0xff] %v7412_v15  ;;  %v939_v34 = vsub.f32 %v7121_v13, %v847_v0  ;;  %v940_v26 = vsub.f32 %v7127_v17, %v847_v0  ;;  %v530_v13 = vadd.f32 %v7101_v50, %v7356_v58 }
 0x2ec   :  { %6095 = vpow2.f32 %v1005_v43  ;;  %v522_v43 = vadd.f32 %v7101_v50, %v7267_v28  ;;  %10411 = vst [vmem:[#allocation53_spill] sm:$0xff] %v7419_v41 }
 0x2ed   :  { %6097 = vpow2.f32 %v999_v27 }
 0x2ee   :  { %6099 = vpow2.f32 %v1001_v4  ;;  %v586_v23 = vmul.f32 0.2, %v522_v43 }
 0x2ef   :  { %v850_v45 = vpop.xlane.xlu2 %849 }
 0x2f0   :  { %v941_v47 = vsub.f32 %v7180_v18, %v850_v45  ;;  %v942_v6 = vsub.f32 %v7175_v7, %v850_v45  ;;  %v521_v18 = vadd.f32 %v7098_v46, %v7267_v28  ;;  %v643_v45 = vmax.f32 %v515_v22, %v579_v38  ;;  %v696_v22 = vld [vmem:[#allocation4 + $0x88] sm:$0xff] }
 0x2f1   :  { %v6094_v5 = vpop.eup %6093  ;;  %v7429_v38 = vunpack.c.h.bf16 %v696_v22 }
 0x2f2   :  { %v6096_v30 = vpop.eup %6095  ;;  %v1011_v4 = vmul.f32 1.442695, %v941_v47  ;;  %v1013_v27 = vmul.f32 1.442695, %v942_v6  ;;  %v7424_v47 = vadd.f32 %v7412_v15, %v644_v57  ;;  %v585_v6 = vmul.f32 0.2, %v521_v18 }
 0x2f3   :  { %v1130_v14 = vadd.f32 %v6096_v30, %v6094_v5  ;;  %v7414_v37 = vpop.eup %6097  ;;  %v7427_v28 = vadd.f32 %v7419_v41, %v643_v45  ;;  %10412 = vst [vmem:[#allocation54_spill] sm:$0xff] %v7429_v38  ;;  %v529_v57 = vadd.f32 %v7098_v46, %v7356_v58 }
 0x2f4   :  { %v6100_v9 = vpop.eup %6099  ;;  %v1223_v7 = vpack.c.bf16 %v6094_v5, %v7414_v37  ;;  %6101 = vpow2.f32 %v1011_v4  ;;  %v1007_v5 = vmul.f32 1.442695, %v939_v34  ;;  %v649_v4 = vmax.f32 %v521_v18, %v585_v6 }
 0x2f5   :  { %1131 = vadd.xlane.f32.xlu2 %v1130_v14  ;;  %v1224_v55 = vpack.c.bf16 %v6096_v30, %v6100_v9  ;;  %6103 = vpow2.f32 %v1013_v27  ;;  %v1009_v30 = vmul.f32 1.442695, %v940_v26  ;;  %v881_v17 = vmax.f32 %v7427_v28, %v7424_v47 }
 0x2f6   :  { %1279 = vmatmul.bf16.vlgmr.msra.gmra.mxu3 %v1223_v7  ;;  %v650_v14 = vmax.f32 %v522_v43, %v586_v23  ;;  %v7437_v27 = vunpack.c.l.bf16 %v696_v22  ;;  %6105 = vpow2.f32 %v1007_v5  ;;  %v594_v7 = vmul.f32 0.2, %v530_v13 }
 0x2f7   :  { %1368 = vmatmul.bf16.vlgmr.msrb.gmra.mxu1 %v1224_v55  ;;  %6107 = vpow2.f32 %v1009_v30  ;;  %v593_v26 = vmul.f32 0.2, %v529_v57  ;;  %v700_v55 = vld [vmem:[#allocation4 + $0xa8] sm:$0xff] }
 0x2f8   :  { %10413 = vst [vmem:[#allocation55_spill] sm:$0xff] %v7437_v27  ;;  %v7440_v45 = vadd.f32 %v7429_v38, %v650_v14  ;;  %v7443_v43 = vadd.f32 %v7437_v27, %v649_v4  ;;  %v658_v23 = vmax.f32 %v530_v13, %v594_v7  ;;  %v7447_v18 = vunpack.c.h.bf16 %v700_v55 }
 0x2f9   :  { %v657_v30 = vmax.f32 %v529_v57, %v593_v26  ;;  %v532_v13 = vadd.f32 %v7101_v50, %v7386_v59  ;;  %v701_v26 = vld [vmem:[#allocation4 + $0xb0] sm:$0xff] }
 0x2fa   :  { %v6102_v36 = vpop.eup %6101  ;;  %v890_v58 = vmax.f32 %v7443_v43, %v7440_v45  ;;  %10414 = vst [vmem:[#allocation56_spill] sm:$0xff] %v7447_v18 }
 0x2fb   :  { %v6104_v0 = vpop.eup %6103 }
 0x2fc   :  { %v1136_v34 = vadd.f32 %v6104_v0, %v6102_v36  ;;  %v6106_v6 = vpop.eup %6105 }
 0x2fd   :  { %v6108_v22 = vpop.eup %6107  ;;  %v1225_v5 = vpack.c.bf16 %v6102_v36, %v6106_v6  ;;  %v531_v36 = vadd.f32 %v7098_v46, %v7386_v59  ;;  %v853_v59 = vpop.xlane.xlu1 %852 }
 0x2fe   :  { %1137 = vadd.xlane.f32.xlu1 %v1136_v34  ;;  %v1226_v14 = vpack.c.bf16 %v6104_v0, %v6108_v22  ;;  %v7452_v34 = vadd.f32 %v7447_v18, %v658_v23  ;;  %v596_v0 = vmul.f32 0.2, %v532_v13  ;;  %v7465_v23 = vunpack.c.h.bf16 %v701_v26 }
 0x2ff   :  { %882 = vmax.xlane.f32.xlu0 %v881_v17  ;;  %v7449_v17 = vunpack.c.l.bf16 %v700_v55  ;;  %v595_v57 = vmul.f32 0.2, %v531_v36  ;;  %v1127_v55 = vadd.f32 %v6100_v9, %v7414_v37  ;;  %v943_v9 = vsub.f32 %v7158_v53, %v853_v59 }
 0x300   :  { %10416 = vst [vmem:[#allocation58_spill] sm:$0xff] %v7465_v23  ;;  %v944_v37 = vsub.f32 %v7155_v48, %v853_v59 }
 0x301   :  { %10415 = vst [vmem:[#allocation57_spill] sm:$0xff] %v7449_v17  ;;  %v7455_v4 = vadd.f32 %v7449_v17, %v657_v30  ;;  %v7467_v30 = vunpack.c.l.bf16 %v701_v26 }
 0x303   :  { %v902_v7 = vmax.f32 %v7455_v4, %v7452_v34  ;;  %10417 = vst [vmem:[#allocation59_spill] sm:$0xff] %v7467_v30 }
 0x306   :  { %1284 = vmatmul.bf16.gmra.mxu3 %v1225_v5  ;;  %v659_v5 = vmax.f32 %v531_v36, %v595_v57  ;;  %v1015_v36 = vmul.f32 1.442695, %v943_v9 }
 0x307   :  { %891 = vmax.xlane.f32.xlu0 %v890_v58  ;;  %1373 = vmatmul.bf16.gmra.mxu1 %v1226_v14  ;;  %v660_v58 = vmax.f32 %v532_v13, %v596_v0  ;;  %v859_v13 = vpop.xlane.xlu2 %858  ;;  %v1017_v0 = vmul.f32 1.442695, %v944_v37 }
 0x308   :  { %6109 = vpow2.f32 %v1015_v36 }
 0x309   :  { %v7470_v14 = vadd.f32 %v7465_v23, %v660_v58  ;;  %v1133_v58 = vadd.f32 %v6108_v22, %v6106_v6  ;;  %6111 = vpow2.f32 %v1017_v0  ;;  %v947_v22 = vsub.f32 %v7204_v52, %v859_v13 }
 0x30a   :  { %v948_v0 = vsub.f32 %v7199_v44, %v859_v13 }
 0x30b   :  { %v1023_v23 = vmul.f32 1.442695, %v947_v22 }
 0x30d   :  { %472 = vperm.xlu2 %6086, %v7072_v31   ;;  %v7473_v31 = vadd.f32 %v7467_v30, %v659_v5  ;;  %v862_v30 = vpop.xlane.xlu1 %861 }
 0x30e   :  { %v949_v48 = vsub.f32 %v7188_v25, %v862_v30 }
 0x30f   :  { %903 = vmax.xlane.f32.xlu0 %v902_v7  ;;  %v7475_v7 = vpop.permute.xlu0 %452  ;;  %v905_v17 = vmax.f32 %v7473_v31, %v7470_v14  ;;  %v458_v53 = vpop.permute.xlu2 %457 }
 0x310   :  { %v539_v59 = vadd.f32 %v7098_v46, %v458_v53  ;;  %v540_v9 = vadd.f32 %v7101_v50, %v458_v53  ;;  %v1027_v36 = vmul.f32 1.442695, %v949_v48  ;;  %v1025_v53 = vmul.f32 1.442695, %v948_v0 }
 0x315   :  { %v868_v13 = vpop.xlane.xlu1 %867 }
 0x316   :  { %v954_v0 = vsub.f32 %v7207_v54, %v868_v13 }
 0x317   :  { %1128 = vadd.xlane.f32.xlu0 %v1127_v55 }
 0x31f   :  { %906 = vmax.xlane.f32.xlu0 %v905_v17  ;;  %v6110_v17 = vpop.eup %6109 }
 0x324   :  { %v856_v57 = vpop.xlane.xlu0 %855 }
 0x325   :  { %v945_v26 = vsub.f32 %v7233_v24, %v856_v57  ;;  %v946_v55 = vsub.f32 %v7230_v21, %v856_v57  ;;  %v6112_v24 = vpop.eup %6111  ;;  %v950_v21 = vsub.f32 %v7183_v19, %v862_v30 }
 0x326   :  { %v1139_v52 = vadd.f32 %v6112_v24, %v6110_v17 }
 0x327   :  { %v1019_v5 = vmul.f32 1.442695, %v945_v26  ;;  %v1021_v18 = vmul.f32 1.442695, %v946_v55  ;;  %1134 = vadd.xlane.f32.xlu0 %v1133_v58  ;;  %v603_v26 = vmul.f32 0.2, %v539_v59 }
 0x328   :  { %v705_v58 = vld [vmem:[#allocation4 + $0xd0] sm:$0xff] }
 0x329   :  { %6113 = vpow2.f32 %v1019_v5  ;;  %v1029_v5 = vmul.f32 1.442695, %v950_v21  ;;  %v7489_v19 = vunpack.c.l.bf16 %v705_v58  ;;  %v7491_v30 = vunpack.c.h.bf16 %v705_v58 }
 0x32a   :  { %6115 = vpow2.f32 %v1021_v18  ;;  %v604_v18 = vmul.f32 0.2, %v540_v9  ;;  %v667_v48 = vmax.f32 %v539_v59, %v603_v26 }
 0x32b   :  { %10418 = vst [vmem:[#allocation60_spill] sm:$0xff] %v7489_v19  ;;  %6117 = vpow2.f32 %v1027_v36  ;;  %v953_v36 = vsub.f32 %v7212_v56, %v868_v13  ;;  %v1037_v56 = vmul.f32 1.442695, %v954_v0 }
 0x32c   :  { %10419 = vst [vmem:[#allocation61_spill] sm:$0xff] %v7491_v30  ;;  %v668_v44 = vmax.f32 %v540_v9, %v604_v18  ;;  %6119 = vpow2.f32 %v1029_v5  ;;  %v7494_v21 = vadd.f32 %v7489_v19, %v667_v48 }
 0x32d   :  { %6121 = vpow2.f32 %v1023_v23  ;;  %v1035_v26 = vmul.f32 1.442695, %v953_v36 }
 0x32e   :  { %6123 = vpow2.f32 %v1025_v53 }
 0x32f   :  { %v6114_v6 = vpop.eup %6113  ;;  %6125 = vpow2.f32 %v1035_v26 }
 0x330   :  { %v6116_v37 = vpop.eup %6115  ;;  %v1227_v57 = vpack.c.bf16 %v6114_v6, %v6110_v17  ;;  %v865_v17 = vpop.xlane.xlu0 %864  ;;  %6127 = vpow2.f32 %v1037_v56 }
 0x331   :  { %v1228_v55 = vpack.c.bf16 %v6116_v37, %v6112_v24  ;;  %v1142_v25 = vadd.f32 %v6116_v37, %v6114_v6  ;;  %v7497_v6 = vadd.f32 %v7491_v30, %v668_v44  ;;  %v6118_v22 = vpop.eup %6117  ;;  %v952_v18 = vsub.f32 %v7244_v62, %v865_v17 }
 0x332   :  { %1289 = vmatmul.bf16.gmra.mxu3 %v1227_v57  ;;  %v6120_v37 = vpop.eup %6119  ;;  %v951_v57 = vsub.f32 %v7247_v2, %v865_v17 }
 0x333   :  { %1378 = vmatmul.bf16.gmra.mxu1 %v1228_v55  ;;  %1143 = vadd.xlane.f32.xlu1 %v1142_v25  ;;  %v6122_v9 = vpop.eup %6121  ;;  %v917_v23 = vmax.f32 %v7494_v21, %v7497_v6  ;;  %v463_v55 = vpop.permute.xlu1 %462  ;;  %v1033_v53 = vmul.f32 1.442695, %v952_v18 }
 0x334   :  { %v6124_v24 = vpop.eup %6123  ;;  %v1031_v58 = vmul.f32 1.442695, %v951_v57  ;;  %v541_v5 = vadd.f32 %v7098_v46, %v463_v55  ;;  %v542_v54 = vadd.f32 %v7101_v50, %v463_v55 }
 0x335   :  { %v1230_v25 = vpack.c.bf16 %v6120_v37, %v6124_v24  ;;  %v1145_v44 = vadd.f32 %v6124_v24, %v6122_v9  ;;  %v7512_v0 = vpop.eup %6125 }
 0x336   :  { %1140 = vadd.xlane.f32.xlu2 %v1139_v52  ;;  %6129 = vpow2.f32 %v1031_v58  ;;  %v605_v36 = vmul.f32 0.2, %v541_v5  ;;  %v606_v17 = vmul.f32 0.2, %v542_v54  ;;  %v7514_v26 = vpop.eup %6127 }
 0x337   :  { %6131 = vpow2.f32 %v1033_v53 }
 0x338   :  { %v7501_v59 = vpop.xlane.xlu2 %870  ;;  %v874_v57 = vpop.xlane.xlu0 %873  ;;  %v670_v58 = vmax.f32 %v542_v54, %v606_v17 }
 0x339   :  { %v957_v55 = vsub.f32 %v7263_v40, %v874_v57  ;;  %v537_v40 = vadd.f32 %v7098_v46, %v7475_v7 }
 0x33b   :  { %482 = vperm.xlu0 %6084, %v7076_v33   ;;  %v1229_v33 = vpack.c.bf16 %v6118_v22, %v6122_v9  ;;  %v669_v9 = vmax.f32 %v541_v5, %v605_v36  ;;  %v1043_v54 = vmul.f32 1.442695, %v957_v55 }
 0x33e   :  { %918 = vmax.xlane.f32.xlu2 %v917_v23  ;;  %v706_v23 = vld [vmem:[#allocation4 + $0xd8] sm:$0xff] }
 0x33f   :  { %v7517_v24 = vunpack.c.l.bf16 %v706_v23  ;;  %v7519_v18 = vunpack.c.h.bf16 %v706_v23 }
 0x340   :  { %v880_v52 = vpop.xlane.xlu2 %879 }
 0x341   :  { %v961_v2 = vsub.f32 %v7315_v3, %v880_v52  ;;  %v962_v48 = vsub.f32 %v7307_v35, %v880_v52  ;;  %v1148_v35 = vadd.f32 %v6120_v37, %v6118_v22  ;;  %10420 = vst [vmem:[#allocation62_spill] sm:$0xff] %v7517_v24  ;;  %v958_v52 = vsub.f32 %v7259_v51, %v874_v57 }
 0x342   :  { %1294 = vmatmul.bf16.gmra.mxu3 %v1229_v33  ;;  %10421 = vst [vmem:[#allocation63_spill] sm:$0xff] %v7519_v18  ;;  %v6130_v33 = vpop.eup %6129  ;;  %v7537_v51 = vadd.f32 %v7517_v24, %v669_v9 }
 0x343   :  { %1383 = vmatmul.bf16.gmra.mxu1 %v1230_v25  ;;  %v1051_v62 = vmul.f32 1.442695, %v961_v2  ;;  %v1053_v13 = vmul.f32 1.442695, %v962_v48  ;;  %v6132_v53 = vpop.eup %6131  ;;  %v7541_v48 = vadd.f32 %v7519_v18, %v670_v58 }
 0x345   :  { %6133 = vpow2.f32 %v1051_v62  ;;  %v1045_v62 = vmul.f32 1.442695, %v958_v52  ;;  %v920_v57 = vmax.f32 %v7537_v51, %v7541_v48 }
 0x346   :  { %1146 = vadd.xlane.f32.xlu2 %v1145_v44  ;;  %6135 = vpow2.f32 %v1053_v13  ;;  %v538_v44 = vadd.f32 %v7101_v50, %v7475_v7  ;;  %v601_v7 = vmul.f32 0.2, %v537_v40 }
 0x347   :  { %v468_v58 = vpop.permute.xlu0 %467 }
 0x348   :  { %v889_v3 = vpop.xlane.xlu2 %888  ;;  %v665_v52 = vmax.f32 %v537_v40, %v601_v7  ;;  %v707_v7 = vld [vmem:[#allocation4 + $0xe0] sm:$0xff] }
 0x349   :  { %v967_v25 = vsub.f32 %v7343_v12, %v889_v3  ;;  %v968_v56 = vsub.f32 %v7335_v49, %v889_v3  ;;  %v956_v49 = vsub.f32 %v7281_v39, %v7501_v59  ;;  %v1231_v12 = vpack.c.bf16 %v7512_v0, %v6130_v33 }
 0x34a   :  { %v602_v3 = vmul.f32 0.2, %v538_v44 }
 0x34b   :  { %v7525_v2 = vpop.eup %6133  ;;  %v1063_v22 = vmul.f32 1.442695, %v967_v25  ;;  %v1065_v37 = vmul.f32 1.442695, %v968_v56  ;;  %v1041_v13 = vmul.f32 1.442695, %v956_v49  ;;  %v543_v49 = vadd.f32 %v7098_v46, %v468_v58 }
 0x34c   :  { %477 = vperm.xlu1 %6085, %v7074_v32   ;;  %v955_v32 = vsub.f32 %v7287_v29, %v7501_v59  ;;  %v7529_v5 = vpop.eup %6135  ;;  %v1232_v29 = vpack.c.bf16 %v7514_v26, %v6132_v53 }
 0x34d   :  { %6137 = vpow2.f32 %v1063_v22  ;;  %v7547_v39 = vadd.f32 %v7529_v5, %v7525_v2 }
 0x34e   :  { %1149 = vadd.xlane.f32.xlu2 %v1148_v35  ;;  %6139 = vpow2.f32 %v1065_v37  ;;  %v1039_v59 = vmul.f32 1.442695, %v955_v32  ;;  %v704_v35 = vld [vmem:[#allocation4 + $0xc8] sm:$0xff]  ;;  %v666_v32 = vmax.f32 %v538_v44, %v602_v3 }
 0x34f   :  { %6141 = vpow2.f32 %v1043_v54  ;;  %v7563_v22 = vunpack.c.h.bf16 %v704_v35 }
 0x350   :  { %v898_v36 = vpop.xlane.xlu2 %897  ;;  %6143 = vpow2.f32 %v1045_v62 }
 0x351   :  { %v973_v17 = vsub.f32 %v7370_v16, %v898_v36  ;;  %v974_v23 = vsub.f32 %v7365_v63, %v898_v36  ;;  %6145 = vpow2.f32 %v1039_v59  ;;  %v7557_v16 = vunpack.c.l.bf16 %v704_v35  ;;  %10423 = vst [vmem:[#allocation65_spill] sm:$0xff] %v7563_v22  ;;  %v6049_v35 = vld [vmem:[#allocation6 + $0x78] sm:$0xff] }
 0x352   :  { %1299 = vmatmul.bf16.gmra.mxu3 %v1231_v12  ;;  %6147 = vpow2.f32 %v1041_v13  ;;  %v544_v12 = vadd.f32 %v7101_v50, %v468_v58  ;;  %v1151_v59 = vadd.f32 %v6132_v53, %v6130_v33  ;;  %v7579_v40 = vadd.f32 %v7563_v22, %v666_v32  ;;  %1660 = vmatpush.bf16.msrb.mxu2 %v6049_v35 }
 0x353   :  { %1388 = vmatmul.bf16.gmra.mxu1 %v1232_v29  ;;  %v7553_v9 = vpop.eup %6137  ;;  %v1075_v55 = vmul.f32 1.442695, %v973_v17  ;;  %v1077_v25 = vmul.f32 1.442695, %v974_v23  ;;  %10422 = vst [vmem:[#allocation64_spill] sm:$0xff] %v7557_v16  ;;  %v877_v29 = vpop.xlane.xlu1 %876  ;;  %v7576_v36 = vadd.f32 %v7557_v16, %v665_v52  ;;  %v7597_v52 = vunpack.c.l.bf16 %v707_v7 }
 0x354   :  { %v7555_v56 = vpop.eup %6139  ;;  %v959_v17 = vsub.f32 %v7301_v10, %v877_v29  ;;  %v607_v23 = vmul.f32 0.2, %v543_v49  ;;  %v960_v33 = vsub.f32 %v7295_v1, %v877_v29  ;;  %v536_v10 = vadd.f32 %v7101_v50, %v7402_v8 }
 0x355   :  { %6149 = vpow2.f32 %v1075_v55  ;;  %v7561_v63 = vadd.f32 %v7555_v56, %v7553_v9  ;;  %v7565_v37 = vpop.eup %6141  ;;  %v914_v58 = vmax.f32 %v7576_v36, %v7579_v40  ;;  %10424 = vst [vmem:[#allocation66_spill] sm:$0xff] %v7597_v52  ;;  %v7603_v16 = vunpack.c.h.bf16 %v707_v7  ;;  %v6047_v7 = vld [vmem:[#allocation6 + $0x68] sm:$0xff] }
 0x356   :  { %921 = vmax.xlane.f32.xlu2 %v920_v57  ;;  %6151 = vpow2.f32 %v1077_v25  ;;  %v7569_v54 = vpop.eup %6143  ;;  %v608_v57 = vmul.f32 0.2, %v544_v12  ;;  %v1047_v32 = vmul.f32 1.442695, %v959_v17  ;;  %v671_v29 = vmax.f32 %v543_v49, %v607_v23  ;;  %v703_v49 = vld [vmem:[#allocation4 + $0xc0] sm:$0xff] }
 0x357   :  { %v7571_v62 = vpop.eup %6145  ;;  %10425 = vst [vmem:[#allocation67_spill] sm:$0xff] %v7603_v16  ;;  %v535_v22 = vadd.f32 %v7098_v46, %v7402_v8  ;;  %v600_v18 = vmul.f32 0.2, %v536_v10 }
 0x358   :  { %v7573_v13 = vpop.eup %6147  ;;  %v1233_v53 = vpack.c.bf16 %v7565_v37, %v7571_v62  ;;  %v7589_v55 = vpop.xlane.xlu2 %900  ;;  %6153 = vpow2.f32 %v1047_v32  ;;  %v7608_v24 = vadd.f32 %v7597_v52, %v671_v29 }
 0x359   :  { %v1234_v25 = vpack.c.bf16 %v7569_v54, %v7573_v13  ;;  %v599_v30 = vmul.f32 0.2, %v535_v22  ;;  %v664_v23 = vmax.f32 %v536_v10, %v600_v18 }
 0x35b   :  { %v7581_v44 = vpop.eup %6149 }
 0x35c   :  { %v7584_v3 = vpop.eup %6151 }
 0x35d   :  { %v7601_v1 = vadd.f32 %v7584_v3, %v7581_v44 }
 0x35e   :  { %1152 = vadd.xlane.f32.xlu2 %v1151_v59  ;;  %v672_v59 = vmax.f32 %v544_v12, %v608_v57  ;;  %v6048_v12 = vld [vmem:[#allocation6 + $0x70] sm:$0xff]  ;;  %v7615_v57 = vunpack.c.h.bf16 %v703_v49  ;;  %v6154_v32 = vpop.eup %6153 }
 0x35f   :  { %1661 = vmatpush.bf16.msrb.mxu2 %v6048_v12  ;;  %v1235_v18 = vpack.c.bf16 %v7525_v2, %v6154_v32 }
 0x360   :  { %v7611_v35 = vadd.f32 %v7603_v16, %v672_v59  ;;  %10426 = vst [vmem:[#allocation68_spill] sm:$0xff] %v7615_v57  ;;  %v7622_v59 = vadd.f32 %v7615_v57, %v664_v23  ;;  %v10428_v16 = vld [vmem:[#allocation42_spill] sm:$0xff] }
 0x362   :  { %1304 = vmatmul.bf16.gmra.mxu3 %v1233_v53  ;;  %v1049_v53 = vmul.f32 1.442695, %v960_v33  ;;  %v923_v8 = vmax.f32 %v7608_v24, %v7611_v35  ;;  %v886_v33 = vpop.xlane.xlu1 %885 }
 0x363   :  { %1393 = vmatmul.bf16.gmra.mxu1 %v1234_v25  ;;  %v663_v25 = vmax.f32 %v535_v22, %v599_v30  ;;  %1662 = vmatpush.bf16.msrb.mxu2 %v6047_v7  ;;  %v965_v12 = vsub.f32 %v10428_v16, %v886_v33  ;;  %v708_v22 = vld [vmem:[#allocation4 + $0xe8] sm:$0xff]  ;;  %v6045_v16 = vld [vmem:[#allocation6 + $0x58] sm:$0xff] }
 0x364   :  { %6155 = vpow2.f32 %v1049_v53  ;;  %v6046_v53 = vld [vmem:[#allocation6 + $0x60] sm:$0xff] }
 0x365   :  { %915 = vmax.xlane.f32.xlu0 %v914_v58  ;;  %v7619_v58 = vunpack.c.l.bf16 %v703_v49  ;;  %v10429_v49 = vld [vmem:[#allocation40_spill] sm:$0xff] }
 0x366   :  { %v966_v19 = vsub.f32 %v10429_v49, %v886_v33 }
 0x367   :  { %10427 = vst [vmem:[#allocation69_spill] sm:$0xff] %v7619_v58  ;;  %v7626_v10 = vadd.f32 %v7619_v58, %v663_v25  ;;  %1663 = vmatpush.bf16.msrb.mxu2 %v6046_v53  ;;  %v7639_v58 = vunpack.c.l.bf16 %v708_v22 }
 0x368   :  { %v7613_v17 = vpop.xlane.xlu2 %1131  ;;  %v1061_v41 = vmul.f32 1.442695, %v966_v19 }
 0x369   :  { %v911_v2 = vmax.f32 %v7626_v10, %v7622_v59  ;;  %10430 = vst [vmem:[#allocation42_spill] sm:$0xff] %v7639_v58 }
 0x36a   :  { %v6156_v29 = vpop.eup %6155 }
 0x36b   :  { %v1236_v30 = vpack.c.bf16 %v7529_v5, %v6156_v29  ;;  %v1160_v5 = vadd.f32 %v7569_v54, %v7565_v37  ;;  %1664 = vmatpush.bf16.msrb.mxu2 %v6045_v16  ;;  %v6044_v37 = vld [vmem:[#allocation6 + $0x50] sm:$0xff]  ;;  %v6042_v16 = vld [vmem:[#allocation6 + $0x40] sm:$0xff] }
 0x36d   :  { %924 = vmax.xlane.f32.xlu0 %v923_v8 }
 0x36f   :  { %1665 = vmatpush.bf16.msrb.mxu2 %v6044_v37 }
 0x370   :  { %v473_v52 = vpop.permute.xlu2 %472 }
 0x371   :  { %v545_v8 = vadd.f32 %v7098_v46, %v473_v52  ;;  %v546_v23 = vadd.f32 %v7101_v50, %v473_v52  ;;  %v7641_v52 = vunpack.c.h.bf16 %v708_v22 }
 0x372   :  { %v883_v57 = vpop.xlane.xlu0 %882  ;;  %1309 = vmatmul.bf16.gmra.mxu3 %v1235_v18  ;;  %v1059_v18 = vmul.f32 1.442695, %v965_v12 }
 0x373   :  { %v963_v7 = vsub.f32 %v7427_v28, %v883_v57  ;;  %v964_v25 = vsub.f32 %v7424_v47, %v883_v57  ;;  %1398 = vmatmul.bf16.gmra.mxu1 %v1236_v30  ;;  %v609_v33 = vmul.f32 0.2, %v545_v8  ;;  %v610_v49 = vmul.f32 0.2, %v546_v23  ;;  %10431 = vst [vmem:[#allocation40_spill] sm:$0xff] %v7641_v52  ;;  %v895_v28 = vpop.xlane.xlu1 %894 }
 0x374   :  { %v971_v12 = vsub.f32 %v7360_v60, %v895_v28  ;;  %v972_v19 = vsub.f32 %v7352_v11, %v895_v28 }
 0x375   :  { %v1055_v27 = vmul.f32 1.442695, %v963_v7  ;;  %v1057_v38 = vmul.f32 1.442695, %v964_v25  ;;  %1161 = vadd.xlane.f32.xlu0 %v1160_v5  ;;  %v673_v47 = vmax.f32 %v545_v8, %v609_v33  ;;  %v674_v57 = vmax.f32 %v546_v23, %v610_v49 }
 0x376   :  { %912 = vmax.xlane.f32.xlu1 %v911_v2  ;;  %v1163_v8 = vadd.f32 %v6156_v29, %v6154_v32  ;;  %v1154_v2 = vadd.f32 %v7514_v26, %v7512_v0  ;;  %v1071_v25 = vmul.f32 1.442695, %v971_v12  ;;  %v1157_v12 = vadd.f32 %v7573_v13, %v7571_v62 }
 0x377   :  { %6157 = vpow2.f32 %v1055_v27  ;;  %v7644_v54 = vadd.f32 %v7639_v58, %v673_v47  ;;  %v7647_v53 = vadd.f32 %v7641_v52, %v674_v57  ;;  %v1369_v27 = vpop.f32.mrf.mxu1 }
 0x378   :  { %6159 = vpow2.f32 %v1057_v38  ;;  %v6043_v38 = vld [vmem:[#allocation6 + $0x48] sm:$0xff] }
 0x379   :  { %6161 = vpow2.f32 %v1059_v18  ;;  %v926_v22 = vmax.f32 %v7644_v54, %v7647_v53  ;;  %v1280_v23 = vpop.f32.mrf.mxu3  ;;  %1666 = vmatpush.bf16.msrb.mxu2 %v6043_v38 }
 0x37a   :  { %6163 = vpow2.f32 %v1061_v41  ;;  %v892_v30 = vpop.xlane.xlu0 %891  ;;  %v1073_v41 = vmul.f32 1.442695, %v972_v19 }
 0x37b   :  { %927 = vmax.xlane.f32.xlu2 %v926_v22  ;;  %v969_v5 = vsub.f32 %v7443_v43, %v892_v30  ;;  %v970_v29 = vsub.f32 %v7440_v45, %v892_v30  ;;  %6165 = vpow2.f32 %v1071_v25 }
 0x37c   :  { %6167 = vpow2.f32 %v1073_v41 }
 0x37d   :  { %v6158_v7 = vpop.eup %6157  ;;  %1164 = vadd.xlane.f32.xlu0 %v1163_v8  ;;  %v1067_v26 = vmul.f32 1.442695, %v969_v5  ;;  %1667 = vmatpush.bf16.msrb.mxu2 %v6042_v16  ;;  %v1069_v57 = vmul.f32 1.442695, %v970_v29  ;;  %6169 = vrcp.f32 %v7613_v17  ;;  %v1370_v16 = vadd.f32 %v1369_v27, %v1280_v23 }
 0x37e   :  { %v6160_v60 = vpop.eup %6159  ;;  %1155 = vadd.xlane.f32.xlu1 %v1154_v2 }
 0x37f   :  { %v6162_v11 = vpop.eup %6161  ;;  %v7656_v33 = vadd.f32 %v6160_v60, %v6158_v7  ;;  %v1371_v45 = vpop.f32.mrf.mxu1  ;;  %6171 = vpow2.f32 %v1067_v26 }
 0x380   :  { %v6164_v32 = vpop.eup %6163  ;;  %v1237_v49 = vpack.c.bf16 %v6162_v11, %v6158_v7  ;;  %6173 = vpow2.f32 %v1069_v57  ;;  %v7664_v7 = vpop.xlane.xlu1 %909 }
 0x381   :  { %v1238_v18 = vpack.c.bf16 %v6164_v32, %v6160_v60  ;;  %v1172_v43 = vadd.f32 %v6164_v32, %v6162_v11  ;;  %v1282_v37 = vpop.f32.mrf.mxu3  ;;  %v6166_v22 = vpop.eup %6165  ;;  %v7673_v60 = vld [vmem:[%s10206_s4] ss:$0 sm:$0xff] }
 0x382   :  { %v904_v0 = vpop.xlane.xlu0 %903  ;;  %1314 = vmatmul.bf16.gmra.mxu3 %v1237_v49 }
 0x383   :  { %v977_v28 = vsub.f32 %v7455_v4, %v904_v0  ;;  %v978_v47 = vsub.f32 %v7452_v34, %v904_v0  ;;  %1403 = vmatmul.bf16.gmra.mxu1 %v1238_v18  ;;  %v6168_v4 = vpop.eup %6167  ;;  %v1372_v34 = vadd.f32 %v1371_v45, %v1282_v37 }
 0x384   :  { %v1181_v38 = vadd.f32 %v6168_v4, %v6166_v22  ;;  %v6170_v2 = vpop.eup %6169 }
 0x385   :  { %v1083_v19 = vmul.f32 1.442695, %v977_v28  ;;  %1173 = vadd.xlane.f32.xlu0 %v1172_v43  ;;  %v1085_v30 = vmul.f32 1.442695, %v978_v47  ;;  %v7666_v62 = vpop.eup %6171  ;;  %v1482_v25 = vmul.f32 %v6170_v2, %v1372_v34  ;;  %v1242_v2 = vpack.c.bf16 %v7584_v3, %v6168_v4 }
 0x386   :  { %1158 = vadd.xlane.f32.xlu1 %v1157_v12  ;;  %v7668_v17 = vpop.eup %6173  ;;  %v1239_v32 = vpack.c.bf16 %v7666_v62, %v7553_v9  ;;  %v981_v3 = vsub.f32 %v7384_v20, %v7664_v7 }
 0x387   :  { %6175 = vpow2.f32 %v1083_v19  ;;  %v1374_v11 = vpop.f32.mrf.mxu1  ;;  %v1240_v49 = vpack.c.bf16 %v7668_v17, %v7555_v56  ;;  %v1516_v18 = vadd.f32 %v7673_v60, %v1482_v25  ;;  %v976_v25 = vsub.f32 %v7389_v42, %v7589_v55 }
 0x388   :  { %6177 = vpow2.f32 %v1085_v30  ;;  %v1138_v47 = vpop.xlane.xlu1 %1137  ;;  %v975_v30 = vsub.f32 %v7394_v61, %v7589_v55  ;;  %v710_v55 = vld [vmem:[#allocation4 + $0xf8] sm:$0xff] }
 0x389   :  { %v1285_v13 = vpop.f32.mrf.mxu3  ;;  %v1548_v9 = vmax.f32 %v1516_v18, 0.0  ;;  %v1081_v18 = vmul.f32 1.442695, %v976_v25 }
 0x38a   :  { %v1129_v8 = vpop.xlane.xlu0 %1128  ;;  %v1375_v34 = vadd.f32 %v1374_v11, %v1285_v13 }
 0x38b   :  { %6179 = vrcp.f32 %v1129_v8  ;;  %v1241_v8 = vpack.c.bf16 %v7581_v44, %v6166_v22 }
 0x38c   :  { %6181 = vrcp.f32 %v1138_v47  ;;  %v10432_v47 = vld [vmem:[#allocation50_spill] sm:$0xff] }
 0x38d   :  { %1182 = vadd.xlane.f32.xlu0 %v1181_v38  ;;  %v7675_v41 = vpop.eup %6175 }
 0x38e   :  { %v7677_v5 = vpop.eup %6177 }
 0x38f   :  { %v1190_v28 = vadd.f32 %v7677_v5, %v7675_v41  ;;  %v1376_v56 = vpop.f32.mrf.mxu1 }
 0x391   :  { %v6180_v29 = vpop.eup %6179  ;;  %v1287_v43 = vpop.f32.mrf.mxu3 }
 0x392   :  { %v7684_v0 = vpop.xlane.xlu0 %906  ;;  %1319 = vmatmul.bf16.gmra.mxu3 %v1239_v32  ;;  %v1481_v26 = vmul.f32 %v6180_v29, %v1370_v16  ;;  %v1377_v37 = vadd.f32 %v1376_v56, %v1287_v43  ;;  %v6182_v45 = vpop.eup %6181  ;;  %v1079_v29 = vmul.f32 1.442695, %v975_v30 }
 0x393   :  { %1408 = vmatmul.bf16.gmra.mxu1 %v1240_v49  ;;  %v979_v4 = vsub.f32 %v7473_v31, %v7684_v0  ;;  %v7713_v31 = vunpack.c.l.bf16 %v710_v55 }
 0x394   :  { %v1515_v27 = vadd.f32 %v7673_v60, %v1481_v26  ;;  %v1484_v19 = vmul.f32 %v6182_v45, %v1377_v37 }
 0x395   :  { %1191 = vadd.xlane.f32.xlu0 %v1190_v28  ;;  %10433 = vst [vmem:[#allocation50_spill] sm:$0xff] %v7713_v31 }
 0x396   :  { %v1547_v23 = vmax.f32 %v1515_v27, 0.0  ;;  %v1518_v32 = vadd.f32 %v7673_v60, %v1484_v19  ;;  %v982_v27 = vsub.f32 %v10432_v47, %v7664_v7  ;;  %v1087_v7 = vmul.f32 1.442695, %v979_v4 }
 0x398   :  { %v1579_v57 = vpack.c.bf16 %v1548_v9, %v1547_v23  ;;  %v1550_v61 = vmax.f32 %v1518_v32, 0.0  ;;  %v1091_v23 = vmul.f32 1.442695, %v981_v3  ;;  %v980_v9 = vsub.f32 %v7470_v14, %v7684_v0 }
 0x39a   :  { %v1135_v12 = vpop.xlane.xlu0 %1134  ;;  %1668 = vmatmul.bf16.vlgmr.msrb.gmra.mxu2 %v1579_v57  ;;  %v1089_v30 = vmul.f32 1.442695, %v980_v9 }
 0x39b   :  { %6183 = vrcp.f32 %v1135_v12  ;;  %v7715_v12 = vunpack.c.h.bf16 %v710_v55  ;;  %v709_v55 = vld [vmem:[#allocation4 + $0xf0] sm:$0xff] }
 0x39c   :  { %6185 = vpow2.f32 %v1079_v29 }
 0x39d   :  { %6187 = vpow2.f32 %v1081_v18  ;;  %10434 = vst [vmem:[#allocation70_spill] sm:$0xff] %v7715_v12 }
 0x39e   :  { %6189 = vpow2.f32 %v1091_v23 }
 0x3a1   :  { %v6184_v38 = vpop.eup %6183 }
 0x3a2   :  { %1324 = vmatmul.bf16.gmra.mxu3 %v1241_v8  ;;  %v1483_v16 = vmul.f32 %v6184_v38, %v1375_v34  ;;  %v7699_v22 = vpop.eup %6185 }
 0x3a3   :  { %1413 = vmatmul.bf16.gmra.mxu1 %v1242_v2  ;;  %v1243_v20 = vpack.c.bf16 %v7675_v41, %v7699_v22  ;;  %v7711_v43 = vpop.eup %6187  ;;  %v1093_v41 = vmul.f32 1.442695, %v982_v27 }
 0x3a4   :  { %v1517_v49 = vadd.f32 %v7673_v60, %v1483_v16  ;;  %v1244_v45 = vpack.c.bf16 %v7677_v5, %v7711_v43  ;;  %v7729_v32 = vpop.eup %6189 }
 0x3a6   :  { %v1549_v26 = vmax.f32 %v1517_v49, 0.0  ;;  %v1144_v5 = vpop.xlane.xlu1 %1143 }
 0x3a8   :  { %v1580_v13 = vpack.c.bf16 %v1550_v61, %v1549_v26 }
 0x3a9   :  { %v1141_v44 = vpop.xlane.xlu2 %1140 }
 0x3aa   :  { %1673 = vmatmul.bf16.gmra.mxu2 %v1580_v13  ;;  %6191 = vrcp.f32 %v1141_v44 }
 0x3ab   :  { %6193 = vpow2.f32 %v1087_v7 }
 0x3ac   :  { %6195 = vpow2.f32 %v1089_v30 }
 0x3ad   :  { %v483_v42 = vpop.permute.xlu0 %482  ;;  %6197 = vpow2.f32 %v1093_v41 }
 0x3ae   :  { %v549_v11 = vadd.f32 %v7098_v46, %v483_v42  ;;  %v550_v28 = vadd.f32 %v7101_v50, %v483_v42  ;;  %6199 = vrcp.f32 %v1144_v5  ;;  %v1178_v5 = vadd.f32 %v7668_v17, %v7666_v62 }
 0x3af   :  { %v1187_v17 = vadd.f32 %v7711_v43, %v7699_v22 }
 0x3b0   :  { %v613_v57 = vmul.f32 0.2, %v549_v11  ;;  %v614_v56 = vmul.f32 0.2, %v550_v28  ;;  %v1379_v37 = vpop.f32.mrf.mxu1  ;;  %v6192_v29 = vpop.eup %6191 }
 0x3b1   :  { %v7719_v19 = vpop.xlane.xlu2 %918  ;;  %v7731_v49 = vpop.eup %6193 }
 0x3b2   :  { %1329 = vmatmul.bf16.gmra.mxu3 %v1243_v20  ;;  %v677_v14 = vmax.f32 %v549_v11, %v613_v57  ;;  %v678_v0 = vmax.f32 %v550_v28, %v614_v56  ;;  %v7733_v61 = vpop.eup %6195  ;;  %v1245_v27 = vpack.c.bf16 %v7729_v32, %v7731_v49  ;;  %v7742_v56 = vunpack.c.l.bf16 %v709_v55 }
 0x3b3   :  { %1418 = vmatmul.bf16.gmra.mxu1 %v1244_v45  ;;  %v6198_v44 = vpop.eup %6197 }
 0x3b4   :  { %v7722_v34 = vadd.f32 %v7713_v31, %v677_v14  ;;  %v7725_v8 = vadd.f32 %v7715_v12, %v678_v0  ;;  %v6200_v4 = vpop.eup %6199  ;;  %v1246_v23 = vpack.c.bf16 %v6198_v44, %v7733_v61  ;;  %10435 = vst [vmem:[#allocation71_spill] sm:$0xff] %v7742_v56 }
 0x3b5   :  { %v1290_v38 = vpop.f32.mrf.mxu3 }
 0x3b6   :  { %v932_v2 = vmax.f32 %v7722_v34, %v7725_v8  ;;  %v1380_v25 = vadd.f32 %v1379_v37, %v1290_v38  ;;  %v7744_v37 = vunpack.c.h.bf16 %v709_v55 }
 0x3b8   :  { %933 = vmax.xlane.f32.xlu1 %v932_v2  ;;  %v1381_v16 = vpop.f32.mrf.mxu1  ;;  %v1485_v18 = vmul.f32 %v6192_v29, %v1380_v25  ;;  %10436 = vst [vmem:[#allocation72_spill] sm:$0xff] %v7744_v37 }
 0x3b9   :  { %v1147_v26 = vpop.xlane.xlu2 %1146 }
 0x3ba   :  { %v1519_v9 = vadd.f32 %v7673_v60, %v1485_v18  ;;  %6201 = vrcp.f32 %v1147_v26  ;;  %v987_v18 = vsub.f32 %v7494_v21, %v7719_v19 }
 0x3bc   :  { %v1551_v7 = vmax.f32 %v1519_v9, 0.0 }
 0x3bd   :  { %v1292_v13 = vpop.f32.mrf.mxu3 }
 0x3be   :  { %v1382_v3 = vadd.f32 %v1381_v16, %v1292_v13  ;;  %v478_v42 = vpop.permute.xlu1 %477  ;;  %v988_v13 = vsub.f32 %v7497_v6, %v7719_v19  ;;  %v1196_v19 = vadd.f32 %v6198_v44, %v7729_v32 }
 0x3bf   :  { %v547_v11 = vadd.f32 %v7098_v46, %v478_v42  ;;  %v548_v28 = vadd.f32 %v7101_v50, %v478_v42 }
 0x3c0   :  { %v1486_v47 = vmul.f32 %v6200_v4, %v1382_v3  ;;  %1170 = vadd.xlane.f32.xlu1 %v7656_v33  ;;  %v1384_v50 = vpop.f32.mrf.mxu1  ;;  %v6202_v29 = vpop.eup %6201  ;;  %v1103_v4 = vmul.f32 1.442695, %v987_v18 }
 0x3c1   :  { %v611_v20 = vmul.f32 0.2, %v547_v11  ;;  %v612_v57 = vmul.f32 0.2, %v548_v28  ;;  %v1150_v38 = vpop.xlane.xlu2 %1149 }
 0x3c2   :  { %1334 = vmatmul.bf16.gmra.mxu3 %v1245_v27  ;;  %v1520_v46 = vadd.f32 %v7673_v60, %v1486_v47  ;;  %6203 = vrcp.f32 %v1150_v38  ;;  %v1105_v47 = vmul.f32 1.442695, %v988_v13 }
 0x3c3   :  { %1423 = vmatmul.bf16.gmra.mxu1 %v1246_v23  ;;  %v675_v45 = vmax.f32 %v547_v11, %v611_v20  ;;  %v676_v33 = vmax.f32 %v548_v28, %v612_v57  ;;  %6205 = vpow2.f32 %v1103_v4 }
 0x3c4   :  { %v1552_v14 = vmax.f32 %v1520_v46, 0.0  ;;  %6207 = vpow2.f32 %v1105_v47 }
 0x3c5   :  { %v1295_v0 = vpop.f32.mrf.mxu3  ;;  %v7748_v30 = vadd.f32 %v7742_v56, %v675_v45  ;;  %v7751_v41 = vadd.f32 %v7744_v37, %v676_v33  ;;  %v10465_v37 = vld [vmem:[#allocation54_spill] sm:$0xff] }
 0x3c6   :  { %v1581_v2 = vpack.c.bf16 %v1552_v14, %v1551_v7  ;;  %v1385_v16 = vadd.f32 %v1384_v50, %v1295_v0 }
 0x3c7   :  { %v929_v25 = vmax.f32 %v7748_v30, %v7751_v41 }
 0x3c8   :  { %1179 = vadd.xlane.f32.xlu1 %v1178_v5  ;;  %1678 = vmatmul.bf16.gmra.mxu2 %v1581_v2  ;;  %v1487_v26 = vmul.f32 %v6202_v29, %v1385_v16  ;;  %v1386_v3 = vpop.f32.mrf.mxu1  ;;  %v6204_v55 = vpop.eup %6203 }
 0x3c9   :  { %930 = vmax.xlane.f32.xlu2 %v929_v25  ;;  %v7768_v22 = vpop.eup %6205  ;;  %v922_v20 = vpop.xlane.xlu2 %921 }
 0x3ca   :  { %v1521_v28 = vadd.f32 %v7673_v60, %v1487_v26  ;;  %v7770_v43 = vpop.eup %6207  ;;  %v989_v0 = vsub.f32 %v7537_v51, %v922_v20  ;;  %v990_v16 = vsub.f32 %v7541_v48, %v922_v20 }
 0x3cb   :  { %v1205_v46 = vadd.f32 %v7770_v43, %v7768_v22 }
 0x3cc   :  { %v1553_v27 = vmax.f32 %v1521_v28, 0.0  ;;  %v1109_v51 = vmul.f32 1.442695, %v990_v16 }
 0x3cd   :  { %v1297_v42 = vpop.f32.mrf.mxu3 }
 0x3ce   :  { %v1387_v62 = vadd.f32 %v1386_v3, %v1297_v42 }
 0x3d0   :  { %v1488_v11 = vmul.f32 %v6204_v55, %v1387_v62  ;;  %1188 = vadd.xlane.f32.xlu1 %v1187_v17  ;;  %v1389_v45 = vpop.f32.mrf.mxu1 }
 0x3d1   :  { %1167 = vadd.xlane.f32.xlu2 %v7547_v39 }
 0x3d2   :  { %v1522_v21 = vadd.f32 %v7673_v60, %v1488_v11 }
 0x3d4   :  { %v1554_v6 = vmax.f32 %v1522_v21, 0.0 }
 0x3d5   :  { %v1300_v50 = vpop.f32.mrf.mxu3 }
 0x3d6   :  { %v1582_v23 = vpack.c.bf16 %v1554_v6, %v1553_v27  ;;  %v1390_v48 = vadd.f32 %v1389_v45, %v1300_v50 }
 0x3d8   :  { %v916_v9 = vpop.xlane.xlu0 %915  ;;  %1197 = vadd.xlane.f32.xlu1 %v1196_v19  ;;  %1683 = vmatmul.bf16.gmra.mxu2 %v1582_v23  ;;  %v1391_v29 = vpop.f32.mrf.mxu1 }
 0x3d9   :  { %1176 = vadd.xlane.f32.xlu2 %v7561_v63  ;;  %v985_v39 = vsub.f32 %v7576_v36, %v916_v9  ;;  %v986_v57 = vsub.f32 %v7579_v40, %v916_v9  ;;  %v1153_v36 = vpop.xlane.xlu2 %1152  ;;  %v1193_v40 = vadd.f32 %v7733_v61, %v7731_v49  ;;  %v1107_v61 = vmul.f32 1.442695, %v989_v0 }
 0x3db   :  { %v1099_v32 = vmul.f32 1.442695, %v985_v39  ;;  %v1101_v63 = vmul.f32 1.442695, %v986_v57 }
 0x3dd   :  { %6209 = vpow2.f32 %v1099_v32  ;;  %v1302_v2 = vpop.f32.mrf.mxu3 }
 0x3de   :  { %6211 = vpow2.f32 %v1101_v63  ;;  %v1392_v23 = vadd.f32 %v1391_v29, %v1302_v2 }
 0x3df   :  { %6213 = vrcp.f32 %v1153_v36 }
 0x3e0   :  { %1206 = vadd.xlane.f32.xlu1 %v1205_v46  ;;  %v925_v44 = vpop.xlane.xlu0 %924 }
 0x3e1   :  { %1185 = vadd.xlane.f32.xlu2 %v7601_v1  ;;  %v991_v33 = vsub.f32 %v7608_v24, %v925_v44  ;;  %v992_v7 = vsub.f32 %v7611_v35, %v925_v44 }
 0x3e3   :  { %v1111_v14 = vmul.f32 1.442695, %v991_v33  ;;  %v1113_v38 = vmul.f32 1.442695, %v992_v7  ;;  %v6210_v24 = vpop.eup %6209 }
 0x3e4   :  { %v6212_v35 = vpop.eup %6211 }
 0x3e5   :  { %6215 = vpow2.f32 %v1111_v14  ;;  %v1202_v13 = vadd.f32 %v6212_v35, %v6210_v24  ;;  %v6214_v3 = vpop.eup %6213  ;;  %v1305_v28 = vpop.f32.mrf.mxu3 }
 0x3e6   :  { %6217 = vpow2.f32 %v1113_v38  ;;  %v1489_v21 = vmul.f32 %v6214_v3, %v1390_v48 }
 0x3e8   :  { %v1162_v57 = vpop.xlane.xlu0 %1161  ;;  %v1523_v32 = vadd.f32 %v7673_v60, %v1489_v21 }
 0x3e9   :  { %v913_v5 = vpop.xlane.xlu1 %912  ;;  %1194 = vadd.xlane.f32.xlu2 %v1193_v40 }
 0x3ea   :  { %v983_v1 = vsub.f32 %v7626_v10, %v913_v5  ;;  %v984_v25 = vsub.f32 %v7622_v59, %v913_v5  ;;  %v1555_v7 = vmax.f32 %v1523_v32, 0.0 }
 0x3eb   :  { %v7787_v62 = vpop.eup %6215 }
 0x3ec   :  { %v1095_v18 = vmul.f32 1.442695, %v983_v1  ;;  %v1097_v49 = vmul.f32 1.442695, %v984_v25  ;;  %v6218_v4 = vpop.eup %6217 }
 0x3ed   :  { %v1211_v9 = vadd.f32 %v6218_v4, %v7787_v62  ;;  %v1307_v40 = vpop.f32.mrf.mxu3 }
 0x3ee   :  { %6219 = vpow2.f32 %v1095_v18  ;;  %v928_v26 = vpop.xlane.xlu2 %927 }
 0x3ef   :  { %6221 = vpow2.f32 %v1097_v49  ;;  %v993_v10 = vsub.f32 %v7644_v54, %v928_v26  ;;  %v994_v59 = vsub.f32 %v7647_v53, %v928_v26  ;;  %v1394_v53 = vpop.f32.mrf.mxu1 }
 0x3f0   :  { %6223 = vpow2.f32 %v1107_v61  ;;  %v1395_v2 = vadd.f32 %v1394_v53, %v1305_v28 }
 0x3f1   :  { %v1156_v42 = vpop.xlane.xlu1 %1155  ;;  %1203 = vadd.xlane.f32.xlu2 %v1202_v13  ;;  %v1115_v17 = vmul.f32 1.442695, %v993_v10  ;;  %v1117_v55 = vmul.f32 1.442695, %v994_v59 }
 0x3f2   :  { %6225 = vrcp.f32 %v1156_v42 }
 0x3f3   :  { %6227 = vpow2.f32 %v1109_v51 }
 0x3f4   :  { %v6220_v11 = vpop.eup %6219  ;;  %6229 = vpow2.f32 %v1115_v17 }
 0x3f5   :  { %v6222_v47 = vpop.eup %6221  ;;  %6231 = vpow2.f32 %v1117_v55  ;;  %v1247_v54 = vpack.c.bf16 %v6210_v24, %v6220_v11  ;;  %v1310_v59 = vpop.f32.mrf.mxu3 }
 0x3f6   :  { %v1199_v27 = vadd.f32 %v6222_v47, %v6220_v11  ;;  %v1248_v6 = vpack.c.bf16 %v6212_v35, %v6222_v47  ;;  %v6224_v19 = vpop.eup %6223 }
 0x3f7   :  { %1339 = vmatmul.bf16.gmra.mxu3 %v1247_v54  ;;  %v1396_v5 = vpop.f32.mrf.mxu1  ;;  %v1249_v35 = vpack.c.bf16 %v6224_v19, %v7768_v22 }
 0x3f8   :  { %v6226_v20 = vpop.eup %6225  ;;  %1200 = vadd.xlane.f32.xlu0 %v1199_v27  ;;  %1428 = vmatmul.bf16.gmra.mxu1 %v1248_v6  ;;  %v1397_v1 = vadd.f32 %v1396_v5, %v1307_v40 }
 0x3f9   :  { %v6228_v39 = vpop.eup %6227  ;;  %v1159_v46 = vpop.xlane.xlu1 %1158  ;;  %1212 = vadd.xlane.f32.xlu2 %v1211_v9  ;;  %v1490_v50 = vmul.f32 %v6226_v20, %v1392_v23 }
 0x3fa   :  { %v6230_v44 = vpop.eup %6229  ;;  %6233 = vrcp.f32 %v1159_v46  ;;  %v1208_v14 = vadd.f32 %v6228_v39, %v6224_v19  ;;  %v1250_v29 = vpack.c.bf16 %v6228_v39, %v7770_v43  ;;  %v1165_v23 = vpop.xlane.xlu0 %1164 }
 0x3fb   :  { %v6232_v45 = vpop.eup %6231  ;;  %v1524_v63 = vadd.f32 %v7673_v60, %v1490_v50  ;;  %6235 = vrcp.f32 %v1162_v57  ;;  %v1251_v13 = vpack.c.bf16 %v6230_v44, %v7787_v62 }
 0x3fc   :  { %v1214_v33 = vadd.f32 %v6232_v45, %v6230_v44  ;;  %v1252_v10 = vpack.c.bf16 %v6232_v45, %v6218_v4 }
 0x3fd   :  { %v1556_v36 = vmax.f32 %v1524_v63, 0.0  ;;  %v1312_v43 = vpop.f32.mrf.mxu3 }
 0x3fe   :  { %1215 = vadd.xlane.f32.xlu1 %v1214_v33 }
 0x3ff   :  { %v1583_v0 = vpack.c.bf16 %v1556_v36, %v1555_v7  ;;  %v1399_v3 = vpop.f32.mrf.mxu1 }
 0x400   :  { %v6234_v38 = vpop.eup %6233  ;;  %1209 = vadd.xlane.f32.xlu0 %v1208_v14  ;;  %v1400_v32 = vadd.f32 %v1399_v3, %v1310_v59 }
 0x401   :  { %1688 = vmatmul.bf16.gmra.mxu2 %v1583_v0  ;;  %v6236_v25 = vpop.eup %6235  ;;  %v1491_v24 = vmul.f32 %v6234_v38, %v1395_v2 }
 0x402   :  { %v1492_v16 = vmul.f32 %v6236_v25, %v1397_v1 }
 0x403   :  { %v1525_v18 = vadd.f32 %v7673_v60, %v1491_v24  ;;  %v1174_v24 = vpop.xlane.xlu0 %1173 }
 0x404   :  { %v1526_v49 = vadd.f32 %v7673_v60, %v1492_v16 }
 0x405   :  { %v1557_v61 = vmax.f32 %v1525_v18, 0.0  ;;  %v1315_v42 = vpop.f32.mrf.mxu3 }
 0x406   :  { %v1558_v51 = vmax.f32 %v1526_v49, 0.0 }
 0x407   :  { %1344 = vmatmul.bf16.gmra.mxu3 %v1249_v35  ;;  %v1401_v48 = vpop.f32.mrf.mxu1 }
 0x408   :  { %1433 = vmatmul.bf16.gmra.mxu1 %v1250_v29  ;;  %v1584_v26 = vpack.c.bf16 %v1558_v51, %v1557_v61  ;;  %v1402_v14 = vadd.f32 %v1401_v48, %v1312_v43 }
 0x40d   :  { %v1317_v21 = vpop.f32.mrf.mxu3 }
 0x40f   :  { %v1404_v28 = vpop.f32.mrf.mxu1 }
 0x411   :  { %1693 = vmatmul.bf16.gmra.mxu2 %v1584_v26  ;;  %v1405_v26 = vadd.f32 %v1404_v28, %v1315_v42 }
 0x415   :  { %v7808_v20 = vpop.f32.mrf.mxu3 }
 0x417   :  { %1349 = vmatmul.bf16.gmra.mxu3 %v1251_v13  ;;  %v1406_v27 = vpop.f32.mrf.mxu1 }
 0x418   :  { %1438 = vmatmul.bf16.gmra.mxu1 %v1252_v10  ;;  %v1407_v13 = vadd.f32 %v1406_v27, %v1317_v21 }
 0x41d   :  { %v7797_v22 = vpop.f32.mrf.mxu2  ;;  %v1322_v36 = vpop.f32.mrf.mxu3 }
 0x41e   :  { %1792 = vperm.xlu1 %6085, %v7797_v22  }
 0x41f   :  { %v1409_v46 = vpop.f32.mrf.mxu1 }
 0x425   :  { %v7802_v4 = vpop.f32.mrf.mxu2  ;;  %v1325_v61 = vpop.f32.mrf.mxu3 }
 0x427   :  { %v1411_v5 = vpop.f32.mrf.mxu1 }
 0x42b   :  { %v934_v17 = vpop.xlane.xlu1 %933 }
 0x42c   :  { %v997_v55 = vsub.f32 %v7722_v34, %v934_v17  ;;  %v998_v11 = vsub.f32 %v7725_v8, %v934_v17 }
 0x42d   :  { %v7804_v19 = vpop.f32.mrf.mxu2 }
 0x42e   :  { %v1123_v47 = vmul.f32 1.442695, %v997_v55  ;;  %v1125_v62 = vmul.f32 1.442695, %v998_v11 }
 0x42f   :  { %v1414_v10 = vpop.f32.mrf.mxu1 }
 0x430   :  { %6237 = vpow2.f32 %v1123_v47 }
 0x431   :  { %6239 = vpow2.f32 %v1125_v62  ;;  %v1327_v62 = vpop.f32.mrf.mxu3 }
 0x432   :  { %6241 = vrcp.f32 %v1165_v23 }
 0x433   :  { %v1171_v0 = vpop.xlane.xlu1 %1170 }
 0x435   :  { %v7810_v50 = vpop.f32.mrf.mxu2 }
 0x436   :  { %v6238_v54 = vpop.eup %6237 }
 0x437   :  { %v6240_v53 = vpop.eup %6239  ;;  %v1416_v42 = vpop.f32.mrf.mxu1 }
 0x438   :  { %v1220_v6 = vadd.f32 %v6240_v53, %v6238_v54  ;;  %v6242_v45 = vpop.eup %6241 }
 0x439   :  { %v1493_v7 = vmul.f32 %v6242_v45, %v1400_v32 }
 0x43a   :  { %1221 = vadd.xlane.f32.xlu2 %v1220_v6  ;;  %v1410_v6 = vadd.f32 %v1409_v46, %v7808_v20 }
 0x43b   :  { %v1527_v25 = vadd.f32 %v7673_v60, %v1493_v7  ;;  %v1180_v11 = vpop.xlane.xlu1 %1179 }
 0x43c   :  { %v931_v9 = vpop.xlane.xlu2 %930 }
 0x43d   :  { %v995_v34 = vsub.f32 %v7748_v30, %v931_v9  ;;  %v996_v8 = vsub.f32 %v7751_v41, %v931_v9  ;;  %v1559_v35 = vmax.f32 %v1527_v25, 0.0  ;;  %v1412_v9 = vadd.f32 %v1411_v5, %v1322_v36 }
 0x43f   :  { %v1119_v39 = vmul.f32 1.442695, %v995_v34  ;;  %v1121_v57 = vmul.f32 1.442695, %v996_v8  ;;  %v1330_v8 = vpop.f32.mrf.mxu3 }
 0x441   :  { %6243 = vpow2.f32 %v1119_v39 }
 0x442   :  { %6245 = vpow2.f32 %v1121_v57  ;;  %v1419_v57 = vpop.f32.mrf.mxu1 }
 0x443   :  { %v1189_v5 = vpop.xlane.xlu1 %1188 }
 0x444   :  { %v1168_v44 = vpop.xlane.xlu2 %1167 }
 0x445   :  { %6247 = vrcp.f32 %v1168_v44 }
 0x446   :  { %6249 = vrcp.f32 %v1171_v0 }
 0x447   :  { %v6244_v63 = vpop.eup %6243  ;;  %6251 = vrcp.f32 %v1174_v24  ;;  %v1332_v46 = vpop.f32.mrf.mxu3 }
 0x448   :  { %v6246_v33 = vpop.eup %6245  ;;  %v1253_v30 = vpack.c.bf16 %v6238_v54, %v6244_v63 }
 0x449   :  { %v1254_v41 = vpack.c.bf16 %v6240_v53, %v6246_v33  ;;  %v1217_v40 = vadd.f32 %v6246_v33, %v6244_v63  ;;  %v1183_v63 = vpop.xlane.xlu0 %1182 }
 0x44a   :  { %1354 = vmatmul.bf16.gmra.mxu3 %v1253_v30  ;;  %v1421_v36 = vpop.f32.mrf.mxu1 }
 0x44b   :  { %v6248_v38 = vpop.eup %6247  ;;  %1443 = vmatmul.bf16.gmra.mxu1 %v1254_v41  ;;  %1218 = vadd.xlane.f32.xlu0 %v1217_v40  ;;  %v7812_v2 = vpop.f32.mrf.mxu2  ;;  %v1415_v41 = vadd.f32 %v1414_v10, %v1325_v61  ;;  %v1417_v40 = vadd.f32 %v1416_v42, %v1327_v62  ;;  %v1420_v61 = vadd.f32 %v1419_v57, %v1330_v8 }
 0x44c   :  { %1812 = vperm.xlu1 %6085, %v7812_v2   ;;  %v1494_v1 = vmul.f32 %v6248_v38, %v1402_v14  ;;  %v6250_v49 = vpop.eup %6249  ;;  %v1177_v48 = vpop.xlane.xlu2 %1176 }
 0x44d   :  { %v1495_v59 = vmul.f32 %v6250_v49, %v1405_v26  ;;  %v6252_v3 = vpop.eup %6251  ;;  %6253 = vrcp.f32 %v1177_v48  ;;  %v1198_v62 = vpop.xlane.xlu1 %1197 }
 0x44e   :  { %v1528_v16 = vadd.f32 %v7673_v60, %v1494_v1  ;;  %v1496_v43 = vmul.f32 %v6252_v3, %v1407_v13  ;;  %6255 = vrcp.f32 %v1180_v11  ;;  %v1422_v13 = vadd.f32 %v1421_v36, %v1332_v46 }
 0x44f   :  { %v1529_v17 = vadd.f32 %v7673_v60, %v1495_v59  ;;  %v1335_v25 = vpop.f32.mrf.mxu3 }
 0x450   :  { %v1560_v29 = vmax.f32 %v1528_v16, 0.0  ;;  %v1530_v47 = vadd.f32 %v7673_v60, %v1496_v43 }
 0x451   :  { %v1561_v54 = vmax.f32 %v1529_v17, 0.0 }
 0x452   :  { %1802 = vperm.xlu2 %6086, %v7804_v19   ;;  %v1585_v18 = vpack.c.bf16 %v1560_v29, %v1559_v35  ;;  %v1562_v28 = vmax.f32 %v1530_v47, 0.0  ;;  %v1424_v16 = vpop.f32.mrf.mxu1  ;;  %v1192_v35 = vpop.xlane.xlu0 %1191 }
 0x453   :  { %v7818_v51 = vpop.f32.mrf.mxu2  ;;  %v6254_v53 = vpop.eup %6253 }
 0x454   :  { %1698 = vmatmul.bf16.gmra.mxu2 %v1585_v18  ;;  %v1586_v21 = vpack.c.bf16 %v1562_v28, %v1561_v54  ;;  %v6256_v23 = vpop.eup %6255  ;;  %v1497_v34 = vmul.f32 %v6254_v53, %v1410_v6  ;;  %v1186_v32 = vpop.xlane.xlu2 %1185 }
 0x455   :  { %v1498_v39 = vmul.f32 %v6256_v23, %v1412_v9  ;;  %6257 = vrcp.f32 %v1186_v32 }
 0x456   :  { %v1531_v44 = vadd.f32 %v7673_v60, %v1497_v34  ;;  %6259 = vrcp.f32 %v1183_v63  ;;  %v1425_v34 = vadd.f32 %v1424_v16, %v1335_v25 }
 0x457   :  { %v1532_v45 = vadd.f32 %v7673_v60, %v1498_v39  ;;  %6261 = vrcp.f32 %v1189_v5  ;;  %v1337_v59 = vpop.f32.mrf.mxu3 }
 0x458   :  { %v1563_v33 = vmax.f32 %v1531_v44, 0.0  ;;  %6263 = vrcp.f32 %v1192_v35 }
 0x459   :  { %v1564_v20 = vmax.f32 %v1532_v45, 0.0 }
 0x45a   :  { %1817 = vperm.xlu2 %6086, %v7818_v51   ;;  %v1426_v48 = vpop.f32.mrf.mxu1 }
 0x45b   :  { %v7822_v55 = vpop.f32.mrf.mxu2  ;;  %v1587_v7 = vpack.c.bf16 %v1564_v20, %v1563_v33  ;;  %v6258_v30 = vpop.eup %6257  ;;  %v1427_v57 = vadd.f32 %v1426_v48, %v1337_v59 }
 0x45c   :  { %v1500_v14 = vmul.f32 %v6258_v30, %v1417_v40  ;;  %v6260_v0 = vpop.eup %6259  ;;  %v1195_v11 = vpop.xlane.xlu2 %1194 }
 0x45d   :  { %v1499_v38 = vmul.f32 %v6260_v0, %v1415_v41  ;;  %v6262_v26 = vpop.eup %6261  ;;  %6265 = vrcp.f32 %v1195_v11 }
 0x45e   :  { %v1534_v1 = vadd.f32 %v7673_v60, %v1500_v14  ;;  %v1501_v3 = vmul.f32 %v6262_v26, %v1420_v61  ;;  %v6264_v43 = vpop.eup %6263  ;;  %6267 = vrcp.f32 %v1198_v62  ;;  %v1207_v61 = vpop.xlane.xlu1 %1206 }
 0x45f   :  { %1797 = vperm.xlu0 %6084, %v7802_v4   ;;  %v1533_v24 = vadd.f32 %v7673_v60, %v1499_v38  ;;  %v1502_v17 = vmul.f32 %v6264_v43, %v1422_v13 }
 0x460   :  { %v1566_v29 = vmax.f32 %v1534_v1, 0.0  ;;  %v1535_v47 = vadd.f32 %v7673_v60, %v1501_v3 }
 0x461   :  { %v1565_v18 = vmax.f32 %v1533_v24, 0.0  ;;  %v1536_v42 = vadd.f32 %v7673_v60, %v1502_v17 }
 0x463   :  { %v7826_v27 = vpop.f32.mrf.mxu2  ;;  %v1588_v49 = vpack.c.bf16 %v1566_v29, %v1565_v18  ;;  %v1568_v6 = vmax.f32 %v1536_v42, 0.0  ;;  %v6266_v9 = vpop.eup %6265 }
 0x464   :  { %1703 = vmatmul.bf16.gmra.mxu2 %v1586_v21  ;;  %1827 = vperm.xlu1 %6085, %v7826_v27   ;;  %v1567_v21 = vmax.f32 %v1535_v47, 0.0  ;;  %v6268_v39 = vpop.eup %6267  ;;  %v1503_v32 = vmul.f32 %v6266_v9, %v1425_v34  ;;  %v1204_v46 = vpop.xlane.xlu2 %1203 }
 0x465   :  { %v1504_v45 = vmul.f32 %v6268_v39, %v1427_v57  ;;  %6269 = vrcp.f32 %v1204_v46 }
 0x466   :  { %v1589_v23 = vpack.c.bf16 %v1568_v6, %v1567_v21  ;;  %v1537_v33 = vadd.f32 %v7673_v60, %v1503_v32 }
 0x467   :  { %1807 = vperm.xlu0 %6084, %v7810_v50   ;;  %v1538_v20 = vadd.f32 %v7673_v60, %v1504_v45 }
 0x468   :  { %v1569_v36 = vmax.f32 %v1537_v33, 0.0 }
 0x469   :  { %v1570_v41 = vmax.f32 %v1538_v20, 0.0 }
 0x46b   :  { %v1201_v30 = vpop.xlane.xlu0 %1200  ;;  %v1590_v0 = vpack.c.bf16 %v1570_v41, %v1569_v36  ;;  %v6270_v1 = vpop.eup %6269 }
 0x46c   :  { %6271 = vrcp.f32 %v1201_v30 }
 0x46f   :  { %1822 = vperm.xlu0 %6084, %v7822_v55  }
 0x472   :  { %v6272_v24 = vpop.eup %6271 }
 0x473   :  { %v1210_v18 = vpop.xlane.xlu0 %1209 }
 0x474   :  { %1708 = vmatmul.bf16.gmra.mxu2 %v1587_v7  ;;  %6273 = vrcp.f32 %v1210_v18 }
 0x475   :  { %v1429_v53 = vpop.f32.mrf.mxu1  ;;  %6275 = vrcp.f32 %v1207_v61 }
 0x47a   :  { %v1340_v28 = vpop.f32.mrf.mxu3  ;;  %v6274_v17 = vpop.eup %6273 }
 0x47b   :  { %v1430_v5 = vadd.f32 %v1429_v53, %v1340_v28  ;;  %v6276_v62 = vpop.eup %6275  ;;  %v1216_v53 = vpop.xlane.xlu1 %1215 }
 0x47c   :  { %6277 = vrcp.f32 %v1216_v53 }
 0x47d   :  { %v1431_v63 = vpop.f32.mrf.mxu1  ;;  %v1505_v16 = vmul.f32 %v6272_v24, %v1430_v5 }
 0x482   :  { %v1342_v44 = vpop.f32.mrf.mxu3 }
 0x483   :  { %v1432_v14 = vadd.f32 %v1431_v63, %v1342_v44  ;;  %v6278_v63 = vpop.eup %6277 }
 0x484   :  { %v7836_v10 = vpop.f32.mrf.mxu2  ;;  %1713 = vmatmul.bf16.gmra.mxu2 %v1588_v49  ;;  %v1539_v49 = vadd.f32 %v7673_v60, %v1505_v16 }
 0x485   :  { %1832 = vperm.xlu1 %6085, %v7836_v10   ;;  %v1434_v38 = vpop.f32.mrf.mxu1  ;;  %v1506_v25 = vmul.f32 %v6270_v1, %v1432_v14 }
 0x486   :  { %v1571_v59 = vmax.f32 %v1539_v49, 0.0 }
 0x487   :  { %v1540_v35 = vadd.f32 %v7673_v60, %v1506_v25 }
 0x489   :  { %v1572_v13 = vmax.f32 %v1540_v35, 0.0 }
 0x48a   :  { %v1345_v40 = vpop.f32.mrf.mxu3 }
 0x48b   :  { %v1591_v43 = vpack.c.bf16 %v1572_v13, %v1571_v59  ;;  %v1435_v48 = vadd.f32 %v1434_v38, %v1345_v40 }
 0x48c   :  { %v7840_v54 = vpop.f32.mrf.mxu2 }
 0x48d   :  { %1837 = vperm.xlu1 %6085, %v7840_v54   ;;  %v1436_v26 = vpop.f32.mrf.mxu1  ;;  %v1507_v28 = vmul.f32 %v6276_v62, %v1435_v48 }
 0x48f   :  { %v1541_v6 = vadd.f32 %v7673_v60, %v1507_v28 }
 0x491   :  { %v1573_v39 = vmax.f32 %v1541_v6, 0.0 }
 0x492   :  { %v1347_v29 = vpop.f32.mrf.mxu3 }
 0x493   :  { %v1437_v3 = vadd.f32 %v1436_v26, %v1347_v29 }
 0x494   :  { %v7844_v8 = vpop.f32.mrf.mxu2  ;;  %1718 = vmatmul.bf16.gmra.mxu2 %v1589_v23  ;;  %v1213_v23 = vpop.xlane.xlu2 %1212 }
 0x495   :  { %1842 = vperm.xlu0 %6084, %v7844_v8   ;;  %v1508_v47 = vmul.f32 %v6274_v17, %v1437_v3  ;;  %v1439_v42 = vpop.f32.mrf.mxu1  ;;  %6279 = vrcp.f32 %v1213_v23 }
 0x497   :  { %v1542_v21 = vadd.f32 %v7673_v60, %v1508_v47 }
 0x499   :  { %v1574_v9 = vmax.f32 %v1542_v21, 0.0 }
 0x49a   :  { %v1350_v11 = vpop.f32.mrf.mxu3 }
 0x49b   :  { %v1592_v44 = vpack.c.bf16 %v1574_v9, %v1573_v39  ;;  %v1440_v45 = vadd.f32 %v1439_v42, %v1350_v11  ;;  %v6280_v20 = vpop.eup %6279 }
 0x49c   :  { %v7849_v7 = vpop.f32.mrf.mxu2 }
 0x49d   :  { %1847 = vperm.xlu2 %6086, %v7849_v7   ;;  %v1441_v57 = vpop.f32.mrf.mxu1  ;;  %v1509_v46 = vmul.f32 %v6280_v20, %v1440_v45  ;;  %v2626_v20 = vpack.c.bf16 %v7818_v51, %v7812_v2 }
 0x49f   :  { %v1543_v41 = vadd.f32 %v7673_v60, %v1509_v46 }
 0x4a1   :  { %v1575_v5 = vmax.f32 %v1543_v41, 0.0 }
 0x4a2   :  { %v1352_v34 = vpop.f32.mrf.mxu3 }
 0x4a3   :  { %v1442_v32 = vadd.f32 %v1441_v57, %v1352_v34  ;;  %v1749_v34 = vld [vmem:[%s10205_s3 + $0x1] sm:$0x1] }
 0x4a4   :  { %1723 = vmatmul.bf16.gmra.mxu2 %v1590_v0 }
 0x4a5   :  { %v1510_v33 = vmul.f32 %v6278_v63, %v1442_v32  ;;  %v2629_v32 = vpack.c.bf16 %v7849_v7, %v7844_v8  ;;  %v2627_v63 = vpack.c.bf16 %v7826_v27, %v7822_v55 }
 0x4a7   :  { %v1544_v30 = vadd.f32 %v7673_v60, %v1510_v33  ;;  %v6861_v60 = vld [vmem:[%s10206_s4] ss:$0 sm:$0xff] }
 0x4a9   :  { %v1576_v0 = vmax.f32 %v1544_v30, 0.0 }
 0x4ab   :  { %v1593_v1 = vpack.c.bf16 %v1576_v0, %v1575_v5 }
 0x4ad   :  { %v1222_v40 = vpop.xlane.xlu2 %1221 }
 0x4ae   :  { %6281 = vrcp.f32 %v1222_v40  ;;  %v1793_v40 = vpop.permute.xlu1 %1792 }
 0x4b4   :  { %1728 = vmatmul.bf16.gmra.mxu2 %v1591_v43  ;;  %v6282_v35 = vpop.eup %6281 }
 0x4be   :  { %v1219_v38 = vpop.xlane.xlu0 %1218 }
 0x4bf   :  { %6283 = vrcp.f32 %v1219_v38  ;;  %v1803_v38 = vpop.permute.xlu2 %1802 }
 0x4c4   :  { %1733 = vmatmul.bf16.gmra.mxu2 %v1592_v44  ;;  %v2628_v44 = vpack.c.bf16 %v7840_v54, %v7836_v10 }
 0x4c5   :  { %v6284_v18 = vpop.eup %6283 }
 0x4c8   :  { %v1444_v36 = vpop.f32.mrf.mxu1 }
 0x4cd   :  { %v1355_v14 = vpop.f32.mrf.mxu3 }
 0x4ce   :  { %v1445_v25 = vadd.f32 %v1444_v36, %v1355_v14 }
 0x4d0   :  { %v1446_v24 = vpop.f32.mrf.mxu1  ;;  %v1511_v26 = vmul.f32 %v6284_v18, %v1445_v25 }
 0x4d1   :  { %v1798_v14 = vpop.permute.xlu0 %1797 }
 0x4d2   :  { %v1545_v59 = vadd.f32 %v6861_v60, %v1511_v26 }
 0x4d4   :  { %1738 = vmatmul.bf16.gmra.mxu2 %v1593_v1  ;;  %v1577_v48 = vmax.f32 %v1545_v59, 0.0  ;;  %v1813_v1 = vpop.permute.xlu1 %1812 }
 0x4d5   :  { %v1357_v16 = vpop.f32.mrf.mxu3 }
 0x4d6   :  { %v1447_v29 = vadd.f32 %v1446_v24, %v1357_v16 }
 0x4d7   :  { %v1699_v49 = vpop.f32.mrf.mxu2 }
 0x4d8   :  { %v1512_v61 = vmul.f32 %v6282_v35, %v1447_v29  ;;  %1852 = vperm.xlu1 %6085, %v1699_v49  }
 0x4d9   :  { %v1808_v29 = vpop.permute.xlu0 %1807 }
 0x4da   :  { %v1546_v13 = vadd.f32 %v6861_v60, %v1512_v61  ;;  %v1818_v60 = vpop.permute.xlu2 %1817 }
 0x4dc   :  { %v1578_v3 = vmax.f32 %v1546_v13, 0.0  ;;  %v1828_v13 = vpop.permute.xlu1 %1827 }
 0x4de   :  { %v1594_v17 = vpack.c.bf16 %v1578_v3, %v1577_v48 }
 0x4df   :  { %v1701_v43 = vpop.f32.mrf.mxu2 }
 0x4e0   :  { %1857 = vperm.xlu2 %6086, %v1701_v43   ;;  %v2630_v39 = vpack.c.bf16 %v1701_v43, %v1699_v49 }
 0x4e4   :  { %1743 = vmatmul.bf16.gmra.mxu2 %v1594_v17 }
 0x4e7   :  { %v1704_v11 = vpop.f32.mrf.mxu2 }
 0x4e8   :  { %1862 = vperm.xlu0 %6084, %v1704_v11  }
 0x4ef   :  { %v1706_v47 = vpop.f32.mrf.mxu2 }
 0x4f0   :  { %1867 = vperm.xlu2 %6086, %v1706_v47   ;;  %1750 = vmatpush.xpose.msrb.mxu0 %v1706_v47  ;;  %v2631_v9 = vpack.c.bf16 %v1706_v47, %v1704_v11 }
 0x4f4   :  { %1751 = vmatpush.xpose.msrb.mxu0 %v1704_v11 }
 0x4f7   :  { %v7861_v62 = vpop.f32.mrf.mxu2 }
 0x4f8   :  { %1752 = vmatpush.xpose.msrb.mxu0 %v1701_v43  ;;  %1872 = vperm.xlu1 %6085, %v7861_v62  }
 0x4fc   :  { %1753 = vmatpush.xpose.msrb.mxu0 %v1699_v49 }
 0x4ff   :  { %v7864_v42 = vpop.f32.mrf.mxu2 }
 0x500   :  { %1754 = vmatpush.xpose.msrb.mxu0 %v7849_v7  ;;  %1877 = vperm.xlu2 %6086, %v7864_v42   ;;  %v2632_v41 = vpack.c.bf16 %v7864_v42, %v7861_v62 }
 0x504   :  { %1755 = vmatpush.xpose.msrb.mxu0 %v7844_v8  ;;  %v2625_v8 = vpack.c.bf16 %v7810_v50, %v7804_v19 }
 0x507   :  { %v7869_v28 = vpop.f32.mrf.mxu2 }
 0x508   :  { %1756 = vmatpush.xpose.msrb.mxu0 %v7840_v54  ;;  %1882 = vperm.xlu1 %6085, %v7869_v28  }
 0x50c   :  { %1757 = vmatpush.xpose.msrb.mxu0 %v7836_v10  ;;  %v2624_v10 = vpack.c.bf16 %v7802_v4, %v7797_v22 }
 0x50f   :  { %v7874_v21 = vpop.f32.mrf.mxu2 }
 0x510   :  { %1758 = vmatpush.xpose.msrb.mxu0 %v7826_v27  ;;  %1887 = vperm.xlu0 %6084, %v7874_v21   ;;  %v2633_v36 = vpack.c.bf16 %v7874_v21, %v7869_v28 }
 0x514   :  { %1759 = vmatpush.xpose.msrb.mxu0 %v7822_v55 }
 0x517   :  { %v7879_v53 = vpop.f32.mrf.mxu2 }
 0x518   :  { %1760 = vmatpush.xpose.msrb.mxu0 %v7818_v51  ;;  %1892 = vperm.xlu0 %6084, %v7879_v53  }
 0x51c   :  { %1761 = vmatpush.xpose.msrb.mxu0 %v7812_v2 }
 0x51f   :  { %v7884_v6 = vpop.f32.mrf.mxu2 }
 0x520   :  { %1762 = vmatpush.xpose.msrb.mxu0 %v7810_v50  ;;  %1897 = vperm.xlu2 %6086, %v7884_v6   ;;  %v2634_v30 = vpack.c.bf16 %v7884_v6, %v7879_v53 }
 0x524   :  { %1763 = vmatpush.xpose.msrb.mxu0 %v7804_v19 }
 0x527   :  { %v1724_v23 = vpop.f32.mrf.mxu2 }
 0x528   :  { %1764 = vmatpush.xpose.msrb.mxu0 %v7802_v4  ;;  %1902 = vperm.xlu2 %6086, %v1724_v23  }
 0x52c   :  { %1765 = vmatpush.xpose.msrb.mxu0 %v7797_v22 }
 0x52f   :  { %v1726_v57 = vpop.f32.mrf.mxu2  ;;  %1766 = vmatmul.f32.vlgmr.msrb.gmra.mxu0 %v1749_v34 }
 0x530   :  { %2640 = vmatpush.bf16.msra.mxu0 %v2631_v9  ;;  %1907 = vperm.xlu1 %6085, %v1726_v57   ;;  %v2635_v51 = vpack.c.bf16 %v1726_v57, %v1724_v23 }
 0x534   :  { %2641 = vmatpush.bf16.msra.mxu0 %v2630_v39 }
 0x537   :  { %v1729_v45 = vpop.f32.mrf.mxu2 }
 0x538   :  { %2642 = vmatpush.bf16.msra.mxu0 %v2629_v32  ;;  %1912 = vperm.xlu1 %6085, %v1729_v45  }
 0x53c   :  { %2643 = vmatpush.bf16.msra.mxu0 %v2628_v44  ;;  %v10439_v44 = vld [vmem:[#allocation13_spill] sm:$0xff] }
 0x53f   :  { %v1731_v33 = vpop.f32.mrf.mxu2 }
 0x540   :  { %2644 = vmatpush.bf16.msra.mxu0 %v2627_v63  ;;  %1917 = vperm.xlu0 %6084, %v1731_v33   ;;  %v2636_v50 = vpack.c.bf16 %v1731_v33, %v1729_v45  ;;  %v1823_v63 = vpop.permute.xlu0 %1822 }
 0x544   :  { %2645 = vmatpush.bf16.msra.mxu0 %v2626_v20 }
 0x547   :  { %v7904_v7 = vpop.f32.mrf.mxu2 }
 0x548   :  { %2646 = vmatpush.bf16.msra.mxu0 %v2625_v8 }
 0x54c   :  { %2647 = vmatpush.bf16.msra.mxu0 %v2624_v10  ;;  %v10440_v10 = vld [vmem:[#allocation14_spill] sm:$0xff] }
 0x54f   :  { %v7908_v54 = vpop.f32.mrf.mxu2 }
 0x550   :  { %v2637_v19 = vpack.c.bf16 %v7908_v54, %v7904_v7 }
 0x557   :  { %v7910_v55 = vpop.f32.mrf.mxu2 }
 0x55f   :  { %v7912_v27 = vpop.f32.mrf.mxu2 }
 0x560   :  { %v2638_v4 = vpack.c.bf16 %v7912_v27, %v7910_v55 }
 0x567   :  { %v7914_v46 = vpop.f32.mrf.mxu2 }
 0x56f   :  { %v7916_v2 = vpop.f32.mrf.mxu2 }
 0x570   :  { %1770 = vmatpush.xpose.msrb.mxu3 %v7916_v2  ;;  %v2639_v22 = vpack.c.bf16 %v7916_v2, %v7914_v46 }
 0x574   :  { %1771 = vmatpush.xpose.msrb.mxu3 %v7914_v46 }
 0x578   :  { %1772 = vmatpush.xpose.msrb.mxu3 %v7912_v27 }
 0x57c   :  { %1773 = vmatpush.xpose.msrb.mxu3 %v7910_v55 }
 0x580   :  { %1774 = vmatpush.xpose.msrb.mxu3 %v7908_v54 }
 0x584   :  { %1775 = vmatpush.xpose.msrb.mxu3 %v7904_v7 }
 0x588   :  { %1776 = vmatpush.xpose.msrb.mxu3 %v1731_v33 }
 0x58c   :  { %1777 = vmatpush.xpose.msrb.mxu3 %v1729_v45 }
 0x590   :  { %1778 = vmatpush.xpose.msrb.mxu3 %v1726_v57  ;;  %v10438_v57 = vld [vmem:[#allocation12_spill] sm:$0xff] }
 0x594   :  { %1779 = vmatpush.xpose.msrb.mxu3 %v1724_v23 }
 0x598   :  { %1780 = vmatpush.xpose.msrb.mxu3 %v7884_v6 }
 0x59c   :  { %1781 = vmatpush.xpose.msrb.mxu3 %v7879_v53 }
 0x5a0   :  { %1782 = vmatpush.xpose.msrb.mxu3 %v7874_v21 }
 0x5a4   :  { %1783 = vmatpush.xpose.msrb.mxu3 %v7869_v28 }
 0x5a8   :  { %1784 = vmatpush.xpose.msrb.mxu3 %v7864_v42 }
 0x5ac   :  { %1785 = vmatpush.xpose.msrb.mxu3 %v7861_v62  ;;  %v1767_v0 = vpop.f32.mrf.mxu0 }
 0x5ad   :  { %v7942_v5 = vperm.slane %v1767_v0, 0 }
 0x5af   :  { %1786 = vmatmul.f32.vlgmr.msrb.gmra.mxu3 %v1749_v34  ;;  %v1952_v24 = vadd.f32 %v7942_v5, %v1793_v40  ;;  %v1954_v16 = vadd.f32 %v7942_v5, %v1798_v14  ;;  %v1956_v59 = vadd.f32 %v7942_v5, %v1803_v38  ;;  %v1958_v3 = vadd.f32 %v7942_v5, %v1808_v29  ;;  %v10437_v34 = vld [vmem:[#allocation11_spill] sm:$0xff] }
 0x5b0   :  { %2729 = vmatpush.bf16.msra.mxu3 %v2639_v22  ;;  %v1962_v43 = vadd.f32 %v7942_v5, %v1818_v60 }
 0x5b1   :  { %v2016_v18 = vmul.f32 0.2, %v1952_v24  ;;  %v2018_v49 = vmul.f32 0.2, %v1954_v16  ;;  %v2020_v28 = vmul.f32 0.2, %v1956_v59 }
 0x5b2   :  { %v2022_v53 = vmul.f32 0.2, %v1958_v3  ;;  %v2026_v9 = vmul.f32 0.2, %v1962_v43 }
 0x5b3   :  { %v2082_v17 = vmax.f32 %v1954_v16, %v2018_v49  ;;  %v2080_v47 = vmax.f32 %v1952_v24, %v2016_v18  ;;  %v10441_v49 = vld [vmem:[#allocation9_spill] sm:$0xff] }
 0x5b4   :  { %2730 = vmatpush.bf16.msra.mxu3 %v2638_v4  ;;  %v1833_v4 = vpop.permute.xlu1 %1832 }
 0x5b5   :  { %v7957_v39 = vadd.f32 %v2082_v17, %v10437_v34  ;;  %v7963_v45 = vadd.f32 %v2080_v47, %v10439_v44  ;;  %v1968_v0 = vadd.f32 %v7942_v5, %v1833_v4 }
 0x5b8   :  { %2731 = vmatpush.bf16.msra.mxu3 %v2637_v19  ;;  %v1960_v19 = vadd.f32 %v7942_v5, %v1813_v1 }
 0x5bc   :  { %2732 = vmatpush.bf16.msra.mxu3 %v2636_v50 }
 0x5c0   :  { %2733 = vmatpush.bf16.msra.mxu3 %v2635_v51 }
 0x5c4   :  { %2734 = vmatpush.bf16.msra.mxu3 %v2634_v30  ;;  %v2084_v30 = vmax.f32 %v1956_v59, %v2020_v28 }
 0x5c8   :  { %2735 = vmatpush.bf16.msra.mxu3 %v2633_v36 }
 0x5cc   :  { %2736 = vmatpush.bf16.msra.mxu3 %v2632_v41 }
 0x632   :  { %v1787_v25 = vpop.f32.mrf.mxu3 }
 0x633   :  { %v7946_v35 = vperm.slane %v1787_v25, 0  ;;  %v2090_v25 = vmax.f32 %v1962_v43, %v2026_v9  ;;  %v10444_v43 = vld [vmem:[#allocation18_spill] sm:$0xff]  ;;  %v10446_v9 = vld [vmem:[#allocation25_spill] sm:$0xff] }
 0x635   :  { %v1953_v26 = vadd.f32 %v7946_v35, %v1793_v40  ;;  %v1955_v61 = vadd.f32 %v7946_v35, %v1798_v14  ;;  %v1957_v62 = vadd.f32 %v7946_v35, %v1803_v38  ;;  %v1959_v42 = vadd.f32 %v7946_v35, %v1808_v29 }
 0x636   :  { %v1963_v6 = vadd.f32 %v7946_v35, %v1818_v60  ;;  %v1961_v33 = vadd.f32 %v7946_v35, %v1813_v1  ;;  %v1965_v50 = vadd.f32 %v7946_v35, %v1823_v63  ;;  %v1969_v36 = vadd.f32 %v7946_v35, %v1833_v4  ;;  %v10442_v60 = vld [vmem:[#allocation10_spill] sm:$0xff] }
 0x637   :  { %v2019_v48 = vmul.f32 0.2, %v1955_v61  ;;  %v2017_v11 = vmul.f32 0.2, %v1953_v26  ;;  %v2021_v20 = vmul.f32 0.2, %v1957_v62  ;;  %v1964_v14 = vadd.f32 %v7942_v5, %v1823_v63 }
 0x638   :  { %v2023_v8 = vmul.f32 0.2, %v1959_v42  ;;  %v2027_v41 = vmul.f32 0.2, %v1963_v6  ;;  %v2086_v38 = vmax.f32 %v1958_v3, %v2022_v53  ;;  %v2025_v1 = vmul.f32 0.2, %v1961_v33 }
 0x639   :  { %v2083_v21 = vmax.f32 %v1955_v61, %v2019_v48  ;;  %v2081_v23 = vmax.f32 %v1953_v26, %v2017_v11  ;;  %v2085_v24 = vmax.f32 %v1957_v62, %v2021_v20  ;;  %v2024_v29 = vmul.f32 0.2, %v1960_v19  ;;  %v10443_v48 = vld [vmem:[#allocation17_spill] sm:$0xff]  ;;  %v10445_v62 = vld [vmem:[#allocation26_spill] sm:$0xff] }
 0x63a   :  { %v2087_v16 = vmax.f32 %v1959_v42, %v2023_v8  ;;  %v2029_v18 = vmul.f32 0.2, %v1965_v50  ;;  %v7979_v26 = vadd.f32 %v2084_v30, %v10441_v49  ;;  %v2033_v61 = vmul.f32 0.2, %v1969_v36  ;;  %v10462_v49 = vld [vmem:[#allocation35_spill] sm:$0xff] }
 0x63b   :  { %v7960_v32 = vadd.f32 %v2083_v21, %v10438_v57  ;;  %v7967_v22 = vadd.f32 %v2081_v23, %v10440_v10  ;;  %v7982_v59 = vadd.f32 %v2085_v24, %v10442_v60  ;;  %v2091_v11 = vmax.f32 %v1963_v6, %v2027_v41  ;;  %v10449_v24 = vld [vmem:[#allocation21_spill] sm:$0xff]  ;;  %v10459_v10 = vld [vmem:[#allocation31_spill] sm:$0xff] }
 0x63c   :  { %v7985_v17 = vadd.f32 %v2087_v16, %v10443_v48  ;;  %v2028_v47 = vmul.f32 0.2, %v1964_v14  ;;  %v2032_v3 = vmul.f32 0.2, %v1968_v0  ;;  %v7988_v28 = vadd.f32 %v2086_v38, %v10444_v43  ;;  %v10447_v38 = vld [vmem:[#allocation15_spill] sm:$0xff] }
 0x63d   :  { %v2211_v51 = vmax.f32 %v7957_v39, %v7960_v32  ;;  %v2208_v40 = vmax.f32 %v7963_v45, %v7967_v22  ;;  %v7991_v42 = vadd.f32 %v2090_v25, %v10445_v62  ;;  %v1967_v21 = vadd.f32 %v7946_v35, %v1828_v13  ;;  %v10456_v62 = vld [vmem:[#allocation24_spill] sm:$0xff] }
 0x63e   :  { %v2214_v53 = vmax.f32 %v7979_v26, %v7982_v59  ;;  %v2089_v23 = vmax.f32 %v1961_v33, %v2025_v1  ;;  %v7997_v63 = vadd.f32 %v2091_v11, %v10446_v9  ;;  %v1966_v20 = vadd.f32 %v7942_v5, %v1828_v13  ;;  %v10448_v13 = vld [vmem:[#allocation16_spill] sm:$0xff] }
 0x63f   :  { %2212 = vmax.xlane.f32.xlu0 %v2211_v51  ;;  %2209 = vmax.xlane.f32.xlu2 %v2208_v40  ;;  %v2088_v6 = vmax.f32 %v1960_v19, %v2024_v29  ;;  %v2217_v8 = vmax.f32 %v7988_v28, %v7985_v17  ;;  %v2093_v51 = vmax.f32 %v1965_v50, %v2029_v18  ;;  %v2031_v40 = vmul.f32 0.2, %v1967_v21  ;;  %v10450_v29 = vld [vmem:[#allocation27_spill] sm:$0xff]  ;;  %v1838_v50 = vpop.permute.xlu1 %1837 }
 0x640   :  { %2215 = vmax.xlane.f32.xlu1 %v2214_v53  ;;  %v2223_v4 = vmax.f32 %v7991_v42, %v7997_v63  ;;  %v2097_v30 = vmax.f32 %v1969_v36, %v2033_v61  ;;  %v2092_v41 = vmax.f32 %v1964_v14, %v2028_v47  ;;  %v8005_v33 = vadd.f32 %v2089_v23, %v10447_v38  ;;  %v10451_v36 = vld [vmem:[#allocation22_spill] sm:$0xff]  ;;  %v10452_v47 = vld [vmem:[#allocation28_spill] sm:$0xff] }
 0x641   :  { %v2096_v25 = vmax.f32 %v1968_v0, %v2032_v3  ;;  %v2030_v1 = vmul.f32 0.2, %v1966_v20  ;;  %v8008_v19 = vadd.f32 %v2088_v6, %v10448_v13  ;;  %v8011_v16 = vadd.f32 %v2093_v51, %v10449_v24  ;;  %v10453_v51 = vld [vmem:[#allocation19_spill] sm:$0xff]  ;;  %v10457_v24 = vld [vmem:[#allocation29_spill] sm:$0xff]  ;;  %v10458_v38 = vld [vmem:[#allocation30_spill] sm:$0xff] }
 0x642   :  { %v8014_v11 = vadd.f32 %v2097_v30, %v10450_v29  ;;  %v8017_v14 = vadd.f32 %v2092_v41, %v10451_v36  ;;  %v1971_v18 = vadd.f32 %v7946_v35, %v1838_v50  ;;  %v2095_v0 = vmax.f32 %v1967_v21, %v2031_v40  ;;  %v10454_v41 = vld [vmem:[#allocation20_spill] sm:$0xff] }
 0x643   :  { %v2220_v61 = vmax.f32 %v8008_v19, %v8005_v33  ;;  %v8023_v3 = vadd.f32 %v2096_v25, %v10452_v47  ;;  %v1970_v53 = vadd.f32 %v7942_v5, %v1838_v50  ;;  %v2094_v6 = vmax.f32 %v1966_v20, %v2030_v1  ;;  %v10455_v20 = vld [vmem:[#allocation23_spill] sm:$0xff] }
 0x644   :  { %v2226_v23 = vmax.f32 %v8017_v14, %v8011_v16  ;;  %v8031_v30 = vadd.f32 %v2095_v0, %v10453_v51 }
 0x645   :  { %v2034_v21 = vmul.f32 0.2, %v1970_v53  ;;  %v8034_v40 = vadd.f32 %v2094_v6, %v10454_v41 }
 0x647   :  { %2218 = vmax.xlane.f32.xlu2 %v2217_v8  ;;  %2224 = vmax.xlane.f32.xlu0 %v2223_v4  ;;  %v2232_v8 = vmax.f32 %v8023_v3, %v8014_v11  ;;  %v2035_v4 = vmul.f32 0.2, %v1971_v18  ;;  %v2229_v25 = vmax.f32 %v8034_v40, %v8031_v30 }
 0x648   :  { %2221 = vmax.xlane.f32.xlu1 %v2220_v61  ;;  %v2098_v61 = vmax.f32 %v1970_v53, %v2034_v21 }
 0x649   :  { %v2099_v50 = vmax.f32 %v1971_v18, %v2035_v4  ;;  %v1843_v18 = vpop.permute.xlu0 %1842 }
 0x64a   :  { %v8042_v9 = vadd.f32 %v2098_v61, %v10456_v62  ;;  %v1973_v4 = vadd.f32 %v7946_v35, %v1843_v18 }
 0x64b   :  { %v8039_v1 = vadd.f32 %v2099_v50, %v10455_v20  ;;  %v1853_v20 = vpop.permute.xlu1 %1852 }
 0x64d   :  { %v2235_v0 = vmax.f32 %v8042_v9, %v8039_v1 }
 0x64f   :  { %2227 = vmax.xlane.f32.xlu2 %v2226_v23  ;;  %2233 = vmax.xlane.f32.xlu0 %v2232_v8  ;;  %v1848_v23 = vpop.permute.xlu2 %1847 }
 0x650   :  { %2230 = vmax.xlane.f32.xlu1 %v2229_v25  ;;  %v1975_v53 = vadd.f32 %v7946_v35, %v1848_v23  ;;  %v1974_v8 = vadd.f32 %v7942_v5, %v1848_v23  ;;  %v1972_v25 = vadd.f32 %v7942_v5, %v1843_v18 }
 0x652   :  { %v2039_v21 = vmul.f32 0.2, %v1975_v53  ;;  %v2038_v50 = vmul.f32 0.2, %v1974_v8 }
 0x654   :  { %v2103_v62 = vmax.f32 %v1975_v53, %v2039_v21  ;;  %v2102_v29 = vmax.f32 %v1974_v8, %v2038_v50 }
 0x656   :  { %v8059_v51 = vadd.f32 %v2103_v62, %v10457_v24  ;;  %v8063_v13 = vadd.f32 %v2102_v29, %v10458_v38  ;;  %v1977_v38 = vadd.f32 %v7946_v35, %v1853_v20 }
 0x657   :  { %v1858_v6 = vpop.permute.xlu2 %1857 }
 0x658   :  { %2236 = vmax.xlane.f32.xlu1 %v2235_v0  ;;  %v2037_v0 = vmul.f32 0.2, %v1973_v4  ;;  %v1979_v23 = vadd.f32 %v7946_v35, %v1858_v6  ;;  %v1978_v18 = vadd.f32 %v7942_v5, %v1858_v6  ;;  %v2041_v34 = vmul.f32 0.2, %v1977_v38 }
 0x65a   :  { %v2101_v36 = vmax.f32 %v1973_v4, %v2037_v0  ;;  %v2043_v21 = vmul.f32 0.2, %v1979_v23  ;;  %v2241_v4 = vmax.f32 %v8063_v13, %v8059_v51  ;;  %v10460_v0 = vld [vmem:[#allocation32_spill] sm:$0xff]  ;;  %v2105_v31 = vmax.f32 %v1977_v38, %v2041_v34  ;;  %v10469_v34 = vld [vmem:[#allocation33_spill] sm:$0xff]  ;;  %v10471_v38 = vld [vmem:[#allocation39_spill] sm:$0xff] }
 0x65c   :  { %v8066_v44 = vadd.f32 %v2101_v36, %v10459_v10  ;;  %v2107_v10 = vmax.f32 %v1979_v23, %v2043_v21 }
 0x65e   :  { %v8090_v23 = vadd.f32 %v2107_v10, %v10462_v49 }
 0x65f   :  { %v8053_v61 = vpop.permute.xlu2 %1867 }
 0x660   :  { %10463 = vst [vmem:[#allocation73_spill] sm:$0xff] %v8090_v23 }
 0x663   :  { %1932 = vperm.xlu0 %6084, %v7910_v55   ;;  %v1863_v55 = vpop.permute.xlu0 %1862 }
 0x664   :  { %v1980_v47 = vadd.f32 %v7942_v5, %v1863_v55 }
 0x666   :  { %v2044_v43 = vmul.f32 0.2, %v1980_v47 }
 0x667   :  { %1922 = vperm.xlu2 %6086, %v7904_v7   ;;  %v1981_v7 = vadd.f32 %v7946_v35, %v1863_v55  ;;  %v1878_v53 = vpop.permute.xlu2 %1877  ;;  %v2042_v55 = vmul.f32 0.2, %v1978_v18 }
 0x668   :  { %v1987_v50 = vadd.f32 %v7946_v35, %v1878_v53  ;;  %v1986_v29 = vadd.f32 %v7942_v5, %v1878_v53 }
 0x669   :  { %v2045_v41 = vmul.f32 0.2, %v1981_v7  ;;  %v2106_v53 = vmax.f32 %v1978_v18, %v2042_v55  ;;  %v10464_v18 = vld [vmem:[#allocation36_spill] sm:$0xff] }
 0x66a   :  { %v2051_v57 = vmul.f32 0.2, %v1987_v50 }
 0x66b   :  { %v1888_v8 = vpop.permute.xlu0 %1887  ;;  %v2109_v62 = vmax.f32 %v1981_v7, %v2045_v41  ;;  %v8096_v55 = vadd.f32 %v2106_v53, %v10464_v18  ;;  %v1982_v53 = vadd.f32 %v7942_v5, %v8053_v61 }
 0x66c   :  { %v1991_v21 = vadd.f32 %v7946_v35, %v1888_v8 }
 0x66d   :  { %v8080_v41 = vadd.f32 %v2109_v62, %v7412_v15  ;;  %v2115_v62 = vmax.f32 %v1987_v50, %v2051_v57  ;;  %v1983_v15 = vadd.f32 %v7946_v35, %v8053_v61  ;;  %v2247_v12 = vmax.f32 %v8096_v55, %v8090_v23 }
 0x66e   :  { %v2055_v50 = vmul.f32 0.2, %v1991_v21 }
 0x66f   :  { %v8105_v56 = vadd.f32 %v2115_v62, %v10465_v37  ;;  %v2047_v58 = vmul.f32 0.2, %v1983_v15 }
 0x670   :  { %v2119_v62 = vmax.f32 %v1991_v21, %v2055_v50 }
 0x671   :  { %1927 = vperm.xlu1 %6085, %v7908_v54   ;;  %v2036_v54 = vmul.f32 0.2, %v1972_v25  ;;  %10466 = vst [vmem:[#allocation74_spill] sm:$0xff] %v8105_v56 }
 0x673   :  { %v2100_v48 = vmax.f32 %v1972_v25, %v2036_v54  ;;  %v1873_v25 = vpop.permute.xlu1 %1872  ;;  %v2108_v54 = vmax.f32 %v1980_v47, %v2044_v43  ;;  %v10461_v43 = vld [vmem:[#allocation53_spill] sm:$0xff] }
 0x674   :  { %v1985_v36 = vadd.f32 %v7946_v35, %v1873_v25  ;;  %v1984_v7 = vadd.f32 %v7942_v5, %v1873_v25 }
 0x675   :  { %v8072_v6 = vadd.f32 %v2100_v48, %v10460_v0  ;;  %v1976_v48 = vadd.f32 %v7942_v5, %v1853_v20  ;;  %v8085_v47 = vadd.f32 %v2108_v54, %v10461_v43  ;;  %v8087_v0 = vpop.permute.xlu2 %1897  ;;  %v1893_v54 = vpop.permute.xlu0 %1892  ;;  %v1990_v43 = vadd.f32 %v7942_v5, %v1888_v8 }
 0x676   :  { %v2049_v60 = vmul.f32 0.2, %v1985_v36  ;;  %v1993_v49 = vadd.f32 %v7946_v35, %v1893_v54  ;;  %v1992_v8 = vadd.f32 %v7942_v5, %v1893_v54 }
 0x677   :  { %v2238_v24 = vmax.f32 %v8072_v6, %v8066_v44  ;;  %v2250_v20 = vmax.f32 %v8085_v47, %v8080_v41  ;;  %v2040_v25 = vmul.f32 0.2, %v1976_v48 }
 0x678   :  { %v2113_v57 = vmax.f32 %v1985_v36, %v2049_v60  ;;  %v2057_v23 = vmul.f32 0.2, %v1993_v49  ;;  %v8114_v60 = vadd.f32 %v2105_v31, %v10469_v34  ;;  %v2111_v34 = vmax.f32 %v1983_v15, %v2047_v58  ;;  %v10477_v15 = vld [vmem:[#allocation49_spill] sm:$0xff] }
 0x679   :  { %v2104_v18 = vmax.f32 %v1976_v48, %v2040_v25  ;;  %v2046_v48 = vmul.f32 0.2, %v1982_v53  ;;  %v10472_v25 = vld [vmem:[#allocation34_spill] sm:$0xff] }
 0x67a   :  { %10470 = vst [vmem:[#allocation76_spill] sm:$0xff] %v8114_v60  ;;  %v8117_v36 = vadd.f32 %v2113_v57, %v10471_v38  ;;  %v2121_v38 = vmax.f32 %v1993_v49, %v2057_v23 }
 0x67b   :  { %v1883_v54 = vpop.permute.xlu1 %1882 }
 0x67c   :  { %v1989_v31 = vadd.f32 %v7946_v35, %v1883_v54  ;;  %v8145_v58 = vadd.f32 %v2121_v38, %v10477_v15 }
 0x67e   :  { %v2053_v23 = vmul.f32 0.2, %v1989_v31 }
 0x68d   :  { %2242 = vmax.xlane.f32.xlu0 %v2241_v4  ;;  %v2050_v4 = vmul.f32 0.2, %v1986_v29 }
 0x68f   :  { %v2114_v10 = vmax.f32 %v1986_v29, %v2050_v4  ;;  %v2054_v29 = vmul.f32 0.2, %v1990_v43  ;;  %v10467_v4 = vld [vmem:[#allocation55_spill] sm:$0xff] }
 0x690   :  { %2239 = vmax.xlane.f32.xlu2 %v2238_v24  ;;  %v2048_v24 = vmul.f32 0.2, %v1984_v7 }
 0x691   :  { %v8111_v52 = vadd.f32 %v2114_v10, %v10467_v4  ;;  %v10473_v10 = vld [vmem:[#allocation41_spill] sm:$0xff]  ;;  %v2118_v57 = vmax.f32 %v1990_v43, %v2054_v29  ;;  %v10475_v43 = vld [vmem:[#allocation46_spill] sm:$0xff] }
 0x693   :  { %10468 = vst [vmem:[#allocation75_spill] sm:$0xff] %v8111_v52  ;;  %v2259_v61 = vmax.f32 %v8111_v52, %v8105_v56  ;;  %v8139_v49 = vadd.f32 %v2118_v57, %v10475_v43  ;;  %v10476_v52 = vld [vmem:[#allocation37_spill] sm:$0xff]  ;;  %v8155_v57 = vpop.permute.xlu1 %1907 }
 0x695   :  { %2251 = vmax.xlane.f32.xlu0 %v2250_v20  ;;  %v2112_v20 = vmax.f32 %v1984_v7, %v2048_v24  ;;  %v2056_v7 = vmul.f32 0.2, %v1992_v8  ;;  %v8122_v24 = vadd.f32 %v2104_v18, %v10472_v25  ;;  %v1988_v18 = vadd.f32 %v7942_v5, %v1883_v54  ;;  %v10474_v25 = vld [vmem:[#allocation45_spill] sm:$0xff] }
 0x696   :  { %v8135_v56 = vadd.f32 %v2119_v62, %v10474_v25  ;;  %v10480_v25 = vld [vmem:[#allocation43_spill] sm:$0xff] }
 0x697   :  { %v8125_v4 = vadd.f32 %v2112_v20, %v10473_v10  ;;  %v2244_v21 = vmax.f32 %v8122_v24, %v8114_v60  ;;  %v2120_v10 = vmax.f32 %v1992_v8, %v2056_v7  ;;  %v8142_v60 = vadd.f32 %v2111_v34, %v10476_v52  ;;  %v10478_v8 = vld [vmem:[#allocation38_spill] sm:$0xff] }
 0x698   :  { %2248 = vmax.xlane.f32.xlu2 %v2247_v12  ;;  %v1903_v12 = vpop.permute.xlu2 %1902  ;;  %v2265_v62 = vmax.f32 %v8139_v49, %v8135_v56  ;;  %v2052_v54 = vmul.f32 0.2, %v1988_v18 }
 0x699   :  { %v1997_v37 = vadd.f32 %v7946_v35, %v1903_v12  ;;  %v2256_v50 = vmax.f32 %v8125_v4, %v8117_v36  ;;  %v1996_v20 = vadd.f32 %v7942_v5, %v1903_v12 }
 0x69a   :  { %v2116_v15 = vmax.f32 %v1988_v18, %v2052_v54 }
 0x69b   :  { %2245 = vmax.xlane.f32.xlu1 %v2244_v21  ;;  %v2061_v29 = vmul.f32 0.2, %v1997_v37  ;;  %v2060_v12 = vmul.f32 0.2, %v1996_v20  ;;  %v2117_v21 = vmax.f32 %v1989_v31, %v2053_v23  ;;  %v10482_v31 = vld [vmem:[#allocation44_spill] sm:$0xff]  ;;  %v10483_v23 = vld [vmem:[#allocation59_spill] sm:$0xff]  ;;  %v8179_v54 = vpop.permute.xlu1 %1912 }
 0x69d   :  { %2260 = vmax.xlane.f32.xlu0 %v2259_v61  ;;  %v2110_v61 = vmax.f32 %v1982_v53, %v2046_v48  ;;  %v10479_v53 = vld [vmem:[#allocation51_spill] sm:$0xff]  ;;  %v2125_v34 = vmax.f32 %v1997_v37, %v2061_v29  ;;  %v2124_v43 = vmax.f32 %v1996_v20, %v2060_v12  ;;  %v8170_v37 = vadd.f32 %v2116_v15, %v10482_v31 }
 0x69e   :  { %v8153_v48 = vadd.f32 %v2120_v10, %v10479_v53  ;;  %v8164_v10 = vadd.f32 %v2117_v21, %v10480_v25 }
 0x69f   :  { %v8150_v7 = vadd.f32 %v2110_v61, %v10478_v8  ;;  %v8161_v61 = vpop.permute.xlu0 %1917  ;;  %v8173_v29 = vadd.f32 %v2124_v43, %v10483_v23 }
 0x6a0   :  { %2257 = vmax.xlane.f32.xlu2 %v2256_v50  ;;  %v2268_v50 = vmax.f32 %v8153_v48, %v8145_v58  ;;  %v2262_v18 = vmax.f32 %v8170_v37, %v8164_v10 }
 0x6a1   :  { %v2253_v38 = vmax.f32 %v8150_v7, %v8142_v60 }
 0x6a3   :  { %2254 = vmax.xlane.f32.xlu1 %v2253_v38 }
 0x6a5   :  { %2266 = vmax.xlane.f32.xlu0 %v2265_v62  ;;  %v10481_v62 = vld [vmem:[#allocation58_spill] sm:$0xff] }
 0x6a6   :  { %v8167_v53 = vadd.f32 %v2125_v34, %v10481_v62 }
 0x6a8   :  { %2269 = vmax.xlane.f32.xlu2 %v2268_v50  ;;  %v2274_v20 = vmax.f32 %v8173_v29, %v8167_v53 }
 0x6ab   :  { %2263 = vmax.xlane.f32.xlu1 %v2262_v18 }
 0x6b0   :  { %2275 = vmax.xlane.f32.xlu2 %v2274_v20 }
 0x6b2   :  { %v2213_v12 = vpop.xlane.xlu0 %2212  ;;  %v2210_v15 = vpop.xlane.xlu2 %2209 }
 0x6b3   :  { %v2306_v21 = vsub.f32 %v7957_v39, %v2213_v12  ;;  %v2307_v34 = vsub.f32 %v7960_v32, %v2213_v12  ;;  %v2304_v38 = vsub.f32 %v7963_v45, %v2210_v15  ;;  %v2305_v43 = vsub.f32 %v7967_v22, %v2210_v15  ;;  %v2216_v25 = vpop.xlane.xlu1 %2215 }
 0x6b4   :  { %v2308_v32 = vsub.f32 %v7979_v26, %v2216_v25 }
 0x6b5   :  { %v2372_v50 = vmul.f32 1.442695, %v2306_v21  ;;  %v2374_v23 = vmul.f32 1.442695, %v2307_v34  ;;  %v2368_v62 = vmul.f32 1.442695, %v2304_v38 }
 0x6b6   :  { %v2370_v31 = vmul.f32 1.442695, %v2305_v43 }
 0x6b7   :  { %6285 = vpow2.f32 %v2372_v50 }
 0x6b8   :  { %6287 = vpow2.f32 %v2374_v23 }
 0x6b9   :  { %6289 = vpow2.f32 %v2368_v62  ;;  %1937 = vperm.xlu0 %6084, %v7912_v27   ;;  %v2309_v62 = vsub.f32 %v7982_v59, %v2216_v25  ;;  %v2376_v27 = vmul.f32 1.442695, %v2308_v32 }
 0x6ba   :  { %6291 = vpow2.f32 %v2370_v31  ;;  %v2225_v18 = vpop.xlane.xlu0 %2224  ;;  %v2219_v39 = vpop.xlane.xlu2 %2218 }
 0x6bb   :  { %v2310_v45 = vsub.f32 %v7988_v28, %v2219_v39  ;;  %v2311_v22 = vsub.f32 %v7985_v17, %v2219_v39  ;;  %v2314_v21 = vsub.f32 %v7991_v42, %v2225_v18  ;;  %v2222_v50 = vpop.xlane.xlu1 %2221  ;;  %v2315_v8 = vsub.f32 %v7997_v63, %v2225_v18 }
 0x6bc   :  { %v2312_v28 = vsub.f32 %v8008_v19, %v2222_v50  ;;  %v2313_v17 = vsub.f32 %v8005_v33, %v2222_v50  ;;  %v2378_v25 = vmul.f32 1.442695, %v2309_v62 }
 0x6bd   :  { %v6286_v20 = vpop.eup %6285  ;;  %v2380_v15 = vmul.f32 1.442695, %v2310_v45  ;;  %v2382_v23 = vmul.f32 1.442695, %v2311_v22  ;;  %v2388_v39 = vmul.f32 1.442695, %v2314_v21 }
 0x6be   :  { %v6288_v12 = vpop.eup %6287  ;;  %v2384_v42 = vmul.f32 1.442695, %v2312_v28  ;;  %v2386_v45 = vmul.f32 1.442695, %v2313_v17  ;;  %v2390_v59 = vmul.f32 1.442695, %v2315_v8 }
 0x6bf   :  { %v6290_v34 = vpop.eup %6289  ;;  %6293 = vpow2.f32 %v2380_v15  ;;  %v2499_v19 = vadd.f32 %v6288_v12, %v6286_v20 }
 0x6c0   :  { %v6292_v38 = vpop.eup %6291  ;;  %v2592_v31 = vpack.c.bf16 %v6286_v20, %v6290_v34  ;;  %6295 = vpow2.f32 %v2382_v23  ;;  %v1994_v20 = vadd.f32 %v7942_v5, %v8087_v0 }
 0x6c1   :  { %v2593_v43 = vpack.c.bf16 %v6288_v12, %v6292_v38  ;;  %v2496_v26 = vadd.f32 %v6292_v38, %v6290_v34  ;;  %6297 = vpow2.f32 %v2376_v27 }
 0x6c2   :  { %2648 = vmatmul.bf16.vlgmr.msra.gmra.mxu0 %v2592_v31  ;;  %6299 = vpow2.f32 %v2388_v39  ;;  %v1995_v31 = vadd.f32 %v7946_v35, %v8087_v0  ;;  %v2228_v50 = vpop.xlane.xlu2 %2227  ;;  %v10485_v0 = vld [vmem:[#allocation57_spill] sm:$0xff] }
 0x6c3   :  { %2737 = vmatmul.bf16.vlgmr.msra.gmra.mxu3 %v2593_v43  ;;  %2497 = vadd.xlane.f32.xlu2 %v2496_v26  ;;  %6301 = vpow2.f32 %v2384_v42  ;;  %v2058_v43 = vmul.f32 0.2, %v1994_v20  ;;  %v2231_v28 = vpop.xlane.xlu1 %2230  ;;  %v2316_v39 = vsub.f32 %v8017_v14, %v2228_v50  ;;  %v2317_v42 = vsub.f32 %v8011_v16, %v2228_v50 }
 0x6c4   :  { %6303 = vpow2.f32 %v2386_v45  ;;  %v2059_v12 = vmul.f32 0.2, %v1995_v31  ;;  %v10484_v45 = vld [vmem:[#allocation56_spill] sm:$0xff] }
 0x6c5   :  { %v6294_v32 = vpop.eup %6293  ;;  %6305 = vpow2.f32 %v2390_v59  ;;  %v2122_v17 = vmax.f32 %v1994_v20, %v2058_v43 }
 0x6c6   :  { %v6296_v63 = vpop.eup %6295  ;;  %6307 = vpow2.f32 %v2378_v25  ;;  %v2123_v26 = vmax.f32 %v1995_v31, %v2059_v12  ;;  %v2318_v25 = vsub.f32 %v8034_v40, %v2231_v28  ;;  %v1998_v40 = vadd.f32 %v7942_v5, %v8155_v57 }
 0x6c7   :  { %v2505_v33 = vadd.f32 %v6296_v63, %v6294_v32  ;;  %v6298_v18 = vpop.eup %6297 }
 0x6c8   :  { %v6300_v22 = vpop.eup %6299  ;;  %v2594_v38 = vpack.c.bf16 %v6294_v32, %v6298_v18  ;;  %v8201_v59 = vadd.f32 %v2123_v26, %v10484_v45  ;;  %v2319_v32 = vsub.f32 %v8031_v30, %v2231_v28  ;;  %v2396_v14 = vmul.f32 1.442695, %v2318_v25  ;;  %v10486_v25 = vld [vmem:[#allocation47_spill] sm:$0xff] }
 0x6c9   :  { %2506 = vadd.xlane.f32.xlu1 %v2505_v33  ;;  %v6302_v21 = vpop.eup %6301  ;;  %v2392_v33 = vmul.f32 1.442695, %v2316_v39 }
 0x6ca   :  { %v6304_v34 = vpop.eup %6303  ;;  %v2398_v30 = vmul.f32 1.442695, %v2319_v32 }
 0x6cb   :  { %2500 = vadd.xlane.f32.xlu2 %v2499_v19  ;;  %v6306_v15 = vpop.eup %6305  ;;  %v2508_v8 = vadd.f32 %v6304_v34, %v6302_v21  ;;  %v8206_v19 = vadd.f32 %v2122_v17, %v10485_v0  ;;  %6309 = vpow2.f32 %v2392_v33  ;;  %v2237_v50 = vpop.xlane.xlu1 %2236 }
 0x6cc   :  { %v6308_v23 = vpop.eup %6307  ;;  %v2511_v27 = vadd.f32 %v6306_v15, %v6300_v22  ;;  %v2234_v17 = vpop.xlane.xlu0 %2233 }
 0x6cd   :  { %v2595_v62 = vpack.c.bf16 %v6296_v63, %v6308_v23  ;;  %v2596_v63 = vpack.c.bf16 %v6300_v22, %v6302_v21  ;;  %v2271_v16 = vmax.f32 %v8206_v19, %v8201_v59  ;;  %v1923_v21 = vpop.permute.xlu2 %1922  ;;  %v2502_v20 = vadd.f32 %v6308_v23, %v6298_v18 }
 0x6ce   :  { %v2004_v31 = vadd.f32 %v7942_v5, %v1923_v21  ;;  %v2322_v18 = vsub.f32 %v8042_v9, %v2237_v50 }
 0x6d0   :  { %v2068_v39 = vmul.f32 0.2, %v2004_v31  ;;  %v2404_v9 = vmul.f32 1.442695, %v2322_v18 }
 0x6d1   :  { %2512 = vadd.xlane.f32.xlu1 %v2511_v27  ;;  %v2005_v27 = vadd.f32 %v7946_v35, %v1923_v21  ;;  %v6310_v12 = vpop.eup %6309 }
 0x6d2   :  { %2653 = vmatmul.bf16.gmra.mxu0 %v2594_v38  ;;  %v2597_v38 = vpack.c.bf16 %v6306_v15, %v6304_v34  ;;  %v2062_v34 = vmul.f32 0.2, %v1998_v40 }
 0x6d3   :  { %2509 = vadd.xlane.f32.xlu2 %v2508_v8  ;;  %2742 = vmatmul.bf16.gmra.mxu3 %v2595_v62  ;;  %v1999_v8 = vadd.f32 %v7946_v35, %v8155_v57  ;;  %v2394_v62 = vmul.f32 1.442695, %v2317_v42  ;;  %v2069_v42 = vmul.f32 0.2, %v2005_v27 }
 0x6d4   :  { %v2126_v57 = vmax.f32 %v1998_v40, %v2062_v34 }
 0x6d5   :  { %v2063_v22 = vmul.f32 0.2, %v1999_v8  ;;  %6311 = vpow2.f32 %v2394_v62  ;;  %v2132_v62 = vmax.f32 %v2004_v31, %v2068_v39  ;;  %v2001_v39 = vadd.f32 %v7946_v35, %v8179_v54 }
 0x6d6   :  { %6313 = vpow2.f32 %v2396_v14 }
 0x6d7   :  { %6315 = vpow2.f32 %v2398_v30  ;;  %v2127_v15 = vmax.f32 %v1999_v8, %v2063_v22  ;;  %v2321_v8 = vsub.f32 %v8014_v11, %v2234_v17  ;;  %v10488_v22 = vld [vmem:[#allocation60_spill] sm:$0xff]  ;;  %v8242_v11 = vpop.permute.xlu0 %1932 }
 0x6d8   :  { %v8237_v21 = vadd.f32 %v2132_v62, %v10488_v22  ;;  %6317 = vpow2.f32 %v2404_v9  ;;  %v2000_v62 = vadd.f32 %v7942_v5, %v8179_v54 }
 0x6d9   :  { %v8223_v32 = vadd.f32 %v2127_v15, %v10486_v25  ;;  %v2402_v30 = vmul.f32 1.442695, %v2321_v8 }
 0x6db   :  { %v6312_v43 = vpop.eup %6311 }
 0x6dc   :  { %v8217_v26 = vpop.eup %6313  ;;  %v2514_v8 = vadd.f32 %v6312_v43, %v6310_v12 }
 0x6dd   :  { %v8220_v28 = vpop.eup %6315  ;;  %v2598_v23 = vpack.c.bf16 %v8217_v26, %v6310_v12 }
 0x6de   :  { %v8246_v31 = vpop.eup %6317 }
 0x6e2   :  { %2658 = vmatmul.bf16.gmra.mxu0 %v2596_v63  ;;  %v10487_v63 = vld [vmem:[#allocation48_spill] sm:$0xff] }
 0x6e3   :  { %2747 = vmatmul.bf16.gmra.mxu3 %v2597_v38  ;;  %2272 = vmax.xlane.f32.xlu0 %v2271_v16  ;;  %v8229_v33 = vadd.f32 %v2126_v57, %v10487_v63  ;;  %v2320_v38 = vsub.f32 %v8023_v3, %v2234_v17  ;;  %v2133_v16 = vmax.f32 %v2005_v27, %v2069_v42  ;;  %v10489_v3 = vld [vmem:[#allocation61_spill] sm:$0xff] }
 0x6e5   :  { %v2277_v14 = vmax.f32 %v8229_v33, %v8223_v32  ;;  %v2400_v40 = vmul.f32 1.442695, %v2320_v38  ;;  %v8240_v34 = vadd.f32 %v2133_v16, %v10489_v3  ;;  %v2002_v16 = vadd.f32 %v7942_v5, %v8161_v61 }
 0x6e7   :  { %v2286_v15 = vmax.f32 %v8237_v21, %v8240_v34 }
 0x6ea   :  { %1947 = vperm.xlu1 %6085, %v7916_v2   ;;  %v2599_v2 = vpack.c.bf16 %v8220_v28, %v6312_v43 }
 0x6eb   :  { %1942 = vperm.xlu2 %6086, %v7914_v46   ;;  %2503 = vadd.xlane.f32.xlu0 %v2502_v20  ;;  %v2323_v46 = vsub.f32 %v8039_v1, %v2237_v50  ;;  %v1928_v20 = vpop.permute.xlu1 %1927 }
 0x6ec   :  { %v2006_v42 = vadd.f32 %v7942_v5, %v1928_v20 }
 0x6ed   :  { %v2406_v1 = vmul.f32 1.442695, %v2323_v46 }
 0x6ef   :  { %6319 = vpow2.f32 %v2406_v1 }
 0x6f0   :  { %6321 = vpow2.f32 %v2400_v40 }
 0x6f1   :  { %6323 = vpow2.f32 %v2402_v30  ;;  %v2065_v30 = vmul.f32 0.2, %v2001_v39 }
 0x6f2   :  { %2663 = vmatmul.bf16.gmra.mxu0 %v2598_v23  ;;  %v2007_v23 = vadd.f32 %v7946_v35, %v1928_v20 }
 0x6f3   :  { %2752 = vmatmul.bf16.gmra.mxu3 %v2599_v2  ;;  %2278 = vmax.xlane.f32.xlu0 %v2277_v14  ;;  %v2003_v14 = vadd.f32 %v7946_v35, %v8161_v61 }
 0x6f4   :  { %v2071_v43 = vmul.f32 0.2, %v2007_v23 }
 0x6f5   :  { %v8248_v27 = vpop.eup %6319 }
 0x6f6   :  { %v8250_v57 = vpop.eup %6321 }
 0x6f7   :  { %v8252_v50 = vpop.eup %6323  ;;  %v2600_v17 = vpack.c.bf16 %v8246_v31, %v8250_v57 }
 0x6f8   :  { %v2601_v46 = vpack.c.bf16 %v8248_v27, %v8252_v50 }
 0x6fb   :  { %2287 = vmax.xlane.f32.xlu0 %v2286_v15  ;;  %v2064_v15 = vmul.f32 0.2, %v2000_v62 }
 0x700   :  { %v2243_v18 = vpop.xlane.xlu0 %2242 }
 0x701   :  { %v2326_v38 = vsub.f32 %v8063_v13, %v2243_v18  ;;  %v2327_v2 = vsub.f32 %v8059_v51, %v2243_v18  ;;  %v2070_v13 = vmul.f32 0.2, %v2006_v42  ;;  %v2067_v18 = vmul.f32 0.2, %v2003_v14 }
 0x702   :  { %2668 = vmatmul.bf16.gmra.mxu0 %v2600_v17  ;;  %v2066_v17 = vmul.f32 0.2, %v2002_v16 }
 0x703   :  { %2757 = vmatmul.bf16.gmra.mxu3 %v2601_v46  ;;  %v2412_v9 = vmul.f32 1.442695, %v2326_v38  ;;  %v2414_v1 = vmul.f32 1.442695, %v2327_v2  ;;  %2515 = vadd.xlane.f32.xlu0 %v2514_v8  ;;  %v2240_v40 = vpop.xlane.xlu2 %2239  ;;  %v2129_v46 = vmax.f32 %v2001_v39, %v2065_v30  ;;  %v2134_v61 = vmax.f32 %v2006_v42, %v2070_v13  ;;  %v10491_v13 = vld [vmem:[#allocation68_spill] sm:$0xff] }
 0x704   :  { %v2324_v51 = vsub.f32 %v8072_v6, %v2240_v40  ;;  %v2325_v12 = vsub.f32 %v8066_v44, %v2240_v40  ;;  %v2517_v2 = vadd.f32 %v8220_v28, %v8217_v26  ;;  %v2135_v8 = vmax.f32 %v2007_v23, %v2071_v43 }
 0x705   :  { %6325 = vpow2.f32 %v2412_v9  ;;  %v2128_v40 = vmax.f32 %v2000_v62, %v2064_v15  ;;  %v2131_v39 = vmax.f32 %v2003_v14, %v2067_v18  ;;  %v8281_v26 = vadd.f32 %v2129_v46, %v10491_v13  ;;  %v10493_v62 = vld [vmem:[#allocation63_spill] sm:$0xff] }
 0x706   :  { %v2408_v54 = vmul.f32 1.442695, %v2324_v51  ;;  %v2410_v20 = vmul.f32 1.442695, %v2325_v12  ;;  %6327 = vpow2.f32 %v2414_v1  ;;  %v10490_v1 = vld [vmem:[#allocation73_spill] sm:$0xff]  ;;  %v8289_v43 = vadd.f32 %v2135_v8, %v10493_v62 }
 0x707   :  { %v2009_v8 = vadd.f32 %v7946_v35, %v8242_v11 }
 0x708   :  { %6329 = vpow2.f32 %v2408_v54  ;;  %v2252_v38 = vpop.xlane.xlu0 %2251 }
 0x709   :  { %6331 = vpow2.f32 %v2410_v20  ;;  %v2332_v6 = vsub.f32 %v8085_v47, %v2252_v38  ;;  %v2333_v44 = vsub.f32 %v8080_v41, %v2252_v38  ;;  %v2130_v47 = vmax.f32 %v2002_v16, %v2066_v17  ;;  %v10492_v41 = vld [vmem:[#allocation62_spill] sm:$0xff] }
 0x70a   :  { %v8286_v23 = vadd.f32 %v2134_v61, %v10492_v41  ;;  %v10495_v61 = vld [vmem:[#allocation65_spill] sm:$0xff] }
 0x70b   :  { %v2424_v9 = vmul.f32 1.442695, %v2332_v6  ;;  %v2426_v51 = vmul.f32 1.442695, %v2333_v44  ;;  %2518 = vadd.xlane.f32.xlu0 %v2517_v2  ;;  %v2249_v12 = vpop.xlane.xlu2 %2248  ;;  %v8276_v3 = vpop.eup %6325  ;;  %v8299_v38 = vadd.f32 %v2131_v39, %v10495_v61  ;;  %v2008_v2 = vadd.f32 %v7942_v5, %v8242_v11  ;;  %v10496_v44 = vld [vmem:[#allocation64_spill] sm:$0xff] }
 0x70c   :  { %v2330_v42 = vsub.f32 %v8096_v55, %v2249_v12  ;;  %v2331_v30 = vsub.f32 %v10490_v1, %v2249_v12  ;;  %v8283_v28 = vpop.eup %6327  ;;  %v10494_v55 = vld [vmem:[#allocation69_spill] sm:$0xff]  ;;  %v2289_v6 = vmax.f32 %v8286_v23, %v8289_v43 }
 0x70d   :  { %6333 = vpow2.f32 %v2424_v9  ;;  %v8292_v20 = vadd.f32 %v2128_v40, %v10494_v55  ;;  %v8308_v40 = vadd.f32 %v2130_v47, %v10496_v44  ;;  %v2523_v44 = vadd.f32 %v8248_v27, %v8246_v31  ;;  %v6055_v31 = vld [vmem:[#allocation6 + $0xa8] sm:$0xff] }
 0x70e   :  { %v6330_v15 = vpop.eup %6329  ;;  %6335 = vpow2.f32 %v2426_v51  ;;  %v2420_v14 = vmul.f32 1.442695, %v2330_v42  ;;  %v2422_v54 = vmul.f32 1.442695, %v2331_v30  ;;  %v2246_v51 = vpop.xlane.xlu1 %2245  ;;  %v10497_v42 = vld [vmem:[#allocation76_spill] sm:$0xff] }
 0x70f   :  { %v6332_v18 = vpop.eup %6331  ;;  %v2602_v46 = vpack.c.bf16 %v8276_v3, %v6330_v15  ;;  %v2280_v16 = vmax.f32 %v8292_v20, %v8281_v26  ;;  %v2328_v39 = vsub.f32 %v8122_v24, %v2246_v51  ;;  %v2329_v11 = vsub.f32 %v10497_v42, %v2246_v51 }
 0x710   :  { %6337 = vpow2.f32 %v2420_v14  ;;  %v2603_v17 = vpack.c.bf16 %v8283_v28, %v6332_v18  ;;  %v2283_v1 = vmax.f32 %v8308_v40, %v8299_v38  ;;  %v2072_v30 = vmul.f32 0.2, %v2008_v2  ;;  %v8326_v41 = vpop.xlane.xlu0 %2260 }
 0x711   :  { %6339 = vpow2.f32 %v2422_v54  ;;  %v2073_v14 = vmul.f32 0.2, %v2009_v8  ;;  %v2520_v24 = vadd.f32 %v8252_v50, %v8250_v57  ;;  %v10499_v57 = vld [vmem:[#allocation67_spill] sm:$0xff] }
 0x712   :  { %2673 = vmatmul.bf16.gmra.mxu0 %v2602_v46  ;;  %v2416_v46 = vmul.f32 1.442695, %v2328_v39  ;;  %v2136_v42 = vmax.f32 %v2008_v2, %v2072_v30  ;;  %v6056_v39 = vld [vmem:[#allocation6 + $0xb0] sm:$0xff] }
 0x713   :  { %2762 = vmatmul.bf16.gmra.mxu3 %v2603_v17  ;;  %v8310_v9 = vpop.eup %6333  ;;  %2290 = vmax.xlane.f32.xlu0 %v2289_v6  ;;  %v2418_v17 = vmul.f32 1.442695, %v2329_v11  ;;  %v6057_v6 = vld [vmem:[#allocation6 + $0xb8] sm:$0xff]  ;;  %v2137_v62 = vmax.f32 %v2009_v8, %v2073_v14  ;;  %v2258_v61 = vpop.xlane.xlu2 %2257 }
 0x714   :  { %2281 = vmax.xlane.f32.xlu2 %v2280_v16  ;;  %v8312_v12 = vpop.eup %6335  ;;  %2284 = vmax.xlane.f32.xlu1 %v2283_v1  ;;  %6341 = vpow2.f32 %v2416_v46  ;;  %v10498_v1 = vld [vmem:[#allocation66_spill] sm:$0xff] }
 0x715   :  { %v8320_v47 = vadd.f32 %v8312_v12, %v8310_v9  ;;  %6343 = vpow2.f32 %v2418_v17  ;;  %3029 = vmatpush.bf16.msra.mxu1 %v6057_v6  ;;  %v8331_v46 = vadd.f32 %v2136_v42, %v10498_v1  ;;  %v8334_v50 = vadd.f32 %v2137_v62, %v10499_v57 }
 0x716   :  { %v6338_v54 = vpop.eup %6337  ;;  %v2255_v11 = vpop.xlane.xlu1 %2254  ;;  %v2526_v6 = vadd.f32 %v6332_v18, %v6330_v15 }
 0x717   :  { %v6340_v16 = vpop.eup %6339  ;;  %v2334_v8 = vsub.f32 %v8150_v7, %v2255_v11  ;;  %v2335_v14 = vsub.f32 %v8142_v60, %v2255_v11  ;;  %v2529_v60 = vadd.f32 %v8283_v28, %v8276_v3  ;;  %v10500_v7 = vld [vmem:[#allocation75_spill] sm:$0xff] }
 0x718   :  { %v8324_v51 = vadd.f32 %v6340_v16, %v6338_v54  ;;  %v8340_v42 = vpop.xlane.xlu0 %2266  ;;  %v2338_v15 = vsub.f32 %v10500_v7, %v8326_v41 }
 0x719   :  { %3030 = vmatpush.bf16.msra.mxu1 %v6056_v39  ;;  %v2430_v62 = vmul.f32 1.442695, %v2335_v14  ;;  %v6054_v14 = vld [vmem:[#allocation6 + $0xa0] sm:$0xff] }
 0x71a   :  { %v6342_v2 = vpop.eup %6341 }
 0x71b   :  { %2521 = vadd.xlane.f32.xlu0 %v2520_v24  ;;  %v6344_v30 = vpop.eup %6343  ;;  %v2604_v17 = vpack.c.bf16 %v6338_v54, %v6342_v2  ;;  %v2428_v24 = vmul.f32 1.442695, %v2334_v8  ;;  %v8342_v39 = vpop.xlane.xlu2 %2269 }
 0x71c   :  { %2524 = vadd.xlane.f32.xlu2 %v2523_v44  ;;  %v2605_v27 = vpack.c.bf16 %v6340_v16, %v6344_v30  ;;  %v2292_v44 = vmax.f32 %v8331_v46, %v8334_v50 }
 0x71d   :  { %3031 = vmatpush.bf16.msra.mxu1 %v6055_v31  ;;  %6345 = vpow2.f32 %v2428_v24  ;;  %v2336_v31 = vsub.f32 %v8125_v4, %v2258_v61  ;;  %v2436_v24 = vmul.f32 1.442695, %v2338_v15  ;;  %v10501_v4 = vld [vmem:[#allocation74_spill] sm:$0xff] }
 0x71e   :  { %6347 = vpow2.f32 %v2430_v62  ;;  %v2264_v16 = vpop.xlane.xlu1 %2263  ;;  %v2339_v22 = vsub.f32 %v10501_v4, %v8326_v41 }
 0x71f   :  { %v2340_v62 = vsub.f32 %v8170_v37, %v2264_v16  ;;  %v2341_v7 = vsub.f32 %v8164_v10, %v2264_v16  ;;  %v2432_v25 = vmul.f32 1.442695, %v2336_v31  ;;  %v10503_v37 = vld [vmem:[#allocation40_spill] sm:$0xff]  ;;  %6349 = vpow2.f32 %v2436_v24 }
 0x720   :  { %v2438_v41 = vmul.f32 1.442695, %v2339_v22  ;;  %v6050_v22 = vld [vmem:[#allocation6 + $0x80] sm:$0xff] }
 0x721   :  { %3032 = vmatpush.bf16.msra.mxu1 %v6054_v14  ;;  %v10502_v14 = vld [vmem:[#allocation42_spill] sm:$0xff]  ;;  %v2440_v10 = vmul.f32 1.442695, %v2340_v62  ;;  %6351 = vpow2.f32 %v2432_v25 }
 0x722   :  { %2678 = vmatmul.bf16.gmra.mxu0 %v2604_v17 }
 0x723   :  { %2767 = vmatmul.bf16.gmra.mxu3 %v2605_v27  ;;  %2293 = vmax.xlane.f32.xlu0 %v2292_v44  ;;  %v6346_v54 = vpop.eup %6345  ;;  %v8351_v27 = vpop.xlane.xlu2 %2275  ;;  %v6053_v44 = vld [vmem:[#allocation6 + $0x98] sm:$0xff] }
 0x724   :  { %2527 = vadd.xlane.f32.xlu2 %v2526_v6  ;;  %v6348_v17 = vpop.eup %6347  ;;  %v2337_v6 = vsub.f32 %v8117_v36, %v2258_v61  ;;  %v2532_v36 = vadd.f32 %v6344_v30, %v6342_v2  ;;  %v6051_v2 = vld [vmem:[#allocation6 + $0x88] sm:$0xff] }
 0x725   :  { %v2607_v1 = vpack.c.bf16 %v6348_v17, %v8312_v12  ;;  %3033 = vmatpush.bf16.msra.mxu1 %v6053_v44  ;;  %v8368_v30 = vpop.eup %6349  ;;  %v2342_v44 = vsub.f32 %v8139_v49, %v8340_v42 }
 0x726   :  { %v2434_v61 = vmul.f32 1.442695, %v2337_v6 }
 0x728   :  { %6353 = vpow2.f32 %v2434_v61 }
 0x729   :  { %6355 = vpow2.f32 %v2440_v10  ;;  %v8389_v10 = vld [vmem:[%s10206_s4 + $0x1] ss:$0 sm:$0xff] }
 0x72b   :  { %v1938_v18 = vpop.permute.xlu0 %1937  ;;  %2530 = vadd.xlane.f32.xlu0 %v2529_v60  ;;  %v2606_v60 = vpack.c.bf16 %v6346_v54, %v8310_v9  ;;  %v2442_v9 = vmul.f32 1.442695, %v2341_v7 }
 0x72c   :  { %v2010_v11 = vadd.f32 %v7942_v5, %v1938_v18  ;;  %v2011_v8 = vadd.f32 %v7946_v35, %v1938_v18 }
 0x72d   :  { %6357 = vpow2.f32 %v2442_v9 }
 0x72e   :  { %v2074_v3 = vmul.f32 0.2, %v2010_v11  ;;  %v2075_v28 = vmul.f32 0.2, %v2011_v8  ;;  %6359 = vpow2.f32 %v2438_v41 }
 0x730   :  { %v2138_v18 = vmax.f32 %v2010_v11, %v2074_v3  ;;  %v2139_v57 = vmax.f32 %v2011_v8, %v2075_v28  ;;  %v8370_v11 = vpop.eup %6351 }
 0x731   :  { %v8372_v8 = vpop.eup %6353 }
 0x732   :  { %2683 = vmatmul.bf16.gmra.mxu0 %v2606_v60  ;;  %v8361_v15 = vadd.f32 %v2138_v18, %v10502_v14  ;;  %v8364_v63 = vadd.f32 %v2139_v57, %v10503_v37  ;;  %v2541_v57 = vadd.f32 %v6348_v17, %v6346_v54  ;;  %v6356_v25 = vpop.eup %6355  ;;  %v2608_v54 = vpack.c.bf16 %v8368_v30, %v8370_v11 }
 0x733   :  { %2772 = vmatmul.bf16.gmra.mxu3 %v2607_v1  ;;  %2533 = vadd.xlane.f32.xlu0 %v2532_v36  ;;  %v6052_v1 = vld [vmem:[#allocation6 + $0x90] sm:$0xff]  ;;  %v6358_v6 = vpop.eup %6357  ;;  %v2343_v17 = vsub.f32 %v8135_v56, %v8340_v42  ;;  %v2444_v60 = vmul.f32 1.442695, %v2342_v44 }
 0x734   :  { %v2295_v12 = vmax.f32 %v8361_v15, %v8364_v63  ;;  %3034 = vmatpush.bf16.msra.mxu1 %v6052_v1  ;;  %v8374_v28 = vpop.eup %6359  ;;  %v2550_v62 = vadd.f32 %v6358_v6, %v6356_v25 }
 0x735   :  { %v2609_v24 = vpack.c.bf16 %v8374_v28, %v8372_v8  ;;  %v2446_v7 = vmul.f32 1.442695, %v2343_v17 }
 0x736   :  { %v2498_v16 = vpop.xlane.xlu2 %2497  ;;  %2296 = vmax.xlane.f32.xlu1 %v2295_v12 }
 0x737   :  { %6361 = vrcp.f32 %v2498_v16 }
 0x738   :  { %3035 = vmatpush.bf16.msra.mxu1 %v6051_v2  ;;  %6363 = vpow2.f32 %v2444_v60 }
 0x739   :  { %6365 = vpow2.f32 %v2446_v7  ;;  %v2345_v7 = vsub.f32 %v8145_v58, %v8342_v39 }
 0x73b   :  { %2542 = vadd.xlane.f32.xlu0 %v2541_v57 }
 0x73c   :  { %3036 = vmatpush.bf16.msra.mxu1 %v6050_v22  ;;  %v2507_v42 = vpop.xlane.xlu1 %2506 }
 0x73d   :  { %v6362_v56 = vpop.eup %6361 }
 0x73e   :  { %v2501_v31 = vpop.xlane.xlu2 %2500  ;;  %v8391_v9 = vpop.eup %6363 }
 0x73f   :  { %v2649_v3 = vpop.f32.mrf.mxu0  ;;  %6367 = vrcp.f32 %v2501_v31  ;;  %v8393_v16 = vpop.eup %6365  ;;  %v2610_v44 = vpack.c.bf16 %v8391_v9, %v6356_v25  ;;  %v10504_v25 = vld [vmem:[#allocation71_spill] sm:$0xff] }
 0x742   :  { %2688 = vmatmul.bf16.gmra.mxu0 %v2608_v54  ;;  %v2611_v54 = vpack.c.bf16 %v8393_v16, %v6358_v6  ;;  %v10505_v6 = vld [vmem:[#allocation72_spill] sm:$0xff] }
 0x743   :  { %2777 = vmatmul.bf16.gmra.mxu3 %v2609_v24  ;;  %2551 = vadd.xlane.f32.xlu0 %v2550_v62 }
 0x745   :  { %v6368_v31 = vpop.eup %6367 }
 0x746   :  { %v2738_v18 = vpop.f32.mrf.mxu3  ;;  %v8384_v4 = vpop.xlane.xlu2 %2509 }
 0x747   :  { %v2651_v49 = vpop.f32.mrf.mxu0  ;;  %v2739_v36 = vadd.f32 %v2738_v18, %v2649_v3  ;;  %v2344_v3 = vsub.f32 %v8153_v48, %v8342_v39 }
 0x749   :  { %v2850_v61 = vmul.f32 %v6362_v56, %v2739_v36  ;;  %v2448_v56 = vmul.f32 1.442695, %v2344_v3 }
 0x74b   :  { %v2884_v17 = vadd.f32 %v8389_v10, %v2850_v61  ;;  %6369 = vpow2.f32 %v2448_v56 }
 0x74d   :  { %v2916_v48 = vmax.f32 %v2884_v17, 0.0 }
 0x74e   :  { %v2740_v12 = vpop.f32.mrf.mxu3  ;;  %v1943_v41 = vpop.permute.xlu2 %1942 }
 0x74f   :  { %v2741_v1 = vadd.f32 %v2740_v12, %v2651_v49  ;;  %v2012_v2 = vadd.f32 %v7942_v5, %v1943_v41  ;;  %v2013_v57 = vadd.f32 %v7946_v35, %v1943_v41  ;;  %v8397_v22 = vpop.f32.mrf.mxu0 }
 0x751   :  { %v2851_v24 = vmul.f32 %v6368_v31, %v2741_v1  ;;  %v2076_v62 = vmul.f32 0.2, %v2012_v2  ;;  %v2077_v60 = vmul.f32 0.2, %v2013_v57  ;;  %v2450_v1 = vmul.f32 1.442695, %v2345_v7  ;;  %v8413_v31 = vpop.xlane.xlu1 %2512 }
 0x752   :  { %2693 = vmatmul.bf16.gmra.mxu0 %v2610_v44 }
 0x753   :  { %v2885_v18 = vadd.f32 %v8389_v10, %v2851_v24  ;;  %v2140_v49 = vmax.f32 %v2012_v2, %v2076_v62  ;;  %v2141_v36 = vmax.f32 %v2013_v57, %v2077_v60  ;;  %2782 = vmatmul.bf16.gmra.mxu3 %v2611_v54  ;;  %6371 = vpow2.f32 %v2450_v1  ;;  %v8419_v62 = vpop.eup %6369 }
 0x754   :  { %6373 = vrcp.f32 %v2507_v42 }
 0x755   :  { %v2917_v12 = vmax.f32 %v2885_v18, 0.0  ;;  %v8408_v41 = vadd.f32 %v2140_v49, %v10504_v25  ;;  %v8411_v61 = vadd.f32 %v2141_v36, %v10505_v6 }
 0x756   :  { %v2743_v37 = vpop.f32.mrf.mxu3  ;;  %v2273_v44 = vpop.xlane.xlu0 %2272 }
 0x757   :  { %v2948_v58 = vpack.c.bf16 %v2917_v12, %v2916_v48  ;;  %v2656_v39 = vpop.f32.mrf.mxu0  ;;  %v2298_v2 = vmax.f32 %v8408_v41, %v8411_v61  ;;  %v2346_v57 = vsub.f32 %v8206_v19, %v2273_v44  ;;  %v2347_v3 = vsub.f32 %v8201_v59, %v2273_v44 }
 0x758   :  { %v2348_v48 = vsub.f32 %v8173_v29, %v8351_v27  ;;  %v2349_v12 = vsub.f32 %v8167_v53, %v8351_v27  ;;  %v10506_v53 = vld [vmem:[#allocation50_spill] sm:$0xff] }
 0x759   :  { %3037 = vmatmul.bf16.vlgmr.msra.gmra.mxu1 %v2948_v58  ;;  %2299 = vmax.xlane.f32.xlu1 %v2298_v2  ;;  %v2452_v54 = vmul.f32 1.442695, %v2346_v57  ;;  %v2454_v17 = vmul.f32 1.442695, %v2347_v3  ;;  %v8421_v49 = vpop.eup %6371 }
 0x75a   :  { %v6374_v56 = vpop.eup %6373  ;;  %v2458_v29 = vmul.f32 1.442695, %v2349_v12 }
 0x75b   :  { %6375 = vpow2.f32 %v2452_v54  ;;  %v2456_v54 = vmul.f32 1.442695, %v2348_v48 }
 0x75c   :  { %6377 = vpow2.f32 %v2454_v17  ;;  %v1948_v7 = vpop.permute.xlu1 %1947 }
 0x75d   :  { %v2014_v19 = vadd.f32 %v7942_v5, %v1948_v7  ;;  %v2015_v59 = vadd.f32 %v7946_v35, %v1948_v7 }
 0x75e   :  { %v2745_v24 = vpop.f32.mrf.mxu3  ;;  %v2504_v36 = vpop.xlane.xlu0 %2503 }
 0x75f   :  { %v2746_v60 = vadd.f32 %v2745_v24, %v2656_v39  ;;  %v2659_v18 = vpop.f32.mrf.mxu0  ;;  %6379 = vrcp.f32 %v2504_v36  ;;  %v2078_v1 = vmul.f32 0.2, %v2014_v19  ;;  %v2079_v58 = vmul.f32 0.2, %v2015_v59  ;;  %v10507_v24 = vld [vmem:[#allocation70_spill] sm:$0xff] }
 0x760   :  { %6381 = vpow2.f32 %v2456_v54 }
 0x761   :  { %2536 = vadd.xlane.f32.xlu1 %v8324_v51  ;;  %v6376_v42 = vpop.eup %6375  ;;  %v2853_v44 = vmul.f32 %v6374_v56, %v2746_v60  ;;  %v2142_v2 = vmax.f32 %v2014_v19, %v2078_v1  ;;  %v2143_v35 = vmax.f32 %v2015_v59, %v2079_v58  ;;  %v2744_v51 = vadd.f32 %v2743_v37, %v8397_v22 }
 0x762   :  { %v6378_v39 = vpop.eup %6377  ;;  %v2612_v5 = vpack.c.bf16 %v6376_v42, %v8419_v62  ;;  %v2544_v19 = vadd.f32 %v8372_v8, %v8370_v11  ;;  %6383 = vpow2.f32 %v2458_v29 }
 0x763   :  { %v2559_v57 = vadd.f32 %v6378_v39, %v6376_v42  ;;  %v2613_v3 = vpack.c.bf16 %v6378_v39, %v8421_v49  ;;  %v8434_v27 = vadd.f32 %v2142_v2, %v10506_v53  ;;  %v8437_v60 = vadd.f32 %v2143_v35, %v10507_v24 }
 0x764   :  { %2698 = vmatmul.bf16.gmra.mxu0 %v2612_v5  ;;  %v2887_v59 = vadd.f32 %v8389_v10, %v2853_v44  ;;  %6385 = vrcp.f32 %v8413_v31 }
 0x765   :  { %2560 = vadd.xlane.f32.xlu0 %v2559_v57  ;;  %2787 = vmatmul.bf16.gmra.mxu3 %v2613_v3  ;;  %v6380_v7 = vpop.eup %6379  ;;  %v2301_v37 = vmax.f32 %v8434_v27, %v8437_v60  ;;  %6387 = vrcp.f32 %v8384_v4 }
 0x766   :  { %v2748_v17 = vpop.f32.mrf.mxu3  ;;  %v2279_v56 = vpop.xlane.xlu0 %2278  ;;  %v2852_v22 = vmul.f32 %v6380_v7, %v2744_v51  ;;  %v2919_v58 = vmax.f32 %v2887_v59, 0.0 }
 0x767   :  { %v2661_v36 = vpop.f32.mrf.mxu0  ;;  %v2350_v48 = vsub.f32 %v8229_v33, %v2279_v56  ;;  %v2351_v42 = vsub.f32 %v8223_v32, %v2279_v56  ;;  %2302 = vmax.xlane.f32.xlu2 %v2301_v37  ;;  %v6382_v33 = vpop.eup %6381  ;;  %v2553_v32 = vadd.f32 %v8393_v16, %v8391_v9  ;;  %v2749_v35 = vadd.f32 %v2748_v17, %v2659_v18 }
 0x768   :  { %v2886_v12 = vadd.f32 %v8389_v10, %v2852_v22  ;;  %v6384_v2 = vpop.eup %6383  ;;  %v2547_v17 = vadd.f32 %v8374_v28, %v8368_v30 }
 0x769   :  { %2545 = vadd.xlane.f32.xlu1 %v2544_v19  ;;  %v2460_v11 = vmul.f32 1.442695, %v2350_v48  ;;  %v2462_v8 = vmul.f32 1.442695, %v2351_v42  ;;  %v2562_v9 = vadd.f32 %v6384_v2, %v6382_v33 }
 0x76a   :  { %v2918_v1 = vmax.f32 %v2886_v12, 0.0  ;;  %v6386_v31 = vpop.eup %6385 }
 0x76b   :  { %6389 = vpow2.f32 %v2460_v11  ;;  %v6388_v3 = vpop.eup %6387 }
 0x76c   :  { %6391 = vpow2.f32 %v2462_v8  ;;  %v2949_v44 = vpack.c.bf16 %v2919_v58, %v2918_v1  ;;  %v2854_v7 = vmul.f32 %v6388_v3, %v2749_v35  ;;  %v2556_v1 = vadd.f32 %v8421_v49, %v8419_v62 }
 0x76e   :  { %v2750_v39 = vpop.f32.mrf.mxu3  ;;  %v2288_v57 = vpop.xlane.xlu0 %2287  ;;  %3042 = vmatmul.bf16.gmra.mxu1 %v2949_v44  ;;  %v2888_v16 = vadd.f32 %v8389_v10, %v2854_v7 }
 0x76f   :  { %v2751_v5 = vadd.f32 %v2750_v39, %v2661_v36  ;;  %v2664_v4 = vpop.f32.mrf.mxu0  ;;  %2539 = vadd.xlane.f32.xlu2 %v8320_v47  ;;  %v2356_v48 = vsub.f32 %v8237_v21, %v2288_v57  ;;  %v2357_v11 = vsub.f32 %v8240_v34, %v2288_v57 }
 0x770   :  { %v2920_v37 = vmax.f32 %v2888_v16, 0.0 }
 0x771   :  { %2554 = vadd.xlane.f32.xlu1 %v2553_v32  ;;  %v2855_v54 = vmul.f32 %v6386_v31, %v2751_v5  ;;  %v6390_v29 = vpop.eup %6389  ;;  %v2472_v30 = vmul.f32 1.442695, %v2356_v48  ;;  %v2474_v39 = vmul.f32 1.442695, %v2357_v11 }
 0x772   :  { %v6392_v51 = vpop.eup %6391  ;;  %v2614_v19 = vpack.c.bf16 %v6390_v29, %v6382_v33 }
 0x773   :  { %v2615_v59 = vpack.c.bf16 %v6392_v51, %v6384_v2  ;;  %v2889_v36 = vadd.f32 %v8389_v10, %v2855_v54  ;;  %v2565_v34 = vadd.f32 %v6392_v51, %v6390_v29 }
 0x774   :  { %2703 = vmatmul.bf16.gmra.mxu0 %v2614_v19 }
 0x775   :  { %2792 = vmatmul.bf16.gmra.mxu3 %v2615_v59  ;;  %v2921_v47 = vmax.f32 %v2889_v36, 0.0 }
 0x776   :  { %v2753_v56 = vpop.f32.mrf.mxu3  ;;  %v2516_v18 = vpop.xlane.xlu0 %2515 }
 0x777   :  { %2548 = vadd.xlane.f32.xlu2 %v2547_v17  ;;  %6393 = vrcp.f32 %v2516_v18  ;;  %v2666_v22 = vpop.f32.mrf.mxu0  ;;  %v2950_v12 = vpack.c.bf16 %v2921_v47, %v2920_v37  ;;  %v2754_v28 = vadd.f32 %v2753_v56, %v2664_v4 }
 0x779   :  { %2563 = vadd.xlane.f32.xlu1 %v2562_v9 }
 0x77d   :  { %v6394_v58 = vpop.eup %6393 }
 0x77e   :  { %v2755_v42 = vpop.f32.mrf.mxu3  ;;  %v2519_v8 = vpop.xlane.xlu0 %2518  ;;  %3047 = vmatmul.bf16.gmra.mxu1 %v2950_v12  ;;  %v2856_v44 = vmul.f32 %v6394_v58, %v2754_v28 }
 0x77f   :  { %6395 = vrcp.f32 %v2519_v8  ;;  %2557 = vadd.xlane.f32.xlu2 %v2556_v1  ;;  %v2756_v33 = vadd.f32 %v2755_v42, %v2666_v22  ;;  %v2669_v5 = vpop.f32.mrf.mxu0 }
 0x780   :  { %6397 = vpow2.f32 %v2472_v30  ;;  %v2890_v31 = vadd.f32 %v8389_v10, %v2856_v44 }
 0x781   :  { %6399 = vpow2.f32 %v2474_v39 }
 0x782   :  { %v2922_v36 = vmax.f32 %v2890_v31, 0.0 }
 0x785   :  { %v6396_v32 = vpop.eup %6395 }
 0x786   :  { %v2758_v21 = vpop.f32.mrf.mxu3  ;;  %v2291_v49 = vpop.xlane.xlu0 %2290  ;;  %v2857_v57 = vmul.f32 %v6396_v32, %v2756_v33 }
 0x787   :  { %v2282_v2 = vpop.xlane.xlu2 %2281  ;;  %v2358_v3 = vsub.f32 %v8286_v23, %v2291_v49  ;;  %v2359_v54 = vsub.f32 %v8289_v43, %v2291_v49  ;;  %v2285_v19 = vpop.xlane.xlu1 %2284  ;;  %2566 = vadd.xlane.f32.xlu2 %v2565_v34  ;;  %v2759_v32 = vadd.f32 %v2758_v21, %v2669_v5 }
 0x788   :  { %v2352_v35 = vsub.f32 %v8292_v20, %v2282_v2  ;;  %v2353_v62 = vsub.f32 %v8281_v26, %v2282_v2  ;;  %v2891_v59 = vadd.f32 %v8389_v10, %v2857_v57  ;;  %v2354_v29 = vsub.f32 %v8308_v40, %v2285_v19  ;;  %v8468_v26 = vpop.eup %6397  ;;  %v2671_v40 = vpop.f32.mrf.mxu0 }
 0x789   :  { %v2355_v20 = vsub.f32 %v8299_v38, %v2285_v19  ;;  %v2476_v51 = vmul.f32 1.442695, %v2358_v3  ;;  %v8470_v9 = vpop.eup %6399  ;;  %v2478_v16 = vmul.f32 1.442695, %v2359_v54 }
 0x78a   :  { %v2464_v4 = vmul.f32 1.442695, %v2352_v35  ;;  %v2466_v7 = vmul.f32 1.442695, %v2353_v62  ;;  %v2923_v56 = vmax.f32 %v2891_v59, 0.0  ;;  %v2574_v37 = vadd.f32 %v8470_v9, %v8468_v26 }
 0x78b   :  { %v2468_v23 = vmul.f32 1.442695, %v2354_v29  ;;  %v2470_v43 = vmul.f32 1.442695, %v2355_v20 }
 0x78c   :  { %6401 = vpow2.f32 %v2464_v4  ;;  %v2951_v17 = vpack.c.bf16 %v2923_v56, %v2922_v36 }
 0x78d   :  { %6403 = vpow2.f32 %v2466_v7 }
 0x78e   :  { %6405 = vpow2.f32 %v2476_v51  ;;  %v2760_v18 = vpop.f32.mrf.mxu3  ;;  %v2522_v38 = vpop.xlane.xlu0 %2521  ;;  %3052 = vmatmul.bf16.gmra.mxu1 %v2951_v17 }
 0x78f   :  { %6407 = vpow2.f32 %v2468_v23  ;;  %v2525_v47 = vpop.xlane.xlu2 %2524  ;;  %2575 = vadd.xlane.f32.xlu2 %v2574_v37  ;;  %v2761_v30 = vadd.f32 %v2760_v18, %v2671_v40 }
 0x790   :  { %6409 = vpow2.f32 %v2470_v43  ;;  %v2674_v31 = vpop.f32.mrf.mxu0 }
 0x791   :  { %6411 = vpow2.f32 %v2478_v16 }
 0x792   :  { %v6402_v22 = vpop.eup %6401  ;;  %6413 = vrcp.f32 %v2525_v47 }
 0x793   :  { %v6404_v48 = vpop.eup %6403  ;;  %6415 = vrcp.f32 %v2522_v38 }
 0x794   :  { %v6406_v42 = vpop.eup %6405  ;;  %v2568_v12 = vadd.f32 %v6404_v48, %v6402_v22 }
 0x795   :  { %v6408_v11 = vpop.eup %6407  ;;  %v2618_v17 = vpack.c.bf16 %v6406_v42, %v8468_v26 }
 0x796   :  { %v6410_v8 = vpop.eup %6409  ;;  %2569 = vadd.xlane.f32.xlu0 %v2568_v12  ;;  %v2616_v1 = vpack.c.bf16 %v6408_v11, %v6402_v22  ;;  %v2763_v28 = vpop.f32.mrf.mxu3 }
 0x797   :  { %v6412_v58 = vpop.eup %6411  ;;  %v2571_v39 = vadd.f32 %v6410_v8, %v6408_v11  ;;  %v2617_v44 = vpack.c.bf16 %v6410_v8, %v6404_v48  ;;  %v2528_v2 = vpop.xlane.xlu2 %2527 }
 0x798   :  { %v6414_v33 = vpop.eup %6413  ;;  %2708 = vmatmul.bf16.gmra.mxu0 %v2616_v1  ;;  %v2294_v34 = vpop.xlane.xlu0 %2293  ;;  %6417 = vrcp.f32 %v2528_v2  ;;  %v2577_v19 = vadd.f32 %v6412_v58, %v6406_v42  ;;  %v2619_v40 = vpack.c.bf16 %v6412_v58, %v8470_v9 }
 0x799   :  { %v6416_v35 = vpop.eup %6415  ;;  %2572 = vadd.xlane.f32.xlu1 %v2571_v39  ;;  %2797 = vmatmul.bf16.gmra.mxu3 %v2617_v44  ;;  %v2360_v62 = vsub.f32 %v8331_v46, %v2294_v34  ;;  %v2361_v49 = vsub.f32 %v8334_v50, %v2294_v34  ;;  %v2859_v57 = vmul.f32 %v6414_v33, %v2761_v30  ;;  %v2676_v23 = vpop.f32.mrf.mxu0 }
 0x79a   :  { %v2858_v3 = vmul.f32 %v6416_v35, %v2759_v32  ;;  %v2764_v50 = vadd.f32 %v2763_v28, %v2674_v31 }
 0x79b   :  { %v2480_v54 = vmul.f32 1.442695, %v2360_v62  ;;  %v2482_v4 = vmul.f32 1.442695, %v2361_v49  ;;  %v2893_v7 = vadd.f32 %v8389_v10, %v2859_v57 }
 0x79c   :  { %v2892_v5 = vadd.f32 %v8389_v10, %v2858_v3 }
 0x79d   :  { %6419 = vpow2.f32 %v2480_v54  ;;  %v2925_v59 = vmax.f32 %v2893_v7, 0.0 }
 0x79e   :  { %6421 = vpow2.f32 %v2482_v4  ;;  %2578 = vadd.xlane.f32.xlu0 %v2577_v19  ;;  %v2924_v21 = vmax.f32 %v2892_v5, 0.0  ;;  %v6418_v20 = vpop.eup %6417  ;;  %v2765_v51 = vpop.f32.mrf.mxu3 }
 0x79f   :  { %v2860_v43 = vmul.f32 %v6418_v20, %v2764_v50  ;;  %v2766_v18 = vadd.f32 %v2765_v51, %v2676_v23 }
 0x7a0   :  { %v2531_v29 = vpop.xlane.xlu0 %2530  ;;  %v2952_v46 = vpack.c.bf16 %v2925_v59, %v2924_v21 }
 0x7a1   :  { %6423 = vrcp.f32 %v2531_v29  ;;  %v2894_v37 = vadd.f32 %v8389_v10, %v2860_v43  ;;  %v2679_v28 = vpop.f32.mrf.mxu0 }
 0x7a2   :  { %3057 = vmatmul.bf16.gmra.mxu1 %v2952_v46 }
 0x7a3   :  { %v6420_v36 = vpop.eup %6419  ;;  %v2926_v1 = vmax.f32 %v2894_v37, 0.0 }
 0x7a4   :  { %v6422_v56 = vpop.eup %6421 }
 0x7a5   :  { %v2580_v16 = vadd.f32 %v6422_v56, %v6420_v36 }
 0x7a6   :  { %v2768_v8 = vpop.f32.mrf.mxu3 }
 0x7a7   :  { %v6424_v47 = vpop.eup %6423  ;;  %2581 = vadd.xlane.f32.xlu1 %v2580_v16  ;;  %v2769_v21 = vadd.f32 %v2768_v8, %v2679_v28 }
 0x7a8   :  { %2713 = vmatmul.bf16.gmra.mxu0 %v2618_v17  ;;  %v2861_v38 = vmul.f32 %v6424_v47, %v2766_v18  ;;  %v2534_v62 = vpop.xlane.xlu0 %2533 }
 0x7a9   :  { %2802 = vmatmul.bf16.gmra.mxu3 %v2619_v40  ;;  %v2297_v22 = vpop.xlane.xlu1 %2296  ;;  %v2681_v34 = vpop.f32.mrf.mxu0 }
 0x7aa   :  { %v2895_v48 = vadd.f32 %v8389_v10, %v2861_v38  ;;  %v2362_v12 = vsub.f32 %v8361_v15, %v2297_v22  ;;  %v2363_v11 = vsub.f32 %v8364_v63, %v2297_v22 }
 0x7ac   :  { %v2927_v30 = vmax.f32 %v2895_v48, 0.0  ;;  %v2484_v26 = vmul.f32 1.442695, %v2362_v12  ;;  %v2486_v42 = vmul.f32 1.442695, %v2363_v11 }
 0x7ae   :  { %v2953_v39 = vpack.c.bf16 %v2927_v30, %v2926_v1  ;;  %6425 = vpow2.f32 %v2484_v26  ;;  %v2770_v44 = vpop.f32.mrf.mxu3 }
 0x7af   :  { %6427 = vpow2.f32 %v2486_v42  ;;  %v2771_v50 = vadd.f32 %v2770_v44, %v2681_v34 }
 0x7b0   :  { %6429 = vrcp.f32 %v2534_v62  ;;  %v2543_v43 = vpop.xlane.xlu0 %2542 }
 0x7b1   :  { %v2684_v15 = vpop.f32.mrf.mxu0 }
 0x7b2   :  { %3062 = vmatmul.bf16.gmra.mxu1 %v2953_v39 }
 0x7b4   :  { %v6426_v9 = vpop.eup %6425 }
 0x7b5   :  { %v6428_v58 = vpop.eup %6427  ;;  %v2620_v33 = vpack.c.bf16 %v6426_v9, %v6420_v36 }
 0x7b6   :  { %v2583_v32 = vadd.f32 %v6428_v58, %v6426_v9  ;;  %v2621_v2 = vpack.c.bf16 %v6428_v58, %v6422_v56  ;;  %v2773_v63 = vpop.f32.mrf.mxu3  ;;  %v6430_v5 = vpop.eup %6429 }
 0x7b7   :  { %v2774_v44 = vadd.f32 %v2773_v63, %v2684_v15 }
 0x7b8   :  { %2718 = vmatmul.bf16.gmra.mxu0 %v2620_v33  ;;  %2584 = vadd.xlane.f32.xlu2 %v2583_v32 }
 0x7b9   :  { %2807 = vmatmul.bf16.gmra.mxu3 %v2621_v2  ;;  %v2686_v49 = vpop.f32.mrf.mxu0 }
 0x7be   :  { %v2775_v35 = vpop.f32.mrf.mxu3 }
 0x7bf   :  { %v2776_v11 = vadd.f32 %v2775_v35, %v2686_v49 }
 0x7c1   :  { %v8488_v59 = vpop.f32.mrf.mxu0 }
 0x7c6   :  { %v8486_v7 = vpop.f32.mrf.mxu3 }
 0x7c9   :  { %v2691_v40 = vpop.f32.mrf.mxu0 }
 0x7cc   :  { %v2300_v57 = vpop.xlane.xlu1 %2299 }
 0x7cd   :  { %v2364_v31 = vsub.f32 %v8408_v41, %v2300_v57  ;;  %v2365_v3 = vsub.f32 %v8411_v61, %v2300_v57  ;;  %v2862_v61 = vmul.f32 %v6430_v5, %v2769_v21  ;;  %v2779_v21 = vadd.f32 %v8486_v7, %v8488_v59 }
 0x7ce   :  { %v2780_v16 = vpop.f32.mrf.mxu3 }
 0x7cf   :  { %v2488_v54 = vmul.f32 1.442695, %v2364_v31  ;;  %v2490_v4 = vmul.f32 1.442695, %v2365_v3  ;;  %v2896_v56 = vadd.f32 %v8389_v10, %v2862_v61 }
 0x7d1   :  { %6431 = vpow2.f32 %v2488_v54  ;;  %v2928_v22 = vmax.f32 %v2896_v56, 0.0  ;;  %v2694_v39 = vpop.f32.mrf.mxu0 }
 0x7d2   :  { %6433 = vpow2.f32 %v2490_v4  ;;  %v2781_v4 = vadd.f32 %v2780_v16, %v2691_v40 }
 0x7d4   :  { %v2537_v19 = vpop.xlane.xlu1 %2536 }
 0x7d5   :  { %6435 = vrcp.f32 %v2537_v19 }
 0x7d6   :  { %v8490_v29 = vpop.f32.mrf.mxu1  ;;  %6437 = vrcp.f32 %v2543_v43 }
 0x7d7   :  { %v6432_v46 = vpop.eup %6431  ;;  %3161 = vperm.xlu2 %6086, %v8490_v29  }
 0x7d8   :  { %v6434_v41 = vpop.eup %6433 }
 0x7d9   :  { %v2586_v20 = vadd.f32 %v6434_v41, %v6432_v46  ;;  %v2696_v54 = vpop.f32.mrf.mxu0 }
 0x7da   :  { %v2303_v23 = vpop.xlane.xlu2 %2302 }
 0x7db   :  { %v6436_v51 = vpop.eup %6435  ;;  %2587 = vadd.xlane.f32.xlu0 %v2586_v20  ;;  %v2366_v18 = vsub.f32 %v8434_v27, %v2303_v23  ;;  %v2367_v17 = vsub.f32 %v8437_v60, %v2303_v23  ;;  %v2783_v60 = vpop.f32.mrf.mxu3 }
 0x7dc   :  { %v2863_v36 = vmul.f32 %v6436_v51, %v2771_v50  ;;  %v6438_v27 = vpop.eup %6437  ;;  %v2546_v32 = vpop.xlane.xlu1 %2545 }
 0x7dd   :  { %v2492_v38 = vmul.f32 1.442695, %v2366_v18  ;;  %v2494_v37 = vmul.f32 1.442695, %v2367_v17  ;;  %v2865_v42 = vmul.f32 %v6438_v27, %v2776_v11  ;;  %v2552_v23 = vpop.xlane.xlu0 %2551  ;;  %v2784_v17 = vadd.f32 %v2783_v60, %v2694_v39 }
 0x7de   :  { %v2897_v47 = vadd.f32 %v8389_v10, %v2863_v36  ;;  %v8497_v8 = vpop.f32.mrf.mxu1 }
 0x7df   :  { %6439 = vpow2.f32 %v2492_v38  ;;  %v2899_v2 = vadd.f32 %v8389_v10, %v2865_v42 }
 0x7e0   :  { %v2929_v48 = vmax.f32 %v2897_v47, 0.0  ;;  %6441 = vpow2.f32 %v2494_v37 }
 0x7e1   :  { %v2931_v31 = vmax.f32 %v2899_v2, 0.0  ;;  %v2699_v51 = vpop.f32.mrf.mxu0 }
 0x7e2   :  { %v2954_v12 = vpack.c.bf16 %v2929_v48, %v2928_v22  ;;  %v2540_v1 = vpop.xlane.xlu2 %2539 }
 0x7e3   :  { %6443 = vrcp.f32 %v2540_v1  ;;  %v2785_v63 = vpop.f32.mrf.mxu3 }
 0x7e4   :  { %3067 = vmatmul.bf16.gmra.mxu1 %v2954_v12  ;;  %v2555_v20 = vpop.xlane.xlu1 %2554  ;;  %v2786_v47 = vadd.f32 %v2785_v63, %v2696_v54 }
 0x7e5   :  { %v6440_v30 = vpop.eup %6439  ;;  %v2561_v60 = vpop.xlane.xlu0 %2560 }
 0x7e6   :  { %v6442_v26 = vpop.eup %6441  ;;  %v2622_v28 = vpack.c.bf16 %v6440_v30, %v6432_v46 }
 0x7e7   :  { %v2623_v9 = vpack.c.bf16 %v6442_v26, %v6434_v41  ;;  %v2589_v58 = vadd.f32 %v6442_v26, %v6440_v30 }
 0x7e8   :  { %2723 = vmatmul.bf16.gmra.mxu0 %v2622_v28 }
 0x7e9   :  { %v6444_v33 = vpop.eup %6443  ;;  %2812 = vmatmul.bf16.gmra.mxu3 %v2623_v9  ;;  %2590 = vadd.xlane.f32.xlu1 %v2589_v58  ;;  %v2701_v38 = vpop.f32.mrf.mxu0 }
 0x7ea   :  { %v2549_v34 = vpop.xlane.xlu2 %2548  ;;  %v2864_v62 = vmul.f32 %v6444_v33, %v2774_v44 }
 0x7eb   :  { %v8500_v35 = vpop.f32.mrf.mxu1  ;;  %6445 = vrcp.f32 %v2549_v34  ;;  %v2788_v61 = vpop.f32.mrf.mxu3 }
 0x7ec   :  { %v2898_v49 = vadd.f32 %v8389_v10, %v2864_v62  ;;  %6447 = vrcp.f32 %v2546_v32  ;;  %v2789_v58 = vadd.f32 %v2788_v61, %v2699_v51 }
 0x7ed   :  { %6449 = vrcp.f32 %v2555_v20 }
 0x7ee   :  { %v2930_v57 = vmax.f32 %v2898_v49, 0.0  ;;  %6451 = vrcp.f32 %v2552_v23 }
 0x7ef   :  { %3166 = vperm.xlu0 %6084, %v8497_v8  }
 0x7f0   :  { %v2955_v15 = vpack.c.bf16 %v2931_v31, %v2930_v57 }
 0x7f1   :  { %v6446_v3 = vpop.eup %6445  ;;  %v2704_v42 = vpop.f32.mrf.mxu0 }
 0x7f2   :  { %v6448_v5 = vpop.eup %6447  ;;  %v2867_v46 = vmul.f32 %v6446_v3, %v2781_v4  ;;  %v2558_v12 = vpop.xlane.xlu2 %2557 }
 0x7f3   :  { %v8504_v19 = vpop.f32.mrf.mxu1  ;;  %v2866_v41 = vmul.f32 %v6448_v5, %v2779_v21  ;;  %v6450_v7 = vpop.eup %6449  ;;  %6453 = vrcp.f32 %v2558_v12 }
 0x7f4   :  { %3072 = vmatmul.bf16.gmra.mxu1 %v2955_v15  ;;  %3176 = vperm.xlu2 %6086, %v8504_v19   ;;  %v2901_v50 = vadd.f32 %v8389_v10, %v2867_v46  ;;  %v2790_v59 = vpop.f32.mrf.mxu3  ;;  %v2869_v37 = vmul.f32 %v6450_v7, %v2786_v47  ;;  %v6452_v22 = vpop.eup %6451  ;;  %6455 = vrcp.f32 %v2561_v60 }
 0x7f5   :  { %v2900_v56 = vadd.f32 %v8389_v10, %v2866_v41  ;;  %v2868_v48 = vmul.f32 %v6452_v22, %v2784_v17  ;;  %v2791_v44 = vadd.f32 %v2790_v59, %v2701_v38  ;;  %v2564_v15 = vpop.xlane.xlu1 %2563 }
 0x7f6   :  { %v2933_v43 = vmax.f32 %v2901_v50, 0.0  ;;  %v2903_v11 = vadd.f32 %v8389_v10, %v2869_v37 }
 0x7f7   :  { %v2932_v16 = vmax.f32 %v2900_v56, 0.0  ;;  %v2902_v1 = vadd.f32 %v8389_v10, %v2868_v48 }
 0x7f8   :  { %v2935_v26 = vmax.f32 %v2903_v11, 0.0 }
 0x7f9   :  { %v2956_v18 = vpack.c.bf16 %v2933_v43, %v2932_v16  ;;  %v2934_v28 = vmax.f32 %v2902_v1, 0.0  ;;  %v6454_v9 = vpop.eup %6453  ;;  %v2706_v49 = vpop.f32.mrf.mxu0 }
 0x7fa   :  { %v2870_v32 = vmul.f32 %v6454_v9, %v2789_v58  ;;  %v6456_v2 = vpop.eup %6455  ;;  %v2567_v57 = vpop.xlane.xlu2 %2566 }
 0x7fb   :  { %v8510_v36 = vpop.f32.mrf.mxu1  ;;  %v2957_v39 = vpack.c.bf16 %v2935_v26, %v2934_v28  ;;  %v2871_v62 = vmul.f32 %v6456_v2, %v2791_v44  ;;  %6457 = vrcp.f32 %v2567_v57 }
 0x7fc   :  { %3181 = vperm.xlu0 %6084, %v8510_v36   ;;  %v2793_v30 = vpop.f32.mrf.mxu3  ;;  %v2904_v31 = vadd.f32 %v8389_v10, %v2870_v32  ;;  %6459 = vrcp.f32 %v2564_v15 }
 0x7fd   :  { %v2905_v63 = vadd.f32 %v8389_v10, %v2871_v62  ;;  %v2794_v20 = vadd.f32 %v2793_v30, %v2704_v42 }
 0x7fe   :  { %v2936_v54 = vmax.f32 %v2904_v31, 0.0 }
 0x7ff   :  { %v2937_v5 = vmax.f32 %v2905_v63, 0.0 }
 0x801   :  { %v2958_v41 = vpack.c.bf16 %v2937_v5, %v2936_v54  ;;  %v6458_v61 = vpop.eup %6457 }
 0x802   :  { %3171 = vperm.xlu1 %6085, %v8500_v35   ;;  %v6460_v56 = vpop.eup %6459  ;;  %v2576_v32 = vpop.xlane.xlu2 %2575 }
 0x803   :  { %v8515_v40 = vpop.f32.mrf.mxu1  ;;  %v2872_v23 = vmul.f32 %v6460_v56, %v2794_v20 }
 0x804   :  { %3077 = vmatmul.bf16.gmra.mxu1 %v2956_v18  ;;  %v2795_v34 = vpop.f32.mrf.mxu3 }
 0x805   :  { %v2796_v46 = vadd.f32 %v2795_v34, %v2706_v49  ;;  %v2906_v7 = vadd.f32 %v8389_v10, %v2872_v23 }
 0x807   :  { %v2873_v50 = vmul.f32 %v6458_v61, %v2796_v46  ;;  %v2938_v37 = vmax.f32 %v2906_v7, 0.0 }
 0x809   :  { %v2907_v16 = vadd.f32 %v8389_v10, %v2873_v50  ;;  %v2570_v17 = vpop.xlane.xlu0 %2569 }
 0x80a   :  { %3186 = vperm.xlu1 %6085, %v8515_v40  }
 0x80b   :  { %v8520_v27 = vpop.f32.mrf.mxu1  ;;  %v2939_v38 = vmax.f32 %v2907_v16, 0.0 }
 0x80c   :  { %3191 = vperm.xlu2 %6086, %v8520_v27   ;;  %v2573_v59 = vpop.xlane.xlu1 %2572 }
 0x80d   :  { %6461 = vrcp.f32 %v2573_v59  ;;  %v2959_v48 = vpack.c.bf16 %v2939_v38, %v2938_v37 }
 0x80e   :  { %6463 = vrcp.f32 %v2570_v17 }
 0x811   :  { %v2579_v9 = vpop.xlane.xlu0 %2578 }
 0x812   :  { %6465 = vrcp.f32 %v2579_v9 }
 0x813   :  { %v8523_v33 = vpop.f32.mrf.mxu1  ;;  %v6462_v1 = vpop.eup %6461  ;;  %6467 = vrcp.f32 %v2576_v32 }
 0x814   :  { %3082 = vmatmul.bf16.gmra.mxu1 %v2957_v39  ;;  %3196 = vperm.xlu0 %6084, %v8523_v33   ;;  %v6464_v42 = vpop.eup %6463 }
 0x815   :  { %v2709_v21 = vpop.f32.mrf.mxu0 }
 0x818   :  { %v6466_v63 = vpop.eup %6465 }
 0x81a   :  { %v2582_v20 = vpop.xlane.xlu1 %2581 }
 0x81c   :  { %v2798_v4 = vpop.f32.mrf.mxu3 }
 0x81d   :  { %v2711_v18 = vpop.f32.mrf.mxu0  ;;  %v2799_v11 = vadd.f32 %v2798_v4, %v2709_v21  ;;  %v6468_v4 = vpop.eup %6467 }
 0x81f   :  { %v8528_v3 = vpop.f32.mrf.mxu1  ;;  %v2874_v28 = vmul.f32 %v6464_v42, %v2799_v11 }
 0x820   :  { %3201 = vperm.xlu0 %6084, %v8528_v3  }
 0x821   :  { %v2908_v58 = vadd.f32 %v8389_v10, %v2874_v28 }
 0x823   :  { %v2940_v62 = vmax.f32 %v2908_v58, 0.0 }
 0x824   :  { %3087 = vmatmul.bf16.gmra.mxu1 %v2958_v41  ;;  %v2800_v43 = vpop.f32.mrf.mxu3 }
 0x825   :  { %v2801_v22 = vadd.f32 %v2800_v43, %v2711_v18  ;;  %v2714_v30 = vpop.f32.mrf.mxu0 }
 0x827   :  { %v8531_v51 = vpop.f32.mrf.mxu1  ;;  %v2875_v60 = vmul.f32 %v6462_v1, %v2801_v22 }
 0x828   :  { %3206 = vperm.xlu0 %6084, %v8531_v51  }
 0x829   :  { %v2909_v39 = vadd.f32 %v8389_v10, %v2875_v60 }
 0x82b   :  { %v2941_v2 = vmax.f32 %v2909_v39, 0.0  ;;  %v2585_v61 = vpop.xlane.xlu2 %2584 }
 0x82c   :  { %v2803_v12 = vpop.f32.mrf.mxu3  ;;  %6469 = vrcp.f32 %v2585_v61 }
 0x82d   :  { %v2716_v34 = vpop.f32.mrf.mxu0  ;;  %v2960_v57 = vpack.c.bf16 %v2941_v2, %v2940_v62  ;;  %v2804_v31 = vadd.f32 %v2803_v12, %v2714_v30  ;;  %6471 = vrcp.f32 %v2582_v20 }
 0x82f   :  { %v8536_v47 = vpop.f32.mrf.mxu1  ;;  %v2876_v21 = vmul.f32 %v6468_v4, %v2804_v31 }
 0x830   :  { %3211 = vperm.xlu1 %6085, %v8536_v47  }
 0x831   :  { %v2910_v41 = vadd.f32 %v8389_v10, %v2876_v21 }
 0x832   :  { %v6470_v59 = vpop.eup %6469 }
 0x833   :  { %v2942_v23 = vmax.f32 %v2910_v41, 0.0  ;;  %v6472_v38 = vpop.eup %6471 }
 0x834   :  { %3092 = vmatmul.bf16.gmra.mxu1 %v2959_v48  ;;  %v2805_v44 = vpop.f32.mrf.mxu3 }
 0x835   :  { %v2806_v49 = vadd.f32 %v2805_v44, %v2716_v34  ;;  %v2719_v5 = vpop.f32.mrf.mxu0 }
 0x837   :  { %v8539_v26 = vpop.f32.mrf.mxu1  ;;  %v2877_v54 = vmul.f32 %v6466_v63, %v2806_v49 }
 0x838   :  { %3216 = vperm.xlu2 %6086, %v8539_v26  }
 0x839   :  { %v2911_v46 = vadd.f32 %v8389_v10, %v2877_v54 }
 0x83b   :  { %v2943_v50 = vmax.f32 %v2911_v46, 0.0 }
 0x83c   :  { %v2808_v15 = vpop.f32.mrf.mxu3 }
 0x83d   :  { %v2721_v43 = vpop.f32.mrf.mxu0  ;;  %v2961_v18 = vpack.c.bf16 %v2943_v50, %v2942_v23  ;;  %v2809_v7 = vadd.f32 %v2808_v15, %v2719_v5 }
 0x83f   :  { %v2878_v37 = vmul.f32 %v6472_v38, %v2809_v7 }
 0x841   :  { %v2912_v48 = vadd.f32 %v8389_v10, %v2878_v37 }
 0x843   :  { %v2944_v11 = vmax.f32 %v2912_v48, 0.0 }
 0x844   :  { %3097 = vmatmul.bf16.gmra.mxu1 %v2960_v57  ;;  %v2810_v56 = vpop.f32.mrf.mxu3  ;;  %v6862_v57 = vld [vmem:[%s10206_s4 + $0x1] ss:$0 sm:$0xff] }
 0x845   :  { %v2811_v16 = vadd.f32 %v2810_v56, %v2721_v43  ;;  %v3118_v43 = vld [vmem:[%s10205_s3 + $0x2] sm:$0x1] }
 0x847   :  { %v2879_v17 = vmul.f32 %v6470_v59, %v2811_v16 }
 0x849   :  { %v2913_v22 = vadd.f32 %v8389_v10, %v2879_v17 }
 0x84b   :  { %v2945_v12 = vmax.f32 %v2913_v22, 0.0 }
 0x84d   :  { %v2962_v30 = vpack.c.bf16 %v2945_v12, %v2944_v11 }
 0x84e   :  { %v2588_v42 = vpop.xlane.xlu0 %2587 }
 0x84f   :  { %6473 = vrcp.f32 %v2588_v42 }
 0x854   :  { %3102 = vmatmul.bf16.gmra.mxu1 %v2961_v18 }
 0x855   :  { %v6474_v10 = vpop.eup %6473 }
 0x85c   :  { %v2591_v9 = vpop.xlane.xlu1 %2590 }
 0x85d   :  { %6475 = vrcp.f32 %v2591_v9 }
 0x861   :  { %v8548_v1 = vpop.f32.mrf.mxu1 }
 0x862   :  { %3221 = vperm.xlu0 %6084, %v8548_v1  }
 0x863   :  { %v6476_v49 = vpop.eup %6475 }
 0x864   :  { %3107 = vmatmul.bf16.gmra.mxu1 %v2962_v30 }
 0x865   :  { %v2724_v28 = vpop.f32.mrf.mxu0 }
 0x869   :  { %v8551_v60 = vpop.f32.mrf.mxu1 }
 0x86a   :  { %3226 = vperm.xlu2 %6086, %v8551_v60  }
 0x86c   :  { %v2813_v39 = vpop.f32.mrf.mxu3 }
 0x86d   :  { %v2814_v58 = vadd.f32 %v2813_v39, %v2724_v28  ;;  %v2726_v2 = vpop.f32.mrf.mxu0 }
 0x86f   :  { %v2880_v32 = vmul.f32 %v6474_v10, %v2814_v58 }
 0x871   :  { %v8554_v44 = vpop.f32.mrf.mxu1  ;;  %v2914_v31 = vadd.f32 %v6862_v57, %v2880_v32  ;;  %v3999_v32 = vpack.c.bf16 %v8551_v60, %v8548_v1 }
 0x872   :  { %3231 = vperm.xlu1 %6085, %v8554_v44  }
 0x873   :  { %v2946_v4 = vmax.f32 %v2914_v31, 0.0 }
 0x874   :  { %v2815_v34 = vpop.f32.mrf.mxu3 }
 0x875   :  { %v2816_v62 = vadd.f32 %v2815_v34, %v2726_v2  ;;  %v3998_v2 = vpack.c.bf16 %v8539_v26, %v8536_v47  ;;  %v3997_v34 = vpack.c.bf16 %v8531_v51, %v8528_v3 }
 0x877   :  { %v2881_v63 = vmul.f32 %v6476_v49, %v2816_v62  ;;  %v3996_v62 = vpack.c.bf16 %v8523_v33, %v8520_v27  ;;  %v3172_v49 = vpop.permute.xlu1 %3171 }
 0x879   :  { %v8560_v15 = vpop.f32.mrf.mxu1  ;;  %v2915_v54 = vadd.f32 %v6862_v57, %v2881_v63 }
 0x87a   :  { %3236 = vperm.xlu2 %6086, %v8560_v15   ;;  %3119 = vmatpush.xpose.msrb.mxu0 %v8560_v15  ;;  %v4000_v10 = vpack.c.bf16 %v8560_v15, %v8554_v44 }
 0x87b   :  { %v2947_v5 = vmax.f32 %v2915_v54, 0.0 }
 0x87d   :  { %v2963_v21 = vpack.c.bf16 %v2947_v5, %v2946_v4 }
 0x87e   :  { %3120 = vmatpush.xpose.msrb.mxu0 %v8554_v44  ;;  %v3995_v44 = vpack.c.bf16 %v8515_v40, %v8510_v36 }
 0x87f   :  { %3112 = vmatmul.bf16.gmra.mxu1 %v2963_v21 }
 0x881   :  { %v8565_v46 = vpop.f32.mrf.mxu1 }
 0x882   :  { %3121 = vmatpush.xpose.msrb.mxu0 %v8551_v60  ;;  %3241 = vperm.xlu0 %6084, %v8565_v46   ;;  %v3167_v60 = vpop.permute.xlu0 %3166 }
 0x886   :  { %3122 = vmatpush.xpose.msrb.mxu0 %v8548_v1  ;;  %v3994_v1 = vpack.c.bf16 %v8504_v19, %v8500_v35 }
 0x889   :  { %v8570_v41 = vpop.f32.mrf.mxu1 }
 0x88a   :  { %3123 = vmatpush.xpose.msrb.mxu0 %v8539_v26  ;;  %3246 = vperm.xlu2 %6086, %v8570_v41   ;;  %v4001_v58 = vpack.c.bf16 %v8570_v41, %v8565_v46  ;;  %v3182_v57 = vpop.permute.xlu0 %3181 }
 0x88e   :  { %3124 = vmatpush.xpose.msrb.mxu0 %v8536_v47  ;;  %v3993_v47 = vpack.c.bf16 %v8497_v8, %v8490_v29 }
 0x891   :  { %v3083_v61 = vpop.f32.mrf.mxu1 }
 0x892   :  { %3125 = vmatpush.xpose.msrb.mxu0 %v8531_v51  ;;  %3251 = vperm.xlu1 %6085, %v3083_v61   ;;  %v3162_v51 = vpop.permute.xlu2 %3161 }
 0x896   :  { %3126 = vmatpush.xpose.msrb.mxu0 %v8528_v3 }
 0x899   :  { %v3085_v20 = vpop.f32.mrf.mxu1 }
 0x89a   :  { %3127 = vmatpush.xpose.msrb.mxu0 %v8523_v33  ;;  %3256 = vperm.xlu2 %6086, %v3085_v20   ;;  %v4002_v9 = vpack.c.bf16 %v3085_v20, %v3083_v61 }
 0x89e   :  { %3128 = vmatpush.xpose.msrb.mxu0 %v8520_v27 }
 0x8a1   :  { %v3088_v50 = vpop.f32.mrf.mxu1 }
 0x8a2   :  { %3129 = vmatpush.xpose.msrb.mxu0 %v8515_v40  ;;  %3261 = vperm.xlu0 %6084, %v3088_v50  }
 0x8a6   :  { %3130 = vmatpush.xpose.msrb.mxu0 %v8510_v36 }
 0x8a9   :  { %v3090_v56 = vpop.f32.mrf.mxu1 }
 0x8aa   :  { %3131 = vmatpush.xpose.msrb.mxu0 %v8504_v19  ;;  %3266 = vperm.xlu2 %6086, %v3090_v56   ;;  %v4003_v39 = vpack.c.bf16 %v3090_v56, %v3088_v50 }
 0x8ae   :  { %3132 = vmatpush.xpose.msrb.mxu0 %v8500_v35 }
 0x8b1   :  { %v3093_v23 = vpop.f32.mrf.mxu1 }
 0x8b2   :  { %3133 = vmatpush.xpose.msrb.mxu0 %v8497_v8  ;;  %3271 = vperm.xlu1 %6085, %v3093_v23   ;;  %v3177_v8 = vpop.permute.xlu2 %3176 }
 0x8b6   :  { %3134 = vmatpush.xpose.msrb.mxu0 %v8490_v29 }
 0x8b9   :  { %3135 = vmatmul.f32.vlgmr.msrb.gmra.mxu0 %v3118_v43  ;;  %v8588_v16 = vpop.f32.mrf.mxu1 }
 0x8ba   :  { %v4004_v28 = vpack.c.bf16 %v8588_v16, %v3093_v23 }
 0x8c1   :  { %v8590_v18 = vpop.f32.mrf.mxu1 }
 0x8c9   :  { %v8592_v7 = vpop.f32.mrf.mxu1 }
 0x8ca   :  { %v4005_v42 = vpack.c.bf16 %v8592_v7, %v8590_v18 }
 0x8d1   :  { %v8594_v59 = vpop.f32.mrf.mxu1 }
 0x8d9   :  { %v8596_v17 = vpop.f32.mrf.mxu1 }
 0x8da   :  { %v4006_v30 = vpack.c.bf16 %v8596_v17, %v8594_v59 }
 0x8e1   :  { %v8598_v38 = vpop.f32.mrf.mxu1 }
 0x8e9   :  { %v8600_v37 = vpop.f32.mrf.mxu1 }
 0x8ea   :  { %v4007_v11 = vpack.c.bf16 %v8600_v37, %v8598_v38 }
 0x8fc   :  { %v8602_v22 = vpop.f32.mrf.mxu1 }
 0x904   :  { %v8604_v48 = vpop.f32.mrf.mxu1 }
 0x905   :  { %v4008_v12 = vpack.c.bf16 %v8604_v48, %v8602_v22  ;;  %3139 = vmatpush.xpose.msra.mxu2 %v8604_v48 }
 0x907   :  { %4098 = vmatpush.bf16.msra.mxu0 %v4008_v12 }
 0x909   :  { %3140 = vmatpush.xpose.msra.mxu2 %v8602_v22 }
 0x90b   :  { %4099 = vmatpush.bf16.msra.mxu0 %v4007_v11  ;;  %v10508_v11 = vld [vmem:[#allocation9_spill] sm:$0xff] }
 0x90d   :  { %3141 = vmatpush.xpose.msra.mxu2 %v8600_v37 }
 0x90f   :  { %4100 = vmatpush.bf16.msra.mxu0 %v4006_v30 }
 0x911   :  { %3142 = vmatpush.xpose.msra.mxu2 %v8598_v38 }
 0x913   :  { %4101 = vmatpush.bf16.msra.mxu0 %v4005_v42  ;;  %v10509_v42 = vld [vmem:[#allocation10_spill] sm:$0xff] }
 0x915   :  { %3143 = vmatpush.xpose.msra.mxu2 %v8596_v17 }
 0x917   :  { %4102 = vmatpush.bf16.msra.mxu0 %v4004_v28 }
 0x919   :  { %3144 = vmatpush.xpose.msra.mxu2 %v8594_v59 }
 0x91b   :  { %4103 = vmatpush.bf16.msra.mxu0 %v4003_v39 }
 0x91d   :  { %3145 = vmatpush.xpose.msra.mxu2 %v8592_v7 }
 0x91f   :  { %4104 = vmatpush.bf16.msra.mxu0 %v4002_v9 }
 0x921   :  { %3146 = vmatpush.xpose.msra.mxu2 %v8590_v18 }
 0x923   :  { %4105 = vmatpush.bf16.msra.mxu0 %v4001_v58  ;;  %v10510_v58 = vld [vmem:[#allocation11_spill] sm:$0xff] }
 0x925   :  { %3147 = vmatpush.xpose.msra.mxu2 %v8588_v16 }
 0x929   :  { %3148 = vmatpush.xpose.msra.mxu2 %v3093_v23  ;;  %v3197_v23 = vpop.permute.xlu0 %3196 }
 0x92d   :  { %3149 = vmatpush.xpose.msra.mxu2 %v3090_v56 }
 0x931   :  { %3150 = vmatpush.xpose.msra.mxu2 %v3088_v50 }
 0x935   :  { %3151 = vmatpush.xpose.msra.mxu2 %v3085_v20 }
 0x936   :  { %v3136_v26 = vpop.f32.mrf.mxu0 }
 0x937   :  { %v8644_v3 = vperm.slane %v3136_v26, 0 }
 0x939   :  { %3152 = vmatpush.xpose.msra.mxu2 %v3083_v61  ;;  %v3325_v27 = vadd.f32 %v8644_v3, %v3172_v49  ;;  %v3323_v36 = vadd.f32 %v8644_v3, %v3167_v60  ;;  %v3321_v63 = vadd.f32 %v8644_v3, %v3162_v51  ;;  %v3329_v15 = vadd.f32 %v8644_v3, %v3182_v57 }
 0x93a   :  { %v3327_v61 = vadd.f32 %v8644_v3, %v3177_v8 }
 0x93b   :  { %v3389_v35 = vmul.f32 0.2, %v3325_v27  ;;  %v3387_v31 = vmul.f32 0.2, %v3323_v36  ;;  %v3393_v12 = vmul.f32 0.2, %v3329_v15 }
 0x93d   :  { %3153 = vmatpush.xpose.msra.mxu2 %v8570_v41  ;;  %v3453_v54 = vmax.f32 %v3325_v27, %v3389_v35  ;;  %v3451_v5 = vmax.f32 %v3323_v36, %v3387_v31  ;;  %v3457_v27 = vmax.f32 %v3329_v15, %v3393_v12 }
 0x93f   :  { %v8659_v30 = vadd.f32 %v3453_v54, %v10508_v11  ;;  %v10512_v54 = vld [vmem:[#allocation13_spill] sm:$0xff] }
 0x941   :  { %3154 = vmatpush.xpose.msra.mxu2 %v8565_v46 }
 0x944   :  { %3155 = vmatmul.f32.vlgmr.msra.gmra.mxu2 %v3118_v43  ;;  %v3385_v43 = vmul.f32 0.2, %v3321_v63 }
 0x945   :  { %4009 = vmatpush.bf16.msrb.mxu2 %v4000_v10  ;;  %v8665_v10 = vadd.f32 %v3451_v5, %v10510_v58  ;;  %v10513_v5 = vld [vmem:[#allocation14_spill] sm:$0xff] }
 0x949   :  { %4010 = vmatpush.bf16.msrb.mxu2 %v3999_v32  ;;  %v10511_v32 = vld [vmem:[#allocation12_spill] sm:$0xff] }
 0x94d   :  { %4011 = vmatpush.bf16.msrb.mxu2 %v3998_v2 }
 0x951   :  { %4012 = vmatpush.bf16.msrb.mxu2 %v3997_v34  ;;  %v3391_v34 = vmul.f32 0.2, %v3327_v61 }
 0x953   :  { %v3455_v35 = vmax.f32 %v3327_v61, %v3391_v34 }
 0x955   :  { %4013 = vmatpush.bf16.msrb.mxu2 %v3996_v62 }
 0x959   :  { %4014 = vmatpush.bf16.msrb.mxu2 %v3995_v44 }
 0x95d   :  { %4015 = vmatpush.bf16.msrb.mxu2 %v3994_v1  ;;  %v3192_v1 = vpop.permute.xlu2 %3191 }
 0x961   :  { %4016 = vmatpush.bf16.msrb.mxu2 %v3993_v47 }
 0x9c7   :  { %v3156_v33 = vpop.f32.mrf.mxu2 }
 0x9c8   :  { %v8648_v40 = vperm.slane %v3156_v33, 0 }
 0x9ca   :  { %v3326_v19 = vadd.f32 %v8648_v40, %v3172_v49  ;;  %v3324_v29 = vadd.f32 %v8648_v40, %v3167_v60  ;;  %v3322_v21 = vadd.f32 %v8648_v40, %v3162_v51  ;;  %v3330_v46 = vadd.f32 %v8648_v40, %v3182_v57 }
 0x9cb   :  { %v3328_v20 = vadd.f32 %v8648_v40, %v3177_v8  ;;  %v3336_v47 = vadd.f32 %v8648_v40, %v3197_v23  ;;  %v3335_v60 = vadd.f32 %v8644_v3, %v3197_v23  ;;  %v3334_v51 = vadd.f32 %v8648_v40, %v3192_v1  ;;  %v10516_v23 = vld [vmem:[#allocation18_spill] sm:$0xff] }
 0x9cc   :  { %v3390_v4 = vmul.f32 0.2, %v3326_v19  ;;  %v3388_v41 = vmul.f32 0.2, %v3324_v29  ;;  %v3386_v39 = vmul.f32 0.2, %v3322_v21  ;;  %v3449_v49 = vmax.f32 %v3321_v63, %v3385_v43 }
 0x9cd   :  { %v3394_v9 = vmul.f32 0.2, %v3330_v46  ;;  %v3392_v44 = vmul.f32 0.2, %v3328_v20  ;;  %v3333_v57 = vadd.f32 %v8644_v3, %v3192_v1  ;;  %v3400_v31 = vmul.f32 0.2, %v3336_v47 }
 0x9ce   :  { %v3454_v50 = vmax.f32 %v3326_v19, %v3390_v4  ;;  %v3452_v56 = vmax.f32 %v3324_v29, %v3388_v41  ;;  %v3450_v33 = vmax.f32 %v3322_v21, %v3386_v39  ;;  %v3399_v29 = vmul.f32 0.2, %v3335_v60  ;;  %v10515_v63 = vld [vmem:[#allocation15_spill] sm:$0xff]  ;;  %v3202_v21 = vpop.permute.xlu0 %3201 }
 0x9cf   :  { %v3458_v36 = vmax.f32 %v3330_v46, %v3394_v9  ;;  %v3456_v19 = vmax.f32 %v3328_v20, %v3392_v44  ;;  %v3398_v8 = vmul.f32 0.2, %v3334_v51  ;;  %v8679_v4 = vadd.f32 %v3449_v49, %v10512_v54  ;;  %v10517_v20 = vld [vmem:[#allocation17_spill] sm:$0xff]  ;;  %v10526_v54 = vld [vmem:[#allocation31_spill] sm:$0xff] }
 0x9d0   :  { %v8662_v28 = vadd.f32 %v3454_v50, %v10509_v42  ;;  %v8668_v2 = vadd.f32 %v3452_v56, %v10511_v32  ;;  %v8682_v41 = vadd.f32 %v3450_v33, %v10513_v5  ;;  %v10514_v50 = vld [vmem:[#allocation16_spill] sm:$0xff]  ;;  %v3397_v46 = vmul.f32 0.2, %v3333_v57  ;;  %v10518_v33 = vld [vmem:[#allocation19_spill] sm:$0xff] }
 0x9d1   :  { %v8685_v56 = vadd.f32 %v3457_v27, %v10514_v50  ;;  %v8688_v15 = vadd.f32 %v3458_v36, %v10515_v63  ;;  %v8691_v61 = vadd.f32 %v3455_v35, %v10516_v23  ;;  %v8694_v43 = vadd.f32 %v3456_v19, %v10517_v20  ;;  %v10519_v36 = vld [vmem:[#allocation21_spill] sm:$0xff]  ;;  %v10525_v20 = vld [vmem:[#allocation26_spill] sm:$0xff] }
 0x9d2   :  { %v3583_v62 = vmax.f32 %v8659_v30, %v8662_v28  ;;  %v3580_v26 = vmax.f32 %v8665_v10, %v8668_v2  ;;  %v3338_v12 = vadd.f32 %v8648_v40, %v3202_v21  ;;  %v3464_v39 = vmax.f32 %v3336_v47, %v3400_v31  ;;  %v10520_v31 = vld [vmem:[#allocation20_spill] sm:$0xff] }
 0x9d3   :  { %v3577_v9 = vmax.f32 %v8679_v4, %v8682_v41  ;;  %v3589_v34 = vmax.f32 %v8685_v56, %v8688_v15  ;;  %v3586_v44 = vmax.f32 %v8691_v61, %v8694_v43  ;;  %v3337_v1 = vadd.f32 %v8644_v3, %v3202_v21 }
 0x9d4   :  { %3584 = vmax.xlane.f32.xlu0 %v3583_v62  ;;  %3581 = vmax.xlane.f32.xlu2 %v3580_v26  ;;  %v3462_v62 = vmax.f32 %v3334_v51, %v3398_v8  ;;  %v3463_v26 = vmax.f32 %v3335_v60, %v3399_v29  ;;  %v3461_v49 = vmax.f32 %v3333_v57, %v3397_v46  ;;  %v3402_v27 = vmul.f32 0.2, %v3338_v12  ;;  %v10521_v8 = vld [vmem:[#allocation22_spill] sm:$0xff]  ;;  %v10522_v46 = vld [vmem:[#allocation27_spill] sm:$0xff] }
 0x9d5   :  { %3578 = vmax.xlane.f32.xlu1 %v3577_v9  ;;  %v8705_v47 = vadd.f32 %v3464_v39, %v10518_v33  ;;  %v3401_v19 = vmul.f32 0.2, %v3337_v1  ;;  %v10523_v9 = vld [vmem:[#allocation28_spill] sm:$0xff] }
 0x9d6   :  { %v8708_v35 = vadd.f32 %v3462_v62, %v10519_v36  ;;  %v8711_v51 = vadd.f32 %v3463_v26, %v10520_v31  ;;  %v8714_v23 = vadd.f32 %v3461_v49, %v10521_v8  ;;  %v3466_v21 = vmax.f32 %v3338_v12, %v3402_v27  ;;  %v3187_v12 = vpop.permute.xlu1 %3186 }
 0x9d7   :  { %v3465_v29 = vmax.f32 %v3337_v1, %v3401_v19  ;;  %v3331_v1 = vadd.f32 %v8644_v3, %v3187_v12  ;;  %v3207_v19 = vpop.permute.xlu0 %3206 }
 0x9d8   :  { %v3598_v60 = vmax.f32 %v8711_v51, %v8705_v47  ;;  %v3595_v57 = vmax.f32 %v8714_v23, %v8708_v35  ;;  %v8721_v39 = vadd.f32 %v3466_v21, %v10522_v46 }
 0x9d9   :  { %v3395_v27 = vmul.f32 0.2, %v3331_v1 }
 0x9dc   :  { %3590 = vmax.xlane.f32.xlu0 %v3589_v34  ;;  %3587 = vmax.xlane.f32.xlu2 %v3586_v44  ;;  %v8724_v34 = vadd.f32 %v3465_v29, %v10523_v9  ;;  %v3332_v44 = vadd.f32 %v8648_v40, %v3187_v12  ;;  %v3217_v29 = vpop.permute.xlu2 %3216  ;;  %v10524_v12 = vld [vmem:[#allocation25_spill] sm:$0xff] }
 0x9dd   :  { %v3343_v31 = vadd.f32 %v8644_v3, %v3217_v29 }
 0x9de   :  { %v3601_v62 = vmax.f32 %v8724_v34, %v8721_v39  ;;  %v3396_v26 = vmul.f32 0.2, %v3332_v44  ;;  %v3212_v49 = vpop.permute.xlu1 %3211 }
 0x9df   :  { %v3342_v21 = vadd.f32 %v8648_v40, %v3212_v49  ;;  %v3222_v5 = vpop.permute.xlu0 %3221 }
 0x9e1   :  { %v3406_v8 = vmul.f32 0.2, %v3342_v21 }
 0x9e4   :  { %3599 = vmax.xlane.f32.xlu0 %v3598_v60  ;;  %3596 = vmax.xlane.f32.xlu2 %v3595_v57  ;;  %v3340_v60 = vadd.f32 %v8648_v40, %v3207_v19  ;;  %v3460_v57 = vmax.f32 %v3332_v44, %v3396_v26  ;;  %v3470_v26 = vmax.f32 %v3342_v21, %v3406_v8  ;;  %v8747_v63 = vpop.permute.xlu2 %3226  ;;  %v10528_v21 = vld [vmem:[#allocation32_spill] sm:$0xff] }
 0x9e6   :  { %v3404_v36 = vmul.f32 0.2, %v3340_v60  ;;  %v8739_v9 = vadd.f32 %v3460_v57, %v10524_v12  ;;  %v8751_v32 = vadd.f32 %v3470_v26, %v10526_v54 }
 0x9ec   :  { %3602 = vmax.xlane.f32.xlu0 %v3601_v62  ;;  %v3344_v62 = vadd.f32 %v8648_v40, %v3217_v29  ;;  %v3346_v29 = vadd.f32 %v8648_v40, %v3222_v5 }
 0x9ee   :  { %3276 = vperm.xlu1 %6085, %v8588_v16   ;;  %v3341_v16 = vadd.f32 %v8644_v3, %v3212_v49  ;;  %v3408_v44 = vmul.f32 0.2, %v3344_v62  ;;  %v3468_v49 = vmax.f32 %v3340_v60, %v3404_v36  ;;  %v3345_v36 = vadd.f32 %v8644_v3, %v3222_v5  ;;  %v10531_v5 = vld [vmem:[#allocation30_spill] sm:$0xff] }
 0x9f0   :  { %v3405_v46 = vmul.f32 0.2, %v3341_v16  ;;  %v3472_v12 = vmax.f32 %v3344_v62, %v3408_v44  ;;  %v10530_v62 = vld [vmem:[#allocation29_spill] sm:$0xff] }
 0x9f2   :  { %v8766_v44 = vadd.f32 %v3472_v12, %v10530_v62  ;;  %v10532_v62 = vld [vmem:[#allocation33_spill] sm:$0xff] }
 0x9fc   :  { %3286 = vperm.xlu2 %6086, %v8592_v7   ;;  %v3339_v7 = vadd.f32 %v8644_v3, %v3207_v19  ;;  %v3469_v19 = vmax.f32 %v3341_v16, %v3405_v46  ;;  %v10529_v46 = vld [vmem:[#allocation24_spill] sm:$0xff] }
 0x9fe   :  { %v3403_v33 = vmul.f32 0.2, %v3339_v7  ;;  %v8758_v60 = vadd.f32 %v3469_v19, %v10528_v21 }
 0xa00   :  { %3296 = vperm.xlu0 %6084, %v8596_v17   ;;  %v3459_v17 = vmax.f32 %v3331_v1, %v3395_v27  ;;  %v3407_v27 = vmul.f32 0.2, %v3343_v31  ;;  %v3467_v57 = vmax.f32 %v3339_v7, %v3403_v33  ;;  %v3410_v33 = vmul.f32 0.2, %v3346_v29 }
 0xa01   :  { %v3607_v7 = vmax.f32 %v8758_v60, %v8751_v32 }
 0xa02   :  { %v8743_v50 = vadd.f32 %v3459_v17, %v10525_v20  ;;  %v10527_v17 = vld [vmem:[#allocation23_spill] sm:$0xff]  ;;  %v3471_v8 = vmax.f32 %v3343_v31, %v3407_v27  ;;  %v8761_v16 = vadd.f32 %v3467_v57, %v10529_v46  ;;  %v3474_v19 = vmax.f32 %v3346_v29, %v3410_v33 }
 0xa03   :  { %v8754_v20 = vadd.f32 %v3468_v49, %v10527_v17  ;;  %v3409_v49 = vmul.f32 0.2, %v3345_v36  ;;  %v10533_v17 = vld [vmem:[#allocation34_spill] sm:$0xff] }
 0xa04   :  { %v3592_v1 = vmax.f32 %v8743_v50, %v8739_v9  ;;  %v8771_v31 = vadd.f32 %v3471_v8, %v10531_v5  ;;  %v8778_v46 = vadd.f32 %v3474_v19, %v10532_v62  ;;  %v8783_v5 = vpop.permute.xlu1 %3231 }
 0xa05   :  { %v3604_v26 = vmax.f32 %v8761_v16, %v8754_v20  ;;  %v3473_v12 = vmax.f32 %v3345_v36, %v3409_v49 }
 0xa06   :  { %v3610_v57 = vmax.f32 %v8771_v31, %v8766_v44 }
 0xa07   :  { %v8781_v8 = vadd.f32 %v3473_v12, %v10533_v17  ;;  %v10534_v12 = vld [vmem:[#allocation38_spill] sm:$0xff] }
 0xa09   :  { %v3613_v58 = vmax.f32 %v8781_v8, %v8778_v46 }
 0xa0c   :  { %v3252_v42 = vpop.permute.xlu1 %3251 }
 0xa14   :  { %v3272_v6 = vpop.permute.xlu1 %3271 }
 0xa18   :  { %3593 = vmax.xlane.f32.xlu1 %v3592_v1  ;;  %v3237_v1 = vpop.permute.xlu2 %3236 }
 0xa19   :  { %v3352_v27 = vadd.f32 %v8648_v40, %v3237_v1  ;;  %v3351_v21 = vadd.f32 %v8644_v3, %v3237_v1 }
 0xa1b   :  { %v3416_v54 = vmul.f32 0.2, %v3352_v27 }
 0xa1d   :  { %v3480_v33 = vmax.f32 %v3352_v27, %v3416_v54  ;;  %v3358_v54 = vadd.f32 %v8648_v40, %v3252_v42 }
 0xa1f   :  { %v8790_v19 = vadd.f32 %v3480_v33, %v10476_v52 }
 0xa20   :  { %3605 = vmax.xlane.f32.xlu1 %v3604_v26  ;;  %v3247_v26 = vpop.permute.xlu2 %3246 }
 0xa21   :  { %v3356_v29 = vadd.f32 %v8648_v40, %v3247_v26  ;;  %v3355_v36 = vadd.f32 %v8644_v3, %v3247_v26  ;;  %v10535_v26 = vld [vmem:[#allocation54_spill] sm:$0xff] }
 0xa23   :  { %v3420_v1 = vmul.f32 0.2, %v3356_v29 }
 0xa25   :  { %3608 = vmax.xlane.f32.xlu2 %v3607_v7  ;;  %v3415_v7 = vmul.f32 0.2, %v3351_v21  ;;  %v3484_v27 = vmax.f32 %v3356_v29, %v3420_v1 }
 0xa27   :  { %v3479_v49 = vmax.f32 %v3351_v21, %v3415_v7  ;;  %v3357_v21 = vadd.f32 %v8644_v3, %v3252_v42  ;;  %v3422_v7 = vmul.f32 0.2, %v3358_v54  ;;  %v8802_v33 = vadd.f32 %v3484_v27, %v10535_v26  ;;  %v10539_v27 = vld [vmem:[#allocation43_spill] sm:$0xff] }
 0xa28   :  { %v8795_v62 = vpop.permute.xlu2 %3256 }
 0xa29   :  { %v8793_v17 = vadd.f32 %v3479_v49, %v10534_v12  ;;  %10536 = vst [vmem:[#allocation73_spill] sm:$0xff] %v8802_v33  ;;  %v3421_v52 = vmul.f32 0.2, %v3357_v21  ;;  %v10537_v49 = vld [vmem:[#allocation55_spill] sm:$0xff]  ;;  %v3486_v1 = vmax.f32 %v3358_v54, %v3422_v7 }
 0xa2a   :  { %3611 = vmax.xlane.f32.xlu0 %v3610_v57  ;;  %v3419_v57 = vmul.f32 0.2, %v3355_v36 }
 0xa2b   :  { %v3622_v11 = vmax.f32 %v8793_v17, %v8790_v19  ;;  %v8814_v26 = vadd.f32 %v3486_v1, %v10539_v27 }
 0xa2d   :  { %10540 = vst [vmem:[#allocation75_spill] sm:$0xff] %v8814_v26 }
 0xa30   :  { %v3267_v24 = vpop.permute.xlu2 %3266 }
 0xa31   :  { %v3364_v29 = vadd.f32 %v8648_v40, %v3267_v24 }
 0xa32   :  { %3614 = vmax.xlane.f32.xlu0 %v3613_v58  ;;  %v3483_v58 = vmax.f32 %v3355_v36, %v3419_v57  ;;  %v3485_v36 = vmax.f32 %v3357_v21, %v3421_v52 }
 0xa33   :  { %v3428_v57 = vmul.f32 0.2, %v3364_v29 }
 0xa34   :  { %v8806_v12 = vadd.f32 %v3483_v58, %v10537_v49  ;;  %v10541_v49 = vld [vmem:[#allocation44_spill] sm:$0xff] }
 0xa35   :  { %v8817_v53 = vadd.f32 %v3485_v36, %v10541_v49  ;;  %v3492_v7 = vmax.f32 %v3364_v29, %v3428_v57 }
 0xa36   :  { %10538 = vst [vmem:[#allocation76_spill] sm:$0xff] %v8806_v12  ;;  %v3628_v42 = vmax.f32 %v8806_v12, %v8802_v33 }
 0xa37   :  { %10542 = vst [vmem:[#allocation74_spill] sm:$0xff] %v8817_v53  ;;  %v8824_v21 = vadd.f32 %v3492_v7, %v10484_v45  ;;  %v3349_v7 = vadd.f32 %v8644_v3, %v8783_v5 }
 0xa39   :  { %3281 = vperm.xlu1 %6085, %v8590_v18   ;;  %v3631_v18 = vmax.f32 %v8817_v53, %v8814_v26  ;;  %10543 = vst [vmem:[#allocation77_spill] sm:$0xff] %v8824_v21  ;;  %v3365_v26 = vadd.f32 %v8644_v3, %v3272_v6 }
 0xa3a   :  { %3623 = vmax.xlane.f32.xlu0 %v3622_v11  ;;  %v3363_v11 = vadd.f32 %v8644_v3, %v3267_v24 }
 0xa3c   :  { %v3427_v58 = vmul.f32 0.2, %v3363_v11 }
 0xa3d   :  { %3291 = vperm.xlu2 %6086, %v8594_v59   ;;  %v3242_v59 = vpop.permute.xlu0 %3241 }
 0xa3e   :  { %v3491_v25 = vmax.f32 %v3363_v11, %v3427_v58 }
 0xa40   :  { %v8829_v36 = vadd.f32 %v3491_v25, %v10485_v0 }
 0xa42   :  { %3629 = vmax.xlane.f32.xlu0 %v3628_v42  ;;  %10544 = vst [vmem:[#allocation78_spill] sm:$0xff] %v8829_v36 }
 0xa45   :  { %v8826_v1 = vpop.permute.xlu0 %3261 }
 0xa47   :  { %v3582_v54 = vpop.xlane.xlu2 %3581 }
 0xa48   :  { %v3675_v24 = vsub.f32 %v8665_v10, %v3582_v54  ;;  %v3676_v52 = vsub.f32 %v8668_v2, %v3582_v54  ;;  %v3579_v49 = vpop.xlane.xlu1 %3578  ;;  %v3640_v10 = vmax.f32 %v8829_v36, %v8824_v21  ;;  %v3350_v54 = vadd.f32 %v8648_v40, %v8783_v5 }
 0xa49   :  { %v3673_v57 = vsub.f32 %v8679_v4, %v3579_v49  ;;  %v3674_v11 = vsub.f32 %v8682_v41, %v3579_v49  ;;  %v3348_v41 = vadd.f32 %v8648_v40, %v8747_v63  ;;  %v8848_v21 = vadd.f32 %v8644_v3, %v3242_v59 }
 0xa4a   :  { %3632 = vmax.xlane.f32.xlu0 %v3631_v18  ;;  %v3741_v42 = vmul.f32 1.442695, %v3675_v24  ;;  %v3743_v29 = vmul.f32 1.442695, %v3676_v52  ;;  %v3414_v24 = vmul.f32 0.2, %v3350_v54  ;;  %v3354_v36 = vadd.f32 %v8648_v40, %v3242_v59 }
 0xa4b   :  { %v3737_v58 = vmul.f32 1.442695, %v3673_v57  ;;  %v3739_v2 = vmul.f32 1.442695, %v3674_v11  ;;  %v3413_v11 = vmul.f32 0.2, %v3349_v7 }
 0xa4c   :  { %6477 = vpow2.f32 %v3741_v42  ;;  %v3347_v42 = vadd.f32 %v8644_v3, %v8747_v63  ;;  %v3478_v63 = vmax.f32 %v3350_v54, %v3414_v24 }
 0xa4d   :  { %6479 = vpow2.f32 %v3743_v29  ;;  %v3585_v25 = vpop.xlane.xlu0 %3584 }
 0xa4e   :  { %6481 = vpow2.f32 %v3737_v58  ;;  %v3677_v0 = vsub.f32 %v8659_v30, %v3585_v25  ;;  %v3411_v53 = vmul.f32 0.2, %v3347_v42  ;;  %v3360_v30 = vadd.f32 %v8648_v40, %v8795_v62 }
 0xa4f   :  { %6483 = vpow2.f32 %v3739_v2  ;;  %v3588_v4 = vpop.xlane.xlu2 %3587  ;;  %v3412_v2 = vmul.f32 0.2, %v3348_v41 }
 0xa50   :  { %v3679_v29 = vsub.f32 %v8691_v61, %v3588_v4  ;;  %v3680_v5 = vsub.f32 %v8694_v43, %v3588_v4  ;;  %v3678_v61 = vsub.f32 %v8662_v28, %v3585_v25  ;;  %v3477_v43 = vmax.f32 %v3349_v7, %v3413_v11 }
 0xa51   :  { %v3476_v54 = vmax.f32 %v3348_v41, %v3412_v2  ;;  %v3745_v24 = vmul.f32 1.442695, %v3677_v0  ;;  %v3417_v28 = vmul.f32 0.2, %v8848_v21  ;;  %v3418_v25 = vmul.f32 0.2, %v3354_v36 }
 0xa52   :  { %3641 = vmax.xlane.f32.xlu0 %v3640_v10  ;;  %v6478_v18 = vpop.eup %6477  ;;  %v3366_v10 = vadd.f32 %v8648_v40, %v3272_v6  ;;  %v3749_v33 = vmul.f32 1.442695, %v3679_v29  ;;  %v3747_v6 = vmul.f32 1.442695, %v3678_v61  ;;  %v3424_v11 = vmul.f32 0.2, %v3360_v30 }
 0xa53   :  { %v6480_v49 = vpop.eup %6479  ;;  %v10547_v41 = vld [vmem:[#allocation35_spill] sm:$0xff] }
 0xa54   :  { %v6482_v52 = vpop.eup %6481  ;;  %v3430_v59 = vmul.f32 0.2, %v3366_v10  ;;  %6485 = vpow2.f32 %v3749_v33  ;;  %v8867_v2 = vadd.f32 %v3476_v54, %v10547_v41  ;;  %v3868_v61 = vadd.f32 %v6480_v49, %v6478_v18  ;;  %v10549_v54 = vld [vmem:[#allocation58_spill] sm:$0xff] }
 0xa55   :  { %v6484_v57 = vpop.eup %6483  ;;  %v3961_v58 = vpack.c.bf16 %v6478_v18, %v6482_v52  ;;  %v3591_v4 = vpop.xlane.xlu0 %3590  ;;  %v3481_v18 = vmax.f32 %v8848_v21, %v3417_v28  ;;  %v10551_v21 = vld [vmem:[#allocation59_spill] sm:$0xff] }
 0xa56   :  { %v3962_v45 = vpack.c.bf16 %v6480_v49, %v6484_v57  ;;  %v3865_v27 = vadd.f32 %v6484_v57, %v6482_v52  ;;  %v3751_v52 = vmul.f32 1.442695, %v3680_v5  ;;  %v3359_v57 = vadd.f32 %v8644_v3, %v8795_v62  ;;  %v10546_v62 = vld [vmem:[#allocation53_spill] sm:$0xff] }
 0xa57   :  { %4017 = vmatmul.bf16.vlgmr.msrb.gmra.mxu2 %v3961_v58  ;;  %v10545_v58 = vld [vmem:[#allocation52_spill] sm:$0xff]  ;;  %v3681_v7 = vsub.f32 %v8685_v56, %v3591_v4  ;;  %v3682_v5 = vsub.f32 %v8688_v15, %v3591_v4  ;;  %v8864_v12 = vadd.f32 %v3477_v43, %v10546_v62  ;;  %v3494_v0 = vmax.f32 %v3366_v10, %v3430_v59 }
 0xa58   :  { %4106 = vmatmul.bf16.vlgmr.msra.gmra.mxu0 %v3962_v45  ;;  %v8859_v29 = vadd.f32 %v3478_v63, %v10545_v58  ;;  %v3429_v45 = vmul.f32 0.2, %v3365_v26  ;;  %6487 = vpow2.f32 %v3751_v52  ;;  %v3362_v63 = vadd.f32 %v8648_v40, %v8826_v1  ;;  %v10548_v4 = vld [vmem:[#allocation36_spill] sm:$0xff] }
 0xa59   :  { %6489 = vpow2.f32 %v3745_v24  ;;  %v3423_v33 = vmul.f32 0.2, %v3359_v57  ;;  %v3361_v10 = vadd.f32 %v8644_v3, %v8826_v1  ;;  %v3755_v49 = vmul.f32 1.442695, %v3682_v5  ;;  %v10552_v5 = vld [vmem:[#allocation41_spill] sm:$0xff] }
 0xa5a   :  { %3866 = vadd.xlane.f32.xlu0 %v3865_v27  ;;  %v3475_v27 = vmax.f32 %v3347_v42, %v3411_v53  ;;  %v3482_v53 = vmax.f32 %v3354_v36, %v3418_v25  ;;  %6491 = vpow2.f32 %v3747_v6  ;;  %v3619_v56 = vmax.f32 %v8864_v12, %v8859_v29  ;;  %v6486_v52 = vpop.eup %6485  ;;  %v10550_v6 = vld [vmem:[#allocation39_spill] sm:$0xff] }
 0xa5b   :  { %v3493_v15 = vmax.f32 %v3365_v26, %v3429_v45  ;;  %v3753_v42 = vmul.f32 1.442695, %v3681_v7  ;;  %v3488_v36 = vmax.f32 %v3360_v30, %v3424_v11  ;;  %v8882_v24 = vadd.f32 %v3494_v0, %v10549_v54 }
 0xa5c   :  { %v8874_v43 = vadd.f32 %v3475_v27, %v10548_v4  ;;  %v3426_v25 = vmul.f32 0.2, %v3362_v63  ;;  %v8885_v45 = vadd.f32 %v3482_v53, %v10550_v6  ;;  %v3487_v7 = vmax.f32 %v3359_v57, %v3423_v33  ;;  %v10558_v4 = vld [vmem:[#allocation47_spill] sm:$0xff] }
 0xa5d   :  { %6493 = vpow2.f32 %v3753_v42  ;;  %v8888_v1 = vadd.f32 %v3493_v15, %v10551_v21  ;;  %v3425_v30 = vmul.f32 0.2, %v3361_v10  ;;  %v10554_v15 = vld [vmem:[#allocation46_spill] sm:$0xff]  ;;  %v10555_v21 = vld [vmem:[#allocation49_spill] sm:$0xff] }
 0xa5e   :  { %v3616_v59 = vmax.f32 %v8874_v43, %v8867_v2  ;;  %v6488_v26 = vpop.eup %6487  ;;  %6495 = vpow2.f32 %v3755_v49  ;;  %v3490_v57 = vmax.f32 %v3362_v63, %v3426_v25  ;;  %v8901_v42 = vadd.f32 %v3487_v7, %v10554_v15  ;;  %v10556_v63 = vld [vmem:[#allocation51_spill] sm:$0xff] }
 0xa5f   :  { %v6490_v27 = vpop.eup %6489  ;;  %v3643_v53 = vmax.f32 %v8888_v1, %v8882_v24  ;;  %v3489_v49 = vmax.f32 %v3361_v10, %v3425_v30  ;;  %v3874_v30 = vadd.f32 %v6488_v26, %v6486_v52 }
 0xa60   :  { %v6492_v28 = vpop.eup %6491  ;;  %v3963_v11 = vpack.c.bf16 %v6486_v52, %v6490_v27 }
 0xa61   :  { %v3964_v0 = vpack.c.bf16 %v6488_v26, %v6492_v28  ;;  %v8909_v25 = vadd.f32 %v3489_v49, %v10556_v63  ;;  %v3871_v10 = vadd.f32 %v6492_v28, %v6490_v27 }
 0xa62   :  { %3869 = vadd.xlane.f32.xlu0 %v3868_v61  ;;  %v8891_v61 = vadd.f32 %v3481_v18, %v10552_v5 }
 0xa63   :  { %3617 = vmax.xlane.f32.xlu1 %v3616_v59  ;;  %v6494_v18 = vpop.eup %6493 }
 0xa64   :  { %v3625_v33 = vmax.f32 %v8891_v61, %v8885_v45  ;;  %v6496_v59 = vpop.eup %6495 }
 0xa66   :  { %3620 = vmax.xlane.f32.xlu2 %v3619_v56  ;;  %v10553_v56 = vld [vmem:[#allocation45_spill] sm:$0xff] }
 0xa67   :  { %v8894_v54 = vadd.f32 %v3488_v36, %v10553_v56  ;;  %4022 = vmatmul.bf16.gmra.mxu2 %v3963_v11  ;;  %v8906_v56 = vadd.f32 %v3490_v57, %v10555_v21  ;;  %v3877_v11 = vadd.f32 %v6496_v59, %v6494_v18 }
 0xa68   :  { %4111 = vmatmul.bf16.gmra.mxu0 %v3964_v0  ;;  %v3600_v0 = vpop.xlane.xlu0 %3599 }
 0xa69   :  { %v3634_v36 = vmax.f32 %v8901_v42, %v8894_v54  ;;  %v3637_v7 = vmax.f32 %v8909_v25, %v8906_v56 }
 0xa6a   :  { %3644 = vmax.xlane.f32.xlu0 %v3643_v53  ;;  %v3597_v53 = vpop.xlane.xlu2 %3596 }
 0xa6b   :  { %3635 = vmax.xlane.f32.xlu1 %v3634_v36 }
 0xa6e   :  { %3626 = vmax.xlane.f32.xlu2 %v3625_v33  ;;  %v8913_v33 = vpop.permute.xlu1 %3276 }
 0xa70   :  { %v8916_v57 = vpop.xlane.xlu0 %3602 }
 0xa72   :  { %3878 = vadd.xlane.f32.xlu0 %v3877_v11  ;;  %v8919_v49 = vpop.permute.xlu2 %3286 }
 0xa73   :  { %3872 = vadd.xlane.f32.xlu1 %v3871_v10  ;;  %v3687_v10 = vsub.f32 %v8711_v51, %v3600_v0 }
 0xa76   :  { %3638 = vmax.xlane.f32.xlu2 %v3637_v7 }
 0xa78   :  { %v8924_v26 = vpop.permute.xlu0 %3296 }
 0xa7b   :  { %3875 = vadd.xlane.f32.xlu1 %v3874_v30 }
 0xa86   :  { %3311 = vperm.xlu0 %6084, %v8602_v22  }
 0xa8b   :  { %v3594_v36 = vpop.xlane.xlu1 %3593 }
 0xa8c   :  { %v3683_v27 = vsub.f32 %v8743_v50, %v3594_v36  ;;  %v3684_v52 = vsub.f32 %v8739_v9, %v3594_v36  ;;  %v3685_v9 = vsub.f32 %v8714_v23, %v3597_v53 }
 0xa8e   :  { %3306 = vperm.xlu2 %6086, %v8600_v37   ;;  %3316 = vperm.xlu0 %6084, %v8604_v48   ;;  %v3757_v28 = vmul.f32 1.442695, %v3683_v27  ;;  %v3759_v11 = vmul.f32 1.442695, %v3684_v52  ;;  %v3688_v48 = vsub.f32 %v8705_v47, %v3600_v0  ;;  %v3761_v51 = vmul.f32 1.442695, %v3685_v9 }
 0xa90   :  { %6497 = vpow2.f32 %v3757_v28  ;;  %v3686_v28 = vsub.f32 %v8708_v35, %v3597_v53 }
 0xa91   :  { %6499 = vpow2.f32 %v3759_v11 }
 0xa94   :  { %3301 = vperm.xlu1 %6085, %v8598_v38   ;;  %v3763_v38 = vmul.f32 1.442695, %v3686_v28 }
 0xa96   :  { %v6498_v30 = vpop.eup %6497 }
 0xa97   :  { %v6500_v52 = vpop.eup %6499  ;;  %v3965_v11 = vpack.c.bf16 %v6498_v30, %v6494_v18 }
 0xa98   :  { %v3609_v22 = vpop.xlane.xlu2 %3608  ;;  %v3966_v15 = vpack.c.bf16 %v6500_v52, %v6496_v59 }
 0xa99   :  { %v3693_v7 = vsub.f32 %v8758_v60, %v3609_v22  ;;  %v3694_v37 = vsub.f32 %v8751_v32, %v3609_v22  ;;  %v3765_v60 = vmul.f32 1.442695, %v3687_v10  ;;  %v3767_v32 = vmul.f32 1.442695, %v3688_v48  ;;  %4027 = vmatmul.bf16.gmra.mxu2 %v3965_v11 }
 0xa9a   :  { %4116 = vmatmul.bf16.gmra.mxu0 %v3966_v15  ;;  %v3606_v15 = vpop.xlane.xlu1 %3605 }
 0xa9b   :  { %v3777_v50 = vmul.f32 1.442695, %v3693_v7  ;;  %v3779_v36 = vmul.f32 1.442695, %v3694_v37  ;;  %v3689_v7 = vsub.f32 %v8724_v34, %v8916_v57  ;;  %v3691_v37 = vsub.f32 %v8761_v16, %v3606_v15 }
 0xa9c   :  { %v3692_v10 = vsub.f32 %v8754_v20, %v3606_v15  ;;  %v3367_v16 = vadd.f32 %v8644_v3, %v8913_v33  ;;  %v3368_v20 = vadd.f32 %v8648_v40, %v8913_v33 }
 0xa9d   :  { %v8932_v27 = vpop.xlane.xlu0 %3611  ;;  %6501 = vpow2.f32 %v3777_v50  ;;  %v3769_v28 = vmul.f32 1.442695, %v3689_v7  ;;  %v3773_v11 = vmul.f32 1.442695, %v3691_v37  ;;  %v6064_v37 = vld [vmem:[#allocation6 + $0xf0] sm:$0xff] }
 0xa9e   :  { %6503 = vpow2.f32 %v3779_v36  ;;  %v3690_v36 = vsub.f32 %v8721_v39, %v8916_v57  ;;  %v3431_v63 = vmul.f32 0.2, %v3367_v16  ;;  %v3432_v33 = vmul.f32 0.2, %v3368_v20 }
 0xa9f   :  { %6505 = vpow2.f32 %v3765_v60  ;;  %v6065_v60 = vld [vmem:[#allocation6 + $0xf8] sm:$0xff] }
 0xaa0   :  { %6507 = vpow2.f32 %v3767_v32  ;;  %v3775_v32 = vmul.f32 1.442695, %v3692_v10  ;;  %4398 = vmatpush.bf16.msrb.mxu3 %v6065_v60  ;;  %v3771_v39 = vmul.f32 1.442695, %v3690_v36  ;;  %v3371_v36 = vadd.f32 %v8644_v3, %v8919_v49 }
 0xaa1   :  { %6509 = vpow2.f32 %v3761_v51  ;;  %v3292_v51 = vpop.permute.xlu2 %3291 }
 0xaa2   :  { %6511 = vpow2.f32 %v3763_v38  ;;  %v3373_v10 = vadd.f32 %v8644_v3, %v3292_v51 }
 0xaa3   :  { %v8937_v47 = vpop.eup %6501  ;;  %6513 = vpow2.f32 %v3769_v28 }
 0xaa4   :  { %v8939_v0 = vpop.eup %6503  ;;  %6515 = vpow2.f32 %v3773_v11  ;;  %4399 = vmatpush.bf16.msrb.mxu3 %v6064_v37 }
 0xaa5   :  { %v8935_v23 = vpop.xlane.xlu0 %3614  ;;  %v8941_v35 = vpop.eup %6505  ;;  %v8945_v18 = vadd.f32 %v8939_v0, %v8937_v47  ;;  %6517 = vpow2.f32 %v3775_v32 }
 0xaa6   :  { %v8947_v59 = vpop.eup %6507  ;;  %6519 = vpow2.f32 %v3771_v39 }
 0xaa7   :  { %v6510_v53 = vpop.eup %6509 }
 0xaa8   :  { %v6512_v22 = vpop.eup %6511  ;;  %v3967_v48 = vpack.c.bf16 %v8941_v35, %v6510_v53 }
 0xaa9   :  { %v3968_v9 = vpack.c.bf16 %v8947_v59, %v6512_v22  ;;  %v6514_v60 = vpop.eup %6513  ;;  %v3883_v37 = vadd.f32 %v6512_v22, %v6510_v53 }
 0xaaa   :  { %4032 = vmatmul.bf16.gmra.mxu2 %v3967_v48  ;;  %v3374_v48 = vadd.f32 %v8648_v40, %v3292_v51  ;;  %v8977_v32 = vpop.eup %6515  ;;  %v3495_v51 = vmax.f32 %v3367_v16, %v3431_v63  ;;  %v3696_v63 = vsub.f32 %v8766_v44, %v8932_v27  ;;  %v10559_v44 = vld [vmem:[#allocation60_spill] sm:$0xff] }
 0xaab   :  { %4121 = vmatmul.bf16.gmra.mxu0 %v3968_v9  ;;  %v3282_v34 = vpop.permute.xlu1 %3281  ;;  %v3880_v9 = vadd.f32 %v6500_v52, %v6498_v30  ;;  %v3437_v30 = vmul.f32 0.2, %v3373_v10 }
 0xaac   :  { %v3369_v38 = vadd.f32 %v8644_v3, %v3282_v34  ;;  %v3370_v15 = vadd.f32 %v8648_v40, %v3282_v34  ;;  %v3438_v52 = vmul.f32 0.2, %v3374_v48  ;;  %v3783_v53 = vmul.f32 1.442695, %v3696_v63 }
 0xaad   :  { %v8954_v50 = vpop.xlane.xlu0 %3623  ;;  %v3501_v16 = vmax.f32 %v3373_v10, %v3437_v30  ;;  %v10560_v10 = vld [vmem:[#allocation61_spill] sm:$0xff]  ;;  %v3376_v63 = vadd.f32 %v8648_v40, %v8924_v26 }
 0xaae   :  { %v3433_v57 = vmul.f32 0.2, %v3369_v38  ;;  %v3434_v7 = vmul.f32 0.2, %v3370_v15 }
 0xab0   :  { %v3497_v21 = vmax.f32 %v3369_v38, %v3433_v57  ;;  %v3498_v62 = vmax.f32 %v3370_v15, %v3434_v7  ;;  %v3496_v38 = vmax.f32 %v3368_v20, %v3432_v33  ;;  %v3372_v15 = vadd.f32 %v8648_v40, %v8919_v49  ;;  %v6063_v57 = vld [vmem:[#allocation6 + $0xe8] sm:$0xff]  ;;  %v8983_v7 = vpop.eup %6517 }
 0xab1   :  { %4400 = vmatpush.bf16.msrb.mxu3 %v6063_v57  ;;  %v3502_v20 = vmax.f32 %v3374_v48, %v3438_v52  ;;  %v3969_v49 = vpack.c.bf16 %v8977_v32, %v6514_v60  ;;  %v10562_v57 = vld [vmem:[#allocation65_spill] sm:$0xff] }
 0xab2   :  { %v8972_v28 = vadd.f32 %v3497_v21, %v10494_v55  ;;  %v8975_v11 = vadd.f32 %v3498_v62, %v10491_v13  ;;  %v3435_v21 = vmul.f32 0.2, %v3371_v36  ;;  %v3695_v62 = vsub.f32 %v8771_v31, %v8932_v27  ;;  %v10557_v55 = vld [vmem:[#allocation48_spill] sm:$0xff] }
 0xab3   :  { %v3436_v33 = vmul.f32 0.2, %v3372_v15  ;;  %v8992_v58 = vadd.f32 %v3495_v51, %v10557_v55  ;;  %v8995_v5 = vadd.f32 %v3496_v38, %v10558_v4  ;;  %v9000_v27 = vadd.f32 %v3501_v16, %v10559_v44  ;;  %v10561_v38 = vld [vmem:[#allocation64_spill] sm:$0xff] }
 0xab4   :  { %v3649_v39 = vmax.f32 %v8972_v28, %v8975_v11  ;;  %v3781_v31 = vmul.f32 1.442695, %v3695_v62  ;;  %v9003_v48 = vadd.f32 %v3502_v20, %v10560_v10  ;;  %v3499_v30 = vmax.f32 %v3371_v36, %v3435_v21  ;;  %v6061_v36 = vld [vmem:[#allocation6 + $0xd8] sm:$0xff] }
 0xab5   :  { %v8967_v34 = vpop.xlane.xlu0 %3629  ;;  %v3500_v52 = vmax.f32 %v3372_v15, %v3436_v33  ;;  %v3646_v51 = vmax.f32 %v8992_v58, %v8995_v5  ;;  %v3375_v21 = vadd.f32 %v8644_v3, %v8924_v26  ;;  %v6059_v26 = vld [vmem:[#allocation6 + $0xc8] sm:$0xff] }
 0xab6   :  { %6521 = vpow2.f32 %v3781_v31 }
 0xab7   :  { %3881 = vadd.xlane.f32.xlu2 %v3880_v9  ;;  %v6520_v9 = vpop.eup %6519  ;;  %6523 = vpow2.f32 %v3783_v53  ;;  %v9013_v62 = vadd.f32 %v3500_v52, %v10562_v57  ;;  %v3439_v53 = vmul.f32 0.2, %v3375_v21 }
 0xab8   :  { %3650 = vmax.xlane.f32.xlu0 %v3649_v39  ;;  %v3970_v13 = vpack.c.bf16 %v8983_v7, %v6520_v9  ;;  %v9010_v39 = vadd.f32 %v3499_v30, %v10561_v38  ;;  %v3889_v31 = vadd.f32 %v6520_v9, %v6514_v60  ;;  %v3440_v30 = vmul.f32 0.2, %v3376_v63  ;;  %v10563_v9 = vld [vmem:[#allocation62_spill] sm:$0xff] }
 0xab9   :  { %v3697_v60 = vsub.f32 %v8781_v8, %v8935_v23 }
 0xaba   :  { %4037 = vmatmul.bf16.gmra.mxu2 %v3969_v49  ;;  %v3652_v16 = vmax.f32 %v9010_v39, %v9013_v62 }
 0xabb   :  { %4126 = vmatmul.bf16.gmra.mxu0 %v3970_v13  ;;  %v3655_v13 = vmax.f32 %v9000_v27, %v9003_v48 }
 0xabc   :  { %v9015_v15 = vpop.eup %6521 }
 0xabd   :  { %v8997_v22 = vpop.xlane.xlu0 %3632  ;;  %v9023_v20 = vpop.eup %6523  ;;  %v3971_v33 = vpack.c.bf16 %v9015_v15, %v8937_v47 }
 0xabe   :  { %3647 = vmax.xlane.f32.xlu1 %v3646_v51  ;;  %v3972_v52 = vpack.c.bf16 %v9023_v20, %v8939_v0  ;;  %v6060_v51 = vld [vmem:[#allocation6 + $0xd0] sm:$0xff] }
 0xabf   :  { %3884 = vadd.xlane.f32.xlu2 %v3883_v37  ;;  %v6062_v37 = vld [vmem:[#allocation6 + $0xe0] sm:$0xff]  ;;  %v10564_v0 = vld [vmem:[#allocation63_spill] sm:$0xff] }
 0xac0   :  { %4401 = vmatpush.bf16.msrb.mxu3 %v6062_v37  ;;  %v3504_v37 = vmax.f32 %v3376_v63, %v3440_v30 }
 0xac4   :  { %4402 = vmatpush.bf16.msrb.mxu3 %v6061_v36  ;;  %v3886_v36 = vadd.f32 %v8947_v59, %v8941_v35 }
 0xac5   :  { %v9025_v49 = vpop.xlane.xlu0 %3641 }
 0xac6   :  { %3653 = vmax.xlane.f32.xlu1 %v3652_v16 }
 0xac7   :  { %3656 = vmax.xlane.f32.xlu2 %v3655_v13  ;;  %v3503_v13 = vmax.f32 %v3375_v21, %v3439_v53  ;;  %v3698_v21 = vsub.f32 %v8778_v46, %v8935_v23  ;;  %v3785_v53 = vmul.f32 1.442695, %v3697_v60  ;;  %v3892_v60 = vadd.f32 %v8983_v7, %v8977_v32 }
 0xac8   :  { %4403 = vmatpush.bf16.msrb.mxu3 %v6060_v51 }
 0xac9   :  { %v9036_v16 = vadd.f32 %v3503_v13, %v10563_v9  ;;  %v3787_v30 = vmul.f32 1.442695, %v3698_v21  ;;  %6525 = vpow2.f32 %v3785_v53 }
 0xaca   :  { %4042 = vmatmul.bf16.gmra.mxu2 %v3971_v33  ;;  %v9039_v33 = vadd.f32 %v3504_v37, %v10564_v0 }
 0xacb   :  { %4131 = vmatmul.bf16.gmra.mxu0 %v3972_v52 }
 0xacc   :  { %4404 = vmatpush.bf16.msrb.mxu3 %v6059_v26  ;;  %v3658_v35 = vmax.f32 %v9036_v16, %v9039_v33 }
 0xacd   :  { %v3867_v47 = vpop.xlane.xlu0 %3866 }
 0xace   :  { %3887 = vadd.xlane.f32.xlu1 %v3886_v36  ;;  %6527 = vrcp.f32 %v3867_v47 }
 0xacf   :  { %3890 = vadd.xlane.f32.xlu2 %v3889_v31  ;;  %v6058_v31 = vld [vmem:[#allocation6 + $0xc0] sm:$0xff]  ;;  %6529 = vpow2.f32 %v3787_v30 }
 0xad0   :  { %4405 = vmatpush.bf16.msrb.mxu3 %v6058_v31  ;;  %v9051_v31 = vpop.eup %6525 }
 0xad5   :  { %v4107_v59 = vpop.f32.mrf.mxu0  ;;  %v3870_v37 = vpop.xlane.xlu0 %3869 }
 0xad6   :  { %v3618_v52 = vpop.xlane.xlu1 %3617  ;;  %3659 = vmax.xlane.f32.xlu1 %v3658_v35  ;;  %v9060_v35 = vld [vmem:[%s10206_s4 + $0x2] ss:$0 sm:$0xff] }
 0xad7   :  { %v3699_v8 = vsub.f32 %v8874_v43, %v3618_v52  ;;  %v3700_v51 = vsub.f32 %v8867_v2, %v3618_v52  ;;  %v6528_v2 = vpop.eup %6527 }
 0xad8   :  { %v9055_v21 = vpop.eup %6529 }
 0xad9   :  { %v3621_v63 = vpop.xlane.xlu2 %3620  ;;  %v3789_v26 = vmul.f32 1.442695, %v3699_v8  ;;  %v3791_v13 = vmul.f32 1.442695, %v3700_v51 }
 0xada   :  { %v4018_v46 = vpop.f32.mrf.mxu2  ;;  %v3702_v52 = vsub.f32 %v8859_v29, %v3621_v63 }
 0xadb   :  { %6531 = vpow2.f32 %v3789_v26  ;;  %v4108_v36 = vadd.f32 %v4107_v59, %v4018_v46  ;;  %v3701_v59 = vsub.f32 %v8864_v12, %v3621_v63 }
 0xadc   :  { %6533 = vpow2.f32 %v3791_v13  ;;  %v3703_v13 = vsub.f32 %v8793_v17, %v8954_v50 }
 0xadd   :  { %6535 = vrcp.f32 %v3870_v37  ;;  %v4109_v47 = vpop.f32.mrf.mxu0  ;;  %v4219_v53 = vmul.f32 %v6528_v2, %v4108_v36  ;;  %v9072_v37 = vpop.xlane.xlu0 %3644  ;;  %v3704_v36 = vsub.f32 %v8790_v19, %v8954_v50  ;;  %v3793_v63 = vmul.f32 1.442695, %v3701_v59 }
 0xade   :  { %v9053_v43 = vpop.xlane.xlu1 %3635  ;;  %3893 = vadd.xlane.f32.xlu1 %v3892_v60  ;;  %v3795_v2 = vmul.f32 1.442695, %v3702_v52 }
 0xadf   :  { %v4253_v29 = vadd.f32 %v9060_v35, %v4219_v53  ;;  %v3799_v0 = vmul.f32 1.442695, %v3704_v36  ;;  %6537 = vpow2.f32 %v3793_v63 }
 0xae1   :  { %v9047_v23 = vpop.xlane.xlu2 %3626  ;;  %v9063_v30 = vpop.eup %6531  ;;  %v4285_v9 = vmax.f32 %v4253_v29, 0.0 }
 0xae2   :  { %v4020_v32 = vpop.f32.mrf.mxu2  ;;  %v9065_v7 = vpop.eup %6533  ;;  %v3973_v51 = vpack.c.bf16 %v9063_v30, %v9051_v31 }
 0xae3   :  { %v4110_v8 = vadd.f32 %v4109_v47, %v4020_v32  ;;  %v6536_v26 = vpop.eup %6535  ;;  %v3974_v12 = vpack.c.bf16 %v9065_v7, %v9055_v21  ;;  %v3797_v32 = vmul.f32 1.442695, %v3703_v13 }
 0xae4   :  { %4047 = vmatmul.bf16.gmra.mxu2 %v3973_v51 }
 0xae5   :  { %v4220_v60 = vmul.f32 %v6536_v26, %v4110_v8  ;;  %4136 = vmatmul.bf16.gmra.mxu0 %v3974_v12  ;;  %v4112_v44 = vpop.f32.mrf.mxu0  ;;  %v9084_v52 = vpop.xlane.xlu0 %3878 }
 0xae6   :  { %v3873_v17 = vpop.xlane.xlu1 %3872  ;;  %v9086_v8 = vpop.eup %6537 }
 0xae7   :  { %v4254_v47 = vadd.f32 %v9060_v35, %v4220_v60  ;;  %6539 = vrcp.f32 %v3873_v17  ;;  %v3706_v60 = vsub.f32 %v8885_v45, %v9047_v23 }
 0xae8   :  { %6541 = vpow2.f32 %v3795_v2 }
 0xae9   :  { %v9076_v46 = vpop.xlane.xlu2 %3638  ;;  %v4286_v10 = vmax.f32 %v4254_v47, 0.0  ;;  %6543 = vpow2.f32 %v3797_v32 }
 0xaea   :  { %v4023_v55 = vpop.f32.mrf.mxu2  ;;  %6545 = vpow2.f32 %v3799_v0 }
 0xaeb   :  { %v4317_v19 = vpack.c.bf16 %v4286_v10, %v4285_v9  ;;  %v3705_v10 = vsub.f32 %v8891_v61, %v9047_v23  ;;  %v4113_v9 = vadd.f32 %v4112_v44, %v4023_v55  ;;  %v10566_v61 = vld [vmem:[#allocation76_spill] sm:$0xff] }
 0xaec   :  { %v3707_v44 = vsub.f32 %v10566_v61, %v8967_v34 }
 0xaed   :  { %4406 = vmatmul.bf16.vlgmr.msrb.gmra.mxu3 %v4317_v19  ;;  %v6540_v12 = vpop.eup %6539  ;;  %v10565_v19 = vld [vmem:[#allocation40_spill] sm:$0xff]  ;;  %v4114_v45 = vpop.f32.mrf.mxu0 }
 0xaee   :  { %v3876_v51 = vpop.xlane.xlu1 %3875  ;;  %v9088_v36 = vpop.eup %6541  ;;  %v4221_v17 = vmul.f32 %v6540_v12, %v4113_v9  ;;  %v3803_v9 = vmul.f32 1.442695, %v3706_v60 }
 0xaef   :  { %6547 = vrcp.f32 %v3876_v51  ;;  %v9092_v63 = vpop.eup %6543  ;;  %v3801_v51 = vmul.f32 1.442695, %v3705_v10 }
 0xaf0   :  { %v9096_v47 = vpop.eup %6545  ;;  %v3975_v55 = vpack.c.bf16 %v9092_v63, %v9086_v8 }
 0xaf1   :  { %v3307_v50 = vpop.permute.xlu2 %3306  ;;  %v3976_v23 = vpack.c.bf16 %v9096_v47, %v9088_v36  ;;  %6549 = vpow2.f32 %v3801_v51 }
 0xaf2   :  { %v3379_v53 = vadd.f32 %v8644_v3, %v3307_v50  ;;  %v3380_v59 = vadd.f32 %v8648_v40, %v3307_v50  ;;  %v4025_v2 = vpop.f32.mrf.mxu2  ;;  %6551 = vpow2.f32 %v3803_v9 }
 0xaf4   :  { %v3443_v26 = vmul.f32 0.2, %v3379_v53  ;;  %v3444_v13 = vmul.f32 0.2, %v3380_v59  ;;  %4052 = vmatmul.bf16.gmra.mxu2 %v3975_v55 }
 0xaf5   :  { %v6548_v12 = vpop.eup %6547  ;;  %4141 = vmatmul.bf16.gmra.mxu0 %v3976_v23 }
 0xaf6   :  { %v3507_v0 = vmax.f32 %v3379_v53, %v3443_v26  ;;  %v3508_v29 = vmax.f32 %v3380_v59, %v3444_v13  ;;  %v10567_v53 = vld [vmem:[#allocation73_spill] sm:$0xff]  ;;  %v4115_v26 = vadd.f32 %v4114_v45, %v4025_v2 }
 0xaf7   :  { %v3708_v59 = vsub.f32 %v10567_v53, %v8967_v34  ;;  %v3805_v53 = vmul.f32 1.442695, %v3707_v44  ;;  %v10569_v44 = vld [vmem:[#allocation72_spill] sm:$0xff] }
 0xaf8   :  { %v9099_v32 = vadd.f32 %v3507_v0, %v10502_v14  ;;  %v9102_v50 = vadd.f32 %v3508_v29, %v10565_v19  ;;  %v3312_v0 = vpop.permute.xlu0 %3311  ;;  %v4255_v29 = vadd.f32 %v9060_v35, %v4221_v17  ;;  %v4222_v61 = vmul.f32 %v6548_v12, %v4115_v26  ;;  %v10568_v26 = vld [vmem:[#allocation71_spill] sm:$0xff] }
 0xaf9   :  { %v3381_v19 = vadd.f32 %v8644_v3, %v3312_v0  ;;  %v3382_v34 = vadd.f32 %v8648_v40, %v3312_v0  ;;  %v3807_v14 = vmul.f32 1.442695, %v3708_v59  ;;  %6553 = vpow2.f32 %v3805_v53  ;;  %v10570_v0 = vld [vmem:[#allocation74_spill] sm:$0xff] }
 0xafa   :  { %v3664_v13 = vmax.f32 %v9099_v32, %v9102_v50  ;;  %v4256_v10 = vadd.f32 %v9060_v35, %v4222_v61  ;;  %v4287_v45 = vmax.f32 %v4255_v29, 0.0  ;;  %v3898_v17 = vadd.f32 %v9023_v20, %v9015_v15 }
 0xafb   :  { %v3445_v2 = vmul.f32 0.2, %v3381_v19  ;;  %v3446_v55 = vmul.f32 0.2, %v3382_v34  ;;  %6555 = vpow2.f32 %v3807_v14  ;;  %v3709_v29 = vsub.f32 %v10570_v0, %v8997_v22 }
 0xafc   :  { %3665 = vmax.xlane.f32.xlu1 %v3664_v13  ;;  %v4288_v57 = vmax.f32 %v4256_v10, 0.0  ;;  %v6550_v13 = vpop.eup %6549  ;;  %v3711_v14 = vsub.f32 %v8901_v42, %v9053_v43 }
 0xafd   :  { %v3509_v60 = vmax.f32 %v3381_v19, %v3445_v2  ;;  %v3510_v23 = vmax.f32 %v3382_v34, %v3446_v55  ;;  %v6552_v19 = vpop.eup %6551  ;;  %v10571_v34 = vld [vmem:[#allocation75_spill] sm:$0xff]  ;;  %v3809_v2 = vmul.f32 1.442695, %v3709_v29  ;;  %v3901_v55 = vadd.f32 %v9055_v21, %v9051_v31  ;;  %v10572_v31 = vld [vmem:[#allocation78_spill] sm:$0xff] }
 0xafe   :  { %v4318_v51 = vpack.c.bf16 %v4288_v57, %v4287_v45  ;;  %v3712_v57 = vsub.f32 %v8894_v54, %v9053_v43  ;;  %v3710_v53 = vsub.f32 %v10571_v34, %v8997_v22  ;;  %v3813_v45 = vmul.f32 1.442695, %v3711_v14  ;;  %v10574_v34 = vld [vmem:[#allocation66_spill] sm:$0xff] }
 0xaff   :  { %v9121_v12 = vadd.f32 %v3509_v60, %v10568_v26  ;;  %v9124_v59 = vadd.f32 %v3510_v23, %v10569_v44  ;;  %v9130_v15 = vpop.eup %6553  ;;  %v3904_v23 = vadd.f32 %v9065_v7, %v9063_v30  ;;  %6557 = vpow2.f32 %v3809_v2 }
 0xb00   :  { %4411 = vmatmul.bf16.gmra.mxu3 %v4318_v51  ;;  %v3977_v61 = vpack.c.bf16 %v9130_v15, %v6550_v13  ;;  %v3815_v42 = vmul.f32 1.442695, %v3712_v57  ;;  %v3811_v54 = vmul.f32 1.442695, %v3710_v53  ;;  %6559 = vpow2.f32 %v3813_v45  ;;  %v3317_v14 = vpop.permute.xlu0 %3316 }
 0xb01   :  { %v3667_v9 = vmax.f32 %v9121_v12, %v9124_v59  ;;  %v9134_v20 = vpop.eup %6555  ;;  %v3715_v21 = vsub.f32 %v10572_v31, %v9025_v49  ;;  %v3717_v29 = vsub.f32 %v8888_v1, %v9072_v37  ;;  %v3910_v57 = vadd.f32 %v9096_v47, %v9092_v63 }
 0xb02   :  { %v3978_v10 = vpack.c.bf16 %v9134_v20, %v6552_v19  ;;  %6561 = vpow2.f32 %v3815_v42  ;;  %v3913_v45 = vadd.f32 %v6552_v19, %v6550_v13  ;;  %v3383_v1 = vadd.f32 %v8644_v3, %v3317_v14 }
 0xb03   :  { %3668 = vmax.xlane.f32.xlu0 %v3667_v9  ;;  %6563 = vpow2.f32 %v3811_v54  ;;  %v10573_v9 = vld [vmem:[#allocation77_spill] sm:$0xff]  ;;  %v3714_v13 = vsub.f32 %v8906_v56, %v9076_v46 }
 0xb04   :  { %3899 = vadd.xlane.f32.xlu1 %v3898_v17  ;;  %4057 = vmatmul.bf16.gmra.mxu2 %v3977_v61  ;;  %v3716_v0 = vsub.f32 %v10573_v9, %v9025_v49  ;;  %v3718_v61 = vsub.f32 %v8882_v24, %v9072_v37  ;;  %v3821_v49 = vmul.f32 1.442695, %v3715_v21  ;;  %v3825_v37 = vmul.f32 1.442695, %v3717_v29 }
 0xb05   :  { %4146 = vmatmul.bf16.gmra.mxu0 %v3978_v10  ;;  %v10575_v10 = vld [vmem:[#allocation67_spill] sm:$0xff]  ;;  %v3819_v31 = vmul.f32 1.442695, %v3714_v13 }
 0xb06   :  { %v3302_v60 = vpop.permute.xlu1 %3301  ;;  %v3827_v54 = vmul.f32 1.442695, %v3718_v61  ;;  %6565 = vpow2.f32 %v3821_v49 }
 0xb07   :  { %v3377_v43 = vadd.f32 %v8644_v3, %v3302_v60  ;;  %v3378_v22 = vadd.f32 %v8648_v40, %v3302_v60  ;;  %v3823_v60 = vmul.f32 1.442695, %v3716_v0  ;;  %v3447_v3 = vmul.f32 0.2, %v3383_v1 }
 0xb09   :  { %v3441_v17 = vmul.f32 0.2, %v3377_v43  ;;  %v3442_v51 = vmul.f32 0.2, %v3378_v22  ;;  %6567 = vpow2.f32 %v3823_v60 }
 0xb0a   :  { %6569 = vpow2.f32 %v3825_v37 }
 0xb0b   :  { %3905 = vadd.xlane.f32.xlu0 %v3904_v23  ;;  %v3505_v30 = vmax.f32 %v3377_v43, %v3441_v17  ;;  %v3506_v7 = vmax.f32 %v3378_v22, %v3442_v51  ;;  %v3384_v23 = vadd.f32 %v8648_v40, %v3317_v14  ;;  %v3713_v43 = vsub.f32 %v8909_v25, %v9076_v46  ;;  %v10577_v14 = vld [vmem:[#allocation70_spill] sm:$0xff] }
 0xb0c   :  { %3902 = vadd.xlane.f32.xlu1 %v3901_v55  ;;  %v6558_v55 = vpop.eup %6557  ;;  %6571 = vpow2.f32 %v3827_v54  ;;  %v3511_v25 = vmax.f32 %v3383_v1, %v3447_v3  ;;  %v3907_v54 = vadd.f32 %v9088_v36, %v9086_v8  ;;  %v3916_v8 = vadd.f32 %v9134_v20, %v9130_v15 }
 0xb0d   :  { %v9159_v53 = vadd.f32 %v3505_v30, %v10574_v34  ;;  %v9162_v2 = vadd.f32 %v3506_v7, %v10575_v10  ;;  %v6560_v42 = vpop.eup %6559  ;;  %v3448_v40 = vmul.f32 0.2, %v3384_v23  ;;  %v3817_v51 = vmul.f32 1.442695, %v3713_v43  ;;  %v10576_v7 = vld [vmem:[#allocation50_spill] sm:$0xff] }
 0xb0e   :  { %v6562_v24 = vpop.eup %6561  ;;  %v3979_v19 = vpack.c.bf16 %v6560_v42, %v6558_v55  ;;  %v9178_v29 = vadd.f32 %v3511_v25, %v10576_v7 }
 0xb0f   :  { %v3661_v63 = vmax.f32 %v9159_v53, %v9162_v2  ;;  %v6564_v47 = vpop.eup %6563  ;;  %v3922_v21 = vadd.f32 %v6562_v24, %v6560_v42  ;;  %v3512_v9 = vmax.f32 %v3384_v23, %v3448_v40  ;;  %6573 = vpow2.f32 %v3817_v51 }
 0xb10   :  { %v3980_v22 = vpack.c.bf16 %v6562_v24, %v6564_v47  ;;  %v3919_v17 = vadd.f32 %v6564_v47, %v6558_v55  ;;  %v6566_v0 = vpop.eup %6565  ;;  %6575 = vpow2.f32 %v3819_v31 }
 0xb11   :  { %3662 = vmax.xlane.f32.xlu2 %v3661_v63  ;;  %v6568_v30 = vpop.eup %6567  ;;  %6577 = vrcp.f32 %v9084_v52 }
 0xb12   :  { %v9173_v56 = vpop.eup %6569  ;;  %v3928_v61 = vadd.f32 %v6568_v30, %v6566_v0 }
 0xb13   :  { %3914 = vadd.xlane.f32.xlu0 %v3913_v45  ;;  %v9175_v46 = vpop.eup %6571 }
 0xb14   :  { %3911 = vadd.xlane.f32.xlu1 %v3910_v57  ;;  %4062 = vmatmul.bf16.gmra.mxu2 %v3979_v19  ;;  %v9181_v57 = vadd.f32 %v3512_v9, %v10577_v14  ;;  %v3931_v49 = vadd.f32 %v9175_v46, %v9173_v56 }
 0xb15   :  { %4151 = vmatmul.bf16.gmra.mxu0 %v3980_v22  ;;  %v6574_v45 = vpop.eup %6573 }
 0xb16   :  { %v6576_v60 = vpop.eup %6575  ;;  %v3981_v1 = vpack.c.bf16 %v6566_v0, %v6574_v45 }
 0xb17   :  { %v4117_v42 = vpop.f32.mrf.mxu0  ;;  %v3982_v23 = vpack.c.bf16 %v6568_v30, %v6576_v60  ;;  %v6578_v37 = vpop.eup %6577 }
 0xb19   :  { %3896 = vadd.xlane.f32.xlu2 %v8945_v18  ;;  %v3670_v18 = vmax.f32 %v9178_v29, %v9181_v57 }
 0xb1b   :  { %3923 = vadd.xlane.f32.xlu0 %v3922_v21 }
 0xb1c   :  { %3920 = vadd.xlane.f32.xlu1 %v3919_v17  ;;  %v4028_v55 = vpop.f32.mrf.mxu2 }
 0xb1d   :  { %v4118_v63 = vadd.f32 %v4117_v42, %v4028_v55 }
 0xb1f   :  { %v4223_v43 = vmul.f32 %v6578_v37, %v4118_v63  ;;  %v4119_v13 = vpop.f32.mrf.mxu0 }
 0xb21   :  { %3671 = vmax.xlane.f32.xlu2 %v3670_v18  ;;  %v4257_v17 = vadd.f32 %v9060_v35, %v4223_v43 }
 0xb23   :  { %3932 = vadd.xlane.f32.xlu0 %v3931_v49  ;;  %v4289_v36 = vmax.f32 %v4257_v17, 0.0 }
 0xb24   :  { %3929 = vadd.xlane.f32.xlu1 %v3928_v61  ;;  %4067 = vmatmul.bf16.gmra.mxu2 %v3981_v1  ;;  %v4030_v47 = vpop.f32.mrf.mxu2 }
 0xb25   :  { %4156 = vmatmul.bf16.gmra.mxu0 %v3982_v23  ;;  %v4120_v3 = vadd.f32 %v4119_v13, %v4030_v47 }
 0xb29   :  { %3908 = vadd.xlane.f32.xlu2 %v3907_v54 }
 0xb2a   :  { %v3882_v24 = vpop.xlane.xlu2 %3881 }
 0xb2b   :  { %6579 = vrcp.f32 %v3882_v24  ;;  %v3651_v19 = vpop.xlane.xlu0 %3650  ;;  %v4122_v24 = vpop.f32.mrf.mxu0 }
 0xb2c   :  { %v3721_v52 = vsub.f32 %v8972_v28, %v3651_v19  ;;  %v3722_v40 = vsub.f32 %v8975_v11, %v3651_v19 }
 0xb2d   :  { %v4033_v20 = vpop.f32.mrf.mxu2 }
 0xb2e   :  { %v3833_v31 = vmul.f32 1.442695, %v3721_v52  ;;  %v3835_v21 = vmul.f32 1.442695, %v3722_v40 }
 0xb30   :  { %6581 = vpow2.f32 %v3833_v31 }
 0xb31   :  { %v6580_v22 = vpop.eup %6579  ;;  %6583 = vpow2.f32 %v3835_v21  ;;  %v3648_v30 = vpop.xlane.xlu1 %3647  ;;  %3917 = vadd.xlane.f32.xlu2 %v3916_v8 }
 0xb32   :  { %v4224_v51 = vmul.f32 %v6580_v22, %v4120_v3  ;;  %v3885_v25 = vpop.xlane.xlu2 %3884  ;;  %v3719_v28 = vsub.f32 %v8992_v58, %v3648_v30  ;;  %v3720_v11 = vsub.f32 %v8995_v5, %v3648_v30  ;;  %v3925_v5 = vadd.f32 %v6576_v60, %v6574_v45 }
 0xb33   :  { %v4124_v17 = vpop.f32.mrf.mxu0 }
 0xb34   :  { %v4258_v9 = vadd.f32 %v9060_v35, %v4224_v51  ;;  %v3829_v49 = vmul.f32 1.442695, %v3719_v28  ;;  %v3831_v42 = vmul.f32 1.442695, %v3720_v11  ;;  %v4123_v51 = vadd.f32 %v4122_v24, %v4033_v20 }
 0xb35   :  { %v4035_v40 = vpop.f32.mrf.mxu2 }
 0xb36   :  { %v4290_v0 = vmax.f32 %v4258_v9, 0.0  ;;  %v9198_v55 = vpop.eup %6581  ;;  %6585 = vpow2.f32 %v3829_v49  ;;  %v4125_v8 = vadd.f32 %v4124_v17, %v4035_v40 }
 0xb37   :  { %v9200_v1 = vpop.eup %6583  ;;  %6587 = vpow2.f32 %v3831_v42 }
 0xb38   :  { %v4319_v61 = vpack.c.bf16 %v4290_v0, %v4289_v36  ;;  %v3937_v58 = vadd.f32 %v9200_v1, %v9198_v55  ;;  %6589 = vrcp.f32 %v3885_v25 }
 0xb39   :  { %v3654_v47 = vpop.xlane.xlu1 %3653  ;;  %3926 = vadd.xlane.f32.xlu2 %v3925_v5 }
 0xb3a   :  { %4416 = vmatmul.bf16.gmra.mxu3 %v4319_v61  ;;  %v3657_v18 = vpop.xlane.xlu2 %3656  ;;  %3938 = vadd.xlane.f32.xlu1 %v3937_v58  ;;  %v3723_v54 = vsub.f32 %v9010_v39, %v3654_v47 }
 0xb3b   :  { %v3725_v23 = vsub.f32 %v9000_v27, %v3657_v18  ;;  %v3726_v15 = vsub.f32 %v9003_v48, %v3657_v18  ;;  %v3724_v27 = vsub.f32 %v9013_v62, %v3654_v47  ;;  %v4127_v18 = vpop.f32.mrf.mxu0 }
 0xb3c   :  { %v6586_v48 = vpop.eup %6585  ;;  %v3837_v43 = vmul.f32 1.442695, %v3723_v54 }
 0xb3d   :  { %v3841_v63 = vmul.f32 1.442695, %v3725_v23  ;;  %v3843_v37 = vmul.f32 1.442695, %v3726_v15  ;;  %v3839_v13 = vmul.f32 1.442695, %v3724_v27  ;;  %v6588_v19 = vpop.eup %6587  ;;  %v3983_v3 = vpack.c.bf16 %v6586_v48, %v9173_v56  ;;  %v4038_v11 = vpop.f32.mrf.mxu2 }
 0xb3e   :  { %v3984_v45 = vpack.c.bf16 %v6588_v19, %v9175_v46  ;;  %v3934_v60 = vadd.f32 %v6588_v19, %v6586_v48  ;;  %v6590_v52 = vpop.eup %6589 }
 0xb3f   :  { %6591 = vpow2.f32 %v3841_v63  ;;  %4072 = vmatmul.bf16.gmra.mxu2 %v3983_v3  ;;  %v4225_v25 = vmul.f32 %v6590_v52, %v4123_v51 }
 0xb40   :  { %6593 = vpow2.f32 %v3843_v37  ;;  %4161 = vmatmul.bf16.gmra.mxu0 %v3984_v45  ;;  %v4128_v37 = vadd.f32 %v4127_v18, %v4038_v11 }
 0xb41   :  { %6595 = vpow2.f32 %v3837_v43  ;;  %v3888_v22 = vpop.xlane.xlu1 %3887  ;;  %3935 = vadd.xlane.f32.xlu2 %v3934_v60  ;;  %v4259_v28 = vadd.f32 %v9060_v35, %v4225_v25 }
 0xb42   :  { %6597 = vpow2.f32 %v3839_v13  ;;  %v3891_v0 = vpop.xlane.xlu2 %3890 }
 0xb43   :  { %6599 = vrcp.f32 %v3888_v22  ;;  %v4291_v58 = vmax.f32 %v4259_v28, 0.0  ;;  %v4129_v43 = vpop.f32.mrf.mxu0 }
 0xb44   :  { %6601 = vrcp.f32 %v3891_v0 }
 0xb45   :  { %v6592_v39 = vpop.eup %6591  ;;  %v4040_v54 = vpop.f32.mrf.mxu2 }
 0xb46   :  { %v6594_v62 = vpop.eup %6593  ;;  %v4130_v13 = vadd.f32 %v4129_v43, %v4040_v54 }
 0xb47   :  { %v6596_v31 = vpop.eup %6595  ;;  %v3943_v56 = vadd.f32 %v6594_v62, %v6592_v39 }
 0xb48   :  { %v6598_v21 = vpop.eup %6597  ;;  %v3985_v20 = vpack.c.bf16 %v6596_v31, %v9198_v55 }
 0xb49   :  { %v3940_v9 = vadd.f32 %v6598_v21, %v6596_v31  ;;  %v6600_v46 = vpop.eup %6599  ;;  %v3660_v30 = vpop.xlane.xlu1 %3659  ;;  %3944 = vadd.xlane.f32.xlu2 %v3943_v56  ;;  %v3986_v63 = vpack.c.bf16 %v6598_v21, %v9200_v1 }
 0xb4a   :  { %v4226_v36 = vmul.f32 %v6600_v46, %v4125_v8  ;;  %v3727_v61 = vsub.f32 %v9036_v16, %v3660_v30  ;;  %v3728_v49 = vsub.f32 %v9039_v33, %v3660_v30  ;;  %v6602_v33 = vpop.eup %6601 }
 0xb4b   :  { %3941 = vadd.xlane.f32.xlu0 %v3940_v9  ;;  %v4227_v48 = vmul.f32 %v6602_v33, %v4128_v37  ;;  %v4132_v31 = vpop.f32.mrf.mxu0 }
 0xb4c   :  { %v4260_v42 = vadd.f32 %v9060_v35, %v4226_v36  ;;  %v3845_v23 = vmul.f32 1.442695, %v3727_v61  ;;  %v3847_v15 = vmul.f32 1.442695, %v3728_v49 }
 0xb4d   :  { %v4261_v1 = vadd.f32 %v9060_v35, %v4227_v48  ;;  %v4043_v51 = vpop.f32.mrf.mxu2 }
 0xb4e   :  { %v4292_v5 = vmax.f32 %v4260_v42, 0.0  ;;  %6603 = vpow2.f32 %v3845_v23 }
 0xb4f   :  { %6605 = vpow2.f32 %v3847_v15  ;;  %4077 = vmatmul.bf16.gmra.mxu2 %v3985_v20  ;;  %v4293_v52 = vmax.f32 %v4261_v1, 0.0  ;;  %v4133_v1 = vadd.f32 %v4132_v31, %v4043_v51 }
 0xb50   :  { %v4320_v24 = vpack.c.bf16 %v4292_v5, %v4291_v58  ;;  %4166 = vmatmul.bf16.gmra.mxu0 %v3986_v63 }
 0xb51   :  { %v3894_v16 = vpop.xlane.xlu1 %3893 }
 0xb52   :  { %4421 = vmatmul.bf16.gmra.mxu3 %v4320_v24  ;;  %6607 = vrcp.f32 %v3894_v16 }
 0xb53   :  { %v4134_v8 = vpop.f32.mrf.mxu0 }
 0xb54   :  { %v6604_v47 = vpop.eup %6603 }
 0xb55   :  { %v6606_v27 = vpop.eup %6605  ;;  %v3987_v60 = vpack.c.bf16 %v6604_v47, %v6592_v39  ;;  %v4045_v9 = vpop.f32.mrf.mxu2 }
 0xb56   :  { %v3946_v55 = vadd.f32 %v6606_v27, %v6604_v47  ;;  %v3988_v22 = vpack.c.bf16 %v6606_v27, %v6594_v62  ;;  %v4135_v54 = vadd.f32 %v4134_v8, %v4045_v9 }
 0xb58   :  { %v6608_v19 = vpop.eup %6607  ;;  %3947 = vadd.xlane.f32.xlu1 %v3946_v55 }
 0xb59   :  { %v4228_v3 = vmul.f32 %v6608_v19, %v4130_v13 }
 0xb5b   :  { %v4262_v45 = vadd.f32 %v9060_v35, %v4228_v3 }
 0xb5d   :  { %v4294_v40 = vmax.f32 %v4262_v45, 0.0 }
 0xb5f   :  { %4082 = vmatmul.bf16.gmra.mxu2 %v3987_v60  ;;  %v4321_v17 = vpack.c.bf16 %v4294_v40, %v4293_v52 }
 0xb60   :  { %4171 = vmatmul.bf16.gmra.mxu0 %v3988_v22 }
 0xb62   :  { %4426 = vmatmul.bf16.gmra.mxu3 %v4321_v17  ;;  %v9222_v30 = vpop.f32.mrf.mxu0 }
 0xb67   :  { %v9220_v39 = vpop.f32.mrf.mxu2 }
 0xb6a   :  { %v4139_v23 = vpop.f32.mrf.mxu0 }
 0xb6f   :  { %v3666_v21 = vpop.xlane.xlu1 %3665  ;;  %v4050_v42 = vpop.f32.mrf.mxu2 }
 0xb70   :  { %v3731_v25 = vsub.f32 %v9099_v32, %v3666_v21  ;;  %v3732_v56 = vsub.f32 %v9102_v50, %v3666_v21  ;;  %v9238_v48 = vpop.f32.mrf.mxu3 }
 0xb72   :  { %v3853_v46 = vmul.f32 1.442695, %v3731_v25  ;;  %v3855_v36 = vmul.f32 1.442695, %v3732_v56  ;;  %v9236_v33 = vpop.f32.mrf.mxu0 }
 0xb74   :  { %6609 = vpow2.f32 %v3853_v46 }
 0xb75   :  { %6611 = vpow2.f32 %v3855_v36 }
 0xb76   :  { %v3669_v62 = vpop.xlane.xlu0 %3668 }
 0xb77   :  { %v3733_v28 = vsub.f32 %v9121_v12, %v3669_v62  ;;  %v3734_v11 = vsub.f32 %v9124_v59, %v3669_v62  ;;  %v3900_v12 = vpop.xlane.xlu1 %3899  ;;  %v9234_v63 = vpop.f32.mrf.mxu2 }
 0xb78   :  { %v9245_v36 = vpop.f32.mrf.mxu3 }
 0xb79   :  { %v3857_v32 = vmul.f32 1.442695, %v3733_v28  ;;  %v3859_v49 = vmul.f32 1.442695, %v3734_v11 }
 0xb7a   :  { %v6610_v0 = vpop.eup %6609  ;;  %v4144_v45 = vpop.f32.mrf.mxu0 }
 0xb7b   :  { %v6612_v61 = vpop.eup %6611  ;;  %6613 = vpow2.f32 %v3857_v32 }
 0xb7c   :  { %v3952_v50 = vadd.f32 %v6612_v61, %v6610_v0  ;;  %6615 = vpow2.f32 %v3859_v49 }
 0xb7d   :  { %6617 = vrcp.f32 %v3900_v12 }
 0xb7e   :  { %3953 = vadd.xlane.f32.xlu2 %v3952_v50  ;;  %v3906_v60 = vpop.xlane.xlu0 %3905 }
 0xb7f   :  { %v3903_v13 = vpop.xlane.xlu1 %3902 }
 0xb81   :  { %v9226_v18 = vpop.eup %6613 }
 0xb82   :  { %v9228_v15 = vpop.eup %6615  ;;  %v4147_v11 = vpop.f32.mrf.mxu0 }
 0xb83   :  { %v3955_v20 = vadd.f32 %v9228_v15, %v9226_v18  ;;  %v6618_v47 = vpop.eup %6617 }
 0xb84   :  { %v3663_v58 = vpop.xlane.xlu2 %3662 }
 0xb85   :  { %3956 = vadd.xlane.f32.xlu1 %v3955_v20  ;;  %v3729_v59 = vsub.f32 %v9159_v53, %v3663_v58  ;;  %v3730_v5 = vsub.f32 %v9162_v2, %v3663_v58  ;;  %v4230_v53 = vmul.f32 %v6618_v47, %v4135_v54  ;;  %v4055_v2 = vpop.f32.mrf.mxu2  ;;  %v4143_v47 = vadd.f32 %v9236_v33, %v9234_v63 }
 0xb87   :  { %v3849_v24 = vmul.f32 1.442695, %v3729_v59  ;;  %v3851_v16 = vmul.f32 1.442695, %v3730_v5  ;;  %v4264_v17 = vadd.f32 %v9060_v35, %v4230_v53 }
 0xb89   :  { %6619 = vpow2.f32 %v3849_v24  ;;  %v4296_v8 = vmax.f32 %v4264_v17, 0.0 }
 0xb8a   :  { %6621 = vpow2.f32 %v3851_v16 }
 0xb8c   :  { %v3897_v37 = vpop.xlane.xlu2 %3896 }
 0xb8d   :  { %6623 = vrcp.f32 %v3897_v37  ;;  %v4058_v28 = vpop.f32.mrf.mxu2 }
 0xb8e   :  { %6625 = vrcp.f32 %v3903_v13 }
 0xb8f   :  { %v6620_v27 = vpop.eup %6619  ;;  %6627 = vrcp.f32 %v3906_v60  ;;  %v3915_v60 = vpop.xlane.xlu0 %3914 }
 0xb90   :  { %v6622_v43 = vpop.eup %6621  ;;  %v3989_v55 = vpack.c.bf16 %v6610_v0, %v6620_v27 }
 0xb91   :  { %v3990_v19 = vpack.c.bf16 %v6612_v61, %v6622_v43  ;;  %v3949_v3 = vadd.f32 %v6622_v43, %v6620_v27  ;;  %v4145_v27 = vadd.f32 %v4144_v45, %v4055_v2 }
 0xb92   :  { %4087 = vmatmul.bf16.gmra.mxu2 %v3989_v55 }
 0xb93   :  { %v6624_v52 = vpop.eup %6623  ;;  %4176 = vmatmul.bf16.gmra.mxu0 %v3990_v19  ;;  %3950 = vadd.xlane.f32.xlu0 %v3949_v3 }
 0xb94   :  { %v4229_v40 = vmul.f32 %v6624_v52, %v4133_v1  ;;  %v3672_v22 = vpop.xlane.xlu2 %3671  ;;  %v6626_v46 = vpop.eup %6625 }
 0xb95   :  { %v3735_v21 = vsub.f32 %v9178_v29, %v3672_v22  ;;  %v3736_v25 = vsub.f32 %v9181_v57, %v3672_v22  ;;  %v6628_v0 = vpop.eup %6627  ;;  %v4138_v29 = vadd.f32 %v9222_v30, %v9220_v39  ;;  %v4140_v57 = vadd.f32 %v4139_v23, %v4050_v42  ;;  %v3912_v39 = vpop.xlane.xlu1 %3911 }
 0xb96   :  { %4530 = vperm.xlu2 %6086, %v9238_v48   ;;  %v4263_v56 = vadd.f32 %v9060_v35, %v4229_v40  ;;  %v9254_v30 = vpop.f32.mrf.mxu3  ;;  %v4060_v42 = vpop.f32.mrf.mxu2 }
 0xb97   :  { %v3861_v9 = vmul.f32 1.442695, %v3735_v21  ;;  %v3863_v51 = vmul.f32 1.442695, %v3736_v25  ;;  %v4232_v61 = vmul.f32 %v6628_v0, %v4140_v57  ;;  %v4231_v32 = vmul.f32 %v6626_v46, %v4138_v29  ;;  %v4149_v23 = vpop.f32.mrf.mxu0 }
 0xb98   :  { %v4295_v31 = vmax.f32 %v4263_v56, 0.0  ;;  %v4150_v21 = vadd.f32 %v4149_v23, %v4060_v42  ;;  %v4148_v56 = vadd.f32 %v4147_v11, %v4058_v28 }
 0xb99   :  { %6629 = vpow2.f32 %v3861_v9  ;;  %v4265_v5 = vadd.f32 %v9060_v35, %v4231_v32  ;;  %v4266_v24 = vadd.f32 %v9060_v35, %v4232_v61 }
 0xb9a   :  { %6631 = vpow2.f32 %v3863_v51  ;;  %v4322_v62 = vpack.c.bf16 %v4296_v8, %v4295_v31 }
 0xb9b   :  { %v4297_v16 = vmax.f32 %v4265_v5, 0.0  ;;  %v4298_v37 = vmax.f32 %v4266_v24, 0.0 }
 0xb9c   :  { %4431 = vmatmul.bf16.gmra.mxu3 %v4322_v62  ;;  %v3909_v59 = vpop.xlane.xlu2 %3908  ;;  %v3924_v62 = vpop.xlane.xlu0 %3923 }
 0xb9d   :  { %6633 = vrcp.f32 %v3909_v59  ;;  %v3921_v57 = vpop.xlane.xlu1 %3920 }
 0xb9e   :  { %4535 = vperm.xlu1 %6085, %v9245_v36   ;;  %6635 = vrcp.f32 %v3912_v39  ;;  %v9258_v53 = vpop.f32.mrf.mxu3  ;;  %v4063_v55 = vpop.f32.mrf.mxu2 }
 0xb9f   :  { %v6630_v49 = vpop.eup %6629  ;;  %v4152_v19 = vpop.f32.mrf.mxu0 }
 0xba0   :  { %v6632_v50 = vpop.eup %6631  ;;  %v3991_v20 = vpack.c.bf16 %v6630_v49, %v9226_v18  ;;  %v4323_v18 = vpack.c.bf16 %v4298_v37, %v4297_v16 }
 0xba1   :  { %v3992_v12 = vpack.c.bf16 %v6632_v50, %v9228_v15  ;;  %v3958_v58 = vadd.f32 %v6632_v50, %v6630_v49  ;;  %v4153_v49 = vadd.f32 %v4152_v19, %v4063_v55 }
 0xba2   :  { %4092 = vmatmul.bf16.gmra.mxu2 %v3991_v20 }
 0xba3   :  { %4181 = vmatmul.bf16.gmra.mxu0 %v3992_v12  ;;  %3959 = vadd.xlane.f32.xlu0 %v3958_v58  ;;  %v6634_v15 = vpop.eup %6633 }
 0xba4   :  { %v6636_v54 = vpop.eup %6635  ;;  %v4233_v43 = vmul.f32 %v6634_v15, %v4143_v47  ;;  %v3918_v3 = vpop.xlane.xlu2 %3917 }
 0xba5   :  { %v4234_v13 = vmul.f32 %v6636_v54, %v4145_v27  ;;  %6637 = vrcp.f32 %v3918_v3  ;;  %v3930_v37 = vpop.xlane.xlu1 %3929 }
 0xba6   :  { %v4267_v1 = vadd.f32 %v9060_v35, %v4233_v43  ;;  %6639 = vrcp.f32 %v3915_v60  ;;  %v4065_v2 = vpop.f32.mrf.mxu2 }
 0xba7   :  { %v4268_v52 = vadd.f32 %v9060_v35, %v4234_v13  ;;  %v4154_v45 = vpop.f32.mrf.mxu0  ;;  %6641 = vrcp.f32 %v3924_v62 }
 0xba8   :  { %v4299_v40 = vmax.f32 %v4267_v1, 0.0  ;;  %6643 = vrcp.f32 %v3921_v57  ;;  %v4155_v28 = vadd.f32 %v4154_v45, %v4065_v2  ;;  %v9291_v57 = vld [vmem:[%s10206_s4 + $0x2] ss:$0 sm:$0xff] }
 0xba9   :  { %v4300_v33 = vmax.f32 %v4268_v52, 0.0 }
 0xbab   :  { %v4324_v22 = vpack.c.bf16 %v4300_v33, %v4299_v40  ;;  %v6638_v17 = vpop.eup %6637 }
 0xbac   :  { %4436 = vmatmul.bf16.gmra.mxu3 %v4323_v18  ;;  %v6640_v25 = vpop.eup %6639  ;;  %v4236_v9 = vmul.f32 %v6638_v17, %v4150_v21  ;;  %v3927_v39 = vpop.xlane.xlu2 %3926 }
 0xbad   :  { %v4235_v31 = vmul.f32 %v6640_v25, %v4148_v56  ;;  %v6642_v50 = vpop.eup %6641  ;;  %6645 = vrcp.f32 %v3927_v39 }
 0xbae   :  { %v4270_v8 = vadd.f32 %v9060_v35, %v4236_v9  ;;  %v4068_v46 = vpop.f32.mrf.mxu2  ;;  %v4238_v12 = vmul.f32 %v6642_v50, %v4155_v28  ;;  %v6644_v59 = vpop.eup %6643  ;;  %6647 = vrcp.f32 %v3930_v37 }
 0xbaf   :  { %v4157_v0 = vpop.f32.mrf.mxu0  ;;  %v4269_v29 = vadd.f32 %v9060_v35, %v4235_v31  ;;  %v4237_v5 = vmul.f32 %v6644_v59, %v4153_v49  ;;  %v3939_v50 = vpop.xlane.xlu1 %3938 }
 0xbb0   :  { %v4302_v61 = vmax.f32 %v4270_v8, 0.0  ;;  %v4272_v24 = vadd.f32 %v9060_v35, %v4238_v12  ;;  %v4158_v43 = vadd.f32 %v4157_v0, %v4068_v46 }
 0xbb1   :  { %v4301_v32 = vmax.f32 %v4269_v29, 0.0  ;;  %v4271_v42 = vadd.f32 %v9060_v35, %v4237_v5 }
 0xbb2   :  { %v4304_v15 = vmax.f32 %v4272_v24, 0.0 }
 0xbb3   :  { %v4325_v11 = vpack.c.bf16 %v4302_v61, %v4301_v32  ;;  %v4303_v47 = vmax.f32 %v4271_v42, 0.0  ;;  %v6646_v27 = vpop.eup %6645 }
 0xbb4   :  { %v4239_v19 = vmul.f32 %v6646_v27, %v4158_v43  ;;  %v6648_v3 = vpop.eup %6647  ;;  %v3936_v2 = vpop.xlane.xlu2 %3935 }
 0xbb5   :  { %v4326_v54 = vpack.c.bf16 %v4304_v15, %v4303_v47  ;;  %6649 = vrcp.f32 %v3936_v2 }
 0xbb6   :  { %v4070_v20 = vpop.f32.mrf.mxu2  ;;  %v4273_v40 = vadd.f32 %v9060_v35, %v4239_v19 }
 0xbb7   :  { %4540 = vperm.xlu0 %6084, %v9254_v30   ;;  %v4159_v58 = vpop.f32.mrf.mxu0 }
 0xbb8   :  { %v4160_v55 = vadd.f32 %v4159_v58, %v4070_v20  ;;  %v4305_v17 = vmax.f32 %v4273_v40, 0.0 }
 0xbba   :  { %v4240_v60 = vmul.f32 %v6648_v3, %v4160_v55 }
 0xbbb   :  { %v6650_v62 = vpop.eup %6649 }
 0xbbc   :  { %4441 = vmatmul.bf16.gmra.mxu3 %v4324_v22  ;;  %v4274_v33 = vadd.f32 %v9060_v35, %v4240_v60  ;;  %v3933_v22 = vpop.xlane.xlu0 %3932  ;;  %v3945_v27 = vpop.xlane.xlu2 %3944 }
 0xbbd   :  { %v9263_v63 = vpop.f32.mrf.mxu3  ;;  %6651 = vrcp.f32 %v3933_v22 }
 0xbbe   :  { %4550 = vperm.xlu2 %6086, %v9263_v63   ;;  %v4306_v21 = vmax.f32 %v4274_v33, 0.0 }
 0xbbf   :  { %4545 = vperm.xlu0 %6084, %v9258_v53   ;;  %v4162_v18 = vpop.f32.mrf.mxu0 }
 0xbc0   :  { %v4327_v31 = vpack.c.bf16 %v4306_v21, %v4305_v17 }
 0xbc2   :  { %v4073_v16 = vpop.f32.mrf.mxu2 }
 0xbc3   :  { %v4163_v8 = vadd.f32 %v4162_v18, %v4073_v16  ;;  %v6652_v0 = vpop.eup %6651 }
 0xbc4   :  { %v3942_v28 = vpop.xlane.xlu0 %3941 }
 0xbc5   :  { %v9267_v51 = vpop.f32.mrf.mxu3  ;;  %v4241_v29 = vmul.f32 %v6652_v0, %v4163_v8  ;;  %6653 = vrcp.f32 %v3942_v28 }
 0xbc6   :  { %4555 = vperm.xlu1 %6085, %v9267_v51   ;;  %6655 = vrcp.f32 %v3939_v50 }
 0xbc7   :  { %v4164_v52 = vpop.f32.mrf.mxu0 }
 0xbca   :  { %v4075_v1 = vpop.f32.mrf.mxu2 }
 0xbcb   :  { %v4165_v56 = vadd.f32 %v4164_v52, %v4075_v1  ;;  %v6654_v24 = vpop.eup %6653  ;;  %v3948_v47 = vpop.xlane.xlu1 %3947 }
 0xbcc   :  { %4446 = vmatmul.bf16.gmra.mxu3 %v4325_v11  ;;  %v4275_v11 = vadd.f32 %v9291_v57, %v4241_v29  ;;  %v6656_v37 = vpop.eup %6655  ;;  %6657 = vrcp.f32 %v3948_v47 }
 0xbcd   :  { %v4242_v35 = vmul.f32 %v6650_v62, %v4165_v56  ;;  %6659 = vrcp.f32 %v3945_v27 }
 0xbce   :  { %v4307_v12 = vmax.f32 %v4275_v11, 0.0 }
 0xbcf   :  { %v4167_v9 = vpop.f32.mrf.mxu0  ;;  %v4276_v61 = vadd.f32 %v9291_v57, %v4242_v35 }
 0xbd1   :  { %v4308_v20 = vmax.f32 %v4276_v61, 0.0 }
 0xbd2   :  { %v4078_v25 = vpop.f32.mrf.mxu2  ;;  %v6658_v40 = vpop.eup %6657 }
 0xbd3   :  { %v4328_v59 = vpack.c.bf16 %v4308_v20, %v4307_v12  ;;  %v4168_v5 = vadd.f32 %v4167_v9, %v4078_v25  ;;  %v6660_v2 = vpop.eup %6659 }
 0xbd5   :  { %v9274_v23 = vpop.f32.mrf.mxu3  ;;  %v4243_v18 = vmul.f32 %v6656_v37, %v4168_v5 }
 0xbd6   :  { %4560 = vperm.xlu0 %6084, %v9274_v23  }
 0xbd7   :  { %v4169_v49 = vpop.f32.mrf.mxu0 }
 0xbda   :  { %v4080_v32 = vpop.f32.mrf.mxu2 }
 0xbdb   :  { %v4170_v58 = vadd.f32 %v4169_v49, %v4080_v32 }
 0xbdc   :  { %4451 = vmatmul.bf16.gmra.mxu3 %v4326_v54  ;;  %v4277_v54 = vadd.f32 %v9291_v57, %v4243_v18 }
 0xbdd   :  { %v9277_v13 = vpop.f32.mrf.mxu3  ;;  %v4244_v42 = vmul.f32 %v6654_v24, %v4170_v58 }
 0xbde   :  { %4565 = vperm.xlu2 %6086, %v9277_v13   ;;  %v4309_v19 = vmax.f32 %v4277_v54, 0.0 }
 0xbdf   :  { %v4172_v16 = vpop.f32.mrf.mxu0  ;;  %v4278_v15 = vadd.f32 %v9291_v57, %v4244_v42 }
 0xbe1   :  { %v4310_v43 = vmax.f32 %v4278_v15, 0.0 }
 0xbe2   :  { %v4083_v39 = vpop.f32.mrf.mxu2 }
 0xbe3   :  { %v4329_v60 = vpack.c.bf16 %v4310_v43, %v4309_v19  ;;  %v4173_v52 = vadd.f32 %v4172_v16, %v4083_v39 }
 0xbe5   :  { %v9282_v45 = vpop.f32.mrf.mxu3  ;;  %v4245_v22 = vmul.f32 %v6660_v2, %v4173_v52 }
 0xbe6   :  { %4570 = vperm.xlu2 %6086, %v9282_v45  }
 0xbe7   :  { %v4174_v3 = vpop.f32.mrf.mxu0  ;;  %v4279_v25 = vadd.f32 %v9291_v57, %v4245_v22 }
 0xbe9   :  { %v4311_v62 = vmax.f32 %v4279_v25, 0.0 }
 0xbea   :  { %v4085_v55 = vpop.f32.mrf.mxu2 }
 0xbeb   :  { %v4175_v1 = vadd.f32 %v4174_v3, %v4085_v55 }
 0xbec   :  { %4456 = vmatmul.bf16.gmra.mxu3 %v4327_v31 }
 0xbed   :  { %v9285_v46 = vpop.f32.mrf.mxu3  ;;  %v4246_v33 = vmul.f32 %v6658_v40, %v4175_v1 }
 0xbee   :  { %4575 = vperm.xlu2 %6086, %v9285_v46  }
 0xbef   :  { %v4280_v21 = vadd.f32 %v9291_v57, %v4246_v33 }
 0xbf1   :  { %v3954_v56 = vpop.xlane.xlu2 %3953  ;;  %v4312_v8 = vmax.f32 %v4280_v21, 0.0 }
 0xbf2   :  { %6661 = vrcp.f32 %v3954_v56 }
 0xbf3   :  { %v4330_v0 = vpack.c.bf16 %v4312_v8, %v4311_v62 }
 0xbf8   :  { %v6662_v32 = vpop.eup %6661  ;;  %v3957_v5 = vpop.xlane.xlu1 %3956 }
 0xbfc   :  { %4461 = vmatmul.bf16.gmra.mxu3 %v4328_v59 }
 0xc06   :  { %v3951_v31 = vpop.xlane.xlu0 %3950 }
 0xc07   :  { %6663 = vrcp.f32 %v3951_v31 }
 0xc08   :  { %6665 = vrcp.f32 %v3957_v5 }
 0xc0c   :  { %4466 = vmatmul.bf16.gmra.mxu3 %v4329_v60 }
 0xc0d   :  { %v6664_v11 = vpop.eup %6663 }
 0xc0e   :  { %v6666_v27 = vpop.eup %6665 }
 0xc10   :  { %v4177_v17 = vpop.f32.mrf.mxu0 }
 0xc15   :  { %v4088_v9 = vpop.f32.mrf.mxu2 }
 0xc16   :  { %v4178_v29 = vadd.f32 %v4177_v17, %v4088_v9  ;;  %v3960_v39 = vpop.xlane.xlu0 %3959 }
 0xc17   :  { %6667 = vrcp.f32 %v3960_v39 }
 0xc18   :  { %v4179_v35 = vpop.f32.mrf.mxu0  ;;  %v4247_v50 = vmul.f32 %v6664_v11, %v4178_v29 }
 0xc1a   :  { %v4281_v59 = vadd.f32 %v9291_v57, %v4247_v50 }
 0xc1c   :  { %4471 = vmatmul.bf16.gmra.mxu3 %v4330_v0  ;;  %v4313_v37 = vmax.f32 %v4281_v59, 0.0  ;;  %v4487_v0 = vld [vmem:[%s10205_s3 + $0x3] sm:$0x1] }
 0xc1d   :  { %v4090_v61 = vpop.f32.mrf.mxu2  ;;  %v6668_v55 = vpop.eup %6667 }
 0xc1e   :  { %v4180_v28 = vadd.f32 %v4179_v35, %v4090_v61 }
 0xc1f   :  { %v9299_v49 = vpop.f32.mrf.mxu3 }
 0xc20   :  { %v4248_v20 = vmul.f32 %v6662_v32, %v4180_v28  ;;  %4580 = vperm.xlu0 %6084, %v9299_v49   ;;  %v4182_v58 = vpop.f32.mrf.mxu0 }
 0xc22   :  { %v4282_v12 = vadd.f32 %v9291_v57, %v4248_v20 }
 0xc24   :  { %v4314_v42 = vmax.f32 %v4282_v12, 0.0 }
 0xc25   :  { %v4093_v24 = vpop.f32.mrf.mxu2 }
 0xc26   :  { %v4331_v18 = vpack.c.bf16 %v4314_v42, %v4313_v37  ;;  %v4183_v15 = vadd.f32 %v4182_v58, %v4093_v24 }
 0xc27   :  { %v9304_v16 = vpop.f32.mrf.mxu3 }
 0xc28   :  { %4585 = vperm.xlu1 %6085, %v9304_v16   ;;  %v4184_v47 = vpop.f32.mrf.mxu0  ;;  %v4249_v3 = vmul.f32 %v6666_v27, %v4183_v15  ;;  %v5366_v27 = vpack.c.bf16 %v9285_v46, %v9282_v45 }
 0xc2a   :  { %v4283_v52 = vadd.f32 %v9291_v57, %v4249_v3 }
 0xc2c   :  { %4476 = vmatmul.bf16.gmra.mxu3 %v4331_v18  ;;  %v4315_v2 = vmax.f32 %v4283_v52, 0.0 }
 0xc2d   :  { %v4095_v54 = vpop.f32.mrf.mxu2 }
 0xc2e   :  { %v4185_v43 = vadd.f32 %v4184_v47, %v4095_v54  ;;  %v5367_v54 = vpack.c.bf16 %v9304_v16, %v9299_v49 }
 0xc2f   :  { %v9307_v19 = vpop.f32.mrf.mxu3 }
 0xc30   :  { %v4250_v1 = vmul.f32 %v6668_v55, %v4185_v43  ;;  %4590 = vperm.xlu2 %6086, %v9307_v19   ;;  %v5365_v43 = vpack.c.bf16 %v9277_v13, %v9274_v23  ;;  %v5364_v55 = vpack.c.bf16 %v9267_v51, %v9263_v63 }
 0xc32   :  { %v4284_v60 = vadd.f32 %v9291_v57, %v4250_v1  ;;  %v4541_v1 = vpop.permute.xlu0 %4540 }
 0xc34   :  { %v4316_v40 = vmax.f32 %v4284_v60, 0.0 }
 0xc36   :  { %v4332_v22 = vpack.c.bf16 %v4316_v40, %v4315_v2 }
 0xc37   :  { %v9312_v33 = vpop.f32.mrf.mxu3 }
 0xc38   :  { %4595 = vperm.xlu1 %6085, %v9312_v33   ;;  %v5368_v47 = vpack.c.bf16 %v9312_v33, %v9307_v19 }
 0xc3c   :  { %4481 = vmatmul.bf16.gmra.mxu3 %v4332_v22 }
 0xc3f   :  { %v9315_v17 = vpop.f32.mrf.mxu3 }
 0xc40   :  { %4600 = vperm.xlu0 %6084, %v9315_v17  }
 0xc47   :  { %v9318_v21 = vpop.f32.mrf.mxu3 }
 0xc48   :  { %v5369_v25 = vpack.c.bf16 %v9318_v21, %v9315_v17  ;;  %4605 = vperm.xlu1 %6085, %v9318_v21   ;;  %4488 = vmatpush.xpose.msra.mxu3 %v9318_v21 }
 0xc4c   :  { %4489 = vmatpush.xpose.msra.mxu3 %v9315_v17 }
 0xc4f   :  { %v9325_v57 = vpop.f32.mrf.mxu3 }
 0xc50   :  { %4490 = vmatpush.xpose.msra.mxu3 %v9312_v33  ;;  %4610 = vperm.xlu2 %6086, %v9325_v57  }
 0xc54   :  { %4491 = vmatpush.xpose.msra.mxu3 %v9307_v19  ;;  %v5363_v19 = vpack.c.bf16 %v9258_v53, %v9254_v30 }
 0xc57   :  { %v9330_v56 = vpop.f32.mrf.mxu3 }
 0xc58   :  { %4492 = vmatpush.xpose.msra.mxu3 %v9304_v16  ;;  %4615 = vperm.xlu1 %6085, %v9330_v56   ;;  %v5370_v15 = vpack.c.bf16 %v9330_v56, %v9325_v57  ;;  %v4531_v16 = vpop.permute.xlu2 %4530 }
 0xc5c   :  { %4493 = vmatpush.xpose.msra.mxu3 %v9299_v49  ;;  %v5362_v49 = vpack.c.bf16 %v9245_v36, %v9238_v48 }
 0xc5f   :  { %v4452_v9 = vpop.f32.mrf.mxu3 }
 0xc60   :  { %4494 = vmatpush.xpose.msra.mxu3 %v9285_v46  ;;  %4620 = vperm.xlu0 %6084, %v4452_v9   ;;  %v4551_v46 = vpop.permute.xlu2 %4550 }
 0xc64   :  { %4495 = vmatpush.xpose.msra.mxu3 %v9282_v45 }
 0xc67   :  { %v4454_v31 = vpop.f32.mrf.mxu3 }
 0xc68   :  { %4496 = vmatpush.xpose.msra.mxu3 %v9277_v13  ;;  %4625 = vperm.xlu0 %6084, %v4454_v31   ;;  %v5371_v18 = vpack.c.bf16 %v4454_v31, %v4452_v9  ;;  %v4536_v13 = vpop.permute.xlu1 %4535 }
 0xc6c   :  { %4497 = vmatpush.xpose.msra.mxu3 %v9274_v23 }
 0xc6f   :  { %v4457_v8 = vpop.f32.mrf.mxu3 }
 0xc70   :  { %4498 = vmatpush.xpose.msra.mxu3 %v9267_v51  ;;  %4630 = vperm.xlu2 %6086, %v4457_v8  }
 0xc74   :  { %4499 = vmatpush.xpose.msra.mxu3 %v9263_v63 }
 0xc77   :  { %v4459_v62 = vpop.f32.mrf.mxu3 }
 0xc78   :  { %4500 = vmatpush.xpose.msra.mxu3 %v9258_v53  ;;  %4635 = vperm.xlu1 %6085, %v4459_v62   ;;  %v5372_v37 = vpack.c.bf16 %v4459_v62, %v4457_v8 }
 0xc7c   :  { %4501 = vmatpush.xpose.msra.mxu3 %v9254_v30 }
 0xc7f   :  { %v4462_v35 = vpop.f32.mrf.mxu3 }
 0xc80   :  { %4502 = vmatpush.xpose.msra.mxu3 %v9245_v36  ;;  %4640 = vperm.xlu0 %6084, %v4462_v35   ;;  %v4566_v36 = vpop.permute.xlu2 %4565 }
 0xc84   :  { %4503 = vmatpush.xpose.msra.mxu3 %v9238_v48 }
 0xc87   :  { %v4464_v29 = vpop.f32.mrf.mxu3  ;;  %4504 = vmatmul.f32.vlgmr.msra.gmra.mxu3 %v4487_v0 }
 0xc88   :  { %4645 = vperm.xlu0 %6084, %v4464_v29   ;;  %v5373_v42 = vpack.c.bf16 %v4464_v29, %v4462_v35 }
 0xc8f   :  { %v9348_v61 = vpop.f32.mrf.mxu3 }
 0xc97   :  { %v9350_v32 = vpop.f32.mrf.mxu3 }
 0xc98   :  { %v5374_v39 = vpack.c.bf16 %v9350_v32, %v9348_v61 }
 0xc9f   :  { %v9352_v28 = vpop.f32.mrf.mxu3 }
 0xca7   :  { %v9354_v11 = vpop.f32.mrf.mxu3 }
 0xca8   :  { %v5375_v24 = vpack.c.bf16 %v9354_v11, %v9352_v28 }
 0xcaf   :  { %v9356_v50 = vpop.f32.mrf.mxu3 }
 0xcb7   :  { %v9358_v20 = vpop.f32.mrf.mxu3 }
 0xcb8   :  { %v5376_v5 = vpack.c.bf16 %v9358_v20, %v9356_v50 }
 0xcbf   :  { %v9360_v12 = vpop.f32.mrf.mxu3 }
 0xcc7   :  { %v9362_v58 = vpop.f32.mrf.mxu3 }
 0xcc8   :  { %v5377_v59 = vpack.c.bf16 %v9362_v58, %v9360_v12  ;;  %4508 = vmatpush.xpose.msrb.mxu1 %v9362_v58 }
 0xcca   :  { %5467 = vmatpush.bf16.msra.mxu2 %v5377_v59 }
 0xccc   :  { %4509 = vmatpush.xpose.msrb.mxu1 %v9360_v12 }
 0xcce   :  { %5468 = vmatpush.bf16.msra.mxu2 %v5376_v5  ;;  %v4546_v5 = vpop.permute.xlu0 %4545 }
 0xcd0   :  { %4510 = vmatpush.xpose.msrb.mxu1 %v9358_v20 }
 0xcd2   :  { %5469 = vmatpush.bf16.msra.mxu2 %v5375_v24 }
 0xcd4   :  { %4511 = vmatpush.xpose.msrb.mxu1 %v9356_v50 }
 0xcd6   :  { %5470 = vmatpush.bf16.msra.mxu2 %v5374_v39  ;;  %v10580_v39 = vld [vmem:[#allocation11_spill] sm:$0xff] }
 0xcd8   :  { %4512 = vmatpush.xpose.msrb.mxu1 %v9354_v11 }
 0xcda   :  { %5471 = vmatpush.bf16.msra.mxu2 %v5373_v42 }
 0xcdc   :  { %4513 = vmatpush.xpose.msrb.mxu1 %v9352_v28 }
 0xcde   :  { %5472 = vmatpush.bf16.msra.mxu2 %v5372_v37 }
 0xce0   :  { %4514 = vmatpush.xpose.msrb.mxu1 %v9350_v32 }
 0xce2   :  { %5473 = vmatpush.bf16.msra.mxu2 %v5371_v18  ;;  %v10581_v18 = vld [vmem:[#allocation12_spill] sm:$0xff] }
 0xce4   :  { %4515 = vmatpush.xpose.msrb.mxu1 %v9348_v61 }
 0xce6   :  { %5474 = vmatpush.bf16.msra.mxu2 %v5370_v15 }
 0xce8   :  { %4516 = vmatpush.xpose.msrb.mxu1 %v4464_v29  ;;  %v10579_v29 = vld [vmem:[#allocation10_spill] sm:$0xff] }
 0xcec   :  { %4517 = vmatpush.xpose.msrb.mxu1 %v4462_v35  ;;  %v10578_v35 = vld [vmem:[#allocation9_spill] sm:$0xff] }
 0xcf0   :  { %4518 = vmatpush.xpose.msrb.mxu1 %v4459_v62 }
 0xcf4   :  { %4519 = vmatpush.xpose.msrb.mxu1 %v4457_v8 }
 0xcf8   :  { %4520 = vmatpush.xpose.msrb.mxu1 %v4454_v31 }
 0xcfc   :  { %4521 = vmatpush.xpose.msrb.mxu1 %v4452_v9 }
 0xd00   :  { %4522 = vmatpush.xpose.msrb.mxu1 %v9330_v56 }
 0xd04   :  { %4523 = vmatpush.xpose.msrb.mxu1 %v9325_v57 }
 0xd07   :  { %4524 = vmatmul.f32.vlgmr.msrb.gmra.mxu1 %v4487_v0 }
 0xd08   :  { %5378 = vmatpush.bf16.msra.mxu1 %v5369_v25  ;;  %v4556_v25 = vpop.permute.xlu1 %4555 }
 0xd0a   :  { %v4505_v3 = vpop.f32.mrf.mxu3 }
 0xd0b   :  { %v9401_v45 = vperm.slane %v4505_v3, 0 }
 0xd0c   :  { %5379 = vmatpush.bf16.msra.mxu1 %v5368_v47 }
 0xd0d   :  { %v4694_v60 = vadd.f32 %v9401_v45, %v4541_v1  ;;  %v4692_v51 = vadd.f32 %v9401_v45, %v4536_v13  ;;  %v4690_v22 = vadd.f32 %v9401_v45, %v4531_v16  ;;  %v4698_v8 = vadd.f32 %v9401_v45, %v4551_v46 }
 0xd0e   :  { %v4700_v62 = vadd.f32 %v9401_v45, %v4556_v25 }
 0xd0f   :  { %v4758_v30 = vmul.f32 0.2, %v4694_v60  ;;  %v4756_v52 = vmul.f32 0.2, %v4692_v51  ;;  %v4754_v24 = vmul.f32 0.2, %v4690_v22 }
 0xd10   :  { %5380 = vmatpush.bf16.msra.mxu1 %v5367_v54  ;;  %v4571_v54 = vpop.permute.xlu2 %4570  ;;  %v4764_v3 = vmul.f32 0.2, %v4700_v62 }
 0xd11   :  { %v4822_v40 = vmax.f32 %v4694_v60, %v4758_v30  ;;  %v4820_v17 = vmax.f32 %v4692_v51, %v4756_v52 }
 0xd13   :  { %v9416_v0 = vadd.f32 %v4822_v40, %v10578_v35  ;;  %v9422_v42 = vadd.f32 %v4820_v17, %v10580_v39  ;;  %v4561_v40 = vpop.permute.xlu0 %4560  ;;  %v10582_v17 = vld [vmem:[#allocation13_spill] sm:$0xff] }
 0xd14   :  { %5381 = vmatpush.bf16.msra.mxu1 %v5366_v27 }
 0xd18   :  { %5382 = vmatpush.bf16.msra.mxu1 %v5365_v43  ;;  %v4576_v39 = vpop.permute.xlu2 %4575 }
 0xd1c   :  { %5383 = vmatpush.bf16.msra.mxu1 %v5364_v55 }
 0xd20   :  { %5384 = vmatpush.bf16.msra.mxu1 %v5363_v19 }
 0xd24   :  { %5385 = vmatpush.bf16.msra.mxu1 %v5362_v49  ;;  %v4696_v49 = vadd.f32 %v9401_v45, %v4546_v5 }
 0xd26   :  { %v4760_v52 = vmul.f32 0.2, %v4696_v49 }
 0xd84   :  { %v4525_v23 = vpop.f32.mrf.mxu1 }
 0xd85   :  { %v9404_v63 = vperm.slane %v4525_v23, 0 }
 0xd87   :  { %v4693_v53 = vadd.f32 %v9404_v63, %v4536_v13  ;;  %v4695_v48 = vadd.f32 %v9404_v63, %v4541_v1  ;;  %v4691_v21 = vadd.f32 %v9404_v63, %v4531_v16  ;;  %v4699_v56 = vadd.f32 %v9404_v63, %v4551_v46 }
 0xd88   :  { %v4701_v9 = vadd.f32 %v9404_v63, %v4556_v25  ;;  %v4697_v27 = vadd.f32 %v9404_v63, %v4546_v5  ;;  %v4762_v16 = vmul.f32 0.2, %v4698_v8  ;;  %v4818_v46 = vmax.f32 %v4690_v22, %v4754_v24  ;;  %v10583_v22 = vld [vmem:[#allocation14_spill] sm:$0xff]  ;;  %v10585_v5 = vld [vmem:[#allocation25_spill] sm:$0xff] }
 0xd89   :  { %v4759_v33 = vmul.f32 0.2, %v4695_v48  ;;  %v4757_v2 = vmul.f32 0.2, %v4693_v53  ;;  %v4755_v37 = vmul.f32 0.2, %v4691_v21  ;;  %v4705_v23 = vadd.f32 %v9404_v63, %v4566_v36 }
 0xd8a   :  { %v4763_v43 = vmul.f32 0.2, %v4699_v56  ;;  %v4765_v55 = vmul.f32 0.2, %v4701_v9  ;;  %v4707_v13 = vadd.f32 %v9404_v63, %v4571_v54  ;;  %v4761_v60 = vmul.f32 0.2, %v4697_v27 }
 0xd8b   :  { %v4823_v57 = vmax.f32 %v4695_v48, %v4759_v33  ;;  %v4821_v31 = vmax.f32 %v4693_v53, %v4757_v2  ;;  %v4819_v1 = vmax.f32 %v4691_v21, %v4755_v37  ;;  %v4704_v53 = vadd.f32 %v9401_v45, %v4566_v36 }
 0xd8c   :  { %v4827_v51 = vmax.f32 %v4699_v56, %v4763_v43  ;;  %v4829_v30 = vmax.f32 %v4701_v9, %v4765_v55  ;;  %v4706_v48 = vadd.f32 %v9401_v45, %v4571_v54  ;;  %v4826_v33 = vmax.f32 %v4698_v8, %v4762_v16  ;;  %v10584_v9 = vld [vmem:[#allocation15_spill] sm:$0xff]  ;;  %v10587_v43 = vld [vmem:[#allocation26_spill] sm:$0xff] }
 0xd8d   :  { %v9419_v59 = vadd.f32 %v4823_v57, %v10579_v29  ;;  %v9425_v15 = vadd.f32 %v4821_v31, %v10581_v18  ;;  %v4828_v2 = vmax.f32 %v4700_v62, %v4764_v3  ;;  %v9438_v25 = vadd.f32 %v4818_v46, %v10582_v17  ;;  %v10588_v46 = vld [vmem:[#allocation17_spill] sm:$0xff]  ;;  %v10590_v17 = vld [vmem:[#allocation19_spill] sm:$0xff] }
 0xd8e   :  { %v9441_v21 = vadd.f32 %v4819_v1, %v10583_v22  ;;  %v4703_v57 = vadd.f32 %v9404_v63, %v4561_v40  ;;  %v4769_v31 = vmul.f32 0.2, %v4705_v23  ;;  %v4771_v35 = vmul.f32 0.2, %v4707_v13 }
 0xd8f   :  { %v4952_v47 = vmax.f32 %v9416_v0, %v9419_v59  ;;  %v4949_v19 = vmax.f32 %v9422_v42, %v9425_v15  ;;  %v4825_v56 = vmax.f32 %v4697_v27, %v4761_v60  ;;  %v9447_v29 = vadd.f32 %v4827_v51, %v10584_v9 }
 0xd90   :  { %v4946_v36 = vmax.f32 %v9438_v25, %v9441_v21  ;;  %v9450_v8 = vadd.f32 %v4829_v30, %v10585_v5  ;;  %v4702_v62 = vadd.f32 %v9401_v45, %v4561_v40  ;;  %v4768_v24 = vmul.f32 0.2, %v4704_v53 }
 0xd91   :  { %4953 = vmax.xlane.f32.xlu2 %v4952_v47  ;;  %4950 = vmax.xlane.f32.xlu0 %v4949_v19  ;;  %v4770_v37 = vmul.f32 0.2, %v4706_v48  ;;  %v4824_v18 = vmax.f32 %v4696_v49, %v4760_v52  ;;  %v10586_v47 = vld [vmem:[#allocation16_spill] sm:$0xff]  ;;  %v9457_v27 = vadd.f32 %v4828_v2, %v10587_v43  ;;  %v4709_v55 = vadd.f32 %v9404_v63, %v4576_v39 }
 0xd92   :  { %v9454_v54 = vadd.f32 %v4826_v33, %v10586_v47  ;;  %4947 = vmax.xlane.f32.xlu1 %v4946_v36  ;;  %v4767_v19 = vmul.f32 0.2, %v4703_v57  ;;  %v4833_v16 = vmax.f32 %v4705_v23, %v4769_v31  ;;  %v4835_v3 = vmax.f32 %v4707_v13, %v4771_v35  ;;  %v10589_v33 = vld [vmem:[#allocation18_spill] sm:$0xff]  ;;  %v10591_v31 = vld [vmem:[#allocation27_spill] sm:$0xff]  ;;  %v4586_v36 = vpop.permute.xlu1 %4585 }
 0xd93   :  { %v9461_v1 = vadd.f32 %v4825_v56, %v10588_v46  ;;  %v4961_v60 = vmax.f32 %v9457_v27, %v9450_v8  ;;  %v4708_v51 = vadd.f32 %v9401_v45, %v4576_v39  ;;  %v4766_v30 = vmul.f32 0.2, %v4702_v62 }
 0xd94   :  { %v4958_v49 = vmax.f32 %v9454_v54, %v9447_v29  ;;  %v4832_v52 = vmax.f32 %v4704_v53, %v4768_v24  ;;  %v4834_v40 = vmax.f32 %v4706_v48, %v4770_v37  ;;  %v9469_v2 = vadd.f32 %v4824_v18, %v10589_v33  ;;  %v10592_v48 = vld [vmem:[#allocation20_spill] sm:$0xff]  ;;  %v10594_v18 = vld [vmem:[#allocation21_spill] sm:$0xff] }
 0xd95   :  { %v4773_v23 = vmul.f32 0.2, %v4709_v55  ;;  %v4831_v13 = vmax.f32 %v4703_v57, %v4767_v19  ;;  %v9472_v22 = vadd.f32 %v4833_v16, %v10590_v17  ;;  %v9475_v35 = vadd.f32 %v4835_v3, %v10591_v31  ;;  %v10593_v24 = vld [vmem:[#allocation28_spill] sm:$0xff]  ;;  %v10595_v3 = vld [vmem:[#allocation22_spill] sm:$0xff]  ;;  %v10598_v17 = vld [vmem:[#allocation29_spill] sm:$0xff] }
 0xd96   :  { %v4955_v56 = vmax.f32 %v9469_v2, %v9461_v1  ;;  %v4772_v9 = vmul.f32 0.2, %v4708_v51  ;;  %v4830_v53 = vmax.f32 %v4702_v62, %v4766_v30  ;;  %v9480_v5 = vadd.f32 %v4832_v52, %v10592_v48  ;;  %v4591_v48 = vpop.permute.xlu2 %4590 }
 0xd97   :  { %v9483_v39 = vadd.f32 %v4834_v40, %v10593_v24  ;;  %v4713_v57 = vadd.f32 %v9404_v63, %v4586_v36  ;;  %v4837_v37 = vmax.f32 %v4709_v55, %v4773_v23  ;;  %v9487_v47 = vadd.f32 %v4831_v13, %v10594_v18  ;;  %v10597_v40 = vld [vmem:[#allocation24_spill] sm:$0xff] }
 0xd98   :  { %v4967_v43 = vmax.f32 %v9480_v5, %v9472_v22  ;;  %v4712_v62 = vadd.f32 %v9401_v45, %v4586_v36  ;;  %v4836_v16 = vmax.f32 %v4708_v51, %v4772_v9  ;;  %v9495_v46 = vadd.f32 %v4830_v53, %v10595_v3  ;;  %v4581_v53 = vpop.permute.xlu0 %4580 }
 0xd99   :  { %4962 = vmax.xlane.f32.xlu0 %v4961_v60  ;;  %4959 = vmax.xlane.f32.xlu2 %v4958_v49  ;;  %v4970_v19 = vmax.f32 %v9483_v39, %v9475_v35  ;;  %v4777_v60 = vmul.f32 0.2, %v4713_v57  ;;  %v10596_v49 = vld [vmem:[#allocation23_spill] sm:$0xff] }
 0xd9a   :  { %4956 = vmax.xlane.f32.xlu1 %v4955_v56  ;;  %v9498_v55 = vadd.f32 %v4837_v37, %v10596_v49  ;;  %v4964_v30 = vmax.f32 %v9495_v46, %v9487_v47  ;;  %v4776_v52 = vmul.f32 0.2, %v4712_v62  ;;  %v9503_v33 = vadd.f32 %v4836_v16, %v10597_v40  ;;  %v10599_v56 = vld [vmem:[#allocation30_spill] sm:$0xff]  ;;  %v4596_v18 = vpop.permute.xlu1 %4595 }
 0xd9b   :  { %v4841_v23 = vmax.f32 %v4713_v57, %v4777_v60  ;;  %v4715_v57 = vadd.f32 %v9404_v63, %v4591_v48  ;;  %v4711_v37 = vadd.f32 %v9404_v63, %v4581_v53  ;;  %v4717_v49 = vadd.f32 %v9404_v63, %v4596_v18 }
 0xd9c   :  { %v4973_v51 = vmax.f32 %v9503_v33, %v9498_v55  ;;  %v4840_v13 = vmax.f32 %v4712_v62, %v4776_v52 }
 0xd9d   :  { %v9508_v31 = vadd.f32 %v4841_v23, %v10598_v17  ;;  %v4779_v62 = vmul.f32 0.2, %v4715_v57  ;;  %v4781_v14 = vmul.f32 0.2, %v4717_v49 }
 0xd9e   :  { %v9511_v36 = vadd.f32 %v4840_v13, %v10599_v56 }
 0xd9f   :  { %v4843_v60 = vmax.f32 %v4715_v57, %v4779_v62  ;;  %v10602_v57 = vld [vmem:[#allocation31_spill] sm:$0xff] }
 0xda0   :  { %v4979_v9 = vmax.f32 %v9511_v36, %v9508_v31  ;;  %v4601_v24 = vpop.permute.xlu0 %4600 }
 0xda1   :  { %4968 = vmax.xlane.f32.xlu2 %v4967_v43  ;;  %4971 = vmax.xlane.f32.xlu0 %v4970_v19  ;;  %v4714_v43 = vadd.f32 %v9401_v45, %v4591_v48  ;;  %v4710_v19 = vadd.f32 %v9401_v45, %v4581_v53  ;;  %v4719_v17 = vadd.f32 %v9404_v63, %v4601_v24 }
 0xda2   :  { %4965 = vmax.xlane.f32.xlu1 %v4964_v30  ;;  %v4606_v52 = vpop.permute.xlu1 %4605  ;;  %v4718_v48 = vadd.f32 %v9401_v45, %v4601_v24 }
 0xda3   :  { %v4778_v16 = vmul.f32 0.2, %v4714_v43 }
 0xda4   :  { %v4782_v44 = vmul.f32 0.2, %v4718_v48 }
 0xda5   :  { %v4842_v23 = vmax.f32 %v4714_v43, %v4778_v16 }
 0xda8   :  { %v4621_v3 = vpop.permute.xlu0 %4620 }
 0xda9   :  { %4974 = vmax.xlane.f32.xlu2 %v4973_v51  ;;  %v4716_v51 = vadd.f32 %v9401_v45, %v4596_v18  ;;  %v10605_v18 = vld [vmem:[#allocation32_spill] sm:$0xff] }
 0xdab   :  { %v4780_v16 = vmul.f32 0.2, %v4716_v51 }
 0xdad   :  { %v4844_v10 = vmax.f32 %v4716_v51, %v4780_v16  ;;  %v10609_v51 = vld [vmem:[#allocation36_spill] sm:$0xff] }
 0xdaf   :  { %v9561_v16 = vadd.f32 %v4844_v10, %v10609_v51 }
 0xdb1   :  { %4980 = vmax.xlane.f32.xlu2 %v4979_v9  ;;  %v10600_v9 = vld [vmem:[#allocation33_spill] sm:$0xff]  ;;  %10610 = vst [vmem:[#allocation76_spill] sm:$0xff] %v9561_v16 }
 0xdb2   :  { %v9529_v53 = vadd.f32 %v4843_v60, %v10600_v9  ;;  %v4626_v9 = vpop.permute.xlu0 %4625 }
 0xdb4   :  { %10601 = vst [vmem:[#allocation35_spill] sm:$0xff] %v9529_v53 }
 0xdb5   :  { %4660 = vperm.xlu0 %6084, %v9352_v28   ;;  %v4775_v28 = vmul.f32 0.2, %v4711_v37 }
 0xdb7   :  { %v4839_v30 = vmax.f32 %v4711_v37, %v4775_v28  ;;  %v10604_v28 = vld [vmem:[#allocation34_spill] sm:$0xff] }
 0xdb8   :  { %v9536_v7 = vadd.f32 %v4842_v23, %v10604_v28  ;;  %v4616_v28 = vpop.permute.xlu1 %4615 }
 0xdb9   :  { %v9533_v62 = vadd.f32 %v4839_v30, %v10602_v57  ;;  %v4721_v30 = vadd.f32 %v9404_v63, %v4606_v52  ;;  %v4845_v57 = vmax.f32 %v4717_v49, %v4781_v14  ;;  %v4724_v34 = vadd.f32 %v9401_v45, %v4616_v28 }
 0xdba   :  { %v4982_v24 = vmax.f32 %v9536_v7, %v9529_v53  ;;  %v4846_v49 = vmax.f32 %v4718_v48, %v4782_v44  ;;  %v9568_v48 = vpop.permute.xlu0 %4640 }
 0xdbb   :  { %4650 = vperm.xlu1 %6085, %v9348_v61   ;;  %v4774_v61 = vmul.f32 0.2, %v4710_v19  ;;  %10603 = vst [vmem:[#allocation39_spill] sm:$0xff] %v9533_v62 }
 0xdbd   :  { %4665 = vperm.xlu0 %6084, %v9354_v11   ;;  %v4611_v11 = vpop.permute.xlu2 %4610  ;;  %v4838_v13 = vmax.f32 %v4710_v19, %v4774_v61 }
 0xdbe   :  { %v4722_v40 = vadd.f32 %v9401_v45, %v4611_v11 }
 0xdbf   :  { %v9539_v19 = vadd.f32 %v4838_v13, %v10605_v18  ;;  %v4720_v18 = vadd.f32 %v9401_v45, %v4606_v52 }
 0xdc0   :  { %v4786_v37 = vmul.f32 0.2, %v4722_v40 }
 0xdc1   :  { %10606 = vst [vmem:[#allocation47_spill] sm:$0xff] %v9539_v19  ;;  %v4976_v23 = vmax.f32 %v9539_v19, %v9533_v62  ;;  %v4785_v62 = vmul.f32 0.2, %v4721_v30  ;;  %v9555_v19 = vadd.f32 %v4845_v57, %v10547_v41  ;;  %v4784_v52 = vmul.f32 0.2, %v4720_v18  ;;  %v10612_v41 = vld [vmem:[#allocation53_spill] sm:$0xff] }
 0xdc2   :  { %v4850_v13 = vmax.f32 %v4722_v40, %v4786_v37  ;;  %v10608_v37 = vld [vmem:[#allocation41_spill] sm:$0xff]  ;;  %v4727_v57 = vadd.f32 %v9404_v63, %v4621_v3 }
 0xdc3   :  { %10607 = vst [vmem:[#allocation64_spill] sm:$0xff] %v9555_v19  ;;  %v4985_v10 = vmax.f32 %v9561_v16, %v9555_v19  ;;  %v10614_v19 = vld [vmem:[#allocation37_spill] sm:$0xff] }
 0xdc5   :  { %v4631_v43 = vpop.permute.xlu2 %4630 }
 0xdc6   :  { %v4731_v61 = vadd.f32 %v9404_v63, %v4631_v43  ;;  %v4730_v26 = vadd.f32 %v9401_v45, %v4631_v43  ;;  %v9558_v43 = vadd.f32 %v4850_v13, %v10608_v37  ;;  %v4726_v13 = vadd.f32 %v9401_v45, %v4621_v3 }
 0xdc7   :  { %v4848_v37 = vmax.f32 %v4720_v18, %v4784_v52 }
 0xdc8   :  { %v4795_v53 = vmul.f32 0.2, %v4731_v61  ;;  %v4794_v40 = vmul.f32 0.2, %v4730_v26  ;;  %v4790_v18 = vmul.f32 0.2, %v4726_v13 }
 0xdc9   :  { %4655 = vperm.xlu2 %6086, %v9350_v32   ;;  %v4723_v32 = vadd.f32 %v9404_v63, %v4611_v11  ;;  %v4783_v11 = vmul.f32 0.2, %v4719_v17 }
 0xdcb   :  { %v4787_v56 = vmul.f32 0.2, %v4723_v32 }
 0xdcd   :  { %v4851_v60 = vmax.f32 %v4723_v32, %v4787_v56  ;;  %v4725_v32 = vadd.f32 %v9404_v63, %v4616_v28  ;;  %v4847_v56 = vmax.f32 %v4719_v17, %v4783_v11  ;;  %v10611_v11 = vld [vmem:[#allocation52_spill] sm:$0xff]  ;;  %v4849_v28 = vmax.f32 %v4721_v30, %v4785_v62 }
 0xdce   :  { %v4791_v30 = vmul.f32 0.2, %v4727_v57 }
 0xdcf   :  { %v9552_v14 = vadd.f32 %v4851_v60, %v10550_v6  ;;  %v4789_v17 = vmul.f32 0.2, %v4725_v32  ;;  %v4859_v6 = vmax.f32 %v4731_v61, %v4795_v53  ;;  %v9571_v60 = vadd.f32 %v4846_v49, %v10612_v41 }
 0xdd0   :  { %v4729_v53 = vadd.f32 %v9404_v63, %v4626_v9  ;;  %v4728_v49 = vadd.f32 %v9401_v45, %v4626_v9  ;;  %v9585_v16 = vadd.f32 %v4849_v28, %v10614_v19  ;;  %v4636_v9 = vpop.permute.xlu1 %4635 }
 0xdd1   :  { %v4994_v44 = vmax.f32 %v9558_v43, %v9552_v14  ;;  %v4853_v61 = vmax.f32 %v4725_v32, %v4789_v17  ;;  %v10617_v32 = vld [vmem:[#allocation38_spill] sm:$0xff]  ;;  %v4733_v28 = vadd.f32 %v9404_v63, %v4636_v9 }
 0xdd2   :  { %10615 = vst [vmem:[#allocation73_spill] sm:$0xff] %v9585_v16  ;;  %v4793_v52 = vmul.f32 0.2, %v4729_v53  ;;  %v10619_v17 = vld [vmem:[#allocation54_spill] sm:$0xff] }
 0xde5   :  { %4977 = vmax.xlane.f32.xlu1 %v4976_v23  ;;  %v4788_v23 = vmul.f32 0.2, %v4724_v34 }
 0xde7   :  { %4983 = vmax.xlane.f32.xlu0 %v4982_v24  ;;  %v9564_v24 = vadd.f32 %v4847_v56, %v10611_v11  ;;  %v4858_v56 = vmax.f32 %v4730_v26, %v4794_v40  ;;  %v10613_v11 = vld [vmem:[#allocation49_spill] sm:$0xff]  ;;  %v4852_v62 = vmax.f32 %v4724_v34, %v4788_v23  ;;  %v10616_v26 = vld [vmem:[#allocation51_spill] sm:$0xff]  ;;  %v9591_v40 = vadd.f32 %v4848_v37, %v10617_v32  ;;  %v9604_v37 = vpop.permute.xlu0 %4645 }
 0xde8   :  { %v9582_v41 = vadd.f32 %v4859_v6, %v10613_v11  ;;  %v4792_v6 = vmul.f32 0.2, %v4728_v49  ;;  %v10620_v23 = vld [vmem:[#allocation55_spill] sm:$0xff]  ;;  %v4857_v11 = vmax.f32 %v4729_v53, %v4793_v52 }
 0xde9   :  { %v4988_v51 = vmax.f32 %v9571_v60, %v9564_v24  ;;  %v9588_v3 = vadd.f32 %v4858_v56, %v10616_v26  ;;  %10618 = vst [vmem:[#allocation74_spill] sm:$0xff] %v9591_v40  ;;  %v9599_v19 = vadd.f32 %v4852_v62, %v10620_v23  ;;  %v4991_v56 = vmax.f32 %v9591_v40, %v9585_v16 }
 0xdea   :  { %v4856_v32 = vmax.f32 %v4728_v49, %v4792_v6  ;;  %v4797_v62 = vmul.f32 0.2, %v4733_v28 }
 0xdeb   :  { %v5006_v34 = vmax.f32 %v9588_v3, %v9582_v41 }
 0xdec   :  { %v4861_v53 = vmax.f32 %v4733_v28, %v4797_v62 }
 0xded   :  { %4986 = vmax.xlane.f32.xlu1 %v4985_v10  ;;  %v4855_v10 = vmax.f32 %v4727_v57, %v4791_v30  ;;  %v10622_v30 = vld [vmem:[#allocation44_spill] sm:$0xff] }
 0xdef   :  { %4995 = vmax.xlane.f32.xlu0 %v4994_v44  ;;  %v9594_v44 = vadd.f32 %v4853_v61, %v10619_v17  ;;  %v4732_v61 = vadd.f32 %v9401_v45, %v4636_v9  ;;  %v10621_v17 = vld [vmem:[#allocation43_spill] sm:$0xff]  ;;  %v10624_v9 = vld [vmem:[#allocation46_spill] sm:$0xff] }
 0xdf0   :  { %v9610_v23 = vadd.f32 %v4855_v10, %v10621_v17 }
 0xdf1   :  { %v4997_v26 = vmax.f32 %v9599_v19, %v9594_v44  ;;  %v4796_v57 = vmul.f32 0.2, %v4732_v61 }
 0xdf2   :  { %4989 = vmax.xlane.f32.xlu2 %v4988_v51  ;;  %v4854_v51 = vmax.f32 %v4726_v13, %v4790_v18  ;;  %v9619_v13 = vadd.f32 %v4856_v32, %v10624_v9  ;;  %v10625_v32 = vld [vmem:[#allocation56_spill] sm:$0xff] }
 0xdf3   :  { %v4860_v52 = vmax.f32 %v4732_v61, %v4796_v57  ;;  %v9630_v28 = vadd.f32 %v4861_v53, %v10625_v32 }
 0xdf4   :  { %v9613_v16 = vadd.f32 %v4854_v51, %v10622_v30  ;;  %v10626_v30 = vld [vmem:[#allocation57_spill] sm:$0xff] }
 0xdf5   :  { %4992 = vmax.xlane.f32.xlu1 %v4991_v56 }
 0xdf6   :  { %v5000_v18 = vmax.f32 %v9613_v16, %v9610_v23 }
 0xdf7   :  { %5007 = vmax.xlane.f32.xlu0 %v5006_v34  ;;  %v10623_v34 = vld [vmem:[#allocation45_spill] sm:$0xff] }
 0xdf8   :  { %v9616_v40 = vadd.f32 %v4857_v11, %v10623_v34  ;;  %v9633_v34 = vadd.f32 %v4860_v52, %v10626_v30 }
 0xdfa   :  { %4998 = vmax.xlane.f32.xlu2 %v4997_v26  ;;  %v5003_v6 = vmax.f32 %v9619_v13, %v9616_v40 }
 0xdfd   :  { %5001 = vmax.xlane.f32.xlu1 %v5000_v18 }
 0xe02   :  { %5004 = vmax.xlane.f32.xlu2 %v5003_v6 }
 0xe04   :  { %v4954_v49 = vpop.xlane.xlu2 %4953  ;;  %v4951_v10 = vpop.xlane.xlu0 %4950 }
 0xe05   :  { %v5046_v56 = vsub.f32 %v9416_v0, %v4954_v49  ;;  %v5047_v51 = vsub.f32 %v9419_v59, %v4954_v49  ;;  %v5044_v11 = vsub.f32 %v9422_v42, %v4951_v10  ;;  %v5045_v26 = vsub.f32 %v9425_v15, %v4951_v10  ;;  %v4948_v59 = vpop.xlane.xlu1 %4947 }
 0xe06   :  { %v5009_v0 = vmax.f32 %v9633_v34, %v9630_v28  ;;  %v5042_v42 = vsub.f32 %v9438_v25, %v4948_v59  ;;  %v5043_v15 = vsub.f32 %v9441_v21, %v4948_v59 }
 0xe07   :  { %v5114_v62 = vmul.f32 1.442695, %v5046_v56  ;;  %v5110_v17 = vmul.f32 1.442695, %v5044_v11  ;;  %v5112_v61 = vmul.f32 1.442695, %v5045_v26 }
 0xe08   :  { %v5116_v57 = vmul.f32 1.442695, %v5047_v51  ;;  %5010 = vmax.xlane.f32.xlu1 %v5009_v0  ;;  %v5106_v18 = vmul.f32 1.442695, %v5042_v42  ;;  %v5108_v49 = vmul.f32 1.442695, %v5043_v15 }
 0xe09   :  { %6669 = vpow2.f32 %v5114_v62 }
 0xe0a   :  { %6671 = vpow2.f32 %v5110_v17 }
 0xe0b   :  { %6673 = vpow2.f32 %v5112_v61  ;;  %4680 = vperm.xlu0 %6084, %v9360_v12  }
 0xe0c   :  { %6675 = vpow2.f32 %v5116_v57  ;;  %v4963_v6 = vpop.xlane.xlu0 %4962  ;;  %v4960_v10 = vpop.xlane.xlu2 %4959 }
 0xe0d   :  { %6677 = vpow2.f32 %v5106_v18  ;;  %v5052_v51 = vsub.f32 %v9457_v27, %v4963_v6  ;;  %v5053_v11 = vsub.f32 %v9450_v8, %v4963_v6  ;;  %v5050_v25 = vsub.f32 %v9454_v54, %v4960_v10  ;;  %v4957_v61 = vpop.xlane.xlu1 %4956 }
 0xe0e   :  { %6679 = vpow2.f32 %v5108_v49  ;;  %v5051_v21 = vsub.f32 %v9447_v29, %v4960_v10  ;;  %v5048_v27 = vsub.f32 %v9469_v2, %v4957_v61  ;;  %v5049_v8 = vsub.f32 %v9461_v1, %v4957_v61 }
 0xe0f   :  { %v9639_v9 = vpop.eup %6669  ;;  %v5126_v32 = vmul.f32 1.442695, %v5052_v51  ;;  %v5128_v62 = vmul.f32 1.442695, %v5053_v11  ;;  %v5122_v17 = vmul.f32 1.442695, %v5050_v25 }
 0xe10   :  { %v6672_v53 = vpop.eup %6671  ;;  %v5124_v57 = vmul.f32 1.442695, %v5051_v21  ;;  %v5118_v30 = vmul.f32 1.442695, %v5048_v27  ;;  %v5120_v29 = vmul.f32 1.442695, %v5049_v8 }
 0xe11   :  { %v6674_v52 = vpop.eup %6673  ;;  %6681 = vpow2.f32 %v5126_v32 }
 0xe12   :  { %v9642_v56 = vpop.eup %6675  ;;  %v9652_v12 = vadd.f32 %v6674_v52, %v6672_v53  ;;  %6683 = vpow2.f32 %v5128_v62 }
 0xe13   :  { %v9650_v26 = vadd.f32 %v9642_v56, %v9639_v9  ;;  %v6678_v54 = vpop.eup %6677  ;;  %6685 = vpow2.f32 %v5122_v17  ;;  %4685 = vperm.xlu0 %6084, %v9362_v58  }
 0xe14   :  { %10628 = vst [vmem:[#allocation78_spill] sm:$0xff] %v9652_v12  ;;  %v6680_v0 = vpop.eup %6679  ;;  %v5330_v59 = vpack.c.bf16 %v6672_v53, %v6678_v54  ;;  %6687 = vpow2.f32 %v5124_v57  ;;  %v4972_v42 = vpop.xlane.xlu0 %4971 }
 0xe15   :  { %10627 = vst [vmem:[#allocation75_spill] sm:$0xff] %v9650_v26  ;;  %v4969_v15 = vpop.xlane.xlu2 %4968  ;;  %v5331_v18 = vpack.c.bf16 %v6674_v52, %v6680_v0  ;;  %6689 = vpow2.f32 %v5118_v30  ;;  %v5058_v49 = vsub.f32 %v9483_v39, %v4972_v42  ;;  %v5059_v2 = vsub.f32 %v9475_v35, %v4972_v42  ;;  %v4966_v52 = vpop.xlane.xlu1 %4965 }
 0xe16   :  { %6691 = vpow2.f32 %v5120_v29  ;;  %5386 = vmatmul.bf16.vlgmr.msra.gmra.mxu1 %v5330_v59  ;;  %v5056_v1 = vsub.f32 %v9480_v5, %v4969_v15  ;;  %v5057_v6 = vsub.f32 %v9472_v22, %v4969_v15  ;;  %v9661_v10 = vadd.f32 %v6680_v0, %v6678_v54 }
 0xe17   :  { %v9663_v58 = vpop.eup %6681  ;;  %5475 = vmatmul.bf16.vlgmr.msra.gmra.mxu2 %v5331_v18  ;;  %v5138_v53 = vmul.f32 1.442695, %v5058_v49  ;;  %v5140_v51 = vmul.f32 1.442695, %v5059_v2  ;;  %v5054_v35 = vsub.f32 %v9495_v46, %v4966_v52  ;;  %v5055_v5 = vsub.f32 %v9487_v47, %v4966_v52 }
 0xe18   :  { %10629 = vst [vmem:[#allocation77_spill] sm:$0xff] %v9661_v10  ;;  %v9665_v11 = vpop.eup %6683  ;;  %v5134_v25 = vmul.f32 1.442695, %v5056_v1  ;;  %v5136_v39 = vmul.f32 1.442695, %v5057_v6 }
 0xe19   :  { %v9667_v21 = vpop.eup %6685  ;;  %6693 = vpow2.f32 %v5138_v53  ;;  %v9673_v22 = vadd.f32 %v9665_v11, %v9663_v58  ;;  %v5130_v17 = vmul.f32 1.442695, %v5054_v35  ;;  %v5132_v61 = vmul.f32 1.442695, %v5055_v5 }
 0xe1a   :  { %v9675_v32 = vpop.eup %6687  ;;  %6695 = vpow2.f32 %v5140_v51  ;;  %4670 = vperm.xlu2 %6086, %v9356_v50  }
 0xe1b   :  { %10630 = vst [vmem:[#allocation9_spill] sm:$0xff] %v9673_v22  ;;  %v6690_v62 = vpop.eup %6689  ;;  %6697 = vpow2.f32 %v5134_v25  ;;  %v9680_v47 = vadd.f32 %v9675_v32, %v9667_v21 }
 0xe1c   :  { %v6692_v57 = vpop.eup %6691  ;;  %6699 = vpow2.f32 %v5136_v39  ;;  %v5332_v49 = vpack.c.bf16 %v6690_v62, %v9639_v9 }
 0xe1d   :  { %v4975_v27 = vpop.xlane.xlu2 %4974  ;;  %6701 = vpow2.f32 %v5130_v17  ;;  %v9684_v54 = vadd.f32 %v6692_v57, %v6690_v62  ;;  %v4734_v17 = vadd.f32 %v9401_v45, %v9568_v48 }
 0xe1e   :  { %v5060_v46 = vsub.f32 %v9503_v33, %v4975_v27  ;;  %v5061_v8 = vsub.f32 %v9498_v55, %v4975_v27  ;;  %6703 = vpow2.f32 %v5132_v61 }
 0xe1f   :  { %10631 = vst [vmem:[#allocation10_spill] sm:$0xff] %v9684_v54  ;;  %v9686_v50 = vpop.eup %6693 }
 0xe20   :  { %v5142_v30 = vmul.f32 1.442695, %v5060_v46  ;;  %v5144_v29 = vmul.f32 1.442695, %v5061_v8  ;;  %v9688_v0 = vpop.eup %6695 }
 0xe21   :  { %v9690_v59 = vpop.eup %6697  ;;  %4675 = vperm.xlu1 %6085, %v9358_v20   ;;  %v9695_v42 = vadd.f32 %v9688_v0, %v9686_v50  ;;  %v5333_v20 = vpack.c.bf16 %v6692_v57, %v9642_v56  ;;  %v4735_v56 = vadd.f32 %v9404_v63, %v9568_v48  ;;  %v4737_v48 = vadd.f32 %v9404_v63, %v9604_v37 }
 0xe22   :  { %6705 = vpow2.f32 %v5142_v30  ;;  %v9697_v33 = vpop.eup %6699  ;;  %v5334_v30 = vpack.c.bf16 %v9663_v58, %v9667_v21 }
 0xe23   :  { %6707 = vpow2.f32 %v5144_v29  ;;  %v9699_v55 = vpop.eup %6701  ;;  %v9703_v15 = vadd.f32 %v9697_v33, %v9690_v59  ;;  %v4799_v46 = vmul.f32 0.2, %v4735_v56 }
 0xe24   :  { %v9705_v18 = vpop.eup %6703 }
 0xe25   :  { %v4981_v2 = vpop.xlane.xlu2 %4980  ;;  %v9713_v53 = vadd.f32 %v9705_v18, %v9699_v55  ;;  %v4863_v12 = vmax.f32 %v4735_v56, %v4799_v46  ;;  %v10635_v56 = vld [vmem:[#allocation59_spill] sm:$0xff] }
 0xe26   :  { %v5064_v1 = vsub.f32 %v9511_v36, %v4981_v2  ;;  %v5065_v6 = vsub.f32 %v9508_v31, %v4981_v2  ;;  %5391 = vmatmul.bf16.gmra.mxu1 %v5332_v49  ;;  %v5335_v2 = vpack.c.bf16 %v9665_v11, %v9675_v32  ;;  %v4736_v11 = vadd.f32 %v9401_v45, %v9604_v37 }
 0xe27   :  { %5480 = vmatmul.bf16.gmra.mxu2 %v5333_v20  ;;  %v4661_v8 = vpop.permute.xlu0 %4660  ;;  %v4798_v20 = vmul.f32 0.2, %v4734_v17 }
 0xe28   :  { %v9715_v51 = vpop.eup %6705  ;;  %v5150_v52 = vmul.f32 1.442695, %v5064_v1  ;;  %v5152_v25 = vmul.f32 1.442695, %v5065_v6  ;;  %v10632_v6 = vld [vmem:[#allocation69_spill] sm:$0xff]  ;;  %v4743_v37 = vadd.f32 %v9404_v63, %v4661_v8 }
 0xe29   :  { %v9717_v39 = vpop.eup %6707  ;;  %v4862_v32 = vmax.f32 %v4734_v17, %v4798_v20 }
 0xe2a   :  { %6709 = vpow2.f32 %v5150_v52  ;;  %v9721_v9 = vadd.f32 %v9717_v39, %v9715_v51 }
 0xe2b   :  { %6711 = vpow2.f32 %v5152_v25  ;;  %v10633_v25 = vld [vmem:[#allocation68_spill] sm:$0xff]  ;;  %v9759_v46 = vadd.f32 %v4862_v32, %v10635_v56 }
 0xe2d   :  { %v4651_v35 = vpop.permute.xlu1 %4650  ;;  %v4656_v1 = vpop.permute.xlu2 %4655 }
 0xe2e   :  { %v4738_v5 = vadd.f32 %v9401_v45, %v4651_v35  ;;  %v4739_v62 = vadd.f32 %v9404_v63, %v4651_v35  ;;  %v4740_v58 = vadd.f32 %v9401_v45, %v4656_v1  ;;  %v4741_v21 = vadd.f32 %v9404_v63, %v4656_v1 }
 0xe30   :  { %v9723_v36 = vpop.eup %6709  ;;  %v4802_v57 = vmul.f32 0.2, %v4738_v5  ;;  %v4803_v27 = vmul.f32 0.2, %v4739_v62 }
 0xe31   :  { %v9725_v31 = vpop.eup %6711 }
 0xe32   :  { %v9735_v61 = vadd.f32 %v9725_v31, %v9723_v36  ;;  %v4866_v29 = vmax.f32 %v4738_v5, %v4802_v57  ;;  %v4867_v49 = vmax.f32 %v4739_v62, %v4803_v27  ;;  %v4801_v5 = vmul.f32 0.2, %v4737_v48  ;;  %v10634_v57 = vld [vmem:[#allocation58_spill] sm:$0xff] }
 0xe33   :  { %v9756_v27 = vadd.f32 %v4863_v12, %v10634_v57 }
 0xe34   :  { %v9744_v52 = vadd.f32 %v4866_v29, %v10632_v6  ;;  %v9747_v35 = vadd.f32 %v4867_v49, %v10633_v25  ;;  %v4805_v29 = vmul.f32 0.2, %v4741_v21  ;;  %v4800_v49 = vmul.f32 0.2, %v4736_v11 }
 0xe35   :  { %v4865_v1 = vmax.f32 %v4737_v48, %v4801_v5  ;;  %v4742_v6 = vadd.f32 %v9401_v45, %v4661_v8  ;;  %v5012_v17 = vmax.f32 %v9759_v46, %v9756_v27  ;;  %v4807_v48 = vmul.f32 0.2, %v4743_v37 }
 0xe36   :  { %5396 = vmatmul.bf16.gmra.mxu1 %v5334_v30  ;;  %v5018_v62 = vmax.f32 %v9744_v52, %v9747_v35  ;;  %v4804_v30 = vmul.f32 0.2, %v4740_v58  ;;  %v4869_v25 = vmax.f32 %v4741_v21, %v4805_v29  ;;  %v5336_v5 = vpack.c.bf16 %v9690_v59, %v9699_v55  ;;  %v10636_v21 = vld [vmem:[#allocation65_spill] sm:$0xff] }
 0xe37   :  { %5485 = vmatmul.bf16.gmra.mxu2 %v5335_v2  ;;  %v4666_v2 = vpop.permute.xlu0 %4665  ;;  %v9768_v26 = vadd.f32 %v4865_v1, %v10558_v4  ;;  %v4806_v32 = vmul.f32 0.2, %v4742_v6  ;;  %v5337_v8 = vpack.c.bf16 %v9697_v33, %v9705_v18  ;;  %v4871_v55 = vmax.f32 %v4743_v37, %v4807_v48  ;;  %v10638_v18 = vld [vmem:[#allocation60_spill] sm:$0xff] }
 0xe38   :  { %v4868_v20 = vmax.f32 %v4740_v58, %v4804_v30  ;;  %v4744_v12 = vadd.f32 %v9401_v45, %v4666_v2  ;;  %v4745_v57 = vadd.f32 %v9404_v63, %v4666_v2  ;;  %v9778_v30 = vadd.f32 %v4869_v25, %v10636_v21  ;;  %v10640_v25 = vld [vmem:[#allocation62_spill] sm:$0xff] }
 0xe39   :  { %v4870_v56 = vmax.f32 %v4742_v6, %v4806_v32  ;;  %v10641_v6 = vld [vmem:[#allocation63_spill] sm:$0xff]  ;;  %v5339_v48 = vpack.c.bf16 %v9717_v39, %v9688_v0  ;;  %v10645_v39 = vld [vmem:[#allocation76_spill] sm:$0xff] }
 0xe3a   :  { %v9775_v58 = vadd.f32 %v4868_v20, %v10561_v38  ;;  %v4808_v29 = vmul.f32 0.2, %v4744_v12 }
 0xe3b   :  { %v9788_v1 = vadd.f32 %v4870_v56, %v10638_v18 }
 0xe3c   :  { %v4872_v2 = vmax.f32 %v4744_v12, %v4808_v29  ;;  %v5021_v38 = vmax.f32 %v9775_v58, %v9778_v30  ;;  %v10642_v29 = vld [vmem:[#allocation35_spill] sm:$0xff] }
 0xe3d   :  { %5019 = vmax.xlane.f32.xlu0 %v5018_v62  ;;  %v4864_v62 = vmax.f32 %v4736_v11, %v4800_v49  ;;  %v4809_v11 = vmul.f32 0.2, %v4745_v57  ;;  %v10637_v49 = vld [vmem:[#allocation48_spill] sm:$0xff] }
 0xe3f   :  { %v9781_v4 = vadd.f32 %v4864_v62, %v10637_v49  ;;  %v4873_v33 = vmax.f32 %v4745_v57, %v4809_v11  ;;  %v9794_v62 = vadd.f32 %v4872_v2, %v10640_v25  ;;  %v5338_v57 = vpack.c.bf16 %v9715_v51, %v9686_v50  ;;  %v10643_v49 = vld [vmem:[#allocation47_spill] sm:$0xff]  ;;  %v10646_v25 = vld [vmem:[#allocation64_spill] sm:$0xff] }
 0xe41   :  { %v5015_v59 = vmax.f32 %v9781_v4, %v9768_v26  ;;  %v9797_v32 = vadd.f32 %v4873_v33, %v10641_v6 }
 0xe43   :  { %5013 = vmax.xlane.f32.xlu2 %v5012_v17  ;;  %v10639_v17 = vld [vmem:[#allocation61_spill] sm:$0xff]  ;;  %v5027_v12 = vmax.f32 %v9794_v62, %v9797_v32 }
 0xe44   :  { %v9791_v20 = vadd.f32 %v4871_v55, %v10639_v17 }
 0xe46   :  { %5401 = vmatmul.bf16.gmra.mxu1 %v5336_v5  ;;  %v5024_v37 = vmax.f32 %v9788_v1, %v9791_v20 }
 0xe47   :  { %5490 = vmatmul.bf16.gmra.mxu2 %v5337_v8 }
 0xe4b   :  { %5016 = vmax.xlane.f32.xlu1 %v5015_v59  ;;  %5022 = vmax.xlane.f32.xlu2 %v5021_v38  ;;  %v10644_v59 = vld [vmem:[#allocation39_spill] sm:$0xff] }
 0xe53   :  { %5025 = vmax.xlane.f32.xlu1 %v5024_v37  ;;  %5028 = vmax.xlane.f32.xlu2 %v5027_v12 }
 0xe56   :  { %5406 = vmatmul.bf16.gmra.mxu1 %v5338_v57 }
 0xe57   :  { %5495 = vmatmul.bf16.gmra.mxu2 %v5339_v48 }
 0xe58   :  { %v4978_v8 = vpop.xlane.xlu1 %4977 }
 0xe59   :  { %v5062_v56 = vsub.f32 %v10643_v49, %v4978_v8  ;;  %v5063_v55 = vsub.f32 %v10644_v59, %v4978_v8 }
 0xe5a   :  { %v4984_v5 = vpop.xlane.xlu0 %4983 }
 0xe5b   :  { %v5066_v21 = vsub.f32 %v9536_v7, %v4984_v5  ;;  %v5067_v11 = vsub.f32 %v10642_v29, %v4984_v5  ;;  %v5146_v33 = vmul.f32 1.442695, %v5062_v56  ;;  %v5148_v38 = vmul.f32 1.442695, %v5063_v55 }
 0xe5d   :  { %v5154_v2 = vmul.f32 1.442695, %v5066_v21  ;;  %v5156_v18 = vmul.f32 1.442695, %v5067_v11 }
 0xe5f   :  { %6713 = vpow2.f32 %v5154_v2 }
 0xe60   :  { %6715 = vpow2.f32 %v5146_v33  ;;  %v4987_v0 = vpop.xlane.xlu1 %4986 }
 0xe61   :  { %6717 = vpow2.f32 %v5148_v38  ;;  %v5068_v17 = vsub.f32 %v10645_v39, %v4987_v0  ;;  %v5069_v6 = vsub.f32 %v10646_v25, %v4987_v0 }
 0xe62   :  { %6719 = vpow2.f32 %v5156_v18  ;;  %v4996_v50 = vpop.xlane.xlu0 %4995 }
 0xe63   :  { %v5074_v51 = vsub.f32 %v9558_v43, %v4996_v50  ;;  %v5075_v7 = vsub.f32 %v9552_v14, %v4996_v50  ;;  %v5158_v8 = vmul.f32 1.442695, %v5068_v17  ;;  %v5160_v21 = vmul.f32 1.442695, %v5069_v6  ;;  %v10648_v50 = vld [vmem:[#allocation73_spill] sm:$0xff] }
 0xe65   :  { %v9815_v37 = vpop.eup %6713  ;;  %v5170_v12 = vmul.f32 1.442695, %v5074_v51  ;;  %v5172_v57 = vmul.f32 1.442695, %v5075_v7  ;;  %v4990_v48 = vpop.xlane.xlu2 %4989 }
 0xe66   :  { %v6716_v5 = vpop.eup %6715  ;;  %v5070_v29 = vsub.f32 %v9571_v60, %v4990_v48  ;;  %v5071_v11 = vsub.f32 %v9564_v24, %v4990_v48 }
 0xe67   :  { %v6718_v49 = vpop.eup %6717  ;;  %6721 = vpow2.f32 %v5170_v12  ;;  %v5340_v14 = vpack.c.bf16 %v9723_v36, %v6716_v5 }
 0xe68   :  { %v9820_v43 = vpop.eup %6719  ;;  %6723 = vpow2.f32 %v5158_v8  ;;  %v5341_v56 = vpack.c.bf16 %v9725_v31, %v6718_v49  ;;  %v5162_v59 = vmul.f32 1.442695, %v5070_v29  ;;  %v5164_v55 = vmul.f32 1.442695, %v5071_v11  ;;  %v4993_v36 = vpop.xlane.xlu1 %4992  ;;  %v10647_v31 = vld [vmem:[#allocation74_spill] sm:$0xff] }
 0xe69   :  { %6725 = vpow2.f32 %v5160_v21  ;;  %5411 = vmatmul.bf16.gmra.mxu1 %v5340_v14  ;;  %v9825_v2 = vadd.f32 %v9820_v43, %v9815_v37  ;;  %v9827_v60 = vadd.f32 %v6718_v49, %v6716_v5  ;;  %v5072_v18 = vsub.f32 %v10647_v31, %v4993_v36 }
 0xe6a   :  { %6727 = vpow2.f32 %v5172_v57  ;;  %5500 = vmatmul.bf16.gmra.mxu2 %v5341_v56  ;;  %v5008_v24 = vpop.xlane.xlu0 %5007  ;;  %v5073_v0 = vsub.f32 %v10648_v50, %v4993_v36 }
 0xe6b   :  { %6729 = vpow2.f32 %v5162_v59  ;;  %v5082_v33 = vsub.f32 %v9588_v3, %v5008_v24  ;;  %v5083_v38 = vsub.f32 %v9582_v41, %v5008_v24  ;;  %v5166_v6 = vmul.f32 1.442695, %v5072_v18 }
 0xe6c   :  { %6731 = vpow2.f32 %v5164_v55  ;;  %v5168_v12 = vmul.f32 1.442695, %v5073_v0 }
 0xe6d   :  { %v9833_v51 = vpop.eup %6721  ;;  %v5186_v7 = vmul.f32 1.442695, %v5082_v33  ;;  %v5188_v39 = vmul.f32 1.442695, %v5083_v38  ;;  %v4999_v17 = vpop.xlane.xlu2 %4998 }
 0xe6e   :  { %v6724_v25 = vpop.eup %6723  ;;  %v5076_v57 = vsub.f32 %v9599_v19, %v4999_v17  ;;  %v5077_v48 = vsub.f32 %v9594_v44, %v4999_v17 }
 0xe6f   :  { %v6726_v3 = vpop.eup %6725  ;;  %6733 = vpow2.f32 %v5186_v7  ;;  %v5342_v50 = vpack.c.bf16 %v6724_v25, %v9815_v37 }
 0xe70   :  { %v9837_v41 = vpop.eup %6727  ;;  %6735 = vpow2.f32 %v5166_v6  ;;  %v5174_v5 = vmul.f32 1.442695, %v5076_v57  ;;  %v5176_v8 = vmul.f32 1.442695, %v5077_v48  ;;  %v9841_v29 = vadd.f32 %v6726_v3, %v6724_v25  ;;  %v5002_v44 = vpop.xlane.xlu1 %5001 }
 0xe71   :  { %v9839_v21 = vpop.eup %6729  ;;  %6737 = vpow2.f32 %v5168_v12  ;;  %v9845_v11 = vadd.f32 %v9837_v41, %v9833_v51  ;;  %v5078_v14 = vsub.f32 %v9613_v16, %v5002_v44  ;;  %v5079_v56 = vsub.f32 %v9610_v23, %v5002_v44 }
 0xe72   :  { %v9847_v49 = vpop.eup %6731  ;;  %6739 = vpow2.f32 %v5188_v39  ;;  %v5343_v16 = vpack.c.bf16 %v6726_v3, %v9820_v43 }
 0xe73   :  { %6741 = vpow2.f32 %v5174_v5  ;;  %v9851_v19 = vadd.f32 %v9847_v49, %v9839_v21  ;;  %v5178_v36 = vmul.f32 1.442695, %v5078_v14  ;;  %v5180_v33 = vmul.f32 1.442695, %v5079_v56 }
 0xe74   :  { %6743 = vpow2.f32 %v5176_v8 }
 0xe75   :  { %v9855_v59 = vpop.eup %6733  ;;  %v5005_v55 = vpop.xlane.xlu2 %5004  ;;  %6745 = vpow2.f32 %v5178_v36 }
 0xe76   :  { %v6736_v24 = vpop.eup %6735  ;;  %v5080_v38 = vsub.f32 %v9619_v13, %v5005_v55  ;;  %v5081_v31 = vsub.f32 %v9616_v40, %v5005_v55  ;;  %6747 = vpow2.f32 %v5180_v33 }
 0xe77   :  { %v6738_v18 = vpop.eup %6737  ;;  %v5344_v10 = vpack.c.bf16 %v6736_v24, %v9839_v21 }
 0xe78   :  { %v9860_v0 = vpop.eup %6739  ;;  %v5182_v7 = vmul.f32 1.442695, %v5080_v38  ;;  %v5184_v23 = vmul.f32 1.442695, %v5081_v31  ;;  %v9865_v17 = vadd.f32 %v6738_v18, %v6736_v24 }
 0xe79   :  { %v9863_v39 = vpop.eup %6741  ;;  %5416 = vmatmul.bf16.gmra.mxu1 %v5342_v50  ;;  %v9869_v13 = vadd.f32 %v9860_v0, %v9855_v59 }
 0xe7a   :  { %v9871_v40 = vpop.eup %6743  ;;  %5505 = vmatmul.bf16.gmra.mxu2 %v5343_v16  ;;  %6749 = vpow2.f32 %v5182_v7 }
 0xe7b   :  { %6751 = vpow2.f32 %v5184_v23  ;;  %v5011_v37 = vpop.xlane.xlu1 %5010  ;;  %v9875_v43 = vadd.f32 %v9871_v40, %v9863_v39  ;;  %v9879_v48 = vpop.eup %6745 }
 0xe7c   :  { %v5084_v25 = vsub.f32 %v9633_v34, %v5011_v37  ;;  %v5085_v6 = vsub.f32 %v9630_v28, %v5011_v37  ;;  %v9881_v8 = vpop.eup %6747  ;;  %v10650_v37 = vld [vmem:[#allocation66_spill] sm:$0xff] }
 0xe7d   :  { %v4681_v12 = vpop.permute.xlu0 %4680  ;;  %v4671_v57 = vpop.permute.xlu2 %4670  ;;  %v9891_v28 = vadd.f32 %v9881_v8, %v9879_v48 }
 0xe7e   :  { %v5190_v3 = vmul.f32 1.442695, %v5084_v25  ;;  %v5192_v5 = vmul.f32 1.442695, %v5085_v6  ;;  %v4750_v44 = vadd.f32 %v9401_v45, %v4681_v12  ;;  %v4751_v14 = vadd.f32 %v9404_v63, %v4681_v12  ;;  %v10651_v6 = vld [vmem:[#allocation67_spill] sm:$0xff] }
 0xe7f   :  { %v4746_v56 = vadd.f32 %v9401_v45, %v4671_v57  ;;  %v4747_v55 = vadd.f32 %v9404_v63, %v4671_v57  ;;  %10649 = vst [vmem:[#allocation11_spill] sm:$0xff] %v9891_v28 }
 0xe80   :  { %v9887_v36 = vpop.eup %6749  ;;  %6753 = vpow2.f32 %v5190_v3  ;;  %v4814_v50 = vmul.f32 0.2, %v4750_v44  ;;  %v4815_v16 = vmul.f32 0.2, %v4751_v14 }
 0xe81   :  { %v9893_v34 = vpop.eup %6751  ;;  %6755 = vpow2.f32 %v5192_v5  ;;  %v4810_v33 = vmul.f32 0.2, %v4746_v56  ;;  %v4811_v38 = vmul.f32 0.2, %v4747_v55 }
 0xe82   :  { %v9897_v31 = vadd.f32 %v9893_v34, %v9887_v36  ;;  %v4878_v5 = vmax.f32 %v4750_v44, %v4814_v50  ;;  %v4879_v22 = vmax.f32 %v4751_v14, %v4815_v16 }
 0xe83   :  { %v4874_v7 = vmax.f32 %v4746_v56, %v4810_v33  ;;  %v4875_v23 = vmax.f32 %v4747_v55, %v4811_v38  ;;  %v5345_v56 = vpack.c.bf16 %v6738_v18, %v9847_v49  ;;  %v10652_v33 = vld [vmem:[#allocation71_spill] sm:$0xff] }
 0xe84   :  { %v9918_v38 = vadd.f32 %v4878_v5, %v10652_v33 }
 0xe85   :  { %v9900_v25 = vadd.f32 %v4874_v7, %v10650_v37  ;;  %v9903_v12 = vadd.f32 %v4875_v23, %v10651_v6  ;;  %v10653_v7 = vld [vmem:[#allocation72_spill] sm:$0xff]  ;;  %v4686_v24 = vpop.permute.xlu0 %4685  ;;  %v5347_v37 = vpack.c.bf16 %v9871_v40, %v9837_v41  ;;  %v10656_v40 = vld [vmem:[#allocation50_spill] sm:$0xff] }
 0xe86   :  { %v9905_v57 = vpop.eup %6753  ;;  %v9921_v44 = vadd.f32 %v4879_v22, %v10653_v7  ;;  %v4752_v18 = vadd.f32 %v9401_v45, %v4686_v24  ;;  %v4753_v50 = vadd.f32 %v9404_v63, %v4686_v24  ;;  %v5346_v22 = vpack.c.bf16 %v9863_v39, %v9833_v51  ;;  %v10654_v7 = vld [vmem:[#allocation42_spill] sm:$0xff]  ;;  %v10655_v24 = vld [vmem:[#allocation40_spill] sm:$0xff] }
 0xe87   :  { %v9907_v3 = vpop.eup %6755  ;;  %v5030_v54 = vmax.f32 %v9900_v25, %v9903_v12 }
 0xe88   :  { %v9915_v55 = vadd.f32 %v9907_v3, %v9905_v57  ;;  %v5036_v21 = vmax.f32 %v9918_v38, %v9921_v44  ;;  %v4816_v6 = vmul.f32 0.2, %v4752_v18  ;;  %v4817_v5 = vmul.f32 0.2, %v4753_v50 }
 0xe89   :  { %5421 = vmatmul.bf16.gmra.mxu1 %v5344_v10  ;;  %5031 = vmax.xlane.f32.xlu1 %v5030_v54 }
 0xe8a   :  { %5510 = vmatmul.bf16.gmra.mxu2 %v5345_v56  ;;  %v4880_v51 = vmax.f32 %v4752_v18, %v4816_v6  ;;  %v4881_v39 = vmax.f32 %v4753_v50, %v4817_v5  ;;  %v5348_v18 = vpack.c.bf16 %v9887_v36, %v9879_v48  ;;  %v5349_v50 = vpack.c.bf16 %v9893_v34, %v9881_v8 }
 0xe8b   :  { %v5350_v36 = vpack.c.bf16 %v9905_v57, %v9855_v59 }
 0xe91   :  { %5037 = vmax.xlane.f32.xlu1 %v5036_v21 }
 0xe93   :  { %v5387_v14 = vpop.f32.mrf.mxu1  ;;  %v4676_v49 = vpop.permute.xlu1 %4675 }
 0xe94   :  { %v4748_v10 = vadd.f32 %v9401_v45, %v4676_v49  ;;  %v4749_v54 = vadd.f32 %v9404_v63, %v4676_v49 }
 0xe96   :  { %v4812_v16 = vmul.f32 0.2, %v4748_v10  ;;  %v4813_v23 = vmul.f32 0.2, %v4749_v54 }
 0xe98   :  { %v4876_v56 = vmax.f32 %v4748_v10, %v4812_v16  ;;  %v4877_v33 = vmax.f32 %v4749_v54, %v4813_v23  ;;  %v9944_v10 = vadd.f32 %v4880_v51, %v10656_v40  ;;  %v10657_v54 = vld [vmem:[#allocation70_spill] sm:$0xff] }
 0xe99   :  { %5426 = vmatmul.bf16.gmra.mxu1 %v5346_v22  ;;  %v9947_v16 = vadd.f32 %v4881_v39, %v10657_v54 }
 0xe9a   :  { %v9934_v21 = vadd.f32 %v4876_v56, %v10654_v7  ;;  %v9937_v45 = vadd.f32 %v4877_v33, %v10655_v24  ;;  %v5476_v63 = vpop.f32.mrf.mxu2  ;;  %5515 = vmatmul.bf16.gmra.mxu2 %v5347_v37 }
 0xe9b   :  { %v9939_v49 = vadd.f32 %v5476_v63, %v5387_v14  ;;  %v5389_v28 = vpop.f32.mrf.mxu1  ;;  %v5039_v14 = vmax.f32 %v9944_v10, %v9947_v16 }
 0xe9c   :  { %v5033_v41 = vmax.f32 %v9934_v21, %v9937_v45 }
 0xe9e   :  { %5034 = vmax.xlane.f32.xlu2 %v5033_v41 }
 0xea2   :  { %v5478_v23 = vpop.f32.mrf.mxu2 }
 0xea3   :  { %v9949_v22 = vadd.f32 %v5478_v23, %v5389_v28  ;;  %v5392_v56 = vpop.f32.mrf.mxu1 }
 0xea6   :  { %5040 = vmax.xlane.f32.xlu2 %v5039_v14 }
 0xea9   :  { %5431 = vmatmul.bf16.gmra.mxu1 %v5348_v18 }
 0xeaa   :  { %v5481_v37 = vpop.f32.mrf.mxu2  ;;  %5520 = vmatmul.bf16.gmra.mxu2 %v5349_v50 }
 0xeab   :  { %v9957_v6 = vadd.f32 %v5481_v37, %v5392_v56  ;;  %v5394_v5 = vpop.f32.mrf.mxu1 }
 0xeb0   :  { %v5020_v33 = vpop.xlane.xlu0 %5019 }
 0xeb1   :  { %v5090_v28 = vsub.f32 %v9744_v52, %v5020_v33  ;;  %v5091_v7 = vsub.f32 %v9747_v35, %v5020_v33  ;;  %v5351_v52 = vpack.c.bf16 %v9907_v3, %v9860_v0 }
 0xeb2   :  { %v5483_v24 = vpop.f32.mrf.mxu2 }
 0xeb3   :  { %v9961_v63 = vadd.f32 %v5483_v24, %v5394_v5  ;;  %v5397_v51 = vpop.f32.mrf.mxu1  ;;  %v5202_v39 = vmul.f32 1.442695, %v5090_v28  ;;  %v5204_v48 = vmul.f32 1.442695, %v5091_v7 }
 0xeb5   :  { %6757 = vpow2.f32 %v5202_v39 }
 0xeb6   :  { %6759 = vpow2.f32 %v5204_v48  ;;  %v5014_v8 = vpop.xlane.xlu2 %5013 }
 0xeb7   :  { %v5086_v34 = vsub.f32 %v9759_v46, %v5014_v8  ;;  %v5087_v41 = vsub.f32 %v9756_v27, %v5014_v8 }
 0xeb9   :  { %5436 = vmatmul.bf16.gmra.mxu1 %v5350_v36  ;;  %v5194_v35 = vmul.f32 1.442695, %v5086_v34  ;;  %v5196_v40 = vmul.f32 1.442695, %v5087_v41 }
 0xeba   :  { %v5486_v54 = vpop.f32.mrf.mxu2  ;;  %5525 = vmatmul.bf16.gmra.mxu2 %v5351_v52 }
 0xebb   :  { %v9969_v23 = vpop.eup %6757  ;;  %v9971_v56 = vadd.f32 %v5486_v54, %v5397_v51  ;;  %6761 = vpow2.f32 %v5194_v35  ;;  %v9973_v14 = vpop.f32.mrf.mxu1 }
 0xebc   :  { %v6760_v59 = vpop.eup %6759  ;;  %6763 = vpow2.f32 %v5196_v40 }
 0xebd   :  { %v9976_v46 = vadd.f32 %v6760_v59, %v9969_v23 }
 0xebe   :  { %v5017_v27 = vpop.xlane.xlu1 %5016  ;;  %v5023_v57 = vpop.xlane.xlu2 %5022 }
 0xebf   :  { %v5088_v0 = vsub.f32 %v9781_v4, %v5017_v27  ;;  %v5089_v3 = vsub.f32 %v9768_v26, %v5017_v27  ;;  %v5092_v18 = vsub.f32 %v9775_v58, %v5023_v57  ;;  %v5093_v50 = vsub.f32 %v9778_v30, %v5023_v57 }
 0xec1   :  { %v6762_v37 = vpop.eup %6761  ;;  %v5198_v5 = vmul.f32 1.442695, %v5088_v0  ;;  %v5200_v33 = vmul.f32 1.442695, %v5089_v3  ;;  %v5206_v28 = vmul.f32 1.442695, %v5092_v18 }
 0xec2   :  { %v6764_v7 = vpop.eup %6763  ;;  %v9982_v24 = vpop.f32.mrf.mxu2  ;;  %v5208_v51 = vmul.f32 1.442695, %v5093_v50 }
 0xec3   :  { %6765 = vpow2.f32 %v5198_v5  ;;  %v5402_v39 = vpop.f32.mrf.mxu1  ;;  %v9984_v48 = vadd.f32 %v6764_v7, %v6762_v37 }
 0xec4   :  { %6767 = vpow2.f32 %v5200_v33 }
 0xec5   :  { %6769 = vpow2.f32 %v5206_v28 }
 0xec6   :  { %6771 = vpow2.f32 %v5208_v51  ;;  %v5026_v26 = vpop.xlane.xlu1 %5025  ;;  %v5029_v4 = vpop.xlane.xlu2 %5028 }
 0xec7   :  { %v5094_v58 = vsub.f32 %v9788_v1, %v5026_v26  ;;  %v5095_v30 = vsub.f32 %v9791_v20, %v5026_v26  ;;  %v5096_v8 = vsub.f32 %v9794_v62, %v5029_v4  ;;  %v5097_v36 = vsub.f32 %v9797_v32, %v5029_v4 }
 0xec9   :  { %v6766_v34 = vpop.eup %6765  ;;  %v5210_v41 = vmul.f32 1.442695, %v5094_v58  ;;  %v5212_v52 = vmul.f32 1.442695, %v5095_v30  ;;  %v5214_v35 = vmul.f32 1.442695, %v5096_v8 }
 0xeca   :  { %v6768_v40 = vpop.eup %6767  ;;  %v5491_v54 = vpop.f32.mrf.mxu2  ;;  %v5216_v27 = vmul.f32 1.442695, %v5097_v36  ;;  %v5352_v57 = vpack.c.bf16 %v6766_v34, %v6762_v37 }
 0xecb   :  { %v6770_v0 = vpop.eup %6769  ;;  %6773 = vpow2.f32 %v5210_v41  ;;  %v9990_v3 = vadd.f32 %v5491_v54, %v5402_v39  ;;  %v9992_v18 = vpop.f32.mrf.mxu1  ;;  %v5353_v1 = vpack.c.bf16 %v6768_v40, %v6764_v7  ;;  %v9994_v20 = vadd.f32 %v6768_v40, %v6766_v34 }
 0xecc   :  { %v6772_v62 = vpop.eup %6771  ;;  %6775 = vpow2.f32 %v5212_v52  ;;  %5441 = vmatmul.bf16.gmra.mxu1 %v5352_v57  ;;  %v5354_v4 = vpack.c.bf16 %v6770_v0, %v9969_v23 }
 0xecd   :  { %6777 = vpow2.f32 %v5214_v35  ;;  %5530 = vmatmul.bf16.gmra.mxu2 %v5353_v1  ;;  %v9996_v32 = vadd.f32 %v6772_v62, %v6770_v0  ;;  %v5355_v30 = vpack.c.bf16 %v6772_v62, %v6760_v59 }
 0xece   :  { %6779 = vpow2.f32 %v5216_v27 }
 0xed1   :  { %v6774_v50 = vpop.eup %6773 }
 0xed2   :  { %v6776_v5 = vpop.eup %6775  ;;  %v9998_v37 = vpop.f32.mrf.mxu2 }
 0xed3   :  { %v6778_v33 = vpop.eup %6777  ;;  %v10000_v28 = vadd.f32 %v6776_v5, %v6774_v50  ;;  %v5407_v39 = vpop.f32.mrf.mxu1 }
 0xed4   :  { %v6780_v51 = vpop.eup %6779  ;;  %v5356_v52 = vpack.c.bf16 %v6778_v33, %v6774_v50 }
 0xed5   :  { %v10002_v7 = vadd.f32 %v6780_v51, %v6778_v33  ;;  %v5357_v35 = vpack.c.bf16 %v6780_v51, %v6776_v5 }
 0xeda   :  { %v5496_v26 = vpop.f32.mrf.mxu2 }
 0xedb   :  { %v10005_v58 = vadd.f32 %v5496_v26, %v5407_v39  ;;  %v5409_v8 = vpop.f32.mrf.mxu1 }
 0xedc   :  { %5446 = vmatmul.bf16.gmra.mxu1 %v5354_v4 }
 0xedd   :  { %5535 = vmatmul.bf16.gmra.mxu2 %v5355_v30 }
 0xee2   :  { %v5498_v36 = vpop.f32.mrf.mxu2 }
 0xee3   :  { %v10007_v34 = vadd.f32 %v5498_v36, %v5409_v8 }
 0xee6   :  { %v5412_v41 = vpop.f32.mrf.mxu1 }
 0xeec   :  { %5451 = vmatmul.bf16.gmra.mxu1 %v5356_v52 }
 0xeed   :  { %v5501_v40 = vpop.f32.mrf.mxu2  ;;  %5540 = vmatmul.bf16.gmra.mxu2 %v5357_v35 }
 0xeee   :  { %v10009_v54 = vadd.f32 %v5501_v40, %v5412_v41  ;;  %v5414_v27 = vpop.f32.mrf.mxu1 }
 0xef5   :  { %v5503_v57 = vpop.f32.mrf.mxu2 }
 0xef6   :  { %v10011_v23 = vadd.f32 %v5503_v57, %v5414_v27  ;;  %v5417_v0 = vpop.f32.mrf.mxu1 }
 0xefc   :  { %v5032_v59 = vpop.xlane.xlu1 %5031 }
 0xefd   :  { %v5506_v1 = vpop.f32.mrf.mxu2  ;;  %v5098_v30 = vsub.f32 %v9900_v25, %v5032_v59  ;;  %v5099_v41 = vsub.f32 %v9903_v12, %v5032_v59 }
 0xefe   :  { %v10013_v62 = vadd.f32 %v5506_v1, %v5417_v0  ;;  %v5419_v39 = vpop.f32.mrf.mxu1 }
 0xeff   :  { %v5218_v52 = vmul.f32 1.442695, %v5098_v30  ;;  %v5220_v35 = vmul.f32 1.442695, %v5099_v41 }
 0xf04   :  { %v5038_v26 = vpop.xlane.xlu1 %5037 }
 0xf05   :  { %v5508_v4 = vpop.f32.mrf.mxu2  ;;  %v5102_v50 = vsub.f32 %v9918_v38, %v5038_v26  ;;  %v5103_v5 = vsub.f32 %v9921_v44, %v5038_v26 }
 0xf06   :  { %v10017_v33 = vadd.f32 %v5508_v4, %v5419_v39  ;;  %v5422_v51 = vpop.f32.mrf.mxu1 }
 0xf07   :  { %v5226_v8 = vmul.f32 1.442695, %v5102_v50  ;;  %v5228_v36 = vmul.f32 1.442695, %v5103_v5 }
 0xf09   :  { %6781 = vpow2.f32 %v5226_v8 }
 0xf0a   :  { %6783 = vpow2.f32 %v5228_v36 }
 0xf0b   :  { %6785 = vpow2.f32 %v5218_v52 }
 0xf0c   :  { %6787 = vpow2.f32 %v5220_v35 }
 0xf0d   :  { %v5511_v40 = vpop.f32.mrf.mxu2 }
 0xf0e   :  { %v10021_v27 = vadd.f32 %v5511_v40, %v5422_v51  ;;  %v5424_v57 = vpop.f32.mrf.mxu1 }
 0xf0f   :  { %v6782_v38 = vpop.eup %6781 }
 0xf10   :  { %v6784_v44 = vpop.eup %6783 }
 0xf11   :  { %v5035_v0 = vpop.xlane.xlu2 %5034  ;;  %v5324_v1 = vadd.f32 %v6784_v44, %v6782_v38  ;;  %v6786_v26 = vpop.eup %6785 }
 0xf12   :  { %v5100_v25 = vsub.f32 %v9934_v21, %v5035_v0  ;;  %v5101_v39 = vsub.f32 %v9937_v45, %v5035_v0  ;;  %v6788_v50 = vpop.eup %6787 }
 0xf13   :  { %5325 = vadd.xlane.f32.xlu1 %v5324_v1  ;;  %v5318_v8 = vadd.f32 %v6788_v50, %v6786_v26 }
 0xf14   :  { %v5222_v12 = vmul.f32 1.442695, %v5100_v25  ;;  %v5224_v59 = vmul.f32 1.442695, %v5101_v39 }
 0xf15   :  { %v5513_v4 = vpop.f32.mrf.mxu2 }
 0xf16   :  { %6789 = vpow2.f32 %v5222_v12  ;;  %v10025_v5 = vadd.f32 %v5513_v4, %v5424_v57  ;;  %v5427_v51 = vpop.f32.mrf.mxu1 }
 0xf17   :  { %6791 = vpow2.f32 %v5224_v59 }
 0xf19   :  { %v5041_v30 = vpop.xlane.xlu2 %5040 }
 0xf1a   :  { %v5104_v36 = vsub.f32 %v9944_v10, %v5041_v30  ;;  %v5105_v41 = vsub.f32 %v9947_v16, %v5041_v30 }
 0xf1b   :  { %5319 = vadd.xlane.f32.xlu1 %v5318_v8 }
 0xf1c   :  { %v6790_v21 = vpop.eup %6789  ;;  %v5230_v45 = vmul.f32 1.442695, %v5104_v36  ;;  %v5232_v52 = vmul.f32 1.442695, %v5105_v41 }
 0xf1d   :  { %v6792_v35 = vpop.eup %6791  ;;  %v5516_v40 = vpop.f32.mrf.mxu2  ;;  %v5358_v0 = vpack.c.bf16 %v6790_v21, %v6786_v26 }
 0xf1e   :  { %6793 = vpow2.f32 %v5230_v45  ;;  %v10029_v1 = vadd.f32 %v5516_v40, %v5427_v51  ;;  %v5429_v57 = vpop.f32.mrf.mxu1  ;;  %v5359_v25 = vpack.c.bf16 %v6792_v35, %v6788_v50  ;;  %v5321_v39 = vadd.f32 %v6792_v35, %v6790_v21  ;;  %v10663_v21 = vld [vmem:[#allocation78_spill] sm:$0xff] }
 0xf1f   :  { %6795 = vpow2.f32 %v5232_v52  ;;  %5456 = vmatmul.bf16.gmra.mxu1 %v5358_v0 }
 0xf20   :  { %5545 = vmatmul.bf16.gmra.mxu2 %v5359_v25  ;;  %5322 = vadd.xlane.f32.xlu0 %v5321_v39 }
 0xf23   :  { %5280 = vadd.xlane.f32.xlu1 %v9865_v17 }
 0xf24   :  { %v6794_v10 = vpop.eup %6793 }
 0xf25   :  { %v6796_v16 = vpop.eup %6795  ;;  %v5518_v12 = vpop.f32.mrf.mxu2  ;;  %v5360_v50 = vpack.c.bf16 %v6794_v10, %v6782_v38 }
 0xf26   :  { %v10032_v59 = vadd.f32 %v5518_v12, %v5429_v57  ;;  %v5432_v4 = vpop.f32.mrf.mxu1  ;;  %v5327_v30 = vadd.f32 %v6796_v16, %v6794_v10  ;;  %v5361_v8 = vpack.c.bf16 %v6796_v16, %v6784_v44  ;;  %v10661_v44 = vld [vmem:[#allocation9_spill] sm:$0xff] }
 0xf28   :  { %5313 = vadd.xlane.f32.xlu0 %v10000_v28  ;;  %5328 = vadd.xlane.f32.xlu2 %v5327_v30 }
 0xf2b   :  { %5271 = vadd.xlane.f32.xlu1 %v9825_v2 }
 0xf2d   :  { %v5521_v26 = vpop.f32.mrf.mxu2 }
 0xf2e   :  { %v10036_v51 = vadd.f32 %v5521_v26, %v5432_v4  ;;  %v5434_v36 = vpop.f32.mrf.mxu1 }
 0xf2f   :  { %5461 = vmatmul.bf16.gmra.mxu1 %v5360_v50 }
 0xf30   :  { %5274 = vadd.xlane.f32.xlu0 %v9841_v29  ;;  %5550 = vmatmul.bf16.gmra.mxu2 %v5361_v8 }
 0xf31   :  { %5277 = vadd.xlane.f32.xlu2 %v9851_v19 }
 0xf33   :  { %5310 = vadd.xlane.f32.xlu1 %v9996_v32 }
 0xf35   :  { %v5523_v17 = vpop.f32.mrf.mxu2 }
 0xf36   :  { %v10041_v41 = vadd.f32 %v5523_v17, %v5434_v36  ;;  %v5437_v2 = vpop.f32.mrf.mxu1 }
 0xf38   :  { %5265 = vadd.xlane.f32.xlu0 %v9827_v60 }
 0xf39   :  { %5316 = vadd.xlane.f32.xlu2 %v10002_v7 }
 0xf3b   :  { %5301 = vadd.xlane.f32.xlu1 %v9984_v48 }
 0xf3d   :  { %v5526_v28 = vpop.f32.mrf.mxu2 }
 0xf3e   :  { %v10046_v38 = vadd.f32 %v5526_v28, %v5437_v2  ;;  %v5439_v29 = vpop.f32.mrf.mxu1  ;;  %v10091_v28 = vld [vmem:[%s10206_s4 + $0x3] ss:$0 sm:$0xff] }
 0xf40   :  { %5304 = vadd.xlane.f32.xlu0 %v9994_v20 }
 0xf41   :  { %5307 = vadd.xlane.f32.xlu2 %v9976_v46 }
 0xf43   :  { %5262 = vadd.xlane.f32.xlu1 %v9721_v9 }
 0xf45   :  { %v5528_v19 = vpop.f32.mrf.mxu2 }
 0xf46   :  { %v10051_v32 = vadd.f32 %v5528_v19, %v5439_v29 }
 0xf48   :  { %5295 = vadd.xlane.f32.xlu0 %v9869_v13  ;;  %v10658_v13 = vld [vmem:[#allocation11_spill] sm:$0xff] }
 0xf49   :  { %5268 = vadd.xlane.f32.xlu2 %v9735_v61  ;;  %v5442_v60 = vpop.f32.mrf.mxu1 }
 0xf4b   :  { %5253 = vadd.xlane.f32.xlu1 %v9713_v53 }
 0xf50   :  { %v5531_v48 = vpop.f32.mrf.mxu2  ;;  %5256 = vadd.xlane.f32.xlu0 %v9703_v15 }
 0xf51   :  { %v10057_v7 = vadd.f32 %v5531_v48, %v5442_v60  ;;  %5259 = vadd.xlane.f32.xlu2 %v9695_v42  ;;  %v5444_v9 = vpop.f32.mrf.mxu1  ;;  %v10659_v42 = vld [vmem:[#allocation10_spill] sm:$0xff] }
 0xf53   :  { %5292 = vadd.xlane.f32.xlu1 %v9897_v31  ;;  %v10660_v31 = vld [vmem:[#allocation77_spill] sm:$0xff] }
 0xf58   :  { %v5533_v46 = vpop.f32.mrf.mxu2  ;;  %5247 = vadd.xlane.f32.xlu0 %v9680_v47  ;;  %v10662_v47 = vld [vmem:[#allocation75_spill] sm:$0xff] }
 0xf59   :  { %v10062_v20 = vadd.f32 %v5533_v46, %v5444_v9  ;;  %5298 = vadd.xlane.f32.xlu2 %v9915_v55  ;;  %v5447_v53 = vpop.f32.mrf.mxu1 }
 0xf5b   :  { %5283 = vadd.xlane.f32.xlu1 %v9845_v11 }
 0xf60   :  { %v5536_v61 = vpop.f32.mrf.mxu2  ;;  %5286 = vadd.xlane.f32.xlu0 %v9875_v43 }
 0xf61   :  { %v10067_v15 = vadd.f32 %v5536_v61, %v5447_v53  ;;  %5289 = vadd.xlane.f32.xlu2 %v10658_v13  ;;  %v10075_v55 = vpop.f32.mrf.mxu1 }
 0xf63   :  { %5244 = vadd.xlane.f32.xlu1 %v10659_v42 }
 0xf68   :  { %5235 = vadd.xlane.f32.xlu0 %v10660_v31  ;;  %v10077_v11 = vpop.f32.mrf.mxu2 }
 0xf69   :  { %5250 = vadd.xlane.f32.xlu2 %v10661_v44  ;;  %v10079_v43 = vpop.f32.mrf.mxu1 }
 0xf70   :  { %v10081_v35 = vpop.f32.mrf.mxu2 }
 0xf71   :  { %5241 = vadd.xlane.f32.xlu2 %v10662_v47  ;;  %v10083_v0 = vpop.f32.mrf.mxu1 }
 0xf78   :  { %v10085_v25 = vpop.f32.mrf.mxu2 }
 0xf79   :  { %5238 = vadd.xlane.f32.xlu2 %v10663_v21 }
 0xf86   :  { %v5326_v45 = vpop.xlane.xlu1 %5325 }
 0xf8e   :  { %v5320_v52 = vpop.xlane.xlu1 %5319 }
 0xf93   :  { %v5323_v40 = vpop.xlane.xlu0 %5322 }
 0xf96   :  { %v5281_v57 = vpop.xlane.xlu1 %5280 }
 0xf97   :  { %6797 = vrcp.f32 %v5281_v57 }
 0xf9b   :  { %v5314_v39 = vpop.xlane.xlu0 %5313  ;;  %v5329_v10 = vpop.xlane.xlu2 %5328 }
 0xf9c   :  { %v5457_v16 = vpop.f32.mrf.mxu1 }
 0xf9d   :  { %v6798_v26 = vpop.eup %6797 }
 0xf9e   :  { %v5272_v12 = vpop.xlane.xlu1 %5271  ;;  %v5603_v29 = vmul.f32 %v6798_v26, %v10025_v5 }
 0xf9f   :  { %6799 = vrcp.f32 %v5272_v12 }
 0xfa0   :  { %v5637_v61 = vadd.f32 %v10091_v28, %v5603_v29 }
 0xfa3   :  { %v5546_v4 = vpop.f32.mrf.mxu2  ;;  %v5275_v30 = vpop.xlane.xlu0 %5274 }
 0xfa4   :  { %6801 = vrcp.f32 %v5275_v30  ;;  %v5278_v50 = vpop.xlane.xlu2 %5277  ;;  %v5459_v36 = vpop.f32.mrf.mxu1 }
 0xfa5   :  { %v6800_v8 = vpop.eup %6799  ;;  %6803 = vrcp.f32 %v5278_v50 }
 0xfa6   :  { %v5311_v17 = vpop.xlane.xlu1 %5310  ;;  %v5600_v2 = vmul.f32 %v6800_v8, %v10013_v62 }
 0xfa8   :  { %v5634_v53 = vadd.f32 %v10091_v28, %v5600_v2 }
 0xfaa   :  { %v6802_v19 = vpop.eup %6801  ;;  %v5666_v5 = vmax.f32 %v5634_v53, 0.0 }
 0xfab   :  { %v6804_v60 = vpop.eup %6803  ;;  %v5601_v48 = vmul.f32 %v6802_v19, %v10017_v33  ;;  %v5548_v9 = vpop.f32.mrf.mxu2  ;;  %v5669_v33 = vmax.f32 %v5637_v61, 0.0 }
 0xfac   :  { %v5266_v46 = vpop.xlane.xlu0 %5265  ;;  %v5602_v13 = vmul.f32 %v6804_v60, %v10021_v27  ;;  %v5317_v62 = vpop.xlane.xlu2 %5316  ;;  %v5549_v2 = vadd.f32 %v5548_v9, %v5459_v36 }
 0xfad   :  { %v5635_v42 = vadd.f32 %v10091_v28, %v5601_v48  ;;  %v5462_v21 = vpop.f32.mrf.mxu1 }
 0xfae   :  { %v5636_v31 = vadd.f32 %v10091_v28, %v5602_v13  ;;  %v5302_v44 = vpop.xlane.xlu1 %5301 }
 0xfaf   :  { %6805 = vrcp.f32 %v5302_v44  ;;  %v5667_v47 = vmax.f32 %v5635_v42, 0.0 }
 0xfb0   :  { %v5668_v57 = vmax.f32 %v5636_v31, 0.0  ;;  %6807 = vrcp.f32 %v5326_v45 }
 0xfb1   :  { %v5693_v12 = vpack.c.bf16 %v5667_v47, %v5666_v5  ;;  %6809 = vrcp.f32 %v5320_v52 }
 0xfb2   :  { %v5694_v30 = vpack.c.bf16 %v5669_v33, %v5668_v57  ;;  %6811 = vrcp.f32 %v5323_v40  ;;  %v5547_v40 = vadd.f32 %v5546_v4, %v5457_v16  ;;  %v5544_v16 = vadd.f32 %v10085_v25, %v10083_v0 }
 0xfb3   :  { %v5551_v50 = vpop.f32.mrf.mxu2 }
 0xfb4   :  { %v5305_v26 = vpop.xlane.xlu0 %5304  ;;  %5710 = vmatpush.bf16.msrb.mxu0 %v5694_v30  ;;  %v5308_v27 = vpop.xlane.xlu2 %5307  ;;  %v5552_v29 = vadd.f32 %v5551_v50, %v5462_v21  ;;  %v5542_v50 = vadd.f32 %v10081_v35, %v10079_v43 }
 0xfb5   :  { %6813 = vrcp.f32 %v5305_v26  ;;  %v6806_v8 = vpop.eup %6805  ;;  %v5464_v42 = vpop.f32.mrf.mxu1 }
 0xfb6   :  { %6815 = vrcp.f32 %v5329_v10  ;;  %v5263_v19 = vpop.xlane.xlu1 %5262  ;;  %v6808_v60 = vpop.eup %6807  ;;  %v5610_v48 = vmul.f32 %v6806_v8, %v10057_v7 }
 0xfb7   :  { %6817 = vrcp.f32 %v5266_v46  ;;  %v6810_v45 = vpop.eup %6809  ;;  %v5618_v13 = vmul.f32 %v6808_v60, %v5552_v29  ;;  %v5539_v29 = vadd.f32 %v10077_v11, %v10075_v55 }
 0xfb8   :  { %6819 = vrcp.f32 %v5317_v62  ;;  %5711 = vmatpush.bf16.msrb.mxu0 %v5693_v12  ;;  %v6812_v52 = vpop.eup %6811  ;;  %v5644_v46 = vadd.f32 %v10091_v28, %v5610_v48  ;;  %v5616_v47 = vmul.f32 %v6810_v45, %v5547_v40 }
 0xfb9   :  { %6821 = vrcp.f32 %v5314_v39  ;;  %v5617_v61 = vmul.f32 %v6812_v52, %v5549_v2 }
 0xfba   :  { %6823 = vrcp.f32 %v5308_v27  ;;  %v5650_v0 = vadd.f32 %v10091_v28, %v5616_v47  ;;  %v5494_v47 = vadd.f32 %v9998_v37, %v9992_v18 }
 0xfbb   :  { %v6814_v53 = vpop.eup %6813  ;;  %v5553_v9 = vpop.f32.mrf.mxu2  ;;  %6825 = vrcp.f32 %v5311_v17  ;;  %v5651_v4 = vadd.f32 %v10091_v28, %v5617_v61  ;;  %v5676_v17 = vmax.f32 %v5644_v46, 0.0 }
 0xfbc   :  { %v6816_v31 = vpop.eup %6815  ;;  %v5611_v10 = vmul.f32 %v6814_v53, %v10062_v20  ;;  %v5296_v36 = vpop.xlane.xlu0 %5295  ;;  %v5554_v7 = vadd.f32 %v5553_v9, %v5464_v42  ;;  %v5652_v20 = vadd.f32 %v10091_v28, %v5618_v13  ;;  %v5682_v55 = vmax.f32 %v5650_v0, 0.0 }
 0xfbd   :  { %v6818_v62 = vpop.eup %6817  ;;  %v5269_v44 = vpop.xlane.xlu2 %5268  ;;  %v5683_v45 = vmax.f32 %v5651_v4, 0.0 }
 0xfbe   :  { %v6820_v5 = vpop.eup %6819  ;;  %6827 = vrcp.f32 %v5269_v44  ;;  %v5645_v39 = vadd.f32 %v10091_v28, %v5611_v10  ;;  %v5619_v21 = vmul.f32 %v6816_v31, %v5554_v7  ;;  %v5254_v57 = vpop.xlane.xlu1 %5253  ;;  %v5598_v12 = vmul.f32 %v6818_v62, %v10009_v54 }
 0xfbf   :  { %v6822_v33 = vpop.eup %6821  ;;  %6829 = vrcp.f32 %v5263_v19  ;;  %v5615_v27 = vmul.f32 %v6820_v5, %v5544_v16  ;;  %v5684_v54 = vmax.f32 %v5652_v20, 0.0  ;;  %v5701_v9 = vpack.c.bf16 %v5683_v45, %v5682_v55 }
 0xfc0   :  { %v5677_v30 = vmax.f32 %v5645_v39, 0.0  ;;  %v6824_v26 = vpop.eup %6823  ;;  %v5653_v8 = vadd.f32 %v10091_v28, %v5619_v21  ;;  %v5614_v60 = vmul.f32 %v6822_v33, %v5542_v50  ;;  %6831 = vrcp.f32 %v5254_v57 }
 0xfc1   :  { %v6826_v2 = vpop.eup %6825  ;;  %v5612_v52 = vmul.f32 %v6824_v26, %v10067_v15  ;;  %v5632_v35 = vadd.f32 %v10091_v28, %v5598_v12  ;;  %v5649_v13 = vadd.f32 %v10091_v28, %v5615_v27 }
 0xfc2   :  { %v10113_v25 = vpack.c.bf16 %v5677_v30, %v5676_v17  ;;  %v5685_v19 = vmax.f32 %v5653_v8, 0.0  ;;  %v5613_v11 = vmul.f32 %v6826_v2, %v5539_v29  ;;  %v5648_v15 = vadd.f32 %v10091_v28, %v5614_v60 }
 0xfc3   :  { %v5646_v46 = vadd.f32 %v10091_v28, %v5612_v52  ;;  %v5664_v62 = vmax.f32 %v5632_v35, 0.0  ;;  %v5681_v44 = vmax.f32 %v5649_v13, 0.0 }
 0xfc4   :  { %v6828_v48 = vpop.eup %6827  ;;  %v5257_v43 = vpop.xlane.xlu0 %5256  ;;  %v5702_v40 = vpack.c.bf16 %v5685_v19, %v5684_v54  ;;  %v5647_v39 = vadd.f32 %v10091_v28, %v5613_v11  ;;  %v5680_v20 = vmax.f32 %v5648_v15, 0.0 }
 0xfc5   :  { %v5599_v53 = vmul.f32 %v6828_v48, %v10011_v23  ;;  %6833 = vrcp.f32 %v5257_v43  ;;  %v5260_v61 = vpop.xlane.xlu2 %5259  ;;  %v6830_v42 = vpop.eup %6829  ;;  %v5678_v33 = vmax.f32 %v5646_v46, 0.0 }
 0xfc6   :  { %6835 = vrcp.f32 %v5260_v61  ;;  %5723 = vmatpush.bf16.msrb.mxu3 %v5702_v40  ;;  %v5293_v31 = vpop.xlane.xlu1 %5292  ;;  %v5597_v23 = vmul.f32 %v6830_v42, %v10007_v34  ;;  %v6832_v5 = vpop.eup %6831  ;;  %v5700_v30 = vpack.c.bf16 %v5681_v44, %v5680_v20  ;;  %v5679_v37 = vmax.f32 %v5647_v39, 0.0 }
 0xfc7   :  { %v5633_v10 = vadd.f32 %v10091_v28, %v5599_v53  ;;  %6837 = vrcp.f32 %v5296_v36  ;;  %v5594_v12 = vmul.f32 %v6832_v5, %v9990_v3 }
 0xfc8   :  { %v5631_v26 = vadd.f32 %v10091_v28, %v5597_v23  ;;  %v5699_v0 = vpack.c.bf16 %v5679_v37, %v5678_v33 }
 0xfc9   :  { %v5665_v7 = vmax.f32 %v5633_v10, 0.0  ;;  %v5628_v29 = vadd.f32 %v10091_v28, %v5594_v12 }
 0xfca   :  { %5724 = vmatpush.bf16.msrb.mxu3 %v5701_v9  ;;  %v5663_v2 = vmax.f32 %v5631_v26, 0.0 }
 0xfcb   :  { %v6834_v16 = vpop.eup %6833  ;;  %v5692_v4 = vpack.c.bf16 %v5665_v7, %v5664_v62  ;;  %v5660_v35 = vmax.f32 %v5628_v29, 0.0 }
 0xfcc   :  { %v6836_v21 = vpop.eup %6835  ;;  %v5595_v36 = vmul.f32 %v6834_v16, %v5494_v47  ;;  %v5248_v57 = vpop.xlane.xlu0 %5247 }
 0xfcd   :  { %v5596_v34 = vmul.f32 %v6836_v21, %v10005_v58  ;;  %5712 = vmatpush.bf16.msrb.mxu0 %v5692_v4  ;;  %v5299_v17 = vpop.xlane.xlu2 %5298  ;;  %v6838_v18 = vpop.eup %6837  ;;  %v5489_v4 = vadd.f32 %v9982_v24, %v9973_v14 }
 0xfce   :  { %6839 = vrcp.f32 %v5299_v17  ;;  %5725 = vmatpush.bf16.msrb.mxu3 %v5700_v30  ;;  %v5284_v50 = vpop.xlane.xlu1 %5283  ;;  %v5629_v8 = vadd.f32 %v10091_v28, %v5595_v36  ;;  %v5608_v3 = vmul.f32 %v6838_v18, %v10046_v38 }
 0xfcf   :  { %6841 = vrcp.f32 %v5293_v31  ;;  %v5630_v27 = vadd.f32 %v10091_v28, %v5596_v34 }
 0xfd0   :  { %6843 = vrcp.f32 %v5284_v50  ;;  %v5661_v54 = vmax.f32 %v5629_v8, 0.0  ;;  %v5642_v40 = vadd.f32 %v10091_v28, %v5608_v3 }
 0xfd1   :  { %v5662_v58 = vmax.f32 %v5630_v27, 0.0 }
 0xfd2   :  { %5726 = vmatpush.bf16.msrb.mxu3 %v5699_v0  ;;  %v5690_v38 = vpack.c.bf16 %v5661_v54, %v5660_v35 }
 0xfd3   :  { %v5691_v60 = vpack.c.bf16 %v5663_v2, %v5662_v58 }
 0xfd4   :  { %v6840_v19 = vpop.eup %6839  ;;  %v5287_v48 = vpop.xlane.xlu0 %5286 }
 0xfd5   :  { %v6842_v45 = vpop.eup %6841  ;;  %v5609_v52 = vmul.f32 %v6840_v19, %v10051_v32  ;;  %6845 = vrcp.f32 %v5287_v48  ;;  %5713 = vmatpush.bf16.msrb.mxu0 %v5691_v60  ;;  %v5290_v43 = vpop.xlane.xlu2 %5289  ;;  %v5674_v32 = vmax.f32 %v5642_v40, 0.0  ;;  %v6070_v40 = vld [vmem:[%s10208_s6 + $0x20] sm:$0xff] }
 0xfd6   :  { %v6844_v53 = vpop.eup %6843  ;;  %6847 = vrcp.f32 %v5290_v43  ;;  %5727 = vmatpush.bf16.msrb.mxu3 %v10113_v25  ;;  %v5607_v42 = vmul.f32 %v6842_v45, %v10041_v41  ;;  %v5245_v46 = vpop.xlane.xlu1 %5244  ;;  %v6073_v43 = vld [vmem:[%s10208_s6 + $0x38] sm:$0xff] }
 0xfd7   :  { %v5643_v61 = vadd.f32 %v10091_v28, %v5609_v52  ;;  %6849 = vrcp.f32 %v5248_v57  ;;  %v5604_v13 = vmul.f32 %v6844_v53, %v10029_v1  ;;  %v6069_v53 = vld [vmem:[%s10208_s6 + $0x18] sm:$0xff] }
 0xfd8   :  { %v5641_v62 = vadd.f32 %v10091_v28, %v5607_v42  ;;  %v6075_v42 = vld [vmem:[%s10210_s8 + $0x8] sm:$0xff] }
 0xfd9   :  { %5714 = vmatpush.bf16.msrb.mxu0 %v5690_v38  ;;  %v5675_v55 = vmax.f32 %v5643_v61, 0.0  ;;  %v5638_v9 = vadd.f32 %v10091_v28, %v5604_v13  ;;  %v6068_v38 = vld [vmem:[%s10208_s6 + $0x10] sm:$0xff]  ;;  %v6067_v61 = vld [vmem:[%s10208_s6 + $0x8] sm:$0xff]  ;;  %v6066_v13 = vld [vmem:[%s10208_s6] sm:$0xff] }
 0xfda   :  { %v5673_v39 = vmax.f32 %v5641_v62, 0.0 }
 0xfdb   :  { %v6846_v11 = vpop.eup %6845  ;;  %v5697_v31 = vpack.c.bf16 %v5675_v55, %v5674_v32  ;;  %v5670_v44 = vmax.f32 %v5638_v9, 0.0  ;;  %v6074_v9 = vld [vmem:[%s10210_s8] sm:$0xff] }
 0xfdc   :  { %v6848_v10 = vpop.eup %6847  ;;  %v5605_v15 = vmul.f32 %v6846_v11, %v10032_v59  ;;  %v5236_v57 = vpop.xlane.xlu0 %5235 }
 0xfdd   :  { %v5606_v25 = vmul.f32 %v6848_v10, %v10036_v51  ;;  %5728 = vmatpush.bf16.msrb.mxu3 %v5697_v31  ;;  %v5251_v23 = vpop.xlane.xlu2 %5250  ;;  %v6850_v1 = vpop.eup %6849  ;;  %v5686_v51 = vld [vmem:[%s10207_s5] sm:$0xff] }
 0xfde   :  { %6851 = vrcp.f32 %v5251_v23  ;;  %v5639_v41 = vadd.f32 %v10091_v28, %v5605_v15  ;;  %v5592_v59 = vmul.f32 %v6850_v1, %v9971_v56  ;;  %v5705_v36 = vunpack.c.h.b16 %v5686_v51 }
 0xfdf   :  { %v5640_v7 = vadd.f32 %v10091_v28, %v5606_v25  ;;  %6853 = vrcp.f32 %v5245_v46  ;;  %v5704_v48 = vunpack.c.l.b16 %v5686_v51  ;;  %v6091_v25 = vld [vmem:[%s10209_s7] ss:$0 sm:$0xff] }
 0xfe0   :  { %v5671_v5 = vmax.f32 %v5639_v41, 0.0  ;;  %v5626_v34 = vadd.f32 %v10091_v28, %v5592_v59  ;;  %v5707_v30 = vpack.c.b16 %v5705_v36, %v5705_v36 }
 0xfe1   :  { %v5672_v47 = vmax.f32 %v5640_v7, 0.0  ;;  %v6092_v7 = vld [vmem:[%s10211_s9] ss:$0 sm:$0xff] }
 0xfe2   :  { %v5695_v16 = vpack.c.bf16 %v5671_v5, %v5670_v44  ;;  %v5658_v18 = vmax.f32 %v5626_v34, 0.0 }
 0xfe3   :  { %v5696_v20 = vpack.c.bf16 %v5673_v39, %v5672_v47 }
 0xfe4   :  { %v6852_v21 = vpop.eup %6851 }
 0xfe5   :  { %v5593_v33 = vmul.f32 %v6852_v21, %v5489_v4  ;;  %5729 = vmatpush.bf16.msrb.mxu3 %v5696_v20  ;;  %v5242_v12 = vpop.xlane.xlu2 %5241  ;;  %v6854_v56 = vpop.eup %6853 }
 0xfe6   :  { %6855 = vrcp.f32 %v5242_v12  ;;  %v5591_v26 = vmul.f32 %v6854_v56, %v9961_v63 }
 0xfe7   :  { %v5627_v17 = vadd.f32 %v10091_v28, %v5593_v33  ;;  %6857 = vrcp.f32 %v5236_v57 }
 0xfe8   :  { %v5625_v8 = vadd.f32 %v10091_v28, %v5591_v26 }
 0xfe9   :  { %5730 = vmatpush.bf16.msrb.mxu3 %v5695_v16  ;;  %v5659_v14 = vmax.f32 %v5627_v17, 0.0 }
 0xfea   :  { %v5657_v63 = vmax.f32 %v5625_v8, 0.0 }
 0xfeb   :  { %v5689_v24 = vpack.c.bf16 %v5659_v14, %v5658_v18 }
 0xfec   :  { %v6856_v37 = vpop.eup %6855  ;;  %5731 = vmatmul.bf16.vlgmr.msrb.gmra.mxu3 %v5707_v30 }
 0xfed   :  { %v5590_v50 = vmul.f32 %v6856_v37, %v9957_v6  ;;  %5715 = vmatpush.bf16.msrb.mxu0 %v5689_v24  ;;  %v5239_v27 = vpop.xlane.xlu2 %5238  ;;  %v6858_v0 = vpop.eup %6857  ;;  %5850 = vmatpush.bf16.msra.mxu3 %v6075_v42 }
 0xfee   :  { %6859 = vrcp.f32 %v5239_v27  ;;  %v5588_v58 = vmul.f32 %v6858_v0, %v9939_v49  ;;  %v5706_v49 = vpack.c.b16 %v5704_v48, %v5704_v48 }
 0xfef   :  { %v5624_v3 = vadd.f32 %v10091_v28, %v5590_v50 }
 0xff0   :  { %v5622_v19 = vadd.f32 %v10091_v28, %v5588_v58 }
 0xff1   :  { %v5656_v2 = vmax.f32 %v5624_v3, 0.0  ;;  %5851 = vmatpush.bf16.msra.mxu3 %v6074_v9 }
 0xff2   :  { %v5654_v45 = vmax.f32 %v5622_v19, 0.0 }
 0xff3   :  { %v5688_v29 = vpack.c.bf16 %v5657_v63, %v5656_v2 }
 0xff4   :  { %v6860_v60 = vpop.eup %6859 }
 0xff5   :  { %v5589_v54 = vmul.f32 %v6860_v60, %v9949_v22  ;;  %5716 = vmatpush.bf16.msrb.mxu0 %v5688_v29  ;;  %v6072_v22 = vld [vmem:[%s10208_s6 + $0x30] sm:$0xff] }
 0xff7   :  { %v5623_v6 = vadd.f32 %v10091_v28, %v5589_v54  ;;  %v6071_v28 = vld [vmem:[%s10208_s6 + $0x28] sm:$0xff] }
 0xff9   :  { %v5655_v52 = vmax.f32 %v5623_v6, 0.0 }
 0xffb   :  { %v5687_v35 = vpack.c.bf16 %v5655_v52, %v5654_v45 }
 0xffd   :  { %5717 = vmatpush.bf16.msrb.mxu0 %v5687_v35 }
0x1000   :  { %5718 = vmatmul.bf16.vlgmr.msrb.gmra.mxu0 %v5706_v49 }
0x1001   :  { %5805 = vmatpush.bf16.msra.mxu0 %v6073_v43 }
0x1005   :  { %5806 = vmatpush.bf16.msra.mxu0 %v6072_v22 }
0x1009   :  { %5807 = vmatpush.bf16.msra.mxu0 %v6071_v28 }
0x100d   :  { %5808 = vmatpush.bf16.msra.mxu0 %v6070_v40 }
0x1011   :  { %5809 = vmatpush.bf16.msra.mxu0 %v6069_v53 }
0x1015   :  { %5810 = vmatpush.bf16.msra.mxu0 %v6068_v38 }
0x1019   :  { %5811 = vmatpush.bf16.msra.mxu0 %v6067_v61 }
0x101d   :  { %5812 = vmatpush.bf16.msra.mxu0 %v6066_v13 }
0x106f   :  { %v5732_v32 = vpop.f32.mrf.mxu3 }
0x1077   :  { %v5734_v55 = vpop.f32.mrf.mxu3 }
0x107d   :  { %v5719_v11 = vpop.f32.mrf.mxu0 }
0x107e   :  { %v5733_v31 = vadd.f32 %v5732_v32, %v5719_v11 }
0x1080   :  { %v5736_v10 = vpack.c.bf16 %v5733_v31, %v5733_v31 }
0x1082   :  { %5813 = vmatmul.bf16.vlgmr.msra.gmra.mxu0 %v5736_v10 }
0x1085   :  { %v5721_v15 = vpop.f32.mrf.mxu0 }
0x10ff   :  { %v5814_v46 = vpop.f32.mrf.mxu0 }
0x1100   :  { %v5815_v23 = vadd.f32 %v6091_v25, %v5814_v46 }
0x1102   :  { %v5818_v62 = vmax.f32 %v5815_v23, 0.0 }
0x1104   :  { %v5819_v1 = vpack.c.bf16 %v5818_v62, %v5818_v62 }
0x1106   :  { %6033 = vmatmul.msk.bf16.vlgmr.msra.gmra.mxu3 %vm5840_vm0, %v5819_v1 }
0x1107   :  { %v5816_v41 = vpop.f32.mrf.mxu0 }
0x1189   :  { %v5853_v44 = vpop.f32.mrf.mxu3 }
0x118a   :  { %v5854_v5 = vadd.f32 %v6092_v7, %v5853_v44 }
0x118c   :  { %5858 = vst.msk [vmem:[%s10212_s10] sm:$0xff] %vm5857_vm1, %v5854_v5 }
0x1191   :  { %v5855_v59 = vpop.f32.mrf.mxu3 }
0x1192   :  { %5863 = vsyncpa [#allocation3], 1 }
0x1193   :  { %5864 = vsyncpa [#allocation5], 1 }

</bundles_post_ra>
